<compile_context>
chip_gen: v7x
topology: tpu7x:2x2x1
jax: 0.10.0
libtpu: 0.0.40
codegen_flags: <defaults>
</compile_context>

<pallas_src>
import functools
import math

import jax
import jax.numpy as jnp
from jax import lax
from jax.experimental import pallas as pl
from jax.experimental.pallas import tpu as pltpu


def _grad_bn_kernel(x_ref, km_ref, gamma_ref, beta_ref, out_ref, *,
                    B, V, NN, M, eps):
    """One grid program per channel chunk.

    x_ref:     (Ct, B*V)  int8  -- nonzero occupancy, lane u = b*V + v
    km_ref:    (NN, V)    int32 -- packed key ((v+1)*M + |r|^2) where voxel v
                                   falls in angular bin n, 0 elsewhere.
                                   Channel- and batch-invariant.
    gamma_ref: (Ct, 1)    f32   -- BatchNorm weight
    beta_ref:  (Ct, 1)    f32   -- BatchNorm bias
    out_ref:   (Ct, B*NN) f32   -- normalized gradients, lane t = b*NN + bin
    """
    nz = x_ref[...] != 0                                      # (Ct, B*V) bool
    km = km_ref[...]                                          # (NN, V)   i32

    # Static unroll over (small) batch: last-write-wins winner per (chan, bin).
    gs = []
    s1 = 0.0
    s2 = 0.0
    for b in range(B):
        nz_b = nz[:, b * V:(b + 1) * V]                       # (Ct, V)
        scores = jnp.where(nz_b[:, None, :], km[None, :, :], 0)   # (Ct, NN, V)
        win = jnp.max(scores, axis=-1)                        # (Ct, NN) i32
        g = jnp.sqrt((win % M).astype(jnp.float32))           # (Ct, NN) f32
        gs.append(g)
        s1 = s1 + jnp.sum(g, axis=-1, keepdims=True)          # (Ct, 1)
        s2 = s2 + jnp.sum(g * g, axis=-1, keepdims=True)      # (Ct, 1)

    # BatchNorm2d (training mode): per-channel stats over (B, N, N).
    cnt = float(B * NN)
    mean = s1 / cnt
    var = jnp.maximum(s2 / cnt - mean * mean, 0.0)
    scale = gamma_ref[...] * lax.rsqrt(var + eps)             # (Ct, 1)
    shift = beta_ref[...] - mean * scale                      # (Ct, 1)
    for b in range(B):
        out_ref[:, b * NN:(b + 1) * NN] = gs[b] * scale + shift


def gradient_input_layer(x, *, L, N, num_channels, gamma, beta, eps=1e-5,
                         channels_per_block=None):
    """JAX/Pallas equivalent of GradientInputLayer.forward.

    x: anything reshapeable to (B, num_channels, L, L, L).
    Returns (B, num_channels, N, N) float32.
    """
    B = x.shape[0]
    C = num_channels
    V = L * L * L
    NN = N * N
    bin_size = 360 // N

    # Packed-key modulus: strictly greater than any squared magnitude.
    M = 3 * (L - 1) ** 2 + 1
    assert (V + 1) * M < 2 ** 31, "packed last-write-wins key overflows int32"

    # --- glue: lane-dense int8 occupancy, channel-major: (C, B*V), u = b*V+v.
    x_i8 = jnp.transpose(x.reshape(B, C, V) != 0, (1, 0, 2)).astype(jnp.int8)
    x_i8 = x_i8.reshape(C, B * V)

    # --- glue: channel/batch-invariant keyed (bin, voxel) match table (NN, V).
    v = jnp.arange(V, dtype=jnp.int32)
    ii = v // (L * L)
    jj = (v // L) % L
    kk = v % L
    sq = ii * ii + jj * jj + kk * kk                          # |r|^2, exact int
    fi = ii.astype(jnp.float32)
    fj = jj.astype(jnp.float32)
    fk = kk.astype(jnp.float32)
    x_comp = jnp.sqrt(fj * fj + fk * fk)
    z_comp = jnp.sqrt(fj * fj + fi * fi)
    ax = (jnp.arctan2(x_comp, fi) * 180.0 / math.pi / bin_size).astype(jnp.int32)
    az = (jnp.arctan2(fk, z_comp) * 180.0 / math.pi / bin_size).astype(jnp.int32)
    bin_id = ax * N + az                                      # (V,) flat bin
    pack_key = (v + 1) * M + sq                               # (V,) int32
    n_ids = jnp.arange(NN, dtype=jnp.int32)
    kmatch = jnp.where(n_ids[:, None] == bin_id[None, :],
                       pack_key[None, :], 0).astype(jnp.int32)   # (NN, V)

    gamma2 = jnp.asarray(gamma, jnp.float32).reshape(C, 1)
    beta2 = jnp.asarray(beta, jnp.float32).reshape(C, 1)

    # Channel chunking: default = all channels in one grid step (the per-channel
    # work is tiny).  If overridden, cpb must be C or a multiple of 8.
    cpb = C if channels_per_block is None else channels_per_block
    assert C % cpb == 0 and (cpb == C or cpb % 8 == 0)

    kernel = functools.partial(_grad_bn_kernel, B=B, V=V, NN=NN, M=M, eps=eps)
    out = pl.pallas_call(
        kernel,
        out_shape=jax.ShapeDtypeStruct((C, B * NN), jnp.float32),
        grid=(C // cpb,),
        in_specs=[
            pl.BlockSpec((cpb, B * V), lambda c: (c, 0)),      # x occupancy
            pl.BlockSpec((NN, V), lambda c: (0, 0)),           # constant table
            pl.BlockSpec((cpb, 1), lambda c: (c, 0)),          # gamma
            pl.BlockSpec((cpb, 1), lambda c: (c, 0)),          # beta
        ],
        out_specs=pl.BlockSpec((cpb, B * NN), lambda c: (c, 0)),  # lane-dense out
        compiler_params=pltpu.CompilerParams(
            dimension_semantics=("parallel",)),
    )(x_i8, kmatch, gamma2, beta2)

    # (C, B*N*N) -> (B, C, N, N)
    return jnp.transpose(out.reshape(C, B, N, N), (1, 0, 2, 3))


if __name__ == "__main__":
    # Small shapes consistent with the module: L=4 lattice, N=8 gradient bins,
    # 4 channels, batch 2.
    B, C, L, N = 2, 4, 4, 8
    key = jax.random.PRNGKey(0)
    # Syndrome in BSF: sparse binary occupancy over (B, C, L, L, L).
    x = (jax.random.uniform(key, (B, C, L, L, L)) < 0.2).astype(jnp.float32)

    # Deterministic BatchNorm2d parameters (nn.BatchNorm2d init: weight=1, bias=0).
    gamma = jnp.ones((C,), jnp.float32)
    beta = jnp.zeros((C,), jnp.float32)

    out = gradient_input_layer(x, L=L, N=N, num_channels=C, gamma=gamma, beta=beta)
    out = jax.block_until_ready(out)
    assert out.shape == (B, C, N, N), out.shape
    assert out.dtype == jnp.float32
    assert bool(jnp.all(jnp.isfinite(out)))
    print("KERNEL_OK")
</pallas_src>

<mosaic_0001>
module attributes {stable_mosaic.version = 11 : i64} {
  func.func @_grad_bn_kernel(%arg0: i32, %arg1: memref<4x128xi8, #tpu.memory_space<vmem>>, %arg2: memref<64x64xi32, #tpu.memory_space<vmem>>, %arg3: memref<4x1xf32, #tpu.memory_space<vmem>>, %arg4: memref<4x1xf32, #tpu.memory_space<vmem>>, %arg5: memref<4x128xf32, #tpu.memory_space<vmem>>) attributes {dimension_semantics = [#tpu.dimension_semantics<parallel>], iteration_bounds = array<i64: 1>, scalar_prefetch = 0 : i64, scratch_operands = 0 : i64, tpu.core_type = #tpu.core_type<tc>, window_params = [{transform_indices = @transform_0, window_bounds = array<i64: 4, 128>}, {pipeline_mode = #tpu.pipeline_mode<synchronous>, transform_indices = @transform_1, window_bounds = array<i64: 64, 64>}, {transform_indices = @transform_2, window_bounds = array<i64: 4, 1>}, {transform_indices = @transform_3, window_bounds = array<i64: 4, 1>}, {transform_indices = @transform_4, window_bounds = array<i64: 4, 128>}]} {
    %c0 = arith.constant 0 : index
    %c0_0 = arith.constant 0 : index
    %0 = vector.load %arg1[%c0, %c0_0] : memref<4x128xi8, #tpu.memory_space<vmem>>, vector<4x128xi8>
    %c0_i8 = arith.constant 0 : i8
    %1 = vector.broadcast %c0_i8 : i8 to vector<4x128xi8>
    %2 = arith.cmpi ne, %0, %1 : vector<4x128xi8>
    %c0_1 = arith.constant 0 : index
    %c0_2 = arith.constant 0 : index
    %3 = vector.load %arg2[%c0_1, %c0_2] : memref<64x64xi32, #tpu.memory_space<vmem>>, vector<64x64xi32>
    %4 = vector.extract_strided_slice %2 {offsets = [0, 0], sizes = [4, 64], strides = [1, 1]} : vector<4x128xi1> to vector<4x64xi1>
    %5 = vector.shape_cast %4 : vector<4x64xi1> to vector<4x1x64xi1>
    %6 = vector.shape_cast %3 : vector<64x64xi32> to vector<1x64x64xi32>
    %c0_i32 = arith.constant 0 : i32
    %7 = vector.shape_cast %5 : vector<4x1x64xi1> to vector<4x1x64xi1>
    %8 = vector.broadcast %7 : vector<4x1x64xi1> to vector<4x64x64xi1>
    %9 = vector.shape_cast %6 : vector<1x64x64xi32> to vector<1x64x64xi32>
    %10 = vector.broadcast %9 : vector<1x64x64xi32> to vector<4x64x64xi32>
    %11 = vector.broadcast %c0_i32 : i32 to vector<4x64x64xi32>
    %12 = arith.select %8, %10, %11 : vector<4x64x64xi1>, vector<4x64x64xi32>
    %cst = arith.constant dense<-2147483648> : vector<4x64xi32>
    %13 = vector.multi_reduction <maxsi>, %12, %cst [2] : vector<4x64x64xi32> to vector<4x64xi32>
    %c28_i32 = arith.constant 28 : i32
    %c0_i32_3 = arith.constant 0 : i32
    %14 = arith.cmpi eq, %c28_i32, %c0_i32_3 : i32
    %c1_i32 = arith.constant 1 : i32
    %15 = arith.select %14, %c1_i32, %c28_i32 : i32
    %16 = vector.broadcast %15 : i32 to vector<4x64xi32>
    %17 = arith.remsi %13, %16 : vector<4x64xi32>
    %c0_i32_4 = arith.constant 0 : i32
    %18 = vector.broadcast %c0_i32_4 : i32 to vector<4x64xi32>
    %19 = arith.cmpi ne, %17, %18 : vector<4x64xi32>
    %c0_i32_5 = arith.constant 0 : i32
    %20 = vector.broadcast %c0_i32_5 : i32 to vector<4x64xi32>
    %21 = arith.cmpi slt, %17, %20 : vector<4x64xi32>
    %c0_i32_6 = arith.constant 0 : i32
    %22 = arith.cmpi slt, %15, %c0_i32_6 : i32
    %23 = vector.broadcast %22 : i1 to vector<4x64xi1>
    %24 = vector.broadcast %23 : vector<4x64xi1> to vector<4x64xi1>
    %25 = arith.xori %21, %24 : vector<4x64xi1>
    %26 = arith.andi %25, %19 : vector<4x64xi1>
    %27 = vector.broadcast %15 : i32 to vector<4x64xi32>
    %28 = arith.addi %17, %27 : vector<4x64xi32>
    %29 = arith.select %26, %28, %17 : vector<4x64xi1>, vector<4x64xi32>
    %30 = arith.sitofp %29 : vector<4x64xi32> to vector<4x64xf32>
    %31 = math.sqrt %30 : vector<4x64xf32>
    %cst_7 = arith.constant dense<0.000000e+00> : vector<4xf32>
    %32 = vector.multi_reduction <add>, %31, %cst_7 [1] : vector<4x64xf32> to vector<4xf32>
    %33 = vector.shape_cast %32 : vector<4xf32> to vector<4x1xf32>
    %cst_8 = arith.constant 0.000000e+00 : f32
    %34 = vector.broadcast %cst_8 : f32 to vector<4x1xf32>
    %35 = arith.addf %34, %33 : vector<4x1xf32>
    %36 = arith.mulf %31, %31 : vector<4x64xf32>
    %cst_9 = arith.constant dense<0.000000e+00> : vector<4xf32>
    %37 = vector.multi_reduction <add>, %36, %cst_9 [1] : vector<4x64xf32> to vector<4xf32>
    %38 = vector.shape_cast %37 : vector<4xf32> to vector<4x1xf32>
    %cst_10 = arith.constant 0.000000e+00 : f32
    %39 = vector.broadcast %cst_10 : f32 to vector<4x1xf32>
    %40 = arith.addf %39, %38 : vector<4x1xf32>
    %41 = vector.extract_strided_slice %2 {offsets = [0, 64], sizes = [4, 64], strides = [1, 1]} : vector<4x128xi1> to vector<4x64xi1>
    %42 = vector.shape_cast %41 : vector<4x64xi1> to vector<4x1x64xi1>
    %43 = vector.shape_cast %3 : vector<64x64xi32> to vector<1x64x64xi32>
    %c0_i32_11 = arith.constant 0 : i32
    %44 = vector.shape_cast %42 : vector<4x1x64xi1> to vector<4x1x64xi1>
    %45 = vector.broadcast %44 : vector<4x1x64xi1> to vector<4x64x64xi1>
    %46 = vector.shape_cast %43 : vector<1x64x64xi32> to vector<1x64x64xi32>
    %47 = vector.broadcast %46 : vector<1x64x64xi32> to vector<4x64x64xi32>
    %48 = vector.broadcast %c0_i32_11 : i32 to vector<4x64x64xi32>
    %49 = arith.select %45, %47, %48 : vector<4x64x64xi1>, vector<4x64x64xi32>
    %cst_12 = arith.constant dense<-2147483648> : vector<4x64xi32>
    %50 = vector.multi_reduction <maxsi>, %49, %cst_12 [2] : vector<4x64x64xi32> to vector<4x64xi32>
    %c28_i32_13 = arith.constant 28 : i32
    %c0_i32_14 = arith.constant 0 : i32
    %51 = arith.cmpi eq, %c28_i32_13, %c0_i32_14 : i32
    %c1_i32_15 = arith.constant 1 : i32
    %52 = arith.select %51, %c1_i32_15, %c28_i32_13 : i32
    %53 = vector.broadcast %52 : i32 to vector<4x64xi32>
    %54 = arith.remsi %50, %53 : vector<4x64xi32>
    %c0_i32_16 = arith.constant 0 : i32
    %55 = vector.broadcast %c0_i32_16 : i32 to vector<4x64xi32>
    %56 = arith.cmpi ne, %54, %55 : vector<4x64xi32>
    %c0_i32_17 = arith.constant 0 : i32
    %57 = vector.broadcast %c0_i32_17 : i32 to vector<4x64xi32>
    %58 = arith.cmpi slt, %54, %57 : vector<4x64xi32>
    %c0_i32_18 = arith.constant 0 : i32
    %59 = arith.cmpi slt, %52, %c0_i32_18 : i32
    %60 = vector.broadcast %59 : i1 to vector<4x64xi1>
    %61 = vector.broadcast %60 : vector<4x64xi1> to vector<4x64xi1>
    %62 = arith.xori %58, %61 : vector<4x64xi1>
    %63 = arith.andi %62, %56 : vector<4x64xi1>
    %64 = vector.broadcast %52 : i32 to vector<4x64xi32>
    %65 = arith.addi %54, %64 : vector<4x64xi32>
    %66 = arith.select %63, %65, %54 : vector<4x64xi1>, vector<4x64xi32>
    %67 = arith.sitofp %66 : vector<4x64xi32> to vector<4x64xf32>
    %68 = math.sqrt %67 : vector<4x64xf32>
    %cst_19 = arith.constant dense<0.000000e+00> : vector<4xf32>
    %69 = vector.multi_reduction <add>, %68, %cst_19 [1] : vector<4x64xf32> to vector<4xf32>
    %70 = vector.shape_cast %69 : vector<4xf32> to vector<4x1xf32>
    %71 = arith.addf %35, %70 : vector<4x1xf32>
    %72 = arith.mulf %68, %68 : vector<4x64xf32>
    %cst_20 = arith.constant dense<0.000000e+00> : vector<4xf32>
    %73 = vector.multi_reduction <add>, %72, %cst_20 [1] : vector<4x64xf32> to vector<4xf32>
    %74 = vector.shape_cast %73 : vector<4xf32> to vector<4x1xf32>
    %75 = arith.addf %40, %74 : vector<4x1xf32>
    %cst_21 = arith.constant 1.280000e+02 : f32
    %76 = vector.broadcast %cst_21 : f32 to vector<4x1xf32>
    %77 = arith.divf %71, %76 : vector<4x1xf32>
    %cst_22 = arith.constant 1.280000e+02 : f32
    %78 = vector.broadcast %cst_22 : f32 to vector<4x1xf32>
    %79 = arith.divf %75, %78 : vector<4x1xf32>
    %80 = arith.mulf %77, %77 : vector<4x1xf32>
    %81 = arith.subf %79, %80 : vector<4x1xf32>
    %cst_23 = arith.constant 0.000000e+00 : f32
    %82 = vector.broadcast %cst_23 : f32 to vector<4x1xf32>
    %83 = arith.maximumf %81, %82 : vector<4x1xf32>
    %c0_24 = arith.constant 0 : index
    %c0_25 = arith.constant 0 : index
    %84 = vector.load %arg3[%c0_24, %c0_25] : memref<4x1xf32, #tpu.memory_space<vmem>>, vector<4x1xf32>
    %cst_26 = arith.constant 9.99999974E-6 : f32
    %85 = vector.broadcast %cst_26 : f32 to vector<4x1xf32>
    %86 = arith.addf %83, %85 : vector<4x1xf32>
    %87 = math.rsqrt %86 : vector<4x1xf32>
    %88 = arith.mulf %84, %87 : vector<4x1xf32>
    %c0_27 = arith.constant 0 : index
    %c0_28 = arith.constant 0 : index
    %89 = vector.load %arg4[%c0_27, %c0_28] : memref<4x1xf32, #tpu.memory_space<vmem>>, vector<4x1xf32>
    %90 = arith.mulf %77, %88 : vector<4x1xf32>
    %91 = arith.subf %89, %90 : vector<4x1xf32>
    %92 = vector.broadcast %88 : vector<4x1xf32> to vector<4x64xf32>
    %93 = arith.mulf %31, %92 : vector<4x64xf32>
    %94 = vector.broadcast %91 : vector<4x1xf32> to vector<4x64xf32>
    %95 = arith.addf %93, %94 : vector<4x64xf32>
    %c0_29 = arith.constant 0 : index
    %c0_30 = arith.constant 0 : index
    %96 = vector.load %arg5[%c0_29, %c0_30] : memref<4x128xf32, #tpu.memory_space<vmem>>, vector<4x64xf32>
    tpu.vector_store %arg5[%c0_29, %c0_30], %95 {strides = array<i32>} : memref<4x128xf32, #tpu.memory_space<vmem>>, vector<4x64xf32>,
    %97 = vector.broadcast %88 : vector<4x1xf32> to vector<4x64xf32>
    %98 = arith.mulf %68, %97 : vector<4x64xf32>
    %99 = vector.broadcast %91 : vector<4x1xf32> to vector<4x64xf32>
    %100 = arith.addf %98, %99 : vector<4x64xf32>
    %c0_31 = arith.constant 0 : index
    %c64 = arith.constant 64 : index
    %101 = vector.load %arg5[%c0_31, %c64] : memref<4x128xf32, #tpu.memory_space<vmem>>, vector<4x64xf32>
    tpu.vector_store %arg5[%c0_31, %c64], %100 {strides = array<i32>} : memref<4x128xf32, #tpu.memory_space<vmem>>, vector<4x64xf32>,
    return
  }
  func.func @transform_0(%arg0: i32) -> (i32, i32) {
    %c0_i32 = arith.constant 0 : i32
    %c0_i32_0 = arith.constant 0 : i32
    return %arg0, %c0_i32 : i32, i32
  }
  func.func @transform_1(%arg0: i32) -> (i32, i32) {
    %c0_i32 = arith.constant 0 : i32
    %c0_i32_0 = arith.constant 0 : i32
    %c0_i32_1 = arith.constant 0 : i32
    return %c0_i32, %c0_i32_0 : i32, i32
  }
  func.func @transform_2(%arg0: i32) -> (i32, i32) {
    %c0_i32 = arith.constant 0 : i32
    %c0_i32_0 = arith.constant 0 : i32
    return %arg0, %c0_i32 : i32, i32
  }
  func.func @transform_3(%arg0: i32) -> (i32, i32) {
    %c0_i32 = arith.constant 0 : i32
    %c0_i32_0 = arith.constant 0 : i32
    return %arg0, %c0_i32 : i32, i32
  }
  func.func @transform_4(%arg0: i32) -> (i32, i32) {
    %c0_i32 = arith.constant 0 : i32
    %c0_i32_0 = arith.constant 0 : i32
    return %arg0, %c0_i32 : i32, i32
  }
}

</mosaic_0001>

<bundles_post_ra>
// kernel: tpu_custom_call.1
= control target key start
LH: loop header
LB: loop body
LE: loop exit
PB: predicated region body
PF: predicated region fallthrough
CT: control target
= control target key end

     0   :  { %9 = vsyncpa [#allocation3], 0  ;;  %s10106_s0 = inlined_call_operand.vmem [shape: s8[4,128], index: 0, kind: input, shape index: {}]   ;;  %s10107_s1 = inlined_call_operand.hbm [shape: s32[64,64], index: 1, kind: input, shape index: {}]   ;;  %s10108_s2 = inlined_call_operand.vmem [shape: f32[4,1], index: 2, kind: input, shape index: {}]   ;;  %s10109_s3 = inlined_call_operand.vmem [shape: f32[4,1], index: 3, kind: input, shape index: {}]   ;;  %s10110_s4 = inlined_call_operand.hbm [shape: f32[4,128], index: 4, kind: output, shape index: {}]  }
   0x1   :  { %10 = vsyncpa [#allocation4], 0  ;;  %s4955_s15 = smov [#allocation2]   ;;  %s4907_s19 = scalar_lea.hbm %s10107_s1, 1024 }
   0x2   :  { %s18_s16 = sshll.u32 %s4955_s15, 4  ;;  %p4908_p0 = scmp.ne.s32.totalorder %s10107_s1, %s4907_s19  ;;  %s19_s16 = int_to_ptr.vmem [resolvable:$true] %s18_s16 }
   0x3   :  { %p4911_p1 = scmp.lt.u32.totalorder %s4907_s19, %s10107_s1 }
   0x5   :  { %p4913_p2 = pnand %p4911_p1, %p4908_p0 }
   0x7   :  { %4916 = shalt.err (!%p4913_p2)
}
   0x8   :  { %s4917_s24 = scalar_lea.vmem %s19_s16, 1024  ;;  %p4922_p4 = scmp.lt.s32.totalorder %s19_s16, %s19_s16 }
   0x9   :  { %p4918_p3 = scmp.ne.s32.totalorder %s19_s16, %s4917_s24  ;;  %p4923_p5 = scmp.lt.s32.totalorder %s4917_s24, %s4917_s24 }
   0xb   :  { %p4924_p6 = por %p4923_p5, %p4922_p4 }
   0xd   :  { %p4925_p7 = pnand %p4924_p6, %p4918_p3 }
   0xf   :  { %4928 = shalt.err (!%p4925_p7)
}
  0x10   :  { %s4956_s25 = smov 128   ;;  %s4957_s26 = smov 8  }
  0x11   :  { %24 = dma.hbm_to_vmem [thread:$0]  %s10107_s1, 1024, %s19_s16, [#allocation3], %s4956_s25, %s4956_s25, %s4957_s26  }
  0x12   :  { %4951 = dma.done.wait [#allocation3], 1024  }
  0x13   :  { %4952 = vsyncadd [#allocation3], 4294966272  ;;  %v10112_v0 = vmov 0   ;;  %v34_v1 = vld [vmem:[%s10106_s0] sm:$0x1]  ;;  %v10111_v12 = vlaneseq  ;;  %v5014_v29 = vld [vmem:[#allocation2 + $0x8] sm:$0xff] }
  0x14   :  { %4775 = vset.pattern.permute.xlu0 %v10112_v0  ;;  %4776 = vset.pattern.permute.xlu1 %v10112_v0  ;;  %vm35_vm0 = vnez %v34_v1  ;;  %v5021_v33 = vld [vmem:[#allocation2] sm:$0xff]  ;;  %v5023_v34 = vld [vmem:[#allocation2 + $0x10] sm:$0xff]  ;;  %v5025_v35 = vld [vmem:[#allocation2 + $0x18] sm:$0xff]  ;;  %vm154_vm8 = vcmask 523264   ;;  %s4959_s0 = smov 64  }
  0x15   :  { %v44_v2 = vsel %vm35_vm0, 16843009, %v10112_v0  ;;  %v5007_v19 = vshrl.u32 %v10111_v12, 7  ;;  %v5050_v46 = vld [vmem:[#allocation2 + $0x20] sm:$0xff]  ;;  %v5065_v57 = vld [vmem:[#allocation2 + $0x28] sm:$0xff]  ;;  %v5078_v63 = vld [vmem:[#allocation2 + $0x30] sm:$0xff] }
  0x16   :  { %v54_v3 = vpack.c.b16 %v44_v2, %v44_v2  ;;  %v48_v4 = vshrl.u32 %v44_v2, 8  ;;  %v50_v5 = vshrl.u32 %v44_v2, 16  ;;  %v52_v9 = vshrl.u32 %v44_v2, 24 }
  0x17   :  { %10355 = vst [vmem:[#allocation8_spill] sm:$0xff] %v5007_v19  ;;  %v5012_v27 = vsub.s32 0, %v5007_v19 }
  0x18   :  { %v55_v6 = vpack.c.b8 %v54_v3, %v54_v3  ;;  %v56_v7 = vpack.c.b16 %v48_v4, %v48_v4  ;;  %v58_v8 = vpack.c.b16 %v50_v5, %v50_v5  ;;  %v60_v15 = vpack.c.b16 %v52_v9, %v52_v9 }
  0x19   :  { %10356 = vst [vmem:[#allocation9_spill] sm:$0xff] %v5012_v27 }
  0x1a   :  { %vm62_vm1 = vnez %v55_v6  ;;  %v57_v10 = vpack.c.b8 %v56_v7, %v56_v7  ;;  %v59_v14 = vpack.c.b8 %v58_v8, %v58_v8  ;;  %v61_v22 = vpack.c.b8 %v60_v15, %v60_v15  ;;  %v5092_v7 = vld [vmem:[#allocation2 + $0x38] sm:$0xff] }
  0x1b   :  { %v66_v11 = vsel %vm62_vm1, 16843009, %v10112_v0 }
  0x1c   :  { %v70_v13 = vunpack.c.0.s8 %v66_v11  ;;  %vm63_vm2 = vnez %v57_v10  ;;  %vm64_vm3 = vnez %v59_v14  ;;  %vm65_vm5 = vnez %v61_v22 }
  0x1d   :  { %v67_v16 = vsel %vm63_vm2, 16843009, %v10112_v0  ;;  %v68_v25 = vsel %vm64_vm3, 16843009, %v10112_v0  ;;  %v69_v31 = vsel %vm65_vm5, 16843009, %v10112_v0 }
  0x1e   :  { %v74_v17 = vpack.i.b16 %v70_v13, %v70_v13  ;;  %v71_v18 = vunpack.c.0.s8 %v67_v16  ;;  %v72_v28 = vunpack.c.0.s8 %v68_v25  ;;  %v73_v38 = vunpack.c.0.s8 %v69_v31 }
  0x20   :  { %v75_v20 = vpack.i.b8 %v74_v17, %v74_v17  ;;  %v76_v21 = vpack.i.b16 %v71_v18, %v71_v18  ;;  %v78_v37 = vpack.i.b16 %v72_v28, %v72_v28  ;;  %v80_v53 = vpack.i.b16 %v73_v38, %v73_v38 }
  0x22   :  { %vm82_vm4 = vnez %v75_v20  ;;  %v77_v24 = vpack.i.b8 %v76_v21, %v76_v21  ;;  %v79_v52 = vpack.i.b8 %v78_v37, %v78_v37  ;;  %v81_v61 = vpack.i.b8 %v80_v53, %v80_v53 }
  0x23   :  { %v86_v23 = vsel %vm82_vm4, 16843009, %v10112_v0 }
  0x24   :  { %v90_v26 = vunpack.c.0.s8 %v86_v23  ;;  %vm83_vm7 = vnez %v77_v24  ;;  %vm84_vm11 = vnez %v79_v52  ;;  %vm85_vm12 = vnez %v81_v61 }
  0x25   :  { %v87_v36 = vsel %vm83_vm7, 16843009, %v10112_v0  ;;  %v88_v4 = vsel %vm84_vm11, 16843009, %v10112_v0  ;;  %v89_v13 = vsel %vm85_vm12, 16843009, %v10112_v0 }
  0x26   :  { %vm94_vm6 = vcmp.ne.s32.totalorder %v90_v26, 0  ;;  %v91_v51 = vunpack.c.0.s8 %v87_v36  ;;  %v92_v9 = vunpack.c.0.s8 %v88_v4  ;;  %v93_v16 = vunpack.c.0.s8 %v89_v13 }
  0x27   :  { %v98_v30 = vsel %vm94_vm6, 1, %v10112_v0 }
  0x28   :  { %v5019_v32 = vrot.slane %v98_v30, %v5012_v27  ;;  %vm95_vm10 = vcmp.ne.s32.totalorder %v91_v51, 0  ;;  %vm96_vm14 = vcmp.ne.s32.totalorder %v92_v9, 0  ;;  %vm97_vm15 = vcmp.ne.s32.totalorder %v93_v16, 0 }
  0x29   :  { %v99_v3 = vsel %vm95_vm10, 1, %v10112_v0  ;;  %v100_v22 = vsel %vm96_vm14, 1, %v10112_v0  ;;  %v101_v30 = vsel %vm97_vm15, 1, %v10112_v0 }
  0x2a   :  { %vm118_vm9 = vcmp.eq.s32.totalorder %v5019_v32, 1  ;;  %v5095_v8 = vrot.slane %v99_v3, %v5012_v27  ;;  %v5130_v26 = vrot.slane %v100_v22, %v5012_v27 }
  0x2b   :  { %v123_v39 = vsel %vm118_vm9, %v5014_v29, 0  ;;  %v122_v40 = vsel %vm118_vm9, %v5021_v33, 0  ;;  %v124_v41 = vsel %vm118_vm9, %v5023_v34, 0  ;;  %v125_v42 = vsel %vm118_vm9, %v5025_v35, 0 }
  0x2c   :  { %v5042_v43 = vsel %vm154_vm8, %v123_v39, 2147483648  ;;  %v5045_v44 = vsel %vm154_vm8, %v122_v40, 2147483648  ;;  %v5048_v45 = vsel %vm154_vm8, %v124_v41, 2147483648  ;;  %v5056_v50 = vsel %vm154_vm8, %v125_v42, 2147483648 }
  0x2d   :  { %v172_v47 = vshra.s32 %v5042_v43, 16  ;;  %v157_v48 = vshra.s32 %v5045_v44, 16  ;;  %v187_v49 = vshra.s32 %v5048_v45, 16  ;;  %v126_v56 = vsel %vm118_vm9, %v5050_v46, 0 }
  0x2e   :  { %v202_v59 = vshra.s32 %v5056_v50, 16  ;;  %v5073_v60 = vsel %vm154_vm8, %v126_v56, 2147483648  ;;  %v127_v62 = vsel %vm118_vm9, %v5065_v57, 0  ;;  %v128_v6 = vsel %vm118_vm9, %v5078_v63, 0 }
  0x2f   :  { %v5058_v54 = vcvt.s32.f32 %v172_v47  ;;  %v5060_v55 = vcvt.s32.f32 %v157_v48  ;;  %v5069_v58 = vcvt.s32.f32 %v187_v49  ;;  %v217_v2 = vshra.s32 %v5073_v60, 16 }
  0x30   :  { %v5081_v1 = vcvt.s32.f32 %v202_v59  ;;  %v5087_v5 = vsel %vm154_vm8, %v127_v62, 2147483648  ;;  %v5103_v14 = vsel %vm154_vm8, %v128_v6, 2147483648  ;;  %v129_v15 = vsel %vm118_vm9, %v5092_v7, 0 }
  0x31   :  { %175 = vmax.xlane.f32.xlu1 %v5058_v54  ;;  %160 = vmax.xlane.f32.xlu0 %v5060_v55  ;;  %v5098_v10 = vcvt.s32.f32 %v217_v2  ;;  %v232_v11 = vshra.s32 %v5087_v5, 16  ;;  %vm119_vm13 = vcmp.eq.s32.totalorder %v5095_v8, 1  ;;  %v247_v18 = vshra.s32 %v5103_v14, 16 }
  0x32   :  { %v5114_v20 = vsel %vm154_vm8, %v129_v15, 2147483648  ;;  %v130_v21 = vsel %vm119_vm13, %v5021_v33, 0  ;;  %v131_v28 = vsel %vm119_vm13, %v5014_v29, 0  ;;  %v132_v38 = vsel %vm119_vm13, %v5023_v34, 0 }
  0x33   :  { %v5110_v17 = vcvt.s32.f32 %v232_v11  ;;  %v5121_v23 = vcvt.s32.f32 %v247_v18  ;;  %v262_v24 = vshra.s32 %v5114_v20, 16  ;;  %v5125_v25 = vsel %vm154_vm8, %v130_v21, 2147483648 }
  0x34   :  { %v277_v36 = vshra.s32 %v5125_v25, 16  ;;  %v5141_v37 = vsel %vm154_vm8, %v131_v28, 2147483648  ;;  %v5156_v41 = vsel %vm154_vm8, %v132_v38, 2147483648  ;;  %v133_v42 = vsel %vm119_vm13, %v5025_v35, 0 }
  0x35   :  { %190 = vmax.xlane.f32.xlu0 %v5069_v58  ;;  %v5137_v31 = vcvt.s32.f32 %v262_v24  ;;  %v292_v40 = vshra.s32 %v5141_v37, 16  ;;  %v307_v48 = vshra.s32 %v5156_v41, 16  ;;  %v5168_v49 = vsel %vm154_vm8, %v133_v42, 2147483648 }
  0x36   :  { %v5152_v39 = vcvt.s32.f32 %v277_v36  ;;  %v134_v51 = vsel %vm119_vm13, %v5050_v46, 0  ;;  %v322_v53 = vshra.s32 %v5168_v49, 16  ;;  %v135_v59 = vsel %vm119_vm13, %v5065_v57, 0 }
  0x37   :  { %v5164_v47 = vcvt.s32.f32 %v292_v40  ;;  %v5174_v52 = vcvt.s32.f32 %v307_v48  ;;  %v5178_v56 = vsel %vm154_vm8, %v134_v51, 2147483648  ;;  %v5188_v2 = vsel %vm154_vm8, %v135_v59, 2147483648 }
  0x38   :  { %10357 = vst [vmem:[#allocation10_spill] sm:$0xff] %v5178_v56  ;;  %v5184_v61 = vcvt.s32.f32 %v322_v53  ;;  %v337_v62 = vshra.s32 %v5178_v56, 16  ;;  %10359 = vst [vmem:[#allocation12_spill] sm:$0xff] %v5188_v2  ;;  %v136_v3 = vsel %vm119_vm13, %v5078_v63, 0  ;;  %v352_v6 = vshra.s32 %v5188_v2, 16 }
  0x39   :  { %205 = vmax.xlane.f32.xlu0 %v5081_v1  ;;  %v5198_v9 = vsel %vm154_vm8, %v136_v3, 2147483648  ;;  %v137_v24 = vsel %vm119_vm13, %v5092_v7, 0  ;;  %vm120_vm1 = vcmp.eq.s32.totalorder %v5130_v26, 1 }
  0x3a   :  { %10358 = vst [vmem:[#allocation11_spill] sm:$0xff] %v5184_v61  ;;  %v5194_v4 = vcvt.s32.f32 %v337_v62  ;;  %10361 = vst [vmem:[#allocation14_spill] sm:$0xff] %v5198_v9  ;;  %v5201_v11 = vcvt.s32.f32 %v352_v6  ;;  %v367_v13 = vshra.s32 %v5198_v9, 16  ;;  %v5226_v28 = vsel %vm154_vm8, %v137_v24, 2147483648 }
  0x3b   :  { %v382_v36 = vshra.s32 %v5226_v28, 16  ;;  %v139_v40 = vsel %vm120_vm1, %v5014_v29, 0  ;;  %v140_v51 = vsel %vm120_vm1, %v5023_v34, 0  ;;  %v141_v3 = vsel %vm120_vm1, %v5025_v35, 0 }
  0x3c   :  { %10360 = vst [vmem:[#allocation13_spill] sm:$0xff] %v5194_v4  ;;  %10362 = vst [vmem:[#allocation15_spill] sm:$0xff] %v5201_v11  ;;  %v5209_v16 = vcvt.s32.f32 %v367_v13  ;;  %v5242_v48 = vsel %vm154_vm8, %v139_v40, 2147483648  ;;  %v5252_v62 = vsel %vm154_vm8, %v140_v51, 2147483648  ;;  %v143_v40 = vsel %vm120_vm1, %v5065_v57, 0 }
  0x3d   :  { %220 = vmax.xlane.f32.xlu0 %v5098_v10  ;;  %10367 = vst [vmem:[#allocation20_spill] sm:$0xff] %v5242_v48  ;;  %v412_v59 = vshra.s32 %v5242_v48, 16  ;;  %10369 = vst [vmem:[#allocation22_spill] sm:$0xff] %v5252_v62  ;;  %v427_v13 = vshra.s32 %v5252_v62, 16 }
  0x3e   :  { %10363 = vst [vmem:[#allocation16_spill] sm:$0xff] %v5209_v16 }
  0x3f   :  { %v5258_v6 = vcvt.s32.f32 %v412_v59  ;;  %v5268_v24 = vcvt.s32.f32 %v427_v13  ;;  %v5282_v59 = vsel %vm154_vm8, %v143_v40, 2147483648 }
  0x40   :  { %10375 = vst [vmem:[#allocation28_spill] sm:$0xff] %v5282_v59 }
  0x41   :  { %235 = vmax.xlane.f32.xlu0 %v5110_v17  ;;  %10370 = vst [vmem:[#allocation23_spill] sm:$0xff] %v5258_v6  ;;  %10372 = vst [vmem:[#allocation25_spill] sm:$0xff] %v5268_v24 }
  0x42   :  { %1943 = vrot.lane.b32.xlu1 %v5019_v32, %s4959_s0  ;;  %v5146_v32 = vrot.slane %v101_v30, %v5012_v27  ;;  %v138_v30 = vsel %vm120_vm1, %v5021_v33, 0 }
  0x43   :  { %v5233_v38 = vsel %vm154_vm8, %v138_v30, 2147483648 }
  0x44   :  { %vm121_vm0 = vcmp.eq.s32.totalorder %v5146_v32, 1  ;;  %10366 = vst [vmem:[#allocation19_spill] sm:$0xff] %v5233_v38  ;;  %v397_v42 = vshra.s32 %v5233_v38, 16 }
  0x45   :  { %250 = vmax.xlane.f32.xlu0 %v5121_v23  ;;  %v147_v15 = vsel %vm121_vm0, %v5014_v29, 0 }
  0x46   :  { %1947 = vrot.lane.b32.xlu1 %v5130_v26, %s4959_s0  ;;  %v5212_v18 = vsel %vm154_vm8, %v147_v15, 2147483648  ;;  %v5248_v53 = vcvt.s32.f32 %v397_v42  ;;  %v5262_v15 = vsel %vm154_vm8, %v141_v3, 2147483648  ;;  %v144_v3 = vsel %vm120_vm1, %v5078_v63, 0 }
  0x47   :  { %10364 = vst [vmem:[#allocation17_spill] sm:$0xff] %v5212_v18  ;;  %v532_v21 = vshra.s32 %v5212_v18, 16  ;;  %10371 = vst [vmem:[#allocation24_spill] sm:$0xff] %v5262_v15  ;;  %v442_v30 = vshra.s32 %v5262_v15, 16  ;;  %v5292_v12 = vsel %vm154_vm8, %v144_v3, 2147483648 }
  0x48   :  { %10368 = vst [vmem:[#allocation21_spill] sm:$0xff] %v5248_v53  ;;  %10377 = vst [vmem:[#allocation30_spill] sm:$0xff] %v5292_v12  ;;  %v487_v0 = vshra.s32 %v5292_v12, 16 }
  0x49   :  { %265 = vmax.xlane.f32.xlu0 %v5137_v31  ;;  %v5216_v22 = vcvt.s32.f32 %v532_v21  ;;  %v142_v21 = vsel %vm120_vm1, %v5050_v46, 0  ;;  %v5278_v42 = vcvt.s32.f32 %v442_v30  ;;  %v145_v30 = vsel %vm120_vm1, %v5092_v7, 0 }
  0x4a   :  { %1949 = vrot.lane.b32.xlu1 %v5146_v32, %s4959_s0  ;;  %v5302_v19 = vsel %vm154_vm8, %v145_v30, 2147483648  ;;  %v5308_v3 = vcvt.s32.f32 %v487_v0 }
  0x4b   :  { %10365 = vst [vmem:[#allocation18_spill] sm:$0xff] %v5216_v22  ;;  %10374 = vst [vmem:[#allocation27_spill] sm:$0xff] %v5278_v42  ;;  %v502_v26 = vshra.s32 %v5302_v19, 16 }
  0x4c   :  { %10379 = vst [vmem:[#allocation32_spill] sm:$0xff] %v5302_v19  ;;  %10380 = vst [vmem:[#allocation33_spill] sm:$0xff] %v5308_v3 }
  0x4d   :  { %280 = vmax.xlane.f32.xlu0 %v5152_v39 }
  0x51   :  { %295 = vmax.xlane.f32.xlu0 %v5164_v47 }
  0x55   :  { %310 = vmax.xlane.f32.xlu0 %v5174_v52 }
  0x59   :  { %325 = vmax.xlane.f32.xlu0 %v5184_v61 }
  0x5d   :  { %340 = vmax.xlane.f32.xlu0 %v5194_v4 }
  0x61   :  { %355 = vmax.xlane.f32.xlu0 %v5201_v11 }
  0x65   :  { %370 = vmax.xlane.f32.xlu0 %v5209_v16 }
  0x6e   :  { %535 = vmax.xlane.f32.xlu1 %v5216_v22 }
  0x7b   :  { %1945 = vrot.lane.b32.xlu0 %v5095_v8, %s4959_s0  ;;  %v5238_v8 = vcvt.s32.f32 %v382_v36  ;;  %v5272_v36 = vsel %vm154_vm8, %v142_v21, 2147483648  ;;  %v472_v21 = vshra.s32 %v5282_v59, 16 }
  0x7c   :  { %10373 = vst [vmem:[#allocation26_spill] sm:$0xff] %v5272_v36  ;;  %v457_v51 = vshra.s32 %v5272_v36, 16 }
  0x7d   :  { %v5298_v40 = vcvt.s32.f32 %v472_v21  ;;  %v5315_v21 = vcvt.s32.f32 %v502_v26 }
  0x7e   :  { %v5288_v13 = vcvt.s32.f32 %v457_v51  ;;  %v146_v51 = vsel %vm121_vm0, %v5021_v33, 0 }
  0x7f   :  { %10378 = vst [vmem:[#allocation31_spill] sm:$0xff] %v5298_v40  ;;  %v5312_v22 = vsel %vm154_vm8, %v146_v51, 2147483648  ;;  %10382 = vst [vmem:[#allocation35_spill] sm:$0xff] %v5315_v21  ;;  %v10384_v51 = vmov 0  }
  0x80   :  { %10376 = vst [vmem:[#allocation29_spill] sm:$0xff] %v5288_v13  ;;  %10381 = vst [vmem:[#allocation34_spill] sm:$0xff] %v5312_v22  ;;  %v517_v30 = vshra.s32 %v5312_v22, 16 }
  0x82   :  { %v5319_v18 = vcvt.s32.f32 %v517_v30 }
  0x84   :  { %10383 = vst [vmem:[#allocation36_spill] sm:$0xff] %v5319_v18 }
  0x9a   :  { %385 = vmax.xlane.f32.xlu0 %v5238_v8 }
  0x9e   :  { %400 = vmax.xlane.f32.xlu0 %v5248_v53 }
  0xa2   :  { %415 = vmax.xlane.f32.xlu0 %v5258_v6 }
  0xa6   :  { %430 = vmax.xlane.f32.xlu0 %v5268_v24 }
  0xaa   :  { %445 = vmax.xlane.f32.xlu0 %v5278_v42 }
  0xae   :  { %460 = vmax.xlane.f32.xlu0 %v5288_v13 }
  0xb2   :  { %475 = vmax.xlane.f32.xlu0 %v5298_v40 }
  0xb6   :  { %490 = vmax.xlane.f32.xlu0 %v5308_v3 }
  0xba   :  { %505 = vmax.xlane.f32.xlu0 %v5315_v21 }
  0xbe   :  { %v5321_v12 = vpop.xlane.xlu1 %175  ;;  %v5323_v40 = vpop.xlane.xlu0 %160  ;;  %520 = vmax.xlane.f32.xlu0 %v5319_v18 }
  0xbf   :  { %vm162_vm11 = vcmp.eq.f32.partialorder %v5060_v55, %v5323_v40  ;;  %vm177_vm12 = vcmp.eq.f32.partialorder %v5058_v54, %v5321_v12  ;;  %v216_v55 = vand.u32 65535, %v5073_v60  ;;  %v231_v60 = vand.u32 65535, %v5087_v5 }
  0xc1   :  { %v233_v5 = vcvt.s32.f32 %v231_v60 }
  0xc2   :  { %v1944_v0 = vpop.permute.xlu1 %1943  ;;  %v5326_v19 = vpop.xlane.xlu0 %190 }
  0xc3   :  { %vm1951_vm2 = vcmp.ne.s32.totalorder %v1944_v0, 0  ;;  %vm192_vm13 = vcmp.eq.f32.partialorder %v5069_v58, %v5326_v19 }
  0xc4   :  { %v1955_v3 = vsel %vm1951_vm2, 1, %v10384_v51 }
  0xc5   :  { %v1962_v26 = vrot.slane %v1955_v3, %v5012_v27 }
  0xc6   :  { %v5330_v13 = vpop.xlane.xlu0 %205  ;;  %v1948_v53 = vpop.permute.xlu1 %1947 }
  0xc7   :  { %vm5332_vm3 = vcmp.eq.s32.totalorder %v1962_v26, 1  ;;  %vm1953_vm4 = vcmp.ne.s32.totalorder %v1948_v53, 0  ;;  %vm207_vm14 = vcmp.eq.f32.partialorder %v5081_v1, %v5330_v13 }
  0xc8   :  { %v1980_v30 = vsel %vm5332_vm3, %v5014_v29, 0  ;;  %v1979_v59 = vsel %vm5332_vm3, %v5021_v33, 0  ;;  %v1981_v0 = vsel %vm5332_vm3, %v5023_v34, 0 }
  0xc9   :  { %v5346_v3 = vsel %vm154_vm8, %v1980_v30, 2147483648  ;;  %v5349_v26 = vsel %vm154_vm8, %v1979_v59, 2147483648  ;;  %v5352_v42 = vsel %vm154_vm8, %v1981_v0, 2147483648 }
  0xca   :  { %10387 = vst [vmem:[#allocation37_spill] sm:$0xff] %v5346_v3  ;;  %10388 = vst [vmem:[#allocation38_spill] sm:$0xff] %v5349_v26  ;;  %v5354_v36 = vpop.xlane.xlu0 %220  ;;  %v2028_v24 = vshra.s32 %v5346_v3, 16  ;;  %v2013_v15 = vshra.s32 %v5349_v26, 16  ;;  %v2043_v6 = vshra.s32 %v5352_v42, 16  ;;  %v1950_v22 = vpop.permute.xlu1 %1949 }
  0xcb   :  { %10389 = vst [vmem:[#allocation39_spill] sm:$0xff] %v5352_v42  ;;  %vm1954_vm7 = vcmp.ne.s32.totalorder %v1950_v22, 0  ;;  %vm222_vm15 = vcmp.eq.f32.partialorder %v5098_v10, %v5354_v36 }
  0xcc   :  { %v5359_v18 = vcvt.s32.f32 %v2028_v24  ;;  %v5361_v62 = vcvt.s32.f32 %v2013_v15  ;;  %v5367_v59 = vcvt.s32.f32 %v2043_v6 }
  0xce   :  { %10390 = vst [vmem:[#allocation40_spill] sm:$0xff] %v5359_v18  ;;  %10391 = vst [vmem:[#allocation41_spill] sm:$0xff] %v5361_v62  ;;  %v5363_v30 = vpop.xlane.xlu0 %235  ;;  %2031 = vmax.xlane.f32.xlu1 %v5359_v18  ;;  %2016 = vmax.xlane.f32.xlu0 %v5361_v62  ;;  %v1957_v62 = vsel %vm1953_vm4, 1, %v10384_v51 }
  0xcf   :  { %10392 = vst [vmem:[#allocation42_spill] sm:$0xff] %v5367_v59  ;;  %vm237_vm2 = vcmp.eq.f32.partialorder %v5110_v17, %v5363_v30 }
  0xd2   :  { %v5369_v0 = vpop.xlane.xlu0 %250  ;;  %2046 = vmax.xlane.f32.xlu0 %v5367_v59  ;;  %v1970_v59 = vrot.slane %v1957_v62, %v5012_v27  ;;  %v1958_v62 = vsel %vm1954_vm7, 1, %v10384_v51 }
  0xd3   :  { %v1974_v9 = vrot.slane %v1958_v62, %v5012_v27  ;;  %vm252_vm4 = vcmp.eq.f32.partialorder %v5121_v23, %v5369_v0 }
  0xd4   :  { %vm5390_vm5 = vcmp.eq.s32.totalorder %v1970_v59, 1 }
  0xd5   :  { %v1995_v53 = vsel %vm5390_vm5, %v5021_v33, 0  ;;  %vm5443_vm10 = vcmp.eq.s32.totalorder %v1974_v9, 1  ;;  %v1997_v9 = vsel %vm5390_vm5, %v5023_v34, 0  ;;  %v1998_v54 = vsel %vm5390_vm5, %v5025_v35, 0 }
  0xd6   :  { %v5372_v3 = vpop.xlane.xlu0 %265  ;;  %v5405_v59 = vsel %vm154_vm8, %v1995_v53, 2147483648  ;;  %v2001_v21 = vsel %vm5390_vm5, %v5078_v63, 0 }
  0xd7   :  { %v2253_v61 = vshra.s32 %v5405_v59, 16 }
  0xda   :  { %v5374_v26 = vpop.xlane.xlu0 %280 }
  0xdb   :  { %vm282_vm7 = vcmp.eq.f32.partialorder %v5152_v39, %v5374_v26  ;;  %v306_v39 = vand.u32 65535, %v5156_v41 }
  0xde   :  { %v5376_v24 = vpop.xlane.xlu0 %295 }
  0xe2   :  { %v5378_v15 = vpop.xlane.xlu0 %310 }
  0xe6   :  { %v5380_v42 = vpop.xlane.xlu0 %325 }
  0xe7   :  { %10393 = vst [vmem:[#allocation43_spill] sm:$0xff] %v5380_v42  ;;  %v1982_v42 = vsel %vm5332_vm3, %v5025_v35, 0 }
  0xea   :  { %v5382_v18 = vpop.xlane.xlu0 %340 }
  0xeb   :  { %10394 = vst [vmem:[#allocation44_spill] sm:$0xff] %v5382_v18 }
  0xee   :  { %v5384_v6 = vpop.xlane.xlu0 %355 }
  0xef   :  { %10395 = vst [vmem:[#allocation45_spill] sm:$0xff] %v5384_v6 }
  0xf2   :  { %v5388_v48 = vpop.xlane.xlu0 %370 }
  0xf3   :  { %10396 = vst [vmem:[#allocation46_spill] sm:$0xff] %v5388_v48  ;;  %v1986_v48 = vsel %vm5332_vm3, %v5092_v7, 0 }
  0xf6   :  { %v1946_v38 = vpop.permute.xlu0 %1945 }
  0xf7   :  { %vm1952_vm6 = vcmp.ne.s32.totalorder %v1946_v38, 0 }
  0xf8   :  { %v1956_v11 = vsel %vm1952_vm6, 1, %v10384_v51  ;;  %vm267_vm6 = vcmp.eq.f32.partialorder %v5137_v31, %v5372_v3  ;;  %v2000_v31 = vsel %vm5390_vm5, %v5065_v57, 0 }
  0xf9   :  { %v1966_v6 = vrot.slane %v1956_v11, %v5012_v27  ;;  %v5448_v27 = vsel %vm154_vm8, %v1982_v42, 2147483648 }
  0xfa   :  { %v2058_v42 = vshra.s32 %v5448_v27, 16 }
  0xfb   :  { %vm5400_vm9 = vcmp.eq.s32.totalorder %v1966_v6, 1  ;;  %v1996_v6 = vsel %vm5390_vm5, %v5014_v29, 0 }
  0xfc   :  { %v1988_v22 = vsel %vm5400_vm9, %v5014_v29, 0  ;;  %v1987_v38 = vsel %vm5400_vm9, %v5021_v33, 0  ;;  %v1989_v11 = vsel %vm5400_vm9, %v5023_v34, 0 }
  0xfd   :  { %v5420_v51 = vsel %vm154_vm8, %v1988_v22, 2147483648  ;;  %v5423_v53 = vsel %vm154_vm8, %v1987_v38, 2147483648  ;;  %v5427_v4 = vsel %vm154_vm8, %v1989_v11, 2147483648  ;;  %v5436_v22 = vsel %vm154_vm8, %v1996_v6, 2147483648 }
  0xfe   :  { %10401 = vst [vmem:[#allocation47_spill] sm:$0xff] %v5420_v51  ;;  %10402 = vst [vmem:[#allocation48_spill] sm:$0xff] %v5423_v53  ;;  %v2148_v18 = vshra.s32 %v5420_v51, 16  ;;  %v2133_v2 = vshra.s32 %v5423_v53, 16  ;;  %v2163_v62 = vshra.s32 %v5427_v4, 16  ;;  %v5452_v51 = vcvt.s32.f32 %v2253_v61 }
  0xff   :  { %10403 = vst [vmem:[#allocation49_spill] sm:$0xff] %v5427_v4  ;;  %10404 = vst [vmem:[#allocation50_spill] sm:$0xff] %v5436_v22  ;;  %v2004_v61 = vsel %vm5443_vm10, %v5014_v29, 0  ;;  %v5474_v4 = vsel %vm154_vm8, %v1997_v9, 2147483648  ;;  %v148_v9 = vsel %vm121_vm0, %v5023_v34, 0 }
 0x100   :  { %v5438_v38 = vcvt.s32.f32 %v2148_v18  ;;  %v5440_v56 = vcvt.s32.f32 %v2133_v2  ;;  %10409 = vst [vmem:[#allocation53_spill] sm:$0xff] %v5452_v51  ;;  %v2268_v18 = vshra.s32 %v5436_v22, 16  ;;  %v1990_v2 = vsel %vm5400_vm9, %v5025_v35, 0 }
 0x101   :  { %v5461_v6 = vcvt.s32.f32 %v2163_v62  ;;  %v5486_v22 = vcvt.s32.f32 %v2058_v42  ;;  %v1983_v42 = vsel %vm5332_vm3, %v5050_v46, 0 }
 0x102   :  { %10405 = vst [vmem:[#allocation51_spill] sm:$0xff] %v5438_v38  ;;  %10406 = vst [vmem:[#allocation52_spill] sm:$0xff] %v5440_v56  ;;  %2151 = vmax.xlane.f32.xlu1 %v5438_v38  ;;  %2136 = vmax.xlane.f32.xlu0 %v5440_v56  ;;  %v2003_v38 = vsel %vm5443_vm10, %v5021_v33, 0  ;;  %v5471_v56 = vsel %vm154_vm8, %v1990_v2, 2147483648  ;;  %v5478_v62 = vcvt.s32.f32 %v2268_v18  ;;  %v5484_v33 = vsel %vm154_vm8, %v2004_v61, 2147483648 }
 0x103   :  { %10410 = vst [vmem:[#allocation54_spill] sm:$0xff] %v5461_v6  ;;  %10411 = vst [vmem:[#allocation55_spill] sm:$0xff] %v5471_v56  ;;  %v5481_v53 = vsel %vm154_vm8, %v2003_v38, 2147483648  ;;  %v2178_v29 = vshra.s32 %v5471_v56, 16  ;;  %v2283_v2 = vshra.s32 %v5474_v4, 16  ;;  %v2388_v18 = vshra.s32 %v5484_v33, 16 }
 0x104   :  { %10412 = vst [vmem:[#allocation56_spill] sm:$0xff] %v5478_v62  ;;  %10413 = vst [vmem:[#allocation57_spill] sm:$0xff] %v5484_v33  ;;  %v2373_v38 = vshra.s32 %v5481_v53, 16  ;;  %v5501_v61 = vsel %vm154_vm8, %v148_v9, 2147483648  ;;  %v5508_v56 = vsel %vm154_vm8, %v1983_v42, 2147483648  ;;  %v156_v42 = vand.u32 65535, %v5045_v44 }
 0x105   :  { %10414 = vst [vmem:[#allocation58_spill] sm:$0xff] %v5486_v22  ;;  %10415 = vst [vmem:[#allocation59_spill] sm:$0xff] %v5501_v61  ;;  %v547_v33 = vshra.s32 %v5501_v61, 16  ;;  %v171_v61 = vand.u32 65535, %v5042_v43 }
 0x106   :  { %2166 = vmax.xlane.f32.xlu1 %v5461_v6  ;;  %2256 = vmax.xlane.f32.xlu0 %v5452_v51  ;;  %v5503_v6 = vcvt.s32.f32 %v2178_v29  ;;  %v5505_v51 = vcvt.s32.f32 %v2283_v2  ;;  %v1991_v29 = vsel %vm5400_vm9, %v5050_v46, 0  ;;  %v2073_v2 = vshra.s32 %v5508_v56, 16 }
 0x107   :  { %v5522_v9 = vsel %vm154_vm8, %v1991_v29, 2147483648 }
 0x108   :  { %10416 = vst [vmem:[#allocation60_spill] sm:$0xff] %v5503_v6  ;;  %10417 = vst [vmem:[#allocation61_spill] sm:$0xff] %v5505_v51 }
 0x109   :  { %10420 = vst [vmem:[#allocation64_spill] sm:$0xff] %v5522_v9 }
 0x10a   :  { %2271 = vmax.xlane.f32.xlu1 %v5478_v62  ;;  %2061 = vmax.xlane.f32.xlu0 %v5486_v22  ;;  %v5512_v62 = vcvt.s32.f32 %v2373_v38  ;;  %v5514_v22 = vcvt.s32.f32 %v2388_v18  ;;  %v5527_v38 = vcvt.s32.f32 %v547_v33  ;;  %v5529_v18 = vcvt.s32.f32 %v2073_v2 }
 0x10b   :  { %v186_v33 = vand.u32 65535, %v5048_v45  ;;  %v381_v45 = vand.u32 65535, %v5226_v28 }
 0x10c   :  { %10418 = vst [vmem:[#allocation62_spill] sm:$0xff] %v5512_v62  ;;  %10419 = vst [vmem:[#allocation63_spill] sm:$0xff] %v5514_v22 }
 0x10d   :  { %10421 = vst [vmem:[#allocation65_spill] sm:$0xff] %v5527_v38  ;;  %10422 = vst [vmem:[#allocation66_spill] sm:$0xff] %v5529_v18  ;;  %v188_v2 = vcvt.s32.f32 %v186_v33 }
 0x10e   :  { %2181 = vmax.xlane.f32.xlu1 %v5503_v6  ;;  %2286 = vmax.xlane.f32.xlu0 %v5505_v51  ;;  %v2193_v6 = vshra.s32 %v5522_v9, 16  ;;  %v158_v51 = vcvt.s32.f32 %v156_v42  ;;  %v201_v42 = vand.u32 65535, %v5056_v50  ;;  %v149_v50 = vsel %vm121_vm0, %v5025_v35, 0  ;;  %v10455_v9 = vld [vmem:[#allocation22_spill] sm:$0xff] }
 0x10f   :  { %v5565_v28 = vsel %vm154_vm8, %v149_v50, 2147483648 }
 0x110   :  { %v5537_v44 = vcvt.s32.f32 %v2193_v6  ;;  %v163_v29 = vsel %vm162_vm11, %v158_v51, -inf  ;;  %v193_v51 = vsel %vm192_vm13, %v188_v2, -inf  ;;  %v203_v6 = vcvt.s32.f32 %v201_v42  ;;  %10425 = vst [vmem:[#allocation69_spill] sm:$0xff] %v5565_v28 }
 0x111   :  { %v246_v42 = vand.u32 65535, %v5103_v14  ;;  %v562_v10 = vshra.s32 %v5565_v28, 16  ;;  %vm297_vm11 = vcmp.eq.f32.partialorder %v5164_v47, %v5376_v24  ;;  %v1994_v47 = vsel %vm5400_vm9, %v5092_v7, 0  ;;  %v10449_v28 = vld [vmem:[#allocation34_spill] sm:$0xff] }
 0x112   :  { %2376 = vmax.xlane.f32.xlu1 %v5512_v62  ;;  %2391 = vmax.xlane.f32.xlu0 %v5514_v22  ;;  %10423 = vst [vmem:[#allocation67_spill] sm:$0xff] %v5537_v44  ;;  %v173_v62 = vcvt.s32.f32 %v171_v61  ;;  %v208_v58 = vsel %vm207_vm14, %v203_v6, -inf  ;;  %v383_v61 = vcvt.s32.f32 %v381_v45  ;;  %v238_v6 = vsel %vm237_vm2, %v233_v5, -inf }
 0x113   :  { %v248_v45 = vcvt.s32.f32 %v246_v42  ;;  %v5588_v17 = vcvt.s32.f32 %v562_v10  ;;  %v291_v10 = vand.u32 65535, %v5141_v37  ;;  %v151_v37 = vsel %vm121_vm0, %v5065_v57, 0 }
 0x114   :  { %v178_v43 = vsel %vm177_vm12, %v173_v62, -inf  ;;  %v218_v62 = vcvt.s32.f32 %v216_v55  ;;  %v1992_v55 = vsel %vm5400_vm9, %v5065_v57, 0  ;;  %vm312_vm12 = vcmp.eq.f32.partialorder %v5174_v52, %v5378_v15 }
 0x115   :  { %v5583_v14 = vsel %vm154_vm8, %v1992_v55, 2147483648  ;;  %10427 = vst [vmem:[#allocation71_spill] sm:$0xff] %v5588_v17 }
 0x116   :  { %550 = vmax.xlane.f32.xlu1 %v5527_v38  ;;  %2076 = vmax.xlane.f32.xlu0 %v5529_v18  ;;  %v10450_v38 = vld [vmem:[#allocation20_spill] sm:$0xff] }
 0x11a   :  { %2196 = vmax.xlane.f32.xlu1 %v5537_v44  ;;  %164 = vmax.xlane.f32.xlu0 %v163_v29  ;;  %v5558_v29 = vsel %vm154_vm8, %v1998_v54, 2147483648  ;;  %v261_v54 = vand.u32 65535, %v5114_v20  ;;  %v253_v20 = vsel %vm252_vm4, %v248_v45, -inf  ;;  %v10443_v44 = vld [vmem:[#allocation15_spill] sm:$0xff] }
 0x11b   :  { %v2298_v33 = vshra.s32 %v5558_v29, 16 }
 0x11e   :  { %179 = vmax.xlane.f32.xlu1 %v178_v43  ;;  %v223_v43 = vsel %vm222_vm15, %v218_v62, -inf  ;;  %v2006_v62 = vsel %vm5443_vm10, %v5025_v35, 0  ;;  %v1985_v35 = vsel %vm5332_vm3, %v5078_v63, 0 }
 0x11f   :  { %v5597_v60 = vsel %vm154_vm8, %v2006_v62, 2147483648  ;;  %v293_v62 = vcvt.s32.f32 %v291_v10 }
 0x122   :  { %194 = vmax.xlane.f32.xlu1 %v193_v51 }
 0x126   :  { %209 = vmax.xlane.f32.xlu1 %v208_v58  ;;  %v2208_v58 = vshra.s32 %v5583_v14, 16 }
 0x127   :  { %v5562_v1 = vpop.xlane.xlu0 %385 }
 0x128   :  { %10424 = vst [vmem:[#allocation68_spill] sm:$0xff] %v5562_v1  ;;  %vm387_vm1 = vcmp.eq.f32.partialorder %v5238_v8, %v5562_v1  ;;  %v5579_v8 = vcvt.s32.f32 %v2298_v33  ;;  %v276_v33 = vand.u32 65535, %v5125_v25  ;;  %v5612_v25 = vsel %vm154_vm8, %v1985_v35, 2147483648 }
 0x129   :  { %v388_v2 = vsel %vm387_vm1, %v383_v61, -inf  ;;  %v263_v61 = vcvt.s32.f32 %v261_v54  ;;  %v2103_v45 = vshra.s32 %v5612_v25, 16  ;;  %v411_v1 = vand.u32 65535, %v10450_v38  ;;  %v10456_v38 = vld [vmem:[#allocation36_spill] sm:$0xff] }
 0x12a   :  { %224 = vmax.xlane.f32.xlu1 %v223_v43  ;;  %389 = vmax.xlane.f32.xlu0 %v388_v2  ;;  %10426 = vst [vmem:[#allocation70_spill] sm:$0xff] %v5579_v8  ;;  %v5608_v43 = vcvt.s32.f32 %v2208_v58  ;;  %v2418_v2 = vshra.s32 %v5597_v60, 16  ;;  %v278_v42 = vcvt.s32.f32 %v276_v33  ;;  %v5630_v58 = vsel %vm154_vm8, %v2000_v31, 2147483648 }
 0x12b   :  { %v5577_v51 = vpop.xlane.xlu0 %400  ;;  %v268_v5 = vsel %vm267_vm6, %v263_v61, -inf  ;;  %v5641_v33 = vcvt.s32.f32 %v2103_v45  ;;  %v2328_v35 = vshra.s32 %v5630_v58, 16 }
 0x12c   :  { %10428 = vst [vmem:[#allocation72_spill] sm:$0xff] %v5608_v43  ;;  %v283_v54 = vsel %vm282_vm7, %v278_v42, -inf  ;;  %v321_v42 = vand.u32 65535, %v5168_v49  ;;  %v5657_v49 = vsel %vm154_vm8, %v1994_v47, 2147483648 }
 0x12d   :  { %10431 = vst [vmem:[#allocation75_spill] sm:$0xff] %v5641_v33  ;;  %v5654_v31 = vcvt.s32.f32 %v2328_v35  ;;  %v2008_v35 = vsel %vm5443_vm10, %v5065_v57, 0 }
 0x12e   :  { %239 = vmax.xlane.f32.xlu1 %v238_v6  ;;  %2301 = vmax.xlane.f32.xlu0 %v5579_v8  ;;  %v5623_v6 = vcvt.s32.f32 %v2418_v2  ;;  %v298_v2 = vsel %vm297_vm11, %v293_v62, -inf  ;;  %v5670_v47 = vsel %vm154_vm8, %v2008_v35, 2147483648 }
 0x12f   :  { %v5593_v50 = vpop.xlane.xlu0 %415  ;;  %10432 = vst [vmem:[#allocation76_spill] sm:$0xff] %v5654_v31 }
 0x130   :  { %10429 = vst [vmem:[#allocation73_spill] sm:$0xff] %v5623_v6 }
 0x132   :  { %254 = vmax.xlane.f32.xlu1 %v253_v20  ;;  %565 = vmax.xlane.f32.xlu0 %v5588_v17  ;;  %v5637_v20 = vsel %vm154_vm8, %v151_v37, 2147483648  ;;  %v323_v37 = vcvt.s32.f32 %v321_v42  ;;  %v10445_v17 = vld [vmem:[#allocation19_spill] sm:$0xff] }
 0x133   :  { %v5606_v23 = vpop.xlane.xlu0 %430  ;;  %10430 = vst [vmem:[#allocation74_spill] sm:$0xff] %v5637_v20  ;;  %v592_v41 = vshra.s32 %v5637_v20, 16  ;;  %v396_v22 = vand.u32 65535, %v10445_v17 }
 0x135   :  { %v5661_v52 = vcvt.s32.f32 %v592_v41  ;;  %v10438_v41 = vld [vmem:[#allocation44_spill] sm:$0xff] }
 0x136   :  { %269 = vmax.xlane.f32.xlu1 %v268_v5  ;;  %2211 = vmax.xlane.f32.xlu0 %v5608_v43  ;;  %v308_v5 = vcvt.s32.f32 %v306_v39  ;;  %v10435_v39 = vld [vmem:[#allocation43_spill] sm:$0xff] }
 0x137   :  { %v5621_v55 = vpop.xlane.xlu0 %445 }
 0x138   :  { %v313_v45 = vsel %vm312_vm12, %v308_v5, -inf  ;;  %v2238_v5 = vshra.s32 %v5657_v49, 16 }
 0x13a   :  { %2421 = vmax.xlane.f32.xlu0 %v5623_v6  ;;  %284 = vmax.xlane.f32.xlu1 %v283_v54  ;;  %v10433_v54 = vld [vmem:[#allocation10_spill] sm:$0xff]  ;;  %v5681_v8 = vcvt.s32.f32 %v2238_v5 }
 0x13b   :  { %v5639_v61 = vpop.xlane.xlu0 %460  ;;  %v336_v62 = vand.u32 65535, %v10433_v54  ;;  %10434 = vst [vmem:[#allocation10_spill] sm:$0xff] %v5661_v52  ;;  %v10437_v54 = vld [vmem:[#allocation12_spill] sm:$0xff] }
 0x13c   :  { %v351_v43 = vand.u32 65535, %v10437_v54  ;;  %10440 = vst [vmem:[#allocation43_spill] sm:$0xff] %v5681_v8 }
 0x13d   :  { %v338_v6 = vcvt.s32.f32 %v336_v62  ;;  %v153_v62 = vsel %vm121_vm0, %v5092_v7, 0 }
 0x13e   :  { %2106 = vmax.xlane.f32.xlu0 %v5641_v33  ;;  %299 = vmax.xlane.f32.xlu1 %v298_v2  ;;  %v10436_v2 = vld [vmem:[#allocation11_spill] sm:$0xff]  ;;  %v353_v54 = vcvt.s32.f32 %v351_v43  ;;  %v5697_v18 = vsel %vm154_vm8, %v153_v62, 2147483648  ;;  %v516_v62 = vand.u32 65535, %v10449_v28  ;;  %v426_v28 = vand.u32 65535, %v10455_v9 }
 0x13f   :  { %v5652_v10 = vpop.xlane.xlu0 %475  ;;  %vm327_vm13 = vcmp.eq.f32.partialorder %v10436_v2, %v10435_v39  ;;  %v2002_v2 = vsel %vm5390_vm5, %v5092_v7, 0  ;;  %10444 = vst [vmem:[#allocation11_spill] sm:$0xff] %v5697_v18 }
 0x140   :  { %v328_v42 = vsel %vm327_vm13, %v323_v37, -inf  ;;  %v2448_v37 = vshra.s32 %v5670_v47, 16  ;;  %v5688_v33 = vsel %vm154_vm8, %v2002_v2, 2147483648 }
 0x141   :  { %v2358_v43 = vshra.s32 %v5688_v33, 16 }
 0x142   :  { %2331 = vmax.xlane.f32.xlu0 %v5654_v31  ;;  %314 = vmax.xlane.f32.xlu1 %v313_v45  ;;  %v10439_v45 = vld [vmem:[#allocation13_spill] sm:$0xff] }
 0x143   :  { %v5673_v31 = vpop.xlane.xlu0 %490  ;;  %vm342_vm14 = vcmp.eq.f32.partialorder %v10439_v45, %v10438_v41  ;;  %v10442_v45 = vld [vmem:[#allocation45_spill] sm:$0xff]  ;;  %v5709_v17 = vcvt.s32.f32 %v2358_v43  ;;  %v10457_v43 = vld [vmem:[#allocation23_spill] sm:$0xff] }
 0x144   :  { %v343_v35 = vsel %vm342_vm14, %v338_v6, -inf  ;;  %vm357_vm15 = vcmp.eq.f32.partialorder %v10443_v44, %v10442_v45  ;;  %v5700_v6 = vcvt.s32.f32 %v2448_v37  ;;  %v622_v44 = vshra.s32 %v5697_v18, 16  ;;  %v10452_v37 = vld [vmem:[#allocation21_spill] sm:$0xff] }
 0x145   :  { %v358_v2 = vsel %vm357_vm15, %v353_v54, -inf  ;;  %10451 = vst [vmem:[#allocation44_spill] sm:$0xff] %v5709_v17  ;;  %vm402_vm2 = vcmp.eq.f32.partialorder %v10452_v37, %v5577_v51  ;;  %vm417_vm6 = vcmp.eq.f32.partialorder %v10457_v43, %v5593_v50  ;;  %v362_v11 = vcvt.f32.s32 %v10442_v45 }
 0x146   :  { %595 = vmax.xlane.f32.xlu0 %v5661_v52  ;;  %329 = vmax.xlane.f32.xlu1 %v328_v42  ;;  %v10441_v42 = vld [vmem:[#allocation14_spill] sm:$0xff]  ;;  %10446 = vst [vmem:[#allocation12_spill] sm:$0xff] %v5700_v6  ;;  %v2327_v45 = vand.u32 65535, %v5630_v58 }
 0x147   :  { %v366_v52 = vand.u32 65535, %v10441_v42  ;;  %v5694_v5 = vpop.xlane.xlu0 %505  ;;  %v10448_v42 = vld [vmem:[#allocation16_spill] sm:$0xff] }
 0x149   :  { %v368_v20 = vcvt.s32.f32 %v366_v52 }
 0x14a   :  { %2241 = vmax.xlane.f32.xlu0 %v5681_v8  ;;  %344 = vmax.xlane.f32.xlu1 %v343_v35  ;;  %v10447_v35 = vld [vmem:[#allocation46_spill] sm:$0xff]  ;;  %v398_v8 = vcvt.s32.f32 %v396_v22  ;;  %v413_v22 = vcvt.s32.f32 %v411_v1 }
 0x14b   :  { %vm372_vm1 = vcmp.eq.f32.partialorder %v10448_v42, %v10447_v35  ;;  %v5713_v52 = vpop.xlane.xlu0 %520 }
 0x14c   :  { %v373_v54 = vsel %vm372_vm1, %v368_v20, -inf  ;;  %10453 = vst [vmem:[#allocation13_spill] sm:$0xff] %v5713_v52  ;;  %v403_v42 = vsel %vm402_vm2, %v398_v8, -inf  ;;  %vm522_vm4 = vcmp.eq.f32.partialorder %v10456_v38, %v5713_v52  ;;  %v418_v37 = vsel %vm417_vm6, %v413_v22, -inf  ;;  %v10459_v8 = vld [vmem:[#allocation25_spill] sm:$0xff]  ;;  %v10461_v52 = vld [vmem:[#allocation27_spill] sm:$0xff] }
 0x14d   :  { %vm432_vm7 = vcmp.eq.f32.partialorder %v10459_v8, %v5606_v23  ;;  %vm447_vm11 = vcmp.eq.f32.partialorder %v10461_v52, %v5621_v55  ;;  %v10466_v52 = vld [vmem:[#allocation32_spill] sm:$0xff] }
 0x14e   :  { %2451 = vmax.xlane.f32.xlu0 %v5700_v6  ;;  %359 = vmax.xlane.f32.xlu1 %v358_v2  ;;  %v5716_v2 = vcvt.s32.f32 %v622_v44  ;;  %v518_v6 = vcvt.s32.f32 %v516_v62  ;;  %v10460_v62 = vld [vmem:[#allocation26_spill] sm:$0xff] }
 0x14f   :  { %v456_v38 = vand.u32 65535, %v10460_v62 }
 0x150   :  { %10454 = vst [vmem:[#allocation14_spill] sm:$0xff] %v5716_v2  ;;  %v523_v20 = vsel %vm522_vm4, %v518_v6, -inf  ;;  %v10462_v6 = vld [vmem:[#allocation28_spill] sm:$0xff] }
 0x151   :  { %v471_v22 = vand.u32 65535, %v10462_v6  ;;  %v10468_v6 = vld [vmem:[#allocation35_spill] sm:$0xff] }
 0x152   :  { %2361 = vmax.xlane.f32.xlu0 %v5709_v17  ;;  %374 = vmax.xlane.f32.xlu1 %v373_v54  ;;  %v428_v17 = vcvt.s32.f32 %v426_v28  ;;  %v10458_v54 = vld [vmem:[#allocation24_spill] sm:$0xff]  ;;  %v10463_v28 = vld [vmem:[#allocation29_spill] sm:$0xff]  ;;  %vm507_vm15 = vcmp.eq.f32.partialorder %v10468_v6, %v5694_v5 }
 0x153   :  { %v441_v44 = vand.u32 65535, %v10458_v54  ;;  %vm462_vm12 = vcmp.eq.f32.partialorder %v10463_v28, %v5639_v61  ;;  %v473_v8 = vcvt.s32.f32 %v471_v22  ;;  %v1984_v28 = vsel %vm5332_vm3, %v5065_v57, 0 }
 0x154   :  { %v433_v9 = vsel %vm432_vm7, %v428_v17, -inf  ;;  %v10465_v17 = vld [vmem:[#allocation31_spill] sm:$0xff] }
 0x155   :  { %v443_v1 = vcvt.s32.f32 %v441_v44  ;;  %vm477_vm13 = vcmp.eq.f32.partialorder %v10465_v17, %v5652_v10 }
 0x156   :  { %625 = vmax.xlane.f32.xlu0 %v5716_v2  ;;  %404 = vmax.xlane.f32.xlu1 %v403_v42  ;;  %v458_v42 = vcvt.s32.f32 %v456_v38  ;;  %v478_v44 = vsel %vm477_vm13, %v473_v8, -inf  ;;  %v2005_v38 = vsel %vm5443_vm10, %v5023_v34, 0  ;;  %v1999_v34 = vsel %vm5390_vm5, %v5050_v46, 0  ;;  %v10480_v2 = vld [vmem:[#allocation37_spill] sm:$0xff] }
 0x157   :  { %v448_v43 = vsel %vm447_vm11, %v443_v1, -inf  ;;  %v10467_v1 = vld [vmem:[#allocation33_spill] sm:$0xff]  ;;  %v5745_v22 = vsel %vm154_vm8, %v2005_v38, 2147483648  ;;  %v5764_v57 = vsel %vm154_vm8, %v1999_v34, 2147483648  ;;  %v1993_v38 = vsel %vm5400_vm9, %v5078_v63, 0 }
 0x158   :  { %v463_v54 = vsel %vm462_vm12, %v458_v42, -inf  ;;  %vm492_vm14 = vcmp.eq.f32.partialorder %v10467_v1, %v5673_v31  ;;  %v2403_v8 = vshra.s32 %v5745_v22, 16 }
 0x15a   :  { %524 = vmax.xlane.f32.xlu0 %v523_v20  ;;  %419 = vmax.xlane.f32.xlu1 %v418_v37  ;;  %v10464_v20 = vld [vmem:[#allocation30_spill] sm:$0xff] }
 0x15b   :  { %v486_v37 = vand.u32 65535, %v10464_v20  ;;  %v5752_v20 = vsel %vm154_vm8, %v1984_v28, 2147483648  ;;  %v2007_v28 = vsel %vm5443_vm10, %v5050_v46, 0 }
 0x15c   :  { %v2088_v17 = vshra.s32 %v5752_v20, 16  ;;  %v2087_v58 = vand.u32 65535, %v5752_v20  ;;  %v2207_v20 = vand.u32 65535, %v5583_v14  ;;  %v10514_v14 = vld [vmem:[#allocation47_spill] sm:$0xff] }
 0x15d   :  { %v488_v62 = vcvt.s32.f32 %v486_v37  ;;  %v5757_v37 = vcvt.s32.f32 %v2403_v8  ;;  %v5791_v8 = vsel %vm154_vm8, %v2007_v28, 2147483648  ;;  %v197_v28 = vcvt.f32.s32 %v5326_v19 }
 0x15e   :  { %434 = vmax.xlane.f32.xlu1 %v433_v9  ;;  %v501_v9 = vand.u32 65535, %v10466_v52  ;;  %v5770_v52 = vcvt.s32.f32 %v2088_v17  ;;  %v2433_v17 = vshra.s32 %v5791_v8, 16  ;;  %v227_v19 = vcvt.f32.s32 %v5354_v36 }
 0x15f   :  { %10469 = vst [vmem:[#allocation45_spill] sm:$0xff] %v5757_v37 }
 0x160   :  { %v503_v42 = vcvt.s32.f32 %v501_v9  ;;  %10471 = vst [vmem:[#allocation19_spill] sm:$0xff] %v5770_v52  ;;  %v2313_v9 = vshra.s32 %v5764_v57, 16 }
 0x162   :  { %449 = vmax.xlane.f32.xlu1 %v448_v43  ;;  %v493_v43 = vsel %vm492_vm14, %v488_v62, -inf }
 0x166   :  { %464 = vmax.xlane.f32.xlu1 %v463_v54  ;;  %v508_v54 = vsel %vm507_vm15, %v503_v42, -inf  ;;  %v5781_v42 = vsel %vm154_vm8, %v1993_v38, 2147483648  ;;  %v167_v38 = vcvt.f32.s32 %v5323_v40 }
 0x16a   :  { %479 = vmax.xlane.f32.xlu1 %v478_v44  ;;  %v150_v44 = vsel %vm121_vm0, %v5050_v46, 0  ;;  %v5805_v46 = vsel %vm154_vm8, %v1986_v48, 2147483648  ;;  %v10476_v48 = vlaneseq }
 0x16b   :  { %v5768_v62 = vsel %vm154_vm8, %v150_v44, 2147483648  ;;  %v5800_v44 = vpop.xlane.xlu1 %535 }
 0x16c   :  { %10470 = vst [vmem:[#allocation15_spill] sm:$0xff] %v5768_v62  ;;  %v577_v1 = vshra.s32 %v5768_v62, 16  ;;  %v5822_v40 = vand.u32 127, %v10476_v48  ;;  %v272_v48 = vcvt.f32.s32 %v5372_v3  ;;  %v287_v3 = vcvt.f32.s32 %v5374_v26 }
 0x16d   :  { %v317_v26 = vcvt.f32.s32 %v5378_v15  ;;  %v2417_v15 = vand.u32 65535, %v5597_v60  ;;  %v2447_v60 = vand.u32 65535, %v5670_v47 }
 0x16e   :  { %494 = vmax.xlane.f32.xlu1 %v493_v43  ;;  %v5778_v43 = vcvt.s32.f32 %v2313_v9  ;;  %v5784_v6 = vcvt.s32.f32 %v577_v1  ;;  %v5802_v9 = vpop.xlane.xlu0 %2016  ;;  %v182_v1 = vcvt.f32.s32 %v5321_v12  ;;  %v152_v12 = vsel %vm121_vm0, %v5078_v63, 0  ;;  %10477 = vst [vmem:[#allocation21_spill] sm:$0xff] %v5822_v40 }
 0x16f   :  { %v257_v40 = vcvt.f32.s32 %v5369_v0  ;;  %v5840_v36 = vpop.xlane.xlu1 %2031 }
 0x170   :  { %10472 = vst [vmem:[#allocation46_spill] sm:$0xff] %v5778_v43  ;;  %10473 = vst [vmem:[#allocation16_spill] sm:$0xff] %v5784_v6  ;;  %v5828_v16 = vshll.u32 %v182_v1, 16  ;;  %v5845_v1 = vsel %vm154_vm8, %v152_v12, 2147483648  ;;  %v10488_v12 = vld [vmem:[#allocation50_spill] sm:$0xff] }
 0x171   :  { %10482 = vst [vmem:[#allocation24_spill] sm:$0xff] %v5845_v1  ;;  %v607_v62 = vshra.s32 %v5845_v1, 16 }
 0x172   :  { %509 = vmax.xlane.f32.xlu1 %v508_v54  ;;  %v2223_v54 = vshra.s32 %v5781_v42, 16 }
 0x174   :  { %v5797_v34 = vcvt.s32.f32 %v2223_v54  ;;  %v212_v54 = vcvt.f32.s32 %v5330_v13  ;;  %v5832_v13 = vshll.u32 %v197_v28, 16 }
 0x176   :  { %2406 = vmax.xlane.f32.xlu1 %v5757_v37  ;;  %10474 = vst [vmem:[#allocation34_spill] sm:$0xff] %v5797_v34  ;;  %v2118_v37 = vshra.s32 %v5805_v46, 16  ;;  %10478 = vst [vmem:[#allocation22_spill] sm:$0xff] %v5832_v13  ;;  %v5836_v32 = vshll.u32 %v212_v54, 16 }
 0x178   :  { %10479 = vst [vmem:[#allocation36_spill] sm:$0xff] %v5836_v32  ;;  %v2057_v32 = vand.u32 65535, %v5448_v27  ;;  %v2072_v27 = vand.u32 65535, %v5508_v56 }
 0x17a   :  { %2091 = vmax.xlane.f32.xlu1 %v5770_v52  ;;  %v5830_v52 = vshll.u32 %v167_v38, 16  ;;  %v10483_v38 = vld [vmem:[#allocation38_spill] sm:$0xff] }
 0x17e   :  { %2316 = vmax.xlane.f32.xlu1 %v5778_v43  ;;  %v5815_v43 = vcvt.s32.f32 %v2433_v17  ;;  %v242_v17 = vcvt.f32.s32 %v5363_v30  ;;  %v5849_v30 = vcvt.s32.f32 %v2118_v37  ;;  %v2009_v37 = vsel %vm5443_vm10, %v5078_v63, 0 }
 0x17f   :  { %v2010_v63 = vsel %vm5443_vm10, %v5092_v7, 0  ;;  %v5886_v0 = vsel %vm154_vm8, %v2009_v37, 2147483648  ;;  %v5894_v7 = vshll.u32 %v287_v3, 16  ;;  %v377_v37 = vcvt.f32.s32 %v10447_v35 }
 0x180   :  { %10475 = vst [vmem:[#allocation20_spill] sm:$0xff] %v5815_v43  ;;  %10485 = vst [vmem:[#allocation25_spill] sm:$0xff] %v5849_v30  ;;  %v5857_v13 = vshll.u32 %v242_v17, 16  ;;  %v2463_v3 = vshra.s32 %v5886_v0, 16  ;;  %v5922_v35 = vshll.u32 %v362_v11, 16  ;;  %v10507_v11 = vld [vmem:[#allocation48_spill] sm:$0xff] }
 0x181   :  { %10494 = vst [vmem:[#allocation32_spill] sm:$0xff] %v5894_v7 }
 0x182   :  { %580 = vmax.xlane.f32.xlu1 %v5784_v6  ;;  %v10484_v6 = vld [vmem:[#allocation39_spill] sm:$0xff]  ;;  %10487 = vst [vmem:[#allocation27_spill] sm:$0xff] %v5857_v13  ;;  %v5935_v18 = vcvt.s32.f32 %v2463_v3 }
 0x183   :  { %10499 = vst [vmem:[#allocation39_spill] sm:$0xff] %v5922_v35 }
 0x186   :  { %2226 = vmax.xlane.f32.xlu1 %v5797_v34  ;;  %v5826_v34 = vsel %vm154_vm8, %v2001_v21, 2147483648  ;;  %v5842_v21 = vpop.xlane.xlu0 %2046 }
 0x187   :  { %10481 = vst [vmem:[#allocation23_spill] sm:$0xff] %v5842_v21  ;;  %v2343_v54 = vshra.s32 %v5826_v34, 16  ;;  %v302_v21 = vcvt.f32.s32 %v5376_v24  ;;  %v347_v24 = vcvt.f32.s32 %v10438_v41 }
 0x189   :  { %v5905_v41 = vshll.u32 %v302_v21, 16  ;;  %v2117_v21 = vand.u32 65535, %v5805_v46  ;;  %v10505_v46 = vand.u32 65535, %v10484_v6  ;;  %v10512_v6 = vand.u32 65535, %v5405_v59  ;;  %v10519_v59 = vld [vmem:[#allocation18_spill] sm:$0xff] }
 0x18a   :  { %2436 = vmax.xlane.f32.xlu1 %v5815_v43  ;;  %v5852_v43 = vshll.u32 %v227_v19, 16  ;;  %v5865_v19 = vshll.u32 %v257_v40, 16  ;;  %v5881_v40 = vshll.u32 %v272_v48, 16 }
 0x18b   :  { %10495 = vst [vmem:[#allocation33_spill] sm:$0xff] %v5905_v41  ;;  %v5950_v3 = vcvt.s32.f32 %v10505_v46 }
 0x18c   :  { %10486 = vst [vmem:[#allocation26_spill] sm:$0xff] %v5852_v43  ;;  %10489 = vst [vmem:[#allocation28_spill] sm:$0xff] %v5865_v19  ;;  %v5876_v43 = vcvt.s32.f32 %v2343_v54  ;;  %v332_v19 = vcvt.f32.s32 %v10435_v39  ;;  %v5892_v54 = vcvt.s32.f32 %v607_v62  ;;  %v5903_v39 = vsel %vm154_vm8, %v2010_v63, 2147483648 }
 0x18d   :  { %10492 = vst [vmem:[#allocation30_spill] sm:$0xff] %v5881_v40  ;;  %v2102_v62 = vand.u32 65535, %v5612_v25  ;;  %v5917_v63 = vshll.u32 %v347_v24, 16  ;;  %v2478_v25 = vshra.s32 %v5903_v39, 16  ;;  %v5952_v24 = vcvt.s32.f32 %v2057_v32  ;;  %v10515_v40 = vld [vmem:[#allocation59_spill] sm:$0xff] }
 0x18e   :  { %2121 = vmax.xlane.f32.xlu1 %v5849_v30  ;;  %v10490_v30 = vld [vmem:[#allocation57_spill] sm:$0xff]  ;;  %10491 = vst [vmem:[#allocation29_spill] sm:$0xff] %v5876_v43  ;;  %10493 = vst [vmem:[#allocation31_spill] sm:$0xff] %v5892_v54  ;;  %v5915_v7 = vshll.u32 %v332_v19, 16  ;;  %v5931_v19 = vshll.u32 %v377_v37, 16  ;;  %v10504_v37 = vand.u32 65535, %v10483_v38  ;;  %v5968_v32 = vcvt.s32.f32 %v10512_v6 }
 0x18f   :  { %v5870_v17 = vpop.xlane.xlu1 %2151  ;;  %v5872_v28 = vpop.xlane.xlu0 %2136  ;;  %v2387_v13 = vand.u32 65535, %v10490_v30  ;;  %v5910_v30 = vshll.u32 %v317_v26, 16  ;;  %10498 = vst [vmem:[#allocation38_spill] sm:$0xff] %v5917_v63  ;;  %10501 = vst [vmem:[#allocation57_spill] sm:$0xff] %v5935_v18  ;;  %v5942_v35 = vcvt.s32.f32 %v2478_v25  ;;  %v2132_v26 = vand.u32 65535, %v10507_v11 }
 0x190   :  { %10497 = vst [vmem:[#allocation37_spill] sm:$0xff] %v5915_v7  ;;  %10500 = vst [vmem:[#allocation50_spill] sm:$0xff] %v5931_v19  ;;  %v5946_v19 = vcvt.s32.f32 %v10504_v37  ;;  %v2237_v38 = vand.u32 65535, %v5657_v49  ;;  %v5964_v37 = vcvt.s32.f32 %v2102_v62  ;;  %v10513_v11 = vand.u32 65535, %v5474_v4  ;;  %v10517_v49 = vld [vmem:[#allocation55_spill] sm:$0xff] }
 0x191   :  { %10496 = vst [vmem:[#allocation35_spill] sm:$0xff] %v5910_v30  ;;  %10506 = vst [vmem:[#allocation77_spill] sm:$0xff] %v5952_v24  ;;  %v2147_v7 = vand.u32 65535, %v10514_v14  ;;  %v2177_v62 = vand.u32 65535, %v10517_v49  ;;  %vm537_vm8 = vcmp.eq.f32.partialorder %v10519_v59, %v5800_v44  ;;  %v5996_v14 = vcvt.s32.f32 %v2207_v20 }
 0x192   :  { %2346 = vmax.xlane.f32.xlu1 %v5876_v43  ;;  %v2357_v43 = vand.u32 65535, %v5688_v33  ;;  %10511 = vst [vmem:[#allocation80_spill] sm:$0xff] %v5964_v37  ;;  %v5972_v46 = vcvt.s32.f32 %v10513_v11  ;;  %v10518_v37 = vld [vmem:[#allocation64_spill] sm:$0xff]  ;;  %v6001_v49 = vcvt.s32.f32 %v2327_v45  ;;  %v6011_v20 = vcvt.s32.f32 %v2087_v58 }
 0x193   :  { %v5898_v56 = vpop.xlane.xlu1 %2166  ;;  %v5900_v48 = vpop.xlane.xlu0 %2256  ;;  %v2192_v24 = vand.u32 65535, %v10518_v37  ;;  %10522 = vst [vmem:[#allocation59_spill] sm:$0xff] %v5996_v14  ;;  %v2222_v37 = vand.u32 65535, %v5781_v42  ;;  %v6015_v42 = vcvt.s32.f32 %v2147_v7  ;;  %v407_v7 = vcvt.f32.s32 %v5577_v51 }
 0x194   :  { %10524 = vst [vmem:[#allocation55_spill] sm:$0xff] %v6001_v49  ;;  %10529 = vst [vmem:[#allocation82_spill] sm:$0xff] %v6011_v20  ;;  %v437_v51 = vcvt.f32.s32 %v5606_v23  ;;  %v10546_v23 = vand.u32 65535, %v5903_v39 }
 0x196   :  { %610 = vmax.xlane.f32.xlu1 %v5892_v54  ;;  %v10502_v54 = vld [vmem:[#allocation17_spill] sm:$0xff]  ;;  %v6082_v39 = vshll.u32 %v437_v51, 16 }
 0x197   :  { %v5927_v30 = vpop.xlane.xlu1 %2271  ;;  %v5929_v33 = vpop.xlane.xlu0 %2061  ;;  %v531_v47 = vand.u32 65535, %v10502_v54  ;;  %10503 = vst [vmem:[#allocation17_spill] sm:$0xff] %v5942_v35  ;;  %v542_v54 = vcvt.f32.s32 %v5800_v44  ;;  %v6003_v44 = vcvt.s32.f32 %v2237_v38  ;;  %v10550_v51 = vld [vmem:[#allocation41_spill] sm:$0xff] }
 0x198   :  { %vm2018_vm3 = vcmp.eq.f32.partialorder %v10550_v51, %v5802_v9  ;;  %v10554_v51 = vld [vmem:[#allocation42_spill] sm:$0xff] }
 0x199   :  { %v533_v41 = vcvt.s32.f32 %v531_v47  ;;  %v5984_v4 = vshll.u32 %v542_v54, 16  ;;  %10525 = vst [vmem:[#allocation64_spill] sm:$0xff] %v6003_v44 }
 0x19a   :  { %2466 = vmax.xlane.f32.xlu1 %v5935_v18  ;;  %v5961_v18 = vcvt.s32.f32 %v2072_v27  ;;  %v10516_v27 = vld [vmem:[#allocation49_spill] sm:$0xff] }
 0x19b   :  { %v5957_v63 = vpop.xlane.xlu1 %2181  ;;  %v5959_v25 = vpop.xlane.xlu0 %2286  ;;  %10520 = vst [vmem:[#allocation47_spill] sm:$0xff] %v5984_v4  ;;  %v538_v54 = vsel %vm537_vm8, %v533_v41, -inf  ;;  %v6013_v4 = vcvt.s32.f32 %v2117_v21  ;;  %v10533_v21 = vld [vmem:[#allocation68_spill] sm:$0xff] }
 0x19c   :  { %10508 = vst [vmem:[#allocation48_spill] sm:$0xff] %v5957_v63  ;;  %10509 = vst [vmem:[#allocation78_spill] sm:$0xff] %v5959_v25  ;;  %v546_v63 = vand.u32 65535, %v10515_v40  ;;  %v5976_v25 = vcvt.s32.f32 %v2387_v13  ;;  %v5990_v40 = vcvt.s32.f32 %v2132_v26  ;;  %v10521_v13 = vand.u32 65535, %v5558_v29 }
 0x19d   :  { %10510 = vst [vmem:[#allocation79_spill] sm:$0xff] %v5961_v18  ;;  %v2162_v18 = vand.u32 65535, %v10516_v27  ;;  %v5999_v27 = vcvt.s32.f32 %v2417_v15  ;;  %v6007_v26 = vcvt.s32.f32 %v2357_v43  ;;  %v10528_v29 = vand.u32 65535, %v10480_v2  ;;  %10530 = vst [vmem:[#allocation83_spill] sm:$0xff] %v6013_v4 }
 0x19e   :  { %2481 = vmax.xlane.f32.xlu1 %v5942_v35  ;;  %v5994_v11 = vcvt.s32.f32 %v10521_v13  ;;  %v548_v59 = vcvt.s32.f32 %v546_v63  ;;  %v6005_v35 = vcvt.s32.f32 %v2447_v60  ;;  %v10531_v60 = vand.u32 65535, %v10488_v12 }
 0x19f   :  { %v5986_v6 = vpop.xlane.xlu1 %2376  ;;  %v5988_v47 = vpop.xlane.xlu0 %2391  ;;  %10523 = vst [vmem:[#allocation49_spill] sm:$0xff] %v5999_v27  ;;  %10527 = vst [vmem:[#allocation81_spill] sm:$0xff] %v6007_v26  ;;  %v2029_v13 = vcvt.s32.f32 %v10528_v29  ;;  %v6021_v41 = vcvt.s32.f32 %v2162_v18  ;;  %v6027_v63 = vcvt.s32.f32 %v2177_v62  ;;  %v10532_v2 = vand.u32 65535, %v5481_v53 }
 0x1a0   :  { %10526 = vst [vmem:[#allocation18_spill] sm:$0xff] %v6005_v35  ;;  %v6025_v43 = vcvt.s32.f32 %v10531_v60  ;;  %v392_v38 = vcvt.f32.s32 %v10533_v21  ;;  %v6037_v29 = vcvt.s32.f32 %v2192_v24  ;;  %v10535_v12 = vand.u32 65535, %v5745_v22 }
 0x1a1   :  { %v6031_v58 = vcvt.s32.f32 %v10532_v2  ;;  %v10537_v62 = vand.u32 65535, %v5764_v57  ;;  %v6047_v53 = vcvt.s32.f32 %v2222_v37  ;;  %v422_v2 = vcvt.f32.s32 %v5593_v50 }
 0x1a2   :  { %539 = vmax.xlane.f32.xlu1 %v538_v54  ;;  %v10534_v54 = vld [vmem:[#allocation65_spill] sm:$0xff]  ;;  %v6041_v60 = vcvt.s32.f32 %v10535_v12  ;;  %v10540_v21 = vand.u32 65535, %v5791_v8  ;;  %v467_v57 = vcvt.f32.s32 %v5639_v61  ;;  %v10544_v50 = vand.u32 65535, %v5886_v0 }
 0x1a3   :  { %v6017_v15 = vpop.xlane.xlu1 %550  ;;  %v6019_v45 = vpop.xlane.xlu0 %2076  ;;  %v6045_v4 = vcvt.s32.f32 %v10537_v62  ;;  %10539 = vst [vmem:[#allocation84_spill] sm:$0xff] %v6047_v53  ;;  %v6069_v8 = vcvt.s32.f32 %v10546_v23  ;;  %v482_v61 = vcvt.f32.s32 %v5652_v10  ;;  %v10548_v0 = vld [vmem:[#allocation69_spill] sm:$0xff]  ;;  %v2038_v10 = vcvt.f32.s32 %v5840_v36 }
 0x1a4   :  { %vm552_vm0 = vcmp.eq.f32.partialorder %v10534_v54, %v6017_v15  ;;  %10536 = vst [vmem:[#allocation68_spill] sm:$0xff] %v6041_v60  ;;  %v6053_v24 = vcvt.s32.f32 %v10540_v21  ;;  %v452_v54 = vcvt.f32.s32 %v5621_v55  ;;  %v6065_v62 = vcvt.s32.f32 %v10544_v50  ;;  %v10549_v23 = vld [vmem:[#allocation13_spill] sm:$0xff]  ;;  %v10563_v60 = vld [vmem:[#allocation22_spill] sm:$0xff] }
 0x1a5   :  { %v553_v18 = vsel %vm552_vm0, %v548_v59, -inf  ;;  %10538 = vst [vmem:[#allocation65_spill] sm:$0xff] %v6045_v4  ;;  %v10542_v59 = vand.u32 65535, %v5826_v34  ;;  %10547 = vst [vmem:[#allocation88_spill] sm:$0xff] %v6069_v8  ;;  %v6073_v34 = vshll.u32 %v407_v7, 16  ;;  %v561_v50 = vand.u32 65535, %v10548_v0 }
 0x1a6   :  { %554 = vmax.xlane.f32.xlu1 %v553_v18  ;;  %10541 = vst [vmem:[#allocation85_spill] sm:$0xff] %v6053_v24  ;;  %10545 = vst [vmem:[#allocation87_spill] sm:$0xff] %v6065_v62  ;;  %v6071_v18 = vshll.u32 %v392_v38, 16  ;;  %v6080_v62 = vshll.u32 %v422_v2, 16  ;;  %v527_v38 = vcvt.f32.s32 %v10549_v23  ;;  %v6088_v8 = vshll.u32 %v452_v54, 16  ;;  %v10551_v23 = vld [vmem:[#allocation40_spill] sm:$0xff] }
 0x1a7   :  { %v6057_v22 = vcvt.s32.f32 %v10542_v59  ;;  %v6061_v12 = vpop.xlane.xlu1 %2196  ;;  %v165_v37 = vpop.xlane.xlu0 %164  ;;  %v497_v59 = vcvt.f32.s32 %v5673_v31  ;;  %v2023_v31 = vcvt.f32.s32 %v5802_v9  ;;  %vm2033_vm5 = vcmp.eq.f32.partialorder %v10551_v23, %v5840_v36  ;;  %v10553_v9 = vld [vmem:[#allocation23_spill] sm:$0xff] }
 0x1a8   :  { %v166_v55 = vcvt.f32.s32 %v165_v37  ;;  %v6090_v37 = vshll.u32 %v467_v57, 16  ;;  %v6107_v21 = vshll.u32 %v527_v38, 16  ;;  %vm2048_vm9 = vcmp.eq.f32.partialorder %v10554_v51, %v10553_v9  ;;  %v10558_v51 = vld [vmem:[#allocation74_spill] sm:$0xff] }
 0x1a9   :  { %10543 = vst [vmem:[#allocation86_spill] sm:$0xff] %v6057_v22  ;;  %v512_v22 = vcvt.f32.s32 %v5694_v5  ;;  %v6101_v54 = vshll.u32 %v497_v59, 16  ;;  %v6117_v36 = vshll.u32 %v2038_v10, 16  ;;  %v6125_v38 = vshll.u32 %v2023_v31, 16  ;;  %v10560_v31 = vld [vmem:[#allocation51_spill] sm:$0xff] }
 0x1aa   :  { %v6086_v7 = vadd.s32 %v5830_v52, %v166_v55  ;;  %v6099_v52 = vshll.u32 %v482_v61, 16  ;;  %v6105_v55 = vcvt.s32.f32 %v561_v50  ;;  %v2053_v61 = vcvt.f32.s32 %v10553_v9 }
 0x1ab   :  { %v180_v5 = vpop.xlane.xlu1 %179  ;;  %v6103_v57 = vshll.u32 %v512_v22, 16  ;;  %10555 = vst [vmem:[#allocation13_spill] sm:$0xff] %v6117_v36  ;;  %v6121_v22 = vsel %vm2018_vm3, %v5946_v19, -inf  ;;  %v6123_v50 = vsel %vm2033_vm5, %v2029_v13, -inf  ;;  %10557 = vst [vmem:[#allocation40_spill] sm:$0xff] %v6125_v38  ;;  %v591_v36 = vand.u32 65535, %v10558_v51 }
 0x1ac   :  { %v636_v0 = vsub.s32 0, %v6086_v7  ;;  %v181_v2 = vcvt.f32.s32 %v180_v5  ;;  %10556 = vst [vmem:[#allocation41_spill] sm:$0xff] %v6123_v50  ;;  %v6135_v9 = vsel %vm2048_vm9, %v5950_v3, -inf  ;;  %v10559_v13 = vld [vmem:[#allocation52_spill] sm:$0xff]  ;;  %vm2153_vm2 = vcmp.eq.f32.partialorder %v10560_v31, %v5870_v17 }
 0x1ad   :  { %10552 = vst [vmem:[#allocation69_spill] sm:$0xff] %v6103_v57  ;;  %vm2138_vm1 = vcmp.eq.f32.partialorder %v10559_v13, %v5872_v28  ;;  %v6142_v38 = vshll.u32 %v2053_v61, 16  ;;  %v2143_v53 = vcvt.f32.s32 %v5872_v28  ;;  %v10562_v4 = vmov 0  }
 0x1ae   :  { %v6110_v24 = vmin.u32 %v636_v0, %v6086_v7  ;;  %v6113_v5 = vadd.s32 %v5828_v16, %v181_v2  ;;  %v2158_v2 = vcvt.f32.s32 %v5870_v17  ;;  %v6154_v26 = vcvt.s32.f32 %v591_v36 }
 0x1af   :  { %v195_v59 = vpop.xlane.xlu1 %194  ;;  %10561 = vst [vmem:[#allocation23_spill] sm:$0xff] %v6142_v38  ;;  %v6157_v17 = vsel %vm2138_vm1, %v5990_v40, -inf  ;;  %v6160_v28 = vsel %vm2153_vm2, %v6015_v42, -inf  ;;  %v6167_v31 = vshll.u32 %v2143_v53, 16  ;;  %vm635_vm0 = vcmp.lt.s32.totalorder %v6086_v7, 0 }
 0x1b0   :  { %v6128_v0 = vmul.u32.u64.low 2454267026, %v6110_v24  ;;  %v6129_v23 = vmul.u32.u64.high 2454267026, %v6110_v24, %v6128_v0  ;;  %v650_v16 = vsub.s32 0, %v6113_v5  ;;  %v196_v10 = vcvt.f32.s32 %v195_v59  ;;  %10564 = vst [vmem:[#allocation42_spill] sm:$0xff] %v6160_v28 }
 0x1b1   :  { %v6162_v61 = vshll.u32 %v2158_v2, 16  ;;  %10567 = vst [vmem:[#allocation52_spill] sm:$0xff] %v6167_v31  ;;  %vm649_vm3 = vcmp.lt.s32.totalorder %v6113_v5, 0  ;;  %v2383_v7 = vcvt.f32.s32 %v5986_v6 }
 0x1b2   :  { %vm641_vm10 = vc.u32 %v6128_v0, 2454267026  ;;  %v4578_v19 = vmin.u32 %v650_v16, %v6113_v5  ;;  %v6147_v51 = vadd.s32 %v10563_v60, %v196_v10  ;;  %v10566_v10 = vld [vmem:[#allocation36_spill] sm:$0xff] }
 0x1b3   :  { %v642_v59 = vsel %vm641_vm10, 1, %v10562_v4  ;;  %v210_v3 = vpop.xlane.xlu1 %209  ;;  %10565 = vst [vmem:[#allocation74_spill] sm:$0xff] %v6162_v61 }
 0x1b4   :  { %v643_v0 = vadd.s32 %v6129_v23, %v642_v59  ;;  %v6150_v20 = vmul.u32.u64.low 2454267026, %v4578_v19  ;;  %v6151_v16 = vmul.u32.u64.high 2454267026, %v4578_v19, %v6150_v20  ;;  %v211_v50 = vcvt.f32.s32 %v210_v3 }
 0x1b5   :  { %v664_v13 = vsub.s32 0, %v6147_v51  ;;  %v2173_v59 = vcvt.f32.s32 %v5898_v56 }
 0x1b6   :  { %v644_v60 = vshrl.u32 %v643_v0, 4  ;;  %vm655_vm4 = vc.u32 %v6150_v20, 2454267026  ;;  %v6165_v23 = vadd.s32 %v10566_v10, %v211_v50  ;;  %v10568_v20 = vld [vmem:[#allocation53_spill] sm:$0xff]  ;;  %v10569_v50 = vld [vmem:[#allocation54_spill] sm:$0xff] }
 0x1b7   :  { %v656_v36 = vsel %vm655_vm4, 1, %v10562_v4  ;;  %v6172_v3 = vmin.u32 %v664_v13, %v6147_v51  ;;  %v225_v40 = vpop.xlane.xlu1 %224  ;;  %v390_v38 = vpop.xlane.xlu0 %389  ;;  %vm2258_vm6 = vcmp.eq.f32.partialorder %v10568_v20, %v5900_v48  ;;  %vm2168_vm7 = vcmp.eq.f32.partialorder %v10569_v50, %v5898_v56 }
 0x1b8   :  { %v657_v42 = vadd.s32 %v6151_v16, %v656_v36  ;;  %v678_v2 = vsub.s32 0, %v6165_v23  ;;  %v226_v10 = vcvt.f32.s32 %v225_v40  ;;  %v391_v61 = vcvt.f32.s32 %v390_v38  ;;  %v10570_v36 = vld [vmem:[#allocation26_spill] sm:$0xff] }
 0x1b9   :  { %v6181_v53 = vmul.u32.u64.low 2454267026, %v6172_v3  ;;  %v6182_v0 = vmul.u32.u64.high 2454267026, %v6172_v3, %v6181_v53  ;;  %v2263_v13 = vcvt.f32.s32 %v5900_v48  ;;  %v645_v31 = vmul.u32 28, %v644_v60 }
 0x1ba   :  { %v658_v28 = vshrl.u32 %v657_v42, 4  ;;  %v6186_v16 = vmin.u32 %v678_v2, %v6165_v23  ;;  %v6189_v1 = vadd.s32 %v10570_v36, %v226_v10  ;;  %v6192_v56 = vsel %vm2258_vm6, %v5968_v32, -inf  ;;  %v10572_v32 = vld [vmem:[#allocation58_spill] sm:$0xff]  ;;  %v10574_v36 = vld [vmem:[#allocation56_spill] sm:$0xff] }
 0x1bb   :  { %vm669_vm11 = vc.u32 %v6181_v53, 2454267026  ;;  %v240_v20 = vpop.xlane.xlu1 %239  ;;  %v6195_v50 = vsel %vm2168_vm7, %v6021_v41, -inf  ;;  %v2278_v38 = vcvt.f32.s32 %v5927_v30  ;;  %v6200_v60 = vadd.s32 %v6071_v18, %v391_v61 }
 0x1bc   :  { %10571 = vst [vmem:[#allocation51_spill] sm:$0xff] %v6195_v50  ;;  %v659_v40 = vmul.u32 28, %v658_v28  ;;  %v670_v48 = vsel %vm669_vm11, 1, %v10562_v4  ;;  %v6204_v2 = vmul.u32.u64.low 2454267026, %v6186_v16  ;;  %v6205_v53 = vmul.u32.u64.high 2454267026, %v6186_v16, %v6204_v2 }
 0x1bd   :  { %v671_v42 = vadd.s32 %v6182_v0, %v670_v48  ;;  %vm2063_vm12 = vcmp.eq.f32.partialorder %v10572_v32, %v5929_v33  ;;  %v6209_v10 = vshll.u32 %v2173_v59, 16  ;;  %v646_v41 = vsub.s32 %v6110_v24, %v645_v31  ;;  %v10576_v32 = vld [vmem:[#allocation77_spill] sm:$0xff] }
 0x1be   :  { %v692_v28 = vsub.s32 0, %v6189_v1  ;;  %vm2273_vm13 = vcmp.eq.f32.partialorder %v10574_v36, %v5927_v30  ;;  %v2068_v18 = vcvt.f32.s32 %v5929_v33  ;;  %v660_v61 = vsub.s32 %v4578_v19, %v659_v40 }
 0x1bf   :  { %10573 = vst [vmem:[#allocation22_spill] sm:$0xff] %v6209_v10  ;;  %v672_v0 = vshrl.u32 %v671_v42, 4  ;;  %v241_v48 = vcvt.f32.s32 %v240_v20  ;;  %v6216_v50 = vpop.xlane.xlu1 %254  ;;  %v6218_v35 = vshll.u32 %v2263_v13, 16  ;;  %vm683_vm14 = vc.u32 %v6204_v2, 2454267026  ;;  %v6237_v42 = vpop.xlane.xlu0 %2301 }
 0x1c0   :  { %v846_v59 = vsub.s32 0, %v6200_v60  ;;  %v6222_v10 = vsel %vm2063_vm12, %v10576_v32, -inf  ;;  %v6224_v24 = vshll.u32 %v2278_v38, 16  ;;  %v684_v31 = vsel %vm683_vm14, 1, %v10562_v4  ;;  %v10580_v38 = vld [vmem:[#allocation48_spill] sm:$0xff] }
 0x1c1   :  { %10575 = vst [vmem:[#allocation36_spill] sm:$0xff] %v6218_v35  ;;  %v6228_v30 = vmin.u32 %v692_v28, %v6189_v1  ;;  %v6231_v33 = vsel %vm2273_vm13, %v6025_v43, -inf  ;;  %v647_v19 = vsub.s32 0, %v646_v41  ;;  %v673_v20 = vmul.u32 28, %v672_v0  ;;  %v10582_v43 = vld [vmem:[#allocation78_spill] sm:$0xff] }
 0x1c2   :  { %10577 = vst [vmem:[#allocation53_spill] sm:$0xff] %v6224_v24  ;;  %10578 = vst [vmem:[#allocation54_spill] sm:$0xff] %v6231_v33  ;;  %v685_v13 = vadd.s32 %v6205_v53, %v684_v31  ;;  %v6235_v40 = vmin.u32 %v846_v59, %v6200_v60  ;;  %v6239_v2 = vshll.u32 %v2068_v18, 16  ;;  %v2188_v36 = vcvt.f32.s32 %v10580_v38  ;;  %v10581_v24 = vld [vmem:[#allocation27_spill] sm:$0xff]  ;;  %v10583_v53 = vld [vmem:[#allocation61_spill] sm:$0xff] }
 0x1c3   :  { %v661_v32 = vsub.s32 0, %v660_v61  ;;  %v6243_v28 = vadd.s32 %v10581_v24, %v241_v48  ;;  %v6245_v35 = vpop.xlane.xlu1 %269  ;;  %v2293_v33 = vcvt.f32.s32 %v10582_v43  ;;  %vm2288_vm15 = vcmp.eq.f32.partialorder %v10583_v53, %v10582_v43  ;;  %v10584_v59 = vld [vmem:[#allocation60_spill] sm:$0xff]  ;;  %v6267_v5 = vpop.xlane.xlu0 %565 }
 0x1c4   :  { %10579 = vst [vmem:[#allocation26_spill] sm:$0xff] %v6239_v2  ;;  %v686_v0 = vshrl.u32 %v685_v13, 4  ;;  %vm2183_vm8 = vcmp.eq.f32.partialorder %v10584_v59, %v10580_v38  ;;  %v6255_v18 = vmul.u32.u64.low 2454267026, %v6228_v30  ;;  %v6256_v31 = vmul.u32.u64.high 2454267026, %v6228_v30, %v6255_v18 }
 0x1c5   :  { %v648_v48 = vsel %vm635_vm0, %v647_v19, %v646_v41  ;;  %v674_v24 = vsub.s32 %v6172_v3, %v673_v20  ;;  %v6260_v2 = vmul.u32.u64.low 2454267026, %v6235_v40  ;;  %v6261_v13 = vmul.u32.u64.high 2454267026, %v6235_v40, %v6260_v2  ;;  %v10585_v41 = vld [vmem:[#allocation63_spill] sm:$0xff]  ;;  %v10587_v20 = vld [vmem:[#allocation62_spill] sm:$0xff] }
 0x1c6   :  { %v662_v44 = vsel %vm649_vm3, %v661_v32, %v660_v61  ;;  %v687_v49 = vmul.u32 28, %v686_v0  ;;  %vm697_vm5 = vc.u32 %v6255_v18, 2454267026  ;;  %v706_v27 = vsub.s32 0, %v6243_v28 }
 0x1c7   :  { %v6264_v14 = vpop.xlane.xlu1 %284  ;;  %v6273_v3 = vsel %vm2288_vm15, %v5972_v46, -inf  ;;  %vm2393_vm9 = vcmp.eq.f32.partialorder %v10585_v41, %v5988_v47  ;;  %v6281_v61 = vsel %vm2183_vm8, %v6027_v63, -inf  ;;  %vm1083_vm10 = vcmp.ne.s32.totalorder %v648_v48, 0 }
 0x1c8   :  { %10586 = vst [vmem:[#allocation58_spill] sm:$0xff] %v6281_v61  ;;  %vm1115_vm1 = vcmp.lt.s32.totalorder %v648_v48, 0  ;;  %v698_v19 = vsel %vm697_vm5, 1, %v10562_v4  ;;  %vm2378_vm2 = vcmp.eq.f32.partialorder %v10587_v20, %v5986_v6  ;;  %vm1084_vm4 = vcmp.ne.s32.totalorder %v662_v44, 0 }
 0x1c9   :  { %v675_v32 = vsub.s32 0, %v674_v24  ;;  %v699_v46 = vadd.s32 %v6256_v31, %v698_v19  ;;  %vm851_vm6 = vc.u32 %v6260_v2, 2454267026  ;;  %vm1116_vm7 = vcmp.lt.s32.totalorder %v662_v44, 0  ;;  %vm6301_vm12 = vmand %vm1115_vm1, %vm1083_vm10  ;;  %v6316_v19 = vpop.xlane.xlu0 %2211 }
 0x1ca   :  { %v688_v43 = vsub.s32 %v6186_v16, %v687_v49  ;;  %v6289_v0 = vmin.u32 %v706_v27, %v6243_v28  ;;  %v256_v63 = vcvt.f32.s32 %v6216_v50  ;;  %v6294_v53 = vshll.u32 %v2188_v36, 16  ;;  %v10592_v50 = vld [vmem:[#allocation28_spill] sm:$0xff]  ;;  %vm6312_vm13 = vmand %vm1116_vm7, %vm1084_vm4  ;;  %10595 = vst [vmem:[#allocation48_spill] sm:$0xff] %v6316_v19 }
 0x1cb   :  { %v6292_v38 = vpop.xlane.xlu1 %299  ;;  %v6296_v59 = vshll.u32 %v2293_v33, 16  ;;  %v1179_v18 = vadd.s32 28, %v648_v48  ;;  %vm663_vm11 = vcmp.lt.s32.totalorder %v6147_v51, 0  ;;  %v1180_v49 = vadd.s32 28, %v662_v44 }
 0x1cc   :  { %10588 = vst [vmem:[#allocation56_spill] sm:$0xff] %v6294_v53  ;;  %v700_v27 = vshrl.u32 %v699_v46, 4  ;;  %v852_v16 = vsel %vm851_vm6, 1, %v10562_v4  ;;  %v6307_v31 = vadd.s32 %v10592_v50, %v256_v63  ;;  %v2398_v36 = vcvt.f32.s32 %v5988_v47 }
 0x1cd   :  { %10589 = vst [vmem:[#allocation77_spill] sm:$0xff] %v6296_v59  ;;  %v676_v51 = vsel %vm663_vm11, %v675_v32, %v674_v24  ;;  %v6322_v46 = vsel %vm2393_vm9, %v5976_v25, -inf  ;;  %v6328_v63 = vsel %vm2378_vm2, %v6031_v58, -inf  ;;  %v6330_v50 = vshll.u32 %v2383_v7, 16  ;;  %v6366_v33 = vpop.xlane.xlu0 %2421 }
 0x1ce   :  { %10596 = vst [vmem:[#allocation27_spill] sm:$0xff] %v6328_v63  ;;  %v689_v53 = vsub.s32 0, %v688_v43  ;;  %v6333_v59 = vmul.u32.u64.low 2454267026, %v6289_v0  ;;  %v6334_v24 = vmul.u32.u64.high 2454267026, %v6289_v0, %v6333_v59  ;;  %v557_v61 = vcvt.f32.s32 %v6017_v15  ;;  %v10598_v15 = vld [vmem:[#allocation71_spill] sm:$0xff]  ;;  %10603 = vst [vmem:[#allocation63_spill] sm:$0xff] %v6366_v33 }
 0x1cf   :  { %10597 = vst [vmem:[#allocation78_spill] sm:$0xff] %v6330_v50  ;;  %v6336_v32 = vpop.xlane.xlu1 %314  ;;  %v1211_v25 = vsel %vm6301_vm12, %v1179_v18, %v648_v48  ;;  %v853_v47 = vadd.s32 %v6261_v13, %v852_v16  ;;  %v720_v6 = vsub.s32 0, %v6307_v31  ;;  %v1212_v58 = vsel %vm6312_vm13, %v1180_v49, %v662_v44  ;;  %v10610_v49 = vld [vmem:[#allocation79_spill] sm:$0xff] }
 0x1d0   :  { %vm1085_vm14 = vcmp.ne.s32.totalorder %v676_v51, 0  ;;  %vm1117_vm15 = vcmp.lt.s32.totalorder %v676_v51, 0  ;;  %v701_v7 = vmul.u32 28, %v700_v27  ;;  %vm677_vm8 = vcmp.lt.s32.totalorder %v6165_v23, 0 }
 0x1d1   :  { %v6347_v41 = vmin.u32 %v720_v6, %v6307_v31  ;;  %vm567_vm0 = vcmp.eq.f32.partialorder %v10598_v15, %v6267_v5  ;;  %v271_v48 = vcvt.f32.s32 %v6245_v35  ;;  %v6352_v20 = vcvt.s32.f32 %v1211_v25  ;;  %vm6358_vm5 = vmand %vm1117_vm15, %vm1085_vm14  ;;  %v6404_v50 = vpop.xlane.xlu0 %2106 }
 0x1d2   :  { %v1181_v13 = vadd.s32 28, %v676_v51  ;;  %v690_v18 = vsel %vm677_vm8, %v689_v53, %v688_v43  ;;  %vm711_vm3 = vc.u32 %v6333_v59, 2454267026  ;;  %v6356_v44 = vcvt.s32.f32 %v1212_v58  ;;  %v10604_v59 = vld [vmem:[#allocation30_spill] sm:$0xff] }
 0x1d3   :  { %10599 = vst [vmem:[#allocation61_spill] sm:$0xff] %v6352_v20  ;;  %v6354_v2 = vpop.xlane.xlu1 %329  ;;  %v854_v23 = vshrl.u32 %v853_v47, 4  ;;  %v6363_v27 = vmul.u32.u64.low 2454267026, %v6347_v41  ;;  %v6364_v16 = vmul.u32.u64.high 2454267026, %v6347_v41, %v6363_v27  ;;  %v2083_v35 = vcvt.f32.s32 %v6019_v45  ;;  %v10605_v47 = vld [vmem:[#allocation66_spill] sm:$0xff] }
 0x1d4   :  { %10600 = vst [vmem:[#allocation60_spill] sm:$0xff] %v6356_v44  ;;  %v702_v43 = vsub.s32 %v6228_v30, %v701_v7  ;;  %v568_v53 = vsel %vm567_vm0, %v6105_v55, -inf  ;;  %v6372_v25 = vadd.s32 %v10604_v59, %v271_v48  ;;  %vm1086_vm9 = vcmp.ne.s32.totalorder %v690_v18, 0  ;;  %v10606_v48 = vld [vmem:[#allocation67_spill] sm:$0xff] }
 0x1d5   :  { %vm1118_vm10 = vcmp.lt.s32.totalorder %v690_v18, 0  ;;  %v712_v6 = vsel %vm711_vm3, 1, %v10562_v4  ;;  %569 = vmax.xlane.f32.xlu0 %v568_v53  ;;  %vm2078_vm1 = vcmp.eq.f32.partialorder %v10605_v47, %v6019_v45  ;;  %4777 = vrsqrt.f32 %v6352_v20 }
 0x1d6   :  { %v1213_v58 = vsel %vm6358_vm5, %v1181_v13, %v676_v51  ;;  %vm725_vm2 = vc.u32 %v6363_v27, 2454267026  ;;  %v734_v30 = vsub.s32 0, %v6372_v25  ;;  %4779 = vrsqrt.f32 %v6356_v44  ;;  %vm6389_vm6 = vmand %vm1118_vm10, %vm1086_vm9 }
 0x1d7   :  { %v6381_v55 = vpop.xlane.xlu1 %344  ;;  %v1182_v7 = vadd.s32 28, %v690_v18  ;;  %v855_v15 = vmul.u32 28, %v854_v23  ;;  %vm2198_vm4 = vcmp.eq.f32.partialorder %v10606_v48, %v6061_v12  ;;  %v6386_v53 = vshll.u32 %v2398_v36, 16 }
 0x1d8   :  { %v703_v51 = vsub.s32 0, %v702_v43  ;;  %v713_v13 = vadd.s32 %v6334_v24, %v712_v6  ;;  %v6395_v27 = vsel %vm2078_vm1, %v10610_v49, -inf  ;;  %v2203_v59 = vcvt.f32.s32 %v6061_v12 }
 0x1d9   :  { %10607 = vst [vmem:[#allocation62_spill] sm:$0xff] %v6386_v53  ;;  %v6398_v47 = vcvt.s32.f32 %v1213_v58  ;;  %v726_v23 = vsel %vm725_vm2, 1, %v10562_v4  ;;  %v6402_v36 = vmin.u32 %v734_v30, %v6372_v25  ;;  %v6406_v53 = vshll.u32 %v557_v61, 16 }
 0x1da   :  { %v6408_v63 = vshll.u32 %v2083_v35, 16  ;;  %vm691_vm7 = vcmp.lt.s32.totalorder %v6189_v1, 0  ;;  %v6417_v6 = vsel %vm2198_vm4, %v6037_v29, -inf  ;;  %v1214_v58 = vsel %vm6389_vm6, %v1182_v7, %v690_v18 }
 0x1db   :  { %10611 = vst [vmem:[#allocation28_spill] sm:$0xff] %v6398_v47  ;;  %10612 = vst [vmem:[#allocation71_spill] sm:$0xff] %v6406_v53  ;;  %v6411_v24 = vpop.xlane.xlu1 %359  ;;  %v856_v30 = vsub.s32 %v6235_v40, %v855_v15  ;;  %v6423_v61 = vmul.u32.u64.low 2454267026, %v6402_v36  ;;  %v6424_v49 = vmul.u32.u64.high 2454267026, %v6402_v36, %v6423_v61  ;;  %v6426_v35 = vsel %vm691_vm7, %v703_v51, %v702_v43  ;;  %v10617_v40 = vld [vmem:[#allocation32_spill] sm:$0xff]  ;;  %v6446_v15 = vpop.xlane.xlu0 %2331 }
 0x1dc   :  { %10613 = vst [vmem:[#allocation30_spill] sm:$0xff] %v6408_v63  ;;  %10614 = vst [vmem:[#allocation66_spill] sm:$0xff] %v6417_v6  ;;  %v714_v1 = vshrl.u32 %v713_v13, 4  ;;  %v727_v63 = vadd.s32 %v6364_v16, %v726_v23  ;;  %v286_v53 = vcvt.f32.s32 %v6264_v14  ;;  %v6430_v57 = vshll.u32 %v2203_v59, 16 }
 0x1dd   :  { %4781 = vrsqrt.f32 %v6398_v47  ;;  %vm845_vm11 = vcmp.lt.s32.totalorder %v6200_v60, 0  ;;  %v2308_v29 = vcvt.f32.s32 %v6237_v42  ;;  %v6435_v12 = vcvt.s32.f32 %v1214_v58  ;;  %10618 = vst [vmem:[#allocation32_spill] sm:$0xff] %v6446_v15 }
 0x1de   :  { %10615 = vst [vmem:[#allocation67_spill] sm:$0xff] %v6430_v57  ;;  %vm739_vm12 = vc.u32 %v6423_v61, 2454267026  ;;  %v6438_v18 = vadd.s32 %v10617_v40, %v286_v53  ;;  %v301_v43 = vcvt.f32.s32 %v6292_v38  ;;  %vm1087_vm13 = vcmp.ne.s32.totalorder %v6426_v35, 0  ;;  %v10620_v61 = vld [vmem:[#allocation33_spill] sm:$0xff] }
 0x1df   :  { %10616 = vst [vmem:[#allocation79_spill] sm:$0xff] %v6435_v12  ;;  %v6441_v7 = vpop.xlane.xlu1 %374  ;;  %vm1119_vm14 = vcmp.lt.s32.totalorder %v6426_v35, 0  ;;  %v857_v14 = vsub.s32 0, %v856_v30  ;;  %v740_v16 = vsel %vm739_vm12, 1, %v10562_v4  ;;  %v4778_v48 = vpop.eup %4777  ;;  %v715_v45 = vmul.u32 28, %v714_v1 }
 0x1e0   :  { %v728_v51 = vshrl.u32 %v727_v63, 4  ;;  %v741_v13 = vadd.s32 %v6424_v49, %v740_v16  ;;  %v748_v53 = vsub.s32 0, %v6438_v18  ;;  %v4780_v59 = vpop.eup %4779  ;;  %v6452_v58 = vshll.u32 %v2308_v29, 16  ;;  %vm6472_vm15 = vmand %vm1119_vm14, %vm1087_vm13 }
 0x1e1   :  { %v6455_v40 = vadd.s32 %v10620_v61, %v301_v43  ;;  %v1183_v57 = vadd.s32 28, %v6426_v35  ;;  %v572_v6 = vcvt.f32.s32 %v6267_v5  ;;  %v316_v49 = vcvt.f32.s32 %v6336_v32 }
 0x1e2   :  { %10619 = vst [vmem:[#allocation89_spill] sm:$0xff] %v6452_v58  ;;  %v6460_v63 = vmin.u32 %v748_v53, %v6438_v18  ;;  %v6466_v16 = vmul.f32 %v4778_v48, %v6352_v20  ;;  %v6478_v5 = vsel %vm845_vm11, %v857_v14, %v856_v30  ;;  %v742_v43 = vshrl.u32 %v741_v13, 4  ;;  %v10625_v30 = vld [vmem:[#allocation35_spill] sm:$0xff]  ;;  %v6497_v13 = vpop.xlane.xlu0 %595 }
 0x1e3   :  { %v6463_v1 = vpop.xlane.xlu1 %404  ;;  %v762_v32 = vsub.s32 0, %v6455_v40  ;;  %v6482_v53 = vmul.f32 %v4780_v59, %v6356_v44  ;;  %4783 = vrsqrt.f32 %v6435_v12  ;;  %vm705_vm8 = vcmp.lt.s32.totalorder %v6243_v28, 0 }
 0x1e4   :  { %10621 = vst [vmem:[#allocation33_spill] sm:$0xff] %v6466_v16  ;;  %v716_v48 = vsub.s32 %v6289_v0, %v715_v45  ;;  %v729_v61 = vmul.u32 28, %v728_v51  ;;  %v6488_v23 = vmul.u32.u64.low 2454267026, %v6460_v63  ;;  %v6489_v38 = vmul.u32.u64.high 2454267026, %v6460_v63, %v6488_v23 }
 0x1e5   :  { %10624 = vst [vmem:[#allocation90_spill] sm:$0xff] %v6482_v53  ;;  %v6492_v60 = vmin.u32 %v762_v32, %v6455_v40  ;;  %v6495_v14 = vadd.s32 %v10625_v30, %v316_v49  ;;  %v1215_v59 = vsel %vm6472_vm15, %v1183_v57, %v6426_v35  ;;  %vm1098_vm0 = vcmp.ne.s32.totalorder %v6478_v5, 0 }
 0x1e6   :  { %v6503_v0 = vshll.u32 %v572_v6, 16  ;;  %v331_v45 = vcvt.f32.s32 %v6354_v2  ;;  %vm719_vm3 = vcmp.lt.s32.totalorder %v6307_v31, 0  ;;  %v743_v32 = vmul.u32 28, %v742_v43 }
 0x1e7   :  { %v6506_v51 = vpop.xlane.xlu1 %419  ;;  %v4782_v58 = vpop.eup %4781  ;;  %vm753_vm5 = vc.u32 %v6488_v23, 2454267026  ;;  %v6510_v49 = vmul.u32.u64.low 2454267026, %v6492_v60  ;;  %v6511_v30 = vmul.u32.u64.high 2454267026, %v6492_v60, %v6510_v49  ;;  %vm1130_vm9 = vcmp.lt.s32.totalorder %v6478_v5, 0 }
 0x1e8   :  { %10626 = vst [vmem:[#allocation35_spill] sm:$0xff] %v6503_v0  ;;  %v730_v57 = vsub.s32 %v6347_v41, %v729_v61  ;;  %v754_v6 = vsel %vm753_vm5, 1, %v10562_v4  ;;  %v776_v35 = vsub.s32 0, %v6495_v14  ;;  %v717_v2 = vsub.s32 0, %v716_v48  ;;  %v10627_v0 = vld [vmem:[#allocation37_spill] sm:$0xff]  ;;  %v10628_v41 = vld [vmem:[#allocation10_spill] sm:$0xff]  ;;  %vm6537_vm2 = vmand %vm1130_vm9, %vm1098_vm0 }
 0x1e9   :  { %v755_v29 = vadd.s32 %v6489_v38, %v754_v6  ;;  %vm767_vm10 = vc.u32 %v6510_v49, 2454267026  ;;  %v6519_v12 = vadd.s32 %v10627_v0, %v331_v45  ;;  %v1194_v23 = vadd.s32 28, %v6478_v5  ;;  %v6543_v49 = vpop.xlane.xlu0 %2241 }
 0x1ea   :  { %v768_v43 = vsel %vm767_vm10, 1, %v10562_v4  ;;  %v6524_v53 = vmin.u32 %v776_v35, %v6495_v14  ;;  %vm597_vm1 = vcmp.eq.f32.partialorder %v10628_v41, %v6497_v13  ;;  %v6531_v16 = vmul.f32 %v4782_v58, %v6398_v47 }
 0x1eb   :  { %v6528_v61 = vpop.xlane.xlu1 %434  ;;  %vm733_vm4 = vcmp.lt.s32.totalorder %v6372_v25, 0  ;;  %v744_v0 = vsub.s32 %v6402_v36, %v743_v32  ;;  %v756_v45 = vshrl.u32 %v755_v29, 4  ;;  %v731_v6 = vsub.s32 0, %v730_v57 }
 0x1ec   :  { %10629 = vst [vmem:[#allocation37_spill] sm:$0xff] %v6531_v16  ;;  %v769_v35 = vadd.s32 %v6511_v30, %v768_v43  ;;  %v6547_v58 = vmul.u32.u64.low 2454267026, %v6524_v53  ;;  %v6548_v41 = vmul.u32.u64.high 2454267026, %v6524_v53, %v6547_v58  ;;  %v6550_v16 = vcvt.s32.f32 %v1215_v59 }
 0x1ed   :  { %v6554_v47 = vsel %vm705_vm8, %v717_v2, %v716_v48  ;;  %v790_v44 = vsub.s32 0, %v6519_v12  ;;  %v598_v36 = vsel %vm597_vm1, %v6154_v26, -inf  ;;  %v6558_v32 = vpop.eup %4783  ;;  %v1226_v30 = vsel %vm6537_vm2, %v1194_v23, %v6478_v5 }
 0x1ee   :  { %10632 = vst [vmem:[#allocation10_spill] sm:$0xff] %v6550_v16  ;;  %10633 = vst [vmem:[#allocation91_spill] sm:$0xff] %v6558_v32  ;;  %v2218_v29 = vcvt.f32.s32 %v6316_v19  ;;  %v757_v43 = vmul.u32 28, %v756_v45  ;;  %vm781_vm6 = vc.u32 %v6547_v58, 2454267026  ;;  %599 = vmax.xlane.f32.xlu0 %v598_v36  ;;  %v745_v28 = vsub.s32 0, %v744_v0 }
 0x1ef   :  { %v6564_v59 = vpop.xlane.xlu1 %449  ;;  %v782_v48 = vsel %vm781_vm6, 1, %v10562_v4  ;;  %v6568_v2 = vmin.u32 %v790_v44, %v6519_v12  ;;  %v346_v26 = vcvt.f32.s32 %v6381_v55  ;;  %vm1088_vm7 = vcmp.ne.s32.totalorder %v6554_v47, 0  ;;  %v10634_v36 = vld [vmem:[#allocation38_spill] sm:$0xff]  ;;  %v6583_v44 = vpop.xlane.xlu0 %2451 }
 0x1f0   :  { %vm1120_vm11 = vcmp.lt.s32.totalorder %v6554_v47, 0  ;;  %v732_v5 = vsel %vm719_vm3, %v731_v6, %v730_v57  ;;  %v770_v23 = vshrl.u32 %v769_v35, 4  ;;  %v783_v38 = vadd.s32 %v6548_v41, %v782_v48 }
 0x1f1   :  { %v6577_v45 = vmul.u32.u64.low 2454267026, %v6568_v2  ;;  %v6578_v58 = vmul.u32.u64.high 2454267026, %v6568_v2, %v6577_v45  ;;  %v6581_v32 = vadd.s32 %v10634_v36, %v346_v26  ;;  %4785 = vrsqrt.f32 %v6550_v16  ;;  %vm6601_vm13 = vmand %vm1120_vm11, %vm1088_vm7 }
 0x1f2   :  { %v6586_v55 = vcvt.s32.f32 %v1226_v30  ;;  %v1184_v20 = vadd.s32 28, %v6554_v47  ;;  %v758_v31 = vsub.s32 %v6460_v63, %v757_v43  ;;  %2020 = vmax.xlane.f32.xlu0 %v6121_v22  ;;  %v746_v6 = vsel %vm733_vm4, %v745_v28, %v744_v0 }
 0x1f3   :  { %v6591_v57 = vpop.xlane.xlu1 %464  ;;  %vm795_vm12 = vc.u32 %v6577_v45, 2454267026  ;;  %v804_v35 = vsub.s32 0, %v6581_v32  ;;  %v361_v41 = vcvt.f32.s32 %v6411_v24  ;;  %vm1089_vm14 = vcmp.ne.s32.totalorder %v732_v5, 0  ;;  %v10641_v45 = vld [vmem:[#allocation39_spill] sm:$0xff] }
 0x1f4   :  { %10635 = vst [vmem:[#allocation38_spill] sm:$0xff] %v6586_v55  ;;  %vm1121_vm15 = vcmp.lt.s32.totalorder %v732_v5, 0  ;;  %v2428_v22 = vcvt.f32.s32 %v6366_v33  ;;  %v771_v63 = vmul.u32 28, %v770_v23  ;;  %v1185_v25 = vadd.s32 28, %v732_v5 }
 0x1f5   :  { %v6606_v0 = vshll.u32 %v2218_v29, 16  ;;  %v784_v43 = vshrl.u32 %v783_v38, 4  ;;  %v6609_v28 = vmin.u32 %v804_v35, %v6581_v32  ;;  %vm1090_vm8 = vcmp.ne.s32.totalorder %v746_v6, 0  ;;  %vm6621_vm3 = vmand %vm1121_vm15, %vm1089_vm14 }
 0x1f6   :  { %vm1122_vm0 = vcmp.lt.s32.totalorder %v746_v6, 0  ;;  %v759_v24 = vsub.s32 0, %v758_v31  ;;  %v796_v48 = vsel %vm795_vm12, 1, %v10562_v4  ;;  %2050 = vmax.xlane.f32.xlu0 %v6135_v9  ;;  %v1216_v23 = vsel %vm6601_vm13, %v1184_v20, %v6554_v47  ;;  %v6630_v9 = vpop.xlane.xlu0 %2361 }
 0x1f7   :  { %10638 = vst [vmem:[#allocation92_spill] sm:$0xff] %v6606_v0  ;;  %v6614_v26 = vpop.xlane.xlu1 %479  ;;  %v2113_v38 = vcvt.f32.s32 %v6404_v50  ;;  %v2338_v36 = vcvt.f32.s32 %v6446_v15  ;;  %v6628_v35 = vadd.s32 %v10641_v45, %v361_v41  ;;  %v1186_v0 = vadd.s32 28, %v746_v6  ;;  %vm6640_vm5 = vmand %vm1122_vm0, %vm1090_vm8 }
 0x1f8   :  { %v772_v16 = vsub.s32 %v6492_v60, %v771_v63  ;;  %v6634_v20 = vmul.u32.u64.low 2454267026, %v6609_v28  ;;  %v6635_v47 = vmul.u32.u64.high 2454267026, %v6609_v28, %v6634_v20  ;;  %4787 = vrsqrt.f32 %v6586_v55 }
 0x1f9   :  { %vm747_vm9 = vcmp.lt.s32.totalorder %v6438_v18, 0  ;;  %v785_v41 = vmul.u32 28, %v784_v43  ;;  %v797_v45 = vadd.s32 %v6578_v58, %v796_v48  ;;  %v1217_v60 = vsel %vm6621_vm3, %v1185_v25, %v732_v5 }
 0x1fa   :  { %v6648_v63 = vshll.u32 %v2428_v22, 16  ;;  %v6650_v15 = vsel %vm747_vm9, %v759_v24, %v758_v31  ;;  %vm809_vm10 = vc.u32 %v6634_v20, 2454267026  ;;  %2065 = vmax.xlane.f32.xlu0 %v6222_v10  ;;  %v6655_v33 = vcvt.s32.f32 %v1216_v23  ;;  %v6672_v23 = vpop.xlane.xlu0 %625 }
 0x1fb   :  { %v6653_v55 = vpop.xlane.xlu1 %494  ;;  %v6657_v19 = vshll.u32 %v2113_v38, 16  ;;  %v810_v18 = vsel %vm809_vm10, 1, %v10562_v4  ;;  %v818_v58 = vsub.s32 0, %v6628_v35  ;;  %v6661_v43 = vpop.eup %4785  ;;  %v1218_v5 = vsel %vm6640_vm5, %v1186_v0, %v746_v6 }
 0x1fc   :  { %10644 = vst [vmem:[#allocation39_spill] sm:$0xff] %v6648_v63  ;;  %v773_v31 = vsub.s32 0, %v772_v16  ;;  %v6665_v22 = vshll.u32 %v2338_v36, 16  ;;  %v602_v10 = vcvt.f32.s32 %v6497_v13  ;;  %v6668_v25 = vcvt.s32.f32 %v1217_v60  ;;  %v10649_v60 = vld [vmem:[#allocation50_spill] sm:$0xff] }
 0x1fd   :  { %10645 = vst [vmem:[#allocation93_spill] sm:$0xff] %v6657_v19  ;;  %vm1091_vm1 = vcmp.ne.s32.totalorder %v6650_v15, 0  ;;  %v786_v24 = vsub.s32 %v6524_v53, %v785_v41  ;;  %v798_v48 = vshrl.u32 %v797_v45, 4  ;;  %vm1123_vm2 = vcmp.lt.s32.totalorder %v6650_v15, 0 }
 0x1fe   :  { %10646 = vst [vmem:[#allocation94_spill] sm:$0xff] %v6665_v22  ;;  %v811_v29 = vadd.s32 %v6635_v47, %v810_v18  ;;  %v6677_v6 = vmin.u32 %v818_v58, %v6628_v35  ;;  %v376_v0 = vcvt.f32.s32 %v6441_v7  ;;  %2080 = vmax.xlane.f32.xlu0 %v6395_v27  ;;  %4789 = vrsqrt.f32 %v6655_v33  ;;  %vm6695_vm6 = vmand %vm1123_vm2, %vm1091_vm1 }
 0x1ff   :  { %v6681_v13 = vpop.xlane.xlu1 %509  ;;  %v6684_v38 = vcvt.s32.f32 %v1218_v5  ;;  %vm761_vm4 = vcmp.lt.s32.totalorder %v6455_v40, 0  ;;  %v406_v53 = vcvt.f32.s32 %v6463_v1  ;;  %v1187_v36 = vadd.s32 28, %v6650_v15 }
 0x200   :  { %v774_v20 = vsel %vm761_vm4, %v773_v31, %v772_v16  ;;  %v6690_v47 = vmul.u32.u64.low 2454267026, %v6677_v6  ;;  %v6691_v30 = vmul.u32.u64.high 2454267026, %v6677_v6, %v6690_v47  ;;  %v787_v7 = vsub.s32 0, %v786_v24 }
 0x201   :  { %v799_v41 = vmul.u32 28, %v798_v48  ;;  %v812_v45 = vshrl.u32 %v811_v29, 4  ;;  %v6700_v40 = vadd.s32 %v10649_v60, %v376_v0  ;;  %4791 = vrsqrt.f32 %v6668_v25  ;;  %v525_v48 = vpop.xlane.xlu0 %524 }
 0x202   :  { %v6703_v1 = vshll.u32 %v602_v10, 16  ;;  %v2248_v16 = vcvt.f32.s32 %v6543_v49  ;;  %v6707_v18 = vadd.s32 %v6073_v34, %v406_v53  ;;  %v6711_v5 = vpop.eup %4787  ;;  %vm1092_vm7 = vcmp.ne.s32.totalorder %v774_v20, 0 }
 0x203   :  { %v6709_v58 = vpop.xlane.xlu1 %2406  ;;  %10651 = vst [vmem:[#allocation95_spill] sm:$0xff] %v6711_v5  ;;  %vm1124_vm11 = vcmp.lt.s32.totalorder %v774_v20, 0  ;;  %vm823_vm12 = vc.u32 %v6690_v47, 2454267026  ;;  %v832_v31 = vsub.s32 0, %v6700_v40  ;;  %4793 = vrsqrt.f32 %v6684_v38 }
 0x204   :  { %10650 = vst [vmem:[#allocation50_spill] sm:$0xff] %v6703_v1  ;;  %v1219_v10 = vsel %vm6695_vm6, %v1187_v36, %v6650_v15  ;;  %v1188_v29 = vadd.s32 28, %v774_v20  ;;  %vm775_vm13 = vcmp.lt.s32.totalorder %v6495_v14, 0  ;;  %v800_v0 = vsub.s32 %v6568_v2, %v799_v41  ;;  %vm6725_vm14 = vmand %vm1124_vm11, %vm1092_vm7  ;;  %v10654_v14 = vld [vmem:[#allocation75_spill] sm:$0xff] }
 0x205   :  { %v6719_v34 = vsel %vm775_vm13, %v787_v7, %v786_v24  ;;  %v813_v53 = vmul.u32 28, %v812_v45  ;;  %v6723_v60 = vmin.u32 %v832_v31, %v6700_v40  ;;  %vm789_vm15 = vcmp.lt.s32.totalorder %v6519_v12, 0 }
 0x206   :  { %v824_v27 = vsel %vm823_vm12, 1, %v10562_v4  ;;  %v860_v15 = vsub.s32 0, %v6707_v18  ;;  %v526_v36 = vcvt.f32.s32 %v525_v48  ;;  %vm2108_vm8 = vcmp.eq.f32.partialorder %v10654_v14, %v6404_v50 }
 0x207   :  { %v6734_v24 = vpop.xlane.xlu1 %2091  ;;  %v6736_v2 = vcvt.s32.f32 %v1219_v10  ;;  %v6738_v7 = vshll.u32 %v2248_v16, 16  ;;  %v2458_v41 = vcvt.f32.s32 %v6583_v44  ;;  %v421_v45 = vcvt.f32.s32 %v6506_v51  ;;  %v10656_v51 = vld [vmem:[#allocation80_spill] sm:$0xff] }
 0x208   :  { %v6743_v31 = vmul.u32.u64.low 2454267026, %v6723_v60  ;;  %v6744_v22 = vmul.u32.u64.high 2454267026, %v6723_v60, %v6743_v31  ;;  %v6747_v63 = vmin.u32 %v860_v15, %v6707_v18  ;;  %v6750_v48 = vadd.s32 %v6107_v21, %v526_v36  ;;  %v6752_v50 = vpop.eup %4789 }
 0x209   :  { %10655 = vst [vmem:[#allocation75_spill] sm:$0xff] %v6738_v7  ;;  %v1220_v16 = vsel %vm6725_vm14, %v1188_v29, %v774_v20  ;;  %vm1093_vm0 = vcmp.ne.s32.totalorder %v6719_v34, 0  ;;  %v825_v10 = vadd.s32 %v6691_v30, %v824_v27  ;;  %v2109_v14 = vsel %vm2108_vm8, %v10656_v51, -inf }
 0x20a   :  { %vm1125_vm3 = vcmp.lt.s32.totalorder %v6719_v34, 0  ;;  %v801_v7 = vsub.s32 0, %v800_v0  ;;  %v814_v15 = vsub.s32 %v6609_v28, %v813_v53  ;;  %vm837_vm5 = vc.u32 %v6743_v31, 2454267026  ;;  %2110 = vmax.xlane.f32.xlu0 %v2109_v14 }
 0x20b   :  { %v838_v21 = vsel %vm837_vm5, 1, %v10562_v4  ;;  %v6763_v36 = vmul.u32.u64.low 2454267026, %v6747_v63  ;;  %v6764_v19 = vmul.u32.u64.high 2454267026, %v6747_v63, %v6763_v36  ;;  %v6767_v20 = vadd.s32 %v6080_v62, %v421_v45  ;;  %v6769_v29 = vpop.xlane.xlu1 %2316  ;;  %v6771_v30 = vpop.eup %4791  ;;  %vm6783_vm10 = vmand %vm1125_vm3, %vm1093_vm0 }
 0x20c   :  { %v6773_v47 = vcvt.s32.f32 %v1220_v16  ;;  %v1189_v27 = vadd.s32 28, %v6719_v34  ;;  %vm803_vm9 = vcmp.lt.s32.totalorder %v6581_v32, 0  ;;  %v972_v28 = vsub.s32 0, %v6750_v48 }
 0x20d   :  { %4795 = vrsqrt.f32 %v6736_v2  ;;  %v6787_v53 = vshll.u32 %v2458_v41, 16  ;;  %v826_v45 = vshrl.u32 %v825_v10, 4  ;;  %vm865_vm1 = vc.u32 %v6763_v36, 2454267026  ;;  %v6789_v31 = vpop.eup %4793 }
 0x20e   :  { %v839_v51 = vadd.s32 %v6744_v22, %v838_v21  ;;  %v866_v14 = vsel %vm865_vm1, 1, %v10562_v4  ;;  %v6795_v1 = vmin.u32 %v972_v28, %v6750_v48  ;;  %2140 = vmax.xlane.f32.xlu0 %v6157_v17  ;;  %v6800_v5 = vsel %vm789_vm15, %v801_v7, %v800_v0 }
 0x20f   :  { %10659 = vst [vmem:[#allocation80_spill] sm:$0xff] %v6787_v53  ;;  %v815_v41 = vsub.s32 0, %v814_v15  ;;  %v867_v10 = vadd.s32 %v6764_v19, %v866_v14  ;;  %v874_v36 = vsub.s32 0, %v6767_v20  ;;  %4797 = vrsqrt.f32 %v6773_v47  ;;  %v6817_v19 = vpop.xlane.xlu1 %580 }
 0x210   :  { %v1221_v21 = vsel %vm6783_vm10, %v1189_v27, %v6719_v34  ;;  %v2368_v28 = vcvt.f32.s32 %v6630_v9  ;;  %v827_v17 = vmul.u32 28, %v826_v45  ;;  %vm1094_vm2 = vcmp.ne.s32.totalorder %v6800_v5, 0 }
 0x211   :  { %v6811_v12 = vmul.u32.u64.low 2454267026, %v6795_v1  ;;  %v6812_v0 = vmul.u32.u64.high 2454267026, %v6795_v1, %v6811_v12  ;;  %v6815_v7 = vmin.u32 %v874_v36, %v6767_v20  ;;  %vm1126_vm4 = vcmp.lt.s32.totalorder %v6800_v5, 0 }
 0x212   :  { %v840_v14 = vshrl.u32 %v839_v51, 4  ;;  %v436_v62 = vcvt.f32.s32 %v6528_v61  ;;  %2260 = vmax.xlane.f32.xlu0 %v6192_v56  ;;  %v6825_v34 = vsel %vm803_vm9, %v815_v41, %v814_v15  ;;  %v868_v27 = vshrl.u32 %v867_v10, 4  ;;  %vm6847_vm11 = vmand %vm1126_vm4, %vm1094_vm2 }
 0x213   :  { %vm977_vm6 = vc.u32 %v6811_v12, 2454267026  ;;  %v451_v45 = vcvt.f32.s32 %v6564_v59  ;;  %vm817_vm7 = vcmp.lt.s32.totalorder %v6628_v35, 0  ;;  %v466_v61 = vcvt.f32.s32 %v6591_v57 }
 0x214   :  { %v978_v36 = vsel %vm977_vm6, 1, %v10562_v4  ;;  %v6831_v22 = vmul.u32.u64.low 2454267026, %v6815_v7  ;;  %v6832_v16 = vmul.u32.u64.high 2454267026, %v6815_v7, %v6831_v22  ;;  %v1190_v56 = vadd.s32 28, %v6800_v5 }
 0x215   :  { %v828_v32 = vsub.s32 %v6677_v6, %v827_v17  ;;  %v632_v15 = vcvt.f32.s32 %v6672_v23  ;;  %v6839_v51 = vadd.s32 %v6082_v39, %v436_v62  ;;  %v6841_v59 = vcvt.s32.f32 %v1221_v21  ;;  %v6858_v17 = vpop.xlane.xlu1 %2226 }
 0x216   :  { %vm1095_vm12 = vcmp.ne.s32.totalorder %v6825_v34, 0  ;;  %v841_v57 = vmul.u32 28, %v840_v14  ;;  %vm879_vm13 = vc.u32 %v6831_v22, 2454267026  ;;  %2290 = vmax.xlane.f32.xlu0 %v6273_v3  ;;  %vm1127_vm14 = vcmp.lt.s32.totalorder %v6825_v34, 0 }
 0x217   :  { %v4796_v6 = vpop.eup %4795  ;;  %v869_v39 = vmul.u32 28, %v868_v27  ;;  %v979_v10 = vadd.s32 %v6812_v0, %v978_v36  ;;  %v6856_v21 = vadd.s32 %v6088_v8, %v451_v45  ;;  %v6860_v12 = vshll.u32 %v2368_v28, 16  ;;  %vm6878_vm15 = vmand %vm1127_vm14, %vm1095_vm12 }
 0x218   :  { %v880_v62 = vsel %vm879_vm13, 1, %v10562_v4  ;;  %v888_v14 = vsub.s32 0, %v6839_v51  ;;  %v6865_v22 = vadd.s32 %v6090_v37, %v466_v61  ;;  %v1222_v3 = vsel %vm6847_vm11, %v1190_v56, %v6800_v5 }
 0x219   :  { %10662 = vst [vmem:[#allocation96_spill] sm:$0xff] %v6860_v12  ;;  %v1191_v0 = vadd.s32 28, %v6825_v34  ;;  %v829_v27 = vsub.s32 0, %v828_v32  ;;  %v6871_v8 = vshll.u32 %v632_v15, 16  ;;  %v4798_v45 = vpop.eup %4797  ;;  %4799 = vrsqrt.f32 %v6841_v59 }
 0x21a   :  { %vm831_vm8 = vcmp.lt.s32.totalorder %v6700_v40, 0  ;;  %v842_v37 = vsub.s32 %v6723_v60, %v841_v57  ;;  %v881_v5 = vadd.s32 %v6832_v16, %v880_v62  ;;  %2395 = vmax.xlane.f32.xlu0 %v6322_v46  ;;  %v870_v36 = vsub.s32 %v6747_v63, %v869_v39 }
 0x21b   :  { %10663 = vst [vmem:[#allocation97_spill] sm:$0xff] %v6871_v8  ;;  %v980_v61 = vshrl.u32 %v979_v10, 4  ;;  %v6888_v56 = vmin.u32 %v888_v14, %v6839_v51  ;;  %v902_v15 = vsub.s32 0, %v6856_v21  ;;  %v6892_v41 = vmul.f32 %v4796_v6, %v6736_v2  ;;  %v6911_v6 = vpop.xlane.xlu1 %2436 }
 0x21c   :  { %v6894_v8 = vcvt.s32.f32 %v1222_v3  ;;  %vm859_vm0 = vcmp.lt.s32.totalorder %v6707_v18, 0  ;;  %v916_v60 = vsub.s32 0, %v6865_v22  ;;  %v6899_v16 = vmul.f32 %v4798_v45, %v6773_v47 }
 0x21d   :  { %v1223_v46 = vsel %vm6878_vm15, %v1191_v0, %v6825_v34  ;;  %v6906_v63 = vsel %vm817_vm7, %v829_v27, %v828_v32  ;;  %v6909_v57 = vmin.u32 %v902_v15, %v6856_v21  ;;  %v843_v39 = vsub.s32 0, %v842_v37 }
 0x21e   :  { %10666 = vst [vmem:[#allocation98_spill] sm:$0xff] %v6894_v8  ;;  %v882_v10 = vshrl.u32 %v881_v5, 4  ;;  %v6914_v62 = vmul.u32.u64.low 2454267026, %v6888_v56  ;;  %v6915_v14 = vmul.u32.u64.high 2454267026, %v6888_v56, %v6914_v62  ;;  %v871_v3 = vsub.s32 0, %v870_v36 }
 0x21f   :  { %v981_v45 = vmul.u32 28, %v980_v61  ;;  %v6918_v28 = vmin.u32 %v916_v60, %v6865_v22  ;;  %v481_v35 = vcvt.f32.s32 %v6614_v26  ;;  %v496_v0 = vcvt.f32.s32 %v6653_v55 }
 0x220   :  { %vm893_vm3 = vc.u32 %v6914_v62, 2454267026  ;;  %v6922_v34 = vmul.u32.u64.low 2454267026, %v6909_v57  ;;  %v6923_v32 = vmul.u32.u64.high 2454267026, %v6909_v57, %v6922_v34  ;;  %4801 = vrsqrt.f32 %v6894_v8  ;;  %v6943_v62 = vpop.xlane.xlu1 %2121 }
 0x221   :  { %v6927_v27 = vcvt.s32.f32 %v1223_v46  ;;  %vm1096_vm5 = vcmp.ne.s32.totalorder %v6906_v63, 0  ;;  %v894_v5 = vsel %vm893_vm3, 1, %v10562_v4  ;;  %vm1128_vm9 = vcmp.lt.s32.totalorder %v6906_v63, 0 }
 0x222   :  { %v6934_v26 = vsel %vm831_vm8, %v843_v39, %v842_v37  ;;  %vm971_vm10 = vcmp.lt.s32.totalorder %v6750_v48, 0  ;;  %v883_v61 = vmul.u32 28, %v882_v10  ;;  %v895_v15 = vadd.s32 %v6915_v14, %v894_v5  ;;  %vm6962_vm6 = vmand %vm1128_vm9, %vm1096_vm5 }
 0x223   :  { %10667 = vst [vmem:[#allocation99_spill] sm:$0xff] %v6927_v27  ;;  %v982_v55 = vsub.s32 %v6795_v1, %v981_v45  ;;  %vm907_vm1 = vc.u32 %v6922_v34, 2454267026  ;;  %v6940_v60 = vmul.u32.u64.low 2454267026, %v6918_v28  ;;  %v6941_v46 = vmul.u32.u64.high 2454267026, %v6918_v28, %v6940_v60  ;;  %v6945_v12 = vpop.eup %4799 }
 0x224   :  { %v1192_v40 = vadd.s32 28, %v6906_v63  ;;  %v872_v37 = vsel %vm859_vm0, %v871_v3, %v870_v36  ;;  %v6951_v39 = vadd.s32 %v6099_v52, %v481_v35  ;;  %v6954_v10 = vadd.s32 %v6101_v54, %v496_v0 }
 0x225   :  { %vm1097_vm2 = vcmp.ne.s32.totalorder %v6934_v26, 0  ;;  %v896_v1 = vshrl.u32 %v895_v15, 4  ;;  %v908_v14 = vsel %vm907_vm1, 1, %v10562_v4  ;;  %vm921_vm4 = vc.u32 %v6940_v60, 2454267026 }
 0x226   :  { %vm1129_vm7 = vcmp.lt.s32.totalorder %v6934_v26, 0  ;;  %v884_v52 = vsub.s32 %v6815_v7, %v883_v61  ;;  %v909_v54 = vadd.s32 %v6923_v32, %v908_v14  ;;  %v922_v18 = vsel %vm921_vm4, 1, %v10562_v4  ;;  %v10670_v32 = vld [vmem:[#allocation70_spill] sm:$0xff]  ;;  %v6980_v61 = vpop.xlane.xlu1 %2346 }
 0x227   :  { %vm1099_vm11 = vcmp.ne.s32.totalorder %v872_v37, 0  ;;  %vm1131_vm12 = vcmp.lt.s32.totalorder %v872_v37, 0  ;;  %v983_v36 = vsub.s32 0, %v982_v55  ;;  %v897_v3 = vmul.u32 28, %v896_v1  ;;  %vm6986_vm15 = vmand %vm1129_vm7, %vm1097_vm2 }
 0x228   :  { %v910_v35 = vshrl.u32 %v909_v54, 4  ;;  %v923_v34 = vadd.s32 %v6941_v46, %v922_v18  ;;  %v930_v0 = vsub.s32 0, %v6951_v39  ;;  %v944_v5 = vsub.s32 0, %v6954_v10  ;;  %vm7001_vm8 = vmand %vm1131_vm12, %vm1099_vm11 }
 0x229   :  { %v1224_v15 = vsel %vm6962_vm6, %v1192_v40, %v6906_v63  ;;  %v1193_v7 = vadd.s32 28, %v6934_v26  ;;  %vm873_vm13 = vcmp.lt.s32.totalorder %v6767_v20, 0  ;;  %vm2303_vm14 = vcmp.eq.f32.partialorder %v10670_v32, %v6237_v42  ;;  %v10676_v20 = vld [vmem:[#allocation69_spill] sm:$0xff] }
 0x22a   :  { %v1195_v46 = vadd.s32 28, %v872_v37  ;;  %v885_v1 = vsub.s32 0, %v884_v52  ;;  %v6991_v63 = vmin.u32 %v930_v0, %v6951_v39  ;;  %v6994_v40 = vmin.u32 %v944_v5, %v6954_v10  ;;  %v6996_v14 = vpop.eup %4801 }
 0x22b   :  { %10673 = vst [vmem:[#allocation70_spill] sm:$0xff] %v6996_v14  ;;  %4803 = vrsqrt.f32 %v6927_v27  ;;  %v7007_v45 = vsel %vm971_vm10, %v983_v36, %v982_v55  ;;  %v898_v54 = vsub.s32 %v6888_v56, %v897_v3  ;;  %v2304_v18 = vsel %vm2303_vm14, %v5994_v11, -inf  ;;  %v7031_v3 = vpop.xlane.xlu1 %610 }
 0x22c   :  { %v911_v0 = vmul.u32 28, %v910_v35  ;;  %v924_v5 = vshrl.u32 %v923_v34, 4  ;;  %v7012_v32 = vmul.u32.u64.low 2454267026, %v6991_v63  ;;  %v7013_v53 = vmul.u32.u64.high 2454267026, %v6991_v63, %v7012_v32  ;;  %2305 = vmax.xlane.f32.xlu0 %v2304_v18 }
 0x22d   :  { %v7015_v27 = vcvt.s32.f32 %v1224_v15  ;;  %v7018_v14 = vmul.u32.u64.low 2454267026, %v6994_v40  ;;  %v7019_v8 = vmul.u32.u64.high 2454267026, %v6994_v40, %v7018_v14  ;;  %v511_v48 = vcvt.f32.s32 %v6681_v13 }
 0x22e   :  { %v1225_v56 = vsel %vm6986_vm15, %v1193_v7, %v6934_v26  ;;  %v1227_v11 = vsel %vm7001_vm8, %v1195_v46, %v872_v37  ;;  %vm1107_vm0 = vcmp.ne.s32.totalorder %v7007_v45, 0  ;;  %v886_v55 = vsel %vm873_vm13, %v885_v1, %v884_v52  ;;  %v10677_v46 = vld [vmem:[#allocation48_spill] sm:$0xff]  ;;  %v10686_v1 = vld [vmem:[#allocation49_spill] sm:$0xff] }
 0x22f   :  { %vm1139_vm3 = vcmp.lt.s32.totalorder %v7007_v45, 0  ;;  %v899_v36 = vsub.s32 0, %v898_v54  ;;  %vm935_vm5 = vc.u32 %v7012_v32, 2454267026  ;;  %vm949_vm9 = vc.u32 %v7018_v14, 2454267026 }
 0x230   :  { %v912_v13 = vsub.s32 %v6909_v57, %v911_v0  ;;  %v925_v35 = vmul.u32 28, %v924_v5  ;;  %v936_v26 = vsel %vm935_vm5, 1, %v10562_v4  ;;  %v950_v34 = vsel %vm949_vm9, 1, %v10562_v4  ;;  %v10678_v57 = vld [vmem:[#allocation72_spill] sm:$0xff]  ;;  %vm7051_vm4 = vmand %vm1139_vm3, %vm1107_vm0 }
 0x231   :  { %v7036_v37 = vcvt.s32.f32 %v1227_v11  ;;  %vm1100_vm10 = vcmp.ne.s32.totalorder %v886_v55, 0  ;;  %vm1132_vm1 = vcmp.lt.s32.totalorder %v886_v55, 0  ;;  %v7039_v52 = vadd.s32 %v10676_v20, %v511_v48 }
 0x232   :  { %v1203_v15 = vadd.s32 28, %v7007_v45  ;;  %v937_v7 = vadd.s32 %v7013_v53, %v936_v26  ;;  %v951_v60 = vadd.s32 %v7019_v8, %v950_v34  ;;  %vm2213_vm2 = vcmp.eq.f32.partialorder %v10678_v57, %v10677_v46  ;;  %vm7057_vm11 = vmand %vm1132_vm1, %vm1100_vm10  ;;  %v7070_v34 = vpop.xlane.xlu1 %2466 }
 0x233   :  { %4805 = vrsqrt.f32 %v7015_v27  ;;  %v1196_v14 = vadd.s32 28, %v886_v55  ;;  %vm887_vm6 = vcmp.lt.s32.totalorder %v6839_v51, 0  ;;  %vm901_vm7 = vcmp.lt.s32.totalorder %v6856_v21, 0  ;;  %v10683_v51 = vld [vmem:[#allocation59_spill] sm:$0xff] }
 0x234   :  { %v7061_v8 = vsel %vm887_vm6, %v899_v36, %v898_v54  ;;  %v913_v42 = vsub.s32 0, %v912_v13  ;;  %v926_v18 = vsub.s32 %v6918_v28, %v925_v35  ;;  %v938_v0 = vshrl.u32 %v937_v7, 4  ;;  %v10684_v28 = vld [vmem:[#allocation63_spill] sm:$0xff]  ;;  %v10685_v35 = vld [vmem:[#allocation73_spill] sm:$0xff] }
 0x235   :  { %v7064_v5 = vpop.eup %4803  ;;  %v7066_v32 = vcvt.s32.f32 %v1225_v56  ;;  %v952_v48 = vshrl.u32 %v951_v60, 4  ;;  %v958_v11 = vsub.s32 0, %v7039_v52  ;;  %v2214_v26 = vsel %vm2213_vm2, %v10683_v51, -inf }
 0x236   :  { %4807 = vrsqrt.f32 %v7036_v37  ;;  %v1235_v54 = vsel %vm7051_vm4, %v1203_v15, %v7007_v45  ;;  %v939_v36 = vmul.u32 28, %v938_v0  ;;  %2215 = vmax.xlane.f32.xlu0 %v2214_v26  ;;  %vm2423_vm12 = vcmp.eq.f32.partialorder %v10685_v35, %v10684_v28  ;;  %v7107_v0 = vpop.xlane.xlu1 %2481 }
 0x237   :  { %v1228_v56 = vsel %vm7057_vm11, %v1196_v14, %v886_v55  ;;  %vm1101_vm13 = vcmp.ne.s32.totalorder %v7061_v8, 0  ;;  %v953_v20 = vmul.u32 28, %v952_v48  ;;  %v7082_v7 = vmin.u32 %v958_v11, %v7039_v52 }
 0x238   :  { %vm1133_vm14 = vcmp.lt.s32.totalorder %v7061_v8, 0  ;;  %v7087_v60 = vsel %vm901_vm7, %v913_v42, %v912_v13  ;;  %v927_v45 = vsub.s32 0, %v926_v18  ;;  %v940_v15 = vsub.s32 %v6991_v63, %v939_v36  ;;  %v10687_v13 = vld [vmem:[#allocation32_spill] sm:$0xff] }
 0x239   :  { %v954_v46 = vsub.s32 %v6994_v40, %v953_v20  ;;  %v7092_v57 = vmul.u32.u64.low 2454267026, %v7082_v7  ;;  %v7093_v55 = vmul.u32.u64.high 2454267026, %v7082_v7, %v7092_v57  ;;  %v2424_v14 = vsel %vm2423_vm12, %v10686_v1, -inf  ;;  %v10688_v42 = vld [vmem:[#allocation76_spill] sm:$0xff]  ;;  %vm7115_vm3 = vmand %vm1133_vm14, %vm1101_vm13  ;;  %v10693_v20 = vld [vmem:[#allocation15_spill] sm:$0xff] }
 0x23a   :  { %v7098_v53 = vmul.f32 %v6945_v12, %v6841_v59  ;;  %4809 = vrsqrt.f32 %v7066_v32  ;;  %v7101_v21 = vcvt.s32.f32 %v1228_v56  ;;  %2425 = vmax.xlane.f32.xlu0 %v2424_v14  ;;  %vm2333_vm15 = vcmp.eq.f32.partialorder %v10688_v42, %v10687_v13  ;;  %v10696_v14 = vld [vmem:[#allocation64_spill] sm:$0xff]  ;;  %v540_v42 = vpop.xlane.xlu1 %539 }
 0x23b   :  { %v1197_v63 = vadd.s32 28, %v7061_v8  ;;  %vm915_vm8 = vcmp.lt.s32.totalorder %v6865_v22, 0  ;;  %v941_v40 = vsub.s32 0, %v940_v15  ;;  %vm963_vm0 = vc.u32 %v7092_v57, 2454267026 }
 0x23c   :  { %v7109_v48 = vcvt.s32.f32 %v1235_v54  ;;  %vm1102_vm5 = vcmp.ne.s32.totalorder %v7087_v60, 0  ;;  %vm929_vm9 = vcmp.lt.s32.totalorder %v6951_v39, 0  ;;  %v964_v22 = vsel %vm963_vm0, 1, %v10562_v4  ;;  %v10691_v54 = vld [vmem:[#allocation55_spill] sm:$0xff] }
 0x23d   :  { %v7122_v11 = vpop.eup %4805  ;;  %vm1134_vm10 = vcmp.lt.s32.totalorder %v7087_v60, 0  ;;  %v928_v51 = vsel %vm915_vm8, %v927_v45, %v926_v18  ;;  %v955_v26 = vsub.s32 0, %v954_v46  ;;  %v2334_v36 = vsel %vm2333_vm15, %v10691_v54, -inf  ;;  %v10692_v39 = vld [vmem:[#allocation43_spill] sm:$0xff] }
 0x23e   :  { %4811 = vrsqrt.f32 %v7101_v21  ;;  %vm943_vm1 = vcmp.lt.s32.totalorder %v6954_v10, 0  ;;  %v965_v28 = vadd.s32 %v7093_v55, %v964_v22  ;;  %2335 = vmax.xlane.f32.xlu0 %v2334_v36  ;;  %vm2243_vm2 = vcmp.eq.f32.partialorder %v10692_v39, %v6543_v49  ;;  %vm7141_vm4 = vmand %vm1134_vm10, %vm1102_vm5  ;;  %v10703_v39 = vld [vmem:[#allocation18_spill] sm:$0xff] }
 0x23f   :  { %v1229_v18 = vsel %vm7115_vm3, %v1197_v63, %v7061_v8  ;;  %v1198_v35 = vadd.s32 28, %v7087_v60  ;;  %v942_v56 = vsel %vm929_vm9, %v941_v40, %v940_v15  ;;  %v576_v45 = vand.u32 65535, %v10693_v20  ;;  %v10697_v15 = vld [vmem:[#allocation16_spill] sm:$0xff] }
 0x240   :  { %v4808_v57 = vpop.eup %4807  ;;  %vm1103_vm6 = vcmp.ne.s32.totalorder %v928_v51, 0  ;;  %vm1135_vm7 = vcmp.lt.s32.totalorder %v928_v51, 0  ;;  %v1199_v55 = vadd.s32 28, %v928_v51  ;;  %v966_v49 = vshrl.u32 %v965_v28, 4  ;;  %v10698_v40 = vld [vmem:[#allocation12_spill] sm:$0xff] }
 0x241   :  { %v7145_v1 = vsel %vm943_vm1, %v955_v26, %v954_v46  ;;  %v2244_v8 = vsel %vm2243_vm2, %v10696_v14, -inf  ;;  %v578_v13 = vcvt.s32.f32 %v576_v45  ;;  %vm582_vm11 = vcmp.eq.f32.partialorder %v10697_v15, %v6817_v19  ;;  %vm7160_vm15 = vmand %vm1135_vm7, %vm1103_vm6 }
 0x242   :  { %vm1104_vm12 = vcmp.ne.s32.totalorder %v942_v56, 0  ;;  %vm1136_vm13 = vcmp.lt.s32.totalorder %v942_v56, 0  ;;  %v967_v63 = vmul.u32 28, %v966_v49  ;;  %2245 = vmax.xlane.f32.xlu0 %v2244_v8  ;;  %vm2453_vm14 = vcmp.eq.f32.partialorder %v10698_v40, %v6583_v44  ;;  %v10707_v49 = vld [vmem:[#allocation31_spill] sm:$0xff] }
 0x243   :  { %4813 = vrsqrt.f32 %v7109_v48  ;;  %v7153_v12 = vcvt.s32.f32 %v1229_v18  ;;  %v1230_v46 = vsel %vm7141_vm4, %v1198_v35, %v7087_v60  ;;  %v583_v26 = vsel %vm582_vm11, %v578_v13, -inf  ;;  %vm7174_vm3 = vmand %vm1136_vm13, %vm1104_vm12  ;;  %v10704_v35 = vld [vmem:[#allocation24_spill] sm:$0xff] }
 0x244   :  { %v7164_v54 = vpop.eup %4809  ;;  %v1200_v36 = vadd.s32 28, %v942_v56  ;;  %vm1105_vm8 = vcmp.ne.s32.totalorder %v7145_v1, 0  ;;  %vm1137_vm0 = vcmp.lt.s32.totalorder %v7145_v1, 0  ;;  %v968_v44 = vsub.s32 %v7082_v7, %v967_v63  ;;  %584 = vmax.xlane.f32.xlu1 %v583_v26  ;;  %v555_v63 = vpop.xlane.xlu1 %554 }
 0x245   :  { %v7170_v28 = vmul.f32 %v4808_v57, %v7036_v37  ;;  %vm957_vm5 = vcmp.lt.s32.totalorder %v7039_v52, 0  ;;  %v2454_v18 = vsel %vm2453_vm14, %v10703_v39, -inf  ;;  %v10705_v20 = vand.u32 65535, %v10704_v35  ;;  %v10706_v57 = vld [vmem:[#allocation44_spill] sm:$0xff]  ;;  %vm7196_vm1 = vmand %vm1137_vm0, %vm1105_vm8  ;;  %v10712_v39 = vld [vmem:[#allocation14_spill] sm:$0xff] }
 0x246   :  { %v1231_v7 = vsel %vm7160_vm15, %v1199_v55, %v928_v51  ;;  %v1201_v10 = vadd.s32 28, %v7145_v1  ;;  %2455 = vmax.xlane.f32.xlu0 %v2454_v18  ;;  %vm2363_vm9 = vcmp.eq.f32.partialorder %v10706_v57, %v6630_v9  ;;  %vm612_vm10 = vcmp.eq.f32.partialorder %v10707_v49, %v7031_v3  ;;  %v10710_v51 = vld [vmem:[#allocation11_spill] sm:$0xff]  ;;  %v10713_v49 = vld [vmem:[#allocation81_spill] sm:$0xff] }
 0x247   :  { %v608_v45 = vcvt.s32.f32 %v10705_v20  ;;  %4815 = vrsqrt.f32 %v7153_v12  ;;  %v7190_v14 = vcvt.s32.f32 %v1230_v46  ;;  %v10711_v55 = vand.u32 65535, %v10710_v51  ;;  %v10714_v57 = vld [vmem:[#allocation41_spill] sm:$0xff] }
 0x248   :  { %v4812_v40 = vpop.eup %4811  ;;  %v1232_v22 = vsel %vm7174_vm3, %v1200_v36, %v942_v56  ;;  %v969_v26 = vsub.s32 0, %v968_v44  ;;  %v2413_v46 = vcvt.f32.s32 %v6709_v58  ;;  %vm627_vm2 = vcmp.eq.f32.partialorder %v10712_v39, %v6672_v23 }
 0x249   :  { %v623_v13 = vcvt.s32.f32 %v10711_v55  ;;  %v613_v15 = vsel %vm612_vm10, %v608_v45, -inf  ;;  %v7207_v18 = vcvt.s32.f32 %v1231_v7  ;;  %v2098_v35 = vcvt.f32.s32 %v6734_v24 }
 0x24a   :  { %614 = vmax.xlane.f32.xlu1 %v613_v15  ;;  %v2323_v20 = vcvt.f32.s32 %v6769_v29  ;;  %v2364_v45 = vsel %vm2363_vm9, %v10713_v49, -inf  ;;  %v1233_v56 = vsel %vm7196_vm1, %v1201_v10, %v7145_v1  ;;  %v587_v36 = vcvt.f32.s32 %v6817_v19  ;;  %v10715_v1 = vld [vmem:[#allocation19_spill] sm:$0xff]  ;;  %v10723_v49 = vld [vmem:[#allocation82_spill] sm:$0xff] }
 0x24b   :  { %2365 = vmax.xlane.f32.xlu0 %v2364_v45  ;;  %v541_v23 = vcvt.f32.s32 %v540_v42  ;;  %v556_v60 = vcvt.f32.s32 %v555_v63  ;;  %v7220_v7 = vmul.f32 %v4812_v40, %v7101_v21  ;;  %4817 = vrsqrt.f32 %v7190_v14  ;;  %v10716_v19 = vld [vmem:[#allocation47_spill] sm:$0xff] }
 0x24c   :  { %v7223_v51 = vcvt.s32.f32 %v1232_v22  ;;  %v628_v55 = vsel %vm627_vm2, %v623_v13, -inf  ;;  %v7227_v9 = vsel %vm957_vm5, %v969_v26, %v968_v44  ;;  %vm2093_vm4 = vcmp.eq.f32.partialorder %v10715_v1, %v6734_v24  ;;  %v10717_v10 = vld [vmem:[#allocation71_spill] sm:$0xff] }
 0x24d   :  { %v7233_v42 = vadd.s32 %v10716_v19, %v541_v23  ;;  %v7236_v8 = vadd.s32 %v10717_v10, %v556_v60  ;;  %v7238_v15 = vpop.eup %4813  ;;  %4819 = vrsqrt.f32 %v7207_v18  ;;  %v7241_v13 = vcvt.s32.f32 %v1233_v56  ;;  %v10727_v10 = vld [vmem:[#allocation61_spill] sm:$0xff] }
 0x24e   :  { %2035 = vmax.xlane.f32.xlu1 %v10714_v57  ;;  %10718 = vst [vmem:[#allocation69_spill] sm:$0xff] %v7238_v15  ;;  %v7243_v52 = vshll.u32 %v2413_v46, 16  ;;  %v7245_v44 = vshll.u32 %v2098_v35, 16  ;;  %v7247_v63 = vshll.u32 %v2323_v20, 16  ;;  %v7249_v40 = vshll.u32 %v587_v36, 16  ;;  %v10724_v20 = vld [vmem:[#allocation25_spill] sm:$0xff] }
 0x24f   :  { %629 = vmax.xlane.f32.xlu0 %v628_v55  ;;  %v986_v22 = vsub.s32 0, %v7233_v42  ;;  %v1000_v26 = vsub.s32 0, %v7236_v8  ;;  %vm1106_vm6 = vcmp.ne.s32.totalorder %v7227_v9, 0  ;;  %vm1138_vm7 = vcmp.lt.s32.totalorder %v7227_v9, 0 }
 0x250   :  { %10719 = vst [vmem:[#allocation48_spill] sm:$0xff] %v7243_v52  ;;  %10720 = vst [vmem:[#allocation72_spill] sm:$0xff] %v7245_v44  ;;  %v2233_v39 = vcvt.f32.s32 %v6858_v17  ;;  %v2094_v46 = vsel %vm2093_vm4, %v10723_v49, -inf  ;;  %4821 = vrsqrt.f32 %v7223_v51  ;;  %vm2123_vm11 = vcmp.eq.f32.partialorder %v10724_v20, %v6943_v62  ;;  %v10729_v20 = vld [vmem:[#allocation60_spill] sm:$0xff] }
 0x251   :  { %10721 = vst [vmem:[#allocation59_spill] sm:$0xff] %v7247_v63  ;;  %10722 = vst [vmem:[#allocation63_spill] sm:$0xff] %v7249_v40  ;;  %v4602_v35 = vmin.u32 %v986_v22, %v7233_v42  ;;  %v4603_v45 = vmin.u32 %v1000_v26, %v7236_v8  ;;  %v7265_v56 = vpop.eup %4815  ;;  %4823 = vrsqrt.f32 %v7241_v13  ;;  %v1202_v36 = vadd.s32 28, %v7227_v9 }
 0x252   :  { %2095 = vmax.xlane.f32.xlu1 %v2094_v46  ;;  %v2443_v23 = vcvt.f32.s32 %v6911_v6  ;;  %v2128_v24 = vcvt.f32.s32 %v6943_v62  ;;  %vm7271_vm12 = vmand %vm1138_vm7, %vm1106_vm6  ;;  %vm1277_vm13 = vcmp.eq.f32.partialorder %v10727_v10, inf  ;;  %v2353_v22 = vcvt.f32.s32 %v6980_v61  ;;  %v10728_v46 = vld [vmem:[#allocation83_spill] sm:$0xff] }
 0x253   :  { %v7275_v55 = vmul.u32.u64.low 2454267026, %v4602_v35  ;;  %v7276_v57 = vmul.u32.u64.high 2454267026, %v4602_v35, %v7275_v55  ;;  %v7278_v1 = vmul.u32.u64.low 2454267026, %v4603_v45  ;;  %v7279_v19 = vmul.u32.u64.high 2454267026, %v4603_v45, %v7278_v1 }
 0x254   :  { %v617_v26 = vcvt.f32.s32 %v7031_v3  ;;  %v2473_v49 = vcvt.f32.s32 %v7070_v34  ;;  %v2124_v62 = vsel %vm2123_vm11, %v10728_v46, -inf  ;;  %vm1284_vm14 = vcmp.eq.f32.partialorder %v10729_v20, inf }
 0x255   :  { %v7287_v63 = vshll.u32 %v2233_v39, 16  ;;  %v2488_v52 = vcvt.f32.s32 %v7107_v0  ;;  %vm991_vm15 = vc.u32 %v7275_v55, 2454267026  ;;  %vm1005_vm8 = vc.u32 %v7278_v1, 2454267026  ;;  %v7290_v44 = vpop.eup %4817  ;;  %v10732_v55 = vld [vmem:[#allocation45_spill] sm:$0xff] }
 0x256   :  { %2125 = vmax.xlane.f32.xlu1 %v2124_v62  ;;  %v1234_v40 = vsel %vm7271_vm12, %v1202_v36, %v7227_v9  ;;  %v7295_v3 = vshll.u32 %v2443_v23, 16  ;;  %v992_v15 = vsel %vm991_vm15, 1, %v10562_v4  ;;  %v1006_v46 = vsel %vm1005_vm8, 1, %v10562_v4  ;;  %v10733_v1 = vld [vmem:[#allocation46_spill] sm:$0xff] }
 0x257   :  { %10730 = vst [vmem:[#allocation73_spill] sm:$0xff] %v7287_v63  ;;  %v993_v39 = vadd.s32 %v7276_v57, %v992_v15  ;;  %v1007_v63 = vadd.s32 %v7279_v19, %v1006_v46  ;;  %vm2408_vm0 = vcmp.eq.f32.partialorder %v10732_v55, %v6709_v58  ;;  %vm2318_vm3 = vcmp.eq.f32.partialorder %v10733_v1, %v6769_v29  ;;  %v7305_v62 = vpop.eup %4819  ;;  %v10739_v19 = vld [vmem:[#allocation42_spill] sm:$0xff]  ;;  %v10741_v46 = vld [vmem:[#allocation68_spill] sm:$0xff] }
 0x258   :  { %10731 = vst [vmem:[#allocation49_spill] sm:$0xff] %v7295_v3  ;;  %v7307_v60 = vshll.u32 %v2128_v24, 16  ;;  %v7309_v9 = vshll.u32 %v2353_v22, 16  ;;  %v7311_v36 = vshll.u32 %v617_v26, 16  ;;  %v7313_v23 = vshll.u32 %v2473_v49, 16  ;;  %v10740_v58 = vld [vmem:[#allocation34_spill] sm:$0xff] }
 0x259   :  { %v7315_v3 = vshll.u32 %v2488_v52, 16  ;;  %v994_v15 = vshrl.u32 %v993_v39, 4  ;;  %v1008_v57 = vshrl.u32 %v1007_v63, 4  ;;  %vm2228_vm5 = vcmp.eq.f32.partialorder %v10740_v58, %v6858_v17  ;;  %v10742_v22 = vld [vmem:[#allocation65_spill] sm:$0xff]  ;;  %v10743_v26 = vld [vmem:[#allocation20_spill] sm:$0xff]  ;;  %v10748_v58 = vld [vmem:[#allocation51_spill] sm:$0xff] }
 0x25a   :  { %10734 = vst [vmem:[#allocation32_spill] sm:$0xff] %v7307_v60  ;;  %10735 = vst [vmem:[#allocation76_spill] sm:$0xff] %v7309_v9  ;;  %2155 = vmax.xlane.f32.xlu1 %v10739_v19  ;;  %v7320_v29 = vcvt.s32.f32 %v1234_v40  ;;  %v7323_v24 = vsel %vm2408_vm0, %v10741_v46, -inf  ;;  %v7326_v55 = vsel %vm2318_vm3, %v10742_v22, -inf  ;;  %vm2438_vm9 = vcmp.eq.f32.partialorder %v10743_v26, %v6911_v6  ;;  %v7330_v52 = vpop.eup %4821  ;;  %v10744_v39 = vld [vmem:[#allocation29_spill] sm:$0xff]  ;;  %v10746_v1 = vld [vmem:[#allocation84_spill] sm:$0xff] }
 0x25b   :  { %10736 = vst [vmem:[#allocation55_spill] sm:$0xff] %v7311_v36  ;;  %10737 = vst [vmem:[#allocation43_spill] sm:$0xff] %v7313_v23  ;;  %v995_v49 = vmul.u32 28, %v994_v15  ;;  %v1009_v63 = vmul.u32 28, %v1008_v57  ;;  %vm2348_vm10 = vcmp.eq.f32.partialorder %v10744_v39, %v6980_v61  ;;  %v10745_v17 = vld [vmem:[#allocation57_spill] sm:$0xff]  ;;  %v7336_v40 = vpop.eup %4823  ;;  %vm985_vm2 = vcmp.lt.s32.totalorder %v7233_v42, 0 }
 0x25c   :  { %10738 = vst [vmem:[#allocation15_spill] sm:$0xff] %v7315_v3  ;;  %vm2468_vm1 = vcmp.eq.f32.partialorder %v10745_v17, %v7070_v34  ;;  %vm999_vm4 = vcmp.lt.s32.totalorder %v7236_v8, 0  ;;  %v7341_v19 = vsel %vm2228_vm5, %v10746_v1, -inf  ;;  %v10747_v6 = vld [vmem:[#allocation17_spill] sm:$0xff]  ;;  %v10751_v26 = vld [vmem:[#allocation86_spill] sm:$0xff]  ;;  %v10752_v17 = vld [vmem:[#allocation87_spill] sm:$0xff] }
 0x25d   :  { %vm2483_vm6 = vcmp.eq.f32.partialorder %v10747_v6, %v7107_v0  ;;  %v996_v15 = vsub.s32 %v4602_v35, %v995_v49  ;;  %v1010_v57 = vsub.s32 %v4603_v45, %v1009_v63  ;;  %v10749_v61 = vld [vmem:[#allocation85_spill] sm:$0xff]  ;;  %v7354_v39 = vsel %vm2348_vm10, %v10751_v26, -inf  ;;  %v10753_v3 = vld [vmem:[#allocation90_spill] sm:$0xff]  ;;  %v10754_v35 = vld [vmem:[#allocation79_spill] sm:$0xff] }
 0x25e   :  { %2170 = vmax.xlane.f32.xlu1 %v10748_v58  ;;  %v7347_v46 = vsel %vm2438_vm9, %v10749_v61, -inf  ;;  %v10750_v34 = vld [vmem:[#allocation33_spill] sm:$0xff]  ;;  %v7357_v1 = vsel %vm2468_vm1, %v10752_v17, -inf  ;;  %v1285_v0 = vsel %vm1284_vm14, %v10729_v20, %v10753_v3  ;;  %v10755_v45 = vld [vmem:[#allocation91_spill] sm:$0xff]  ;;  %v10756_v58 = vld [vmem:[#allocation88_spill] sm:$0xff]  ;;  %vm1279_vm7 = vcmp.eq.f32.partialorder %v10727_v10, 0.0 }
 0x25f   :  { %v1278_v22 = vsel %vm1277_vm13, %v10727_v10, %v10750_v34  ;;  %v1297_v49 = vmul.f32 %v10755_v45, %v10754_v35  ;;  %v997_v63 = vsub.s32 0, %v996_v15  ;;  %v1011_v6 = vsub.s32 0, %v1010_v57  ;;  %v10759_v17 = vld [vmem:[#allocation28_spill] sm:$0xff]  ;;  %v10760_v45 = vld [vmem:[#allocation54_spill] sm:$0xff] }
 0x260   :  { %v7366_v61 = vsel %vm2483_vm6, %v10756_v58, -inf  ;;  %v10757_v34 = vand.u32 2147483648, %v10727_v10  ;;  %vm1286_vm11 = vcmp.eq.f32.partialorder %v10729_v20, 0.0  ;;  %vm1291_vm12 = vcmp.eq.f32.partialorder %v10759_v17, inf  ;;  %v10763_v10 = vld [vmem:[#allocation10_spill] sm:$0xff] }
 0x261   :  { %vm1293_vm13 = vcmp.eq.f32.partialorder %v10759_v17, 0.0  ;;  %v998_v3 = vsel %vm985_vm2, %v997_v63, %v996_v15  ;;  %v10761_v58 = vand.u32 2147483648, %v10729_v20  ;;  %vm1298_vm14 = vcmp.eq.f32.partialorder %v10754_v35, inf  ;;  %v10765_v8 = vld [vmem:[#allocation58_spill] sm:$0xff] }
 0x262   :  { %v7371_v26 = vsel %vm1279_vm7, %v10757_v34, %v1278_v22  ;;  %2275 = vmax.xlane.f32.xlu1 %v10760_v45  ;;  %v1304_v22 = vmul.f32 %v6661_v43, %v10763_v10  ;;  %v10764_v34 = vld [vmem:[#allocation37_spill] sm:$0xff]  ;;  %v1294_v60 = vand.u32 2147483648, %v10759_v17  ;;  %v1299_v36 = vsel %vm1298_vm14, %v10754_v35, %v1297_v49  ;;  %v570_v20 = vpop.xlane.xlu0 %569 }
 0x263   :  { %10758 = vst [vmem:[#allocation64_spill] sm:$0xff] %v7371_v26  ;;  %v7381_v23 = vsel %vm1286_vm11, %v10761_v58, %v1285_v0  ;;  %v1292_v9 = vsel %vm1291_vm12, %v10759_v17, %v10764_v34  ;;  %vm1300_vm15 = vcmp.eq.f32.partialorder %v10754_v35, 0.0  ;;  %v1012_v42 = vsel %vm999_vm4, %v1011_v6, %v1010_v57  ;;  %v10768_v6 = vld [vmem:[#allocation35_spill] sm:$0xff] }
 0x264   :  { %10762 = vst [vmem:[#allocation16_spill] sm:$0xff] %v7381_v23  ;;  %v1301_v15 = vand.u32 2147483648, %v10754_v35  ;;  %vm1305_vm8 = vcmp.eq.f32.partialorder %v10763_v10, inf  ;;  %v1311_v43 = vmul.f32 %v6752_v50, %v6655_v33  ;;  %vm1333_vm0 = vcmp.eq.f32.partialorder %v6736_v2, inf }
 0x265   :  { %vm1340_vm3 = vcmp.eq.f32.partialorder %v6773_v47, inf  ;;  %vm1108_vm5 = vcmp.ne.s32.totalorder %v998_v3, 0  ;;  %vm1140_vm9 = vcmp.lt.s32.totalorder %v998_v3, 0  ;;  %v571_v0 = vcvt.f32.s32 %v570_v20  ;;  %v10773_v20 = vld [vmem:[#allocation27_spill] sm:$0xff] }
 0x266   :  { %v1318_v49 = vmul.f32 %v6771_v30, %v6668_v25  ;;  %2185 = vmax.xlane.f32.xlu1 %v10765_v8  ;;  %v7404_v57 = vsel %vm1293_vm13, %v1294_v60, %v1292_v9  ;;  %v7406_v35 = vsel %vm1300_vm15, %v1301_v15, %v1299_v36  ;;  %v1306_v50 = vsel %vm1305_vm8, %v10763_v10, %v1304_v22  ;;  %vm7413_vm4 = vmand %vm1140_vm9, %vm1108_vm5 }
 0x267   :  { %10766 = vst [vmem:[#allocation12_spill] sm:$0xff] %v7404_v57  ;;  %10767 = vst [vmem:[#allocation18_spill] sm:$0xff] %v7406_v35  ;;  %vm1307_vm10 = vcmp.eq.f32.partialorder %v10763_v10, 0.0  ;;  %v1204_v63 = vadd.s32 28, %v998_v3  ;;  %vm1109_vm1 = vcmp.ne.s32.totalorder %v1012_v42, 0  ;;  %vm1141_vm2 = vcmp.lt.s32.totalorder %v1012_v42, 0 }
 0x268   :  { %v7411_v45 = vadd.s32 %v10768_v6, %v571_v0  ;;  %v1308_v17 = vand.u32 2147483648, %v10763_v10  ;;  %vm1312_vm6 = vcmp.eq.f32.partialorder %v6655_v33, inf  ;;  %vm1319_vm7 = vcmp.eq.f32.partialorder %v6668_v25, inf  ;;  %vm7425_vm11 = vmand %vm1141_vm2, %vm1109_vm1 }
 0x269   :  { %v1325_v60 = vmul.f32 %v6789_v31, %v6684_v38  ;;  %v1205_v9 = vadd.s32 28, %v1012_v42  ;;  %v1313_v58 = vsel %vm1312_vm6, %v6655_v33, %v1311_v43  ;;  %v1320_v22 = vsel %vm1319_vm7, %v6668_v25, %v1318_v49 }
 0x26a   :  { %v1014_v36 = vsub.s32 0, %v7411_v45  ;;  %2380 = vmax.xlane.f32.xlu1 %v10773_v20  ;;  %v7432_v15 = vsel %vm1307_vm10, %v1308_v17, %v1306_v50  ;;  %vm1314_vm12 = vcmp.eq.f32.partialorder %v6655_v33, 0.0  ;;  %v1315_v31 = vand.u32 2147483648, %v6655_v33 }
 0x26b   :  { %10774 = vst [vmem:[#allocation24_spill] sm:$0xff] %v7432_v15  ;;  %v1322_v0 = vand.u32 2147483648, %v6668_v25  ;;  %v1236_v43 = vsel %vm7413_vm4, %v1204_v63, %v998_v3  ;;  %vm1321_vm13 = vcmp.eq.f32.partialorder %v6668_v25, 0.0  ;;  %vm1326_vm14 = vcmp.eq.f32.partialorder %v6684_v38, inf  ;;  %v10777_v25 = vld [vmem:[#allocation66_spill] sm:$0xff] }
 0x26c   :  { %v4604_v49 = vmin.u32 %v1014_v36, %v7411_v45  ;;  %v7442_v8 = vsel %vm1314_vm12, %v1315_v31, %v1313_v58  ;;  %v1327_v50 = vsel %vm1326_vm14, %v6684_v38, %v1325_v60  ;;  %vm1328_vm15 = vcmp.eq.f32.partialorder %v6684_v38, 0.0 }
 0x26d   :  { %10775 = vst [vmem:[#allocation44_spill] sm:$0xff] %v7442_v8  ;;  %v7444_v10 = vsel %vm1321_vm13, %v1322_v0, %v1320_v22  ;;  %v1237_v33 = vsel %vm7425_vm11, %v1205_v9, %v1012_v42  ;;  %v1329_v3 = vand.u32 2147483648, %v6684_v38  ;;  %v7454_v63 = vcvt.s32.f32 %v1236_v43  ;;  %v10779_v38 = vld [vmem:[#allocation98_spill] sm:$0xff] }
 0x26e   :  { %10776 = vst [vmem:[#allocation31_spill] sm:$0xff] %v7444_v10  ;;  %v7450_v6 = vmul.u32.u64.low 2454267026, %v4604_v49  ;;  %v7451_v30 = vmul.u32.u64.high 2454267026, %v4604_v49, %v7450_v6  ;;  %2200 = vmax.xlane.f32.xlu1 %v10777_v25  ;;  %v1334_v17 = vsel %vm1333_vm0, %v6736_v2, %v6892_v41  ;;  %vm1335_vm8 = vcmp.eq.f32.partialorder %v6736_v2, 0.0  ;;  %v10780_v9 = vld [vmem:[#allocation70_spill] sm:$0xff]  ;;  %v10781_v41 = vld [vmem:[#allocation99_spill] sm:$0xff] }
 0x26f   :  { %v1341_v42 = vsel %vm1340_vm3, %v6773_v47, %v6899_v16  ;;  %v7466_v60 = vsel %vm1328_vm15, %v1329_v3, %v1327_v50  ;;  %vm1342_vm9 = vcmp.eq.f32.partialorder %v6773_v47, 0.0  ;;  %v1353_v36 = vmul.f32 %v10780_v9, %v10779_v38  ;;  %v10786_v25 = vld [vmem:[#allocation38_spill] sm:$0xff] }
 0x270   :  { %vm1019_vm5 = vc.u32 %v7450_v6, 2454267026  ;;  %10778 = vst [vmem:[#allocation11_spill] sm:$0xff] %v7466_v60  ;;  %v7471_v58 = vcvt.s32.f32 %v1237_v33  ;;  %vm1347_vm0 = vcmp.eq.f32.partialorder %v6841_v59, inf  ;;  %v1360_v34 = vmul.f32 %v7064_v5, %v10781_v41 }
 0x271   :  { %v1020_v22 = vsel %vm1019_vm5, 1, %v10562_v4  ;;  %v10782_v16 = vand.u32 2147483648, %v6736_v2  ;;  %v10784_v0 = vand.u32 2147483648, %v6773_v47  ;;  %v1348_v50 = vsel %vm1347_vm0, %v6841_v59, %v7098_v53 }
 0x272   :  { %v1021_v20 = vadd.s32 %v7451_v30, %v1020_v22  ;;  %4825 = vrsqrt.f32 %v7454_v63  ;;  %2410 = vmax.xlane.f32.xlu1 %v7323_v24  ;;  %vm1349_vm3 = vcmp.eq.f32.partialorder %v6841_v59, 0.0  ;;  %v1350_v5 = vand.u32 2147483648, %v6841_v59 }
 0x273   :  { %v7480_v31 = vsel %vm1335_vm8, %v10782_v16, %v1334_v17  ;;  %v7484_v43 = vsel %vm1342_vm9, %v10784_v0, %v1341_v42  ;;  %vm1354_vm10 = vcmp.eq.f32.partialorder %v10779_v38, inf  ;;  %vm1356_vm1 = vcmp.eq.f32.partialorder %v10779_v38, 0.0  ;;  %v10787_v17 = vld [vmem:[#allocation95_spill] sm:$0xff] }
 0x274   :  { %10783 = vst [vmem:[#allocation14_spill] sm:$0xff] %v7480_v31  ;;  %10785 = vst [vmem:[#allocation81_spill] sm:$0xff] %v7484_v43  ;;  %v1022_v2 = vshrl.u32 %v1021_v20, 4  ;;  %v1355_v33 = vsel %vm1354_vm10, %v10779_v38, %v1353_v36  ;;  %vm1361_vm2 = vcmp.eq.f32.partialorder %v10781_v41, inf  ;;  %4827 = vrsqrt.f32 %v7471_v58 }
 0x275   :  { %v1357_v47 = vand.u32 2147483648, %v10779_v38  ;;  %v1362_v53 = vsel %vm1361_vm2, %v10781_v41, %v1360_v34  ;;  %v1367_v24 = vmul.f32 %v7122_v11, %v7015_v27  ;;  %v1364_v30 = vand.u32 2147483648, %v10781_v41 }
 0x276   :  { %v1023_v6 = vmul.u32 28, %v1022_v2  ;;  %v1374_v3 = vmul.f32 %v7164_v54, %v7066_v32  ;;  %v1381_v42 = vmul.f32 %v10787_v17, %v10786_v25  ;;  %vm1013_vm4 = vcmp.lt.s32.totalorder %v7411_v45, 0  ;;  %2320 = vmax.xlane.f32.xlu1 %v7326_v55 }
 0x277   :  { %v7510_v38 = vsel %vm1349_vm3, %v1350_v5, %v1348_v50  ;;  %v7512_v9 = vsel %vm1356_vm1, %v1357_v47, %v1355_v33  ;;  %vm1363_vm6 = vcmp.eq.f32.partialorder %v10781_v41, 0.0  ;;  %vm1368_vm7 = vcmp.eq.f32.partialorder %v7015_v27, inf }
 0x278   :  { %10788 = vst [vmem:[#allocation41_spill] sm:$0xff] %v7510_v38  ;;  %10789 = vst [vmem:[#allocation19_spill] sm:$0xff] %v7512_v9  ;;  %v1024_v11 = vsub.s32 %v4604_v49, %v1023_v6  ;;  %v7515_v36 = vsel %vm1363_vm6, %v1364_v30, %v1362_v53  ;;  %vm1370_vm11 = vcmp.eq.f32.partialorder %v7015_v27, 0.0  ;;  %v1369_v54 = vsel %vm1368_vm7, %v7015_v27, %v1367_v24  ;;  %v10795_v6 = vld [vmem:[#allocation50_spill] sm:$0xff] }
 0x279   :  { %10790 = vst [vmem:[#allocation47_spill] sm:$0xff] %v7515_v36  ;;  %v1371_v22 = vand.u32 2147483648, %v7015_v27  ;;  %vm1375_vm12 = vcmp.eq.f32.partialorder %v7066_v32, inf  ;;  %vm1382_vm13 = vcmp.eq.f32.partialorder %v10786_v25, inf  ;;  %vm1377_vm14 = vcmp.eq.f32.partialorder %v7066_v32, 0.0 }
 0x27a   :  { %v1376_v59 = vsel %vm1375_vm12, %v7066_v32, %v1374_v3  ;;  %v1383_v55 = vsel %vm1382_vm13, %v10786_v25, %v1381_v42  ;;  %vm1389_vm15 = vcmp.eq.f32.partialorder %v7036_v37, inf  ;;  %2230 = vmax.xlane.f32.xlu1 %v7341_v19  ;;  %v1378_v49 = vand.u32 2147483648, %v7066_v32 }
 0x27b   :  { %v1385_v41 = vand.u32 2147483648, %v10786_v25  ;;  %v1390_v27 = vsel %vm1389_vm15, %v7036_v37, %v7170_v28  ;;  %v1402_v34 = vmul.f32 %v7265_v56, %v7153_v12  ;;  %v1025_v20 = vsub.s32 0, %v1024_v11  ;;  %v600_v28 = vpop.xlane.xlu0 %599 }
 0x27c   :  { %v7534_v16 = vsel %vm1370_vm11, %v1371_v22, %v1369_v54  ;;  %vm1384_vm8 = vcmp.eq.f32.partialorder %v10786_v25, 0.0  ;;  %v1392_v0 = vand.u32 2147483648, %v7036_v37  ;;  %v7538_v50 = vpop.eup %4825  ;;  %v7540_v19 = vsel %vm1377_vm14, %v1378_v49, %v1376_v59  ;;  %v10798_v54 = vld [vmem:[#allocation40_spill] sm:$0xff] }
 0x27d   :  { %10791 = vst [vmem:[#allocation71_spill] sm:$0xff] %v7534_v16  ;;  %10792 = vst [vmem:[#allocation82_spill] sm:$0xff] %v7540_v19  ;;  %v7542_v32 = vsel %vm1384_vm8, %v1385_v41, %v1383_v55  ;;  %vm1391_vm5 = vcmp.eq.f32.partialorder %v7036_v37, 0.0  ;;  %vm1396_vm9 = vcmp.eq.f32.partialorder %v7101_v21, inf  ;;  %vm1403_vm0 = vcmp.eq.f32.partialorder %v7153_v12, inf }
 0x27e   :  { %10793 = vst [vmem:[#allocation25_spill] sm:$0xff] %v7542_v32  ;;  %v7546_v5 = vsel %vm1391_vm5, %v1392_v0, %v1390_v27  ;;  %v1397_v56 = vsel %vm1396_vm9, %v7101_v21, %v7220_v7  ;;  %v1409_v2 = vmul.f32 %v7290_v44, %v7190_v14  ;;  %v7553_v33 = vpop.eup %4827  ;;  %2440 = vmax.xlane.f32.xlu1 %v7347_v46  ;;  %v601_v47 = vcvt.f32.s32 %v600_v28 }
 0x27f   :  { %10794 = vst [vmem:[#allocation61_spill] sm:$0xff] %v7546_v5  ;;  %vm1398_vm3 = vcmp.eq.f32.partialorder %v7101_v21, 0.0  ;;  %v1399_v37 = vand.u32 2147483648, %v7101_v21  ;;  %v1404_v53 = vsel %vm1403_vm0, %v7153_v12, %v1402_v34  ;;  %v1026_v24 = vsel %vm1013_vm4, %v1025_v20, %v1024_v11  ;;  %v2021_v3 = vpop.xlane.xlu0 %2020 }
 0x280   :  { %vm1405_vm10 = vcmp.eq.f32.partialorder %v7153_v12, 0.0  ;;  %v1406_v7 = vand.u32 2147483648, %v7153_v12  ;;  %v1416_v44 = vmul.f32 %v7305_v62, %v7207_v18  ;;  %v7566_v30 = vadd.s32 %v10795_v6, %v601_v47 }
 0x281   :  { %v7568_v46 = vsel %vm1398_vm3, %v1399_v37, %v1397_v56  ;;  %vm1410_vm1 = vcmp.eq.f32.partialorder %v7190_v14, inf  ;;  %v1423_v21 = vmul.f32 %v7330_v52, %v7223_v51  ;;  %vm1412_vm2 = vcmp.eq.f32.partialorder %v7190_v14, 0.0 }
 0x282   :  { %10796 = vst [vmem:[#allocation83_spill] sm:$0xff] %v7568_v46  ;;  %v7573_v45 = vsel %vm1405_vm10, %v1406_v7, %v1404_v53  ;;  %v1411_v25 = vsel %vm1410_vm1, %v7190_v14, %v1409_v2  ;;  %vm1417_vm4 = vcmp.eq.f32.partialorder %v7207_v18, inf  ;;  %vm1110_vm6 = vcmp.ne.s32.totalorder %v1026_v24, 0  ;;  %2350 = vmax.xlane.f32.xlu1 %v7354_v39 }
 0x283   :  { %10797 = vst [vmem:[#allocation60_spill] sm:$0xff] %v7573_v45  ;;  %vm1142_vm7 = vcmp.lt.s32.totalorder %v1026_v24, 0  ;;  %v1042_v12 = vsub.s32 0, %v7566_v30  ;;  %v2022_v62 = vcvt.f32.s32 %v2021_v3  ;;  %v1413_v17 = vand.u32 2147483648, %v7190_v14  ;;  %v2051_v55 = vpop.xlane.xlu0 %2050 }
 0x284   :  { %v1418_v52 = vsel %vm1417_vm4, %v7207_v18, %v1416_v44  ;;  %vm1419_vm11 = vcmp.eq.f32.partialorder %v7207_v18, 0.0  ;;  %vm1424_vm12 = vcmp.eq.f32.partialorder %v7223_v51, inf  ;;  %v1206_v42 = vadd.s32 28, %v1026_v24  ;;  %vm7591_vm13 = vmand %vm1142_vm7, %vm1110_vm6  ;;  %v10805_v44 = vld [vmem:[#allocation69_spill] sm:$0xff] }
 0x285   :  { %v7585_v11 = vmin.u32 %v1042_v12, %v7566_v30  ;;  %v7588_v22 = vadd.s32 %v10798_v54, %v2022_v62  ;;  %v1425_v39 = vsel %vm1424_vm12, %v7223_v51, %v1423_v21  ;;  %v7597_v49 = vsel %vm1412_vm2, %v1413_v17, %v1411_v25 }
 0x286   :  { %10801 = vst [vmem:[#allocation45_spill] sm:$0xff] %v7597_v49  ;;  %v1420_v41 = vand.u32 2147483648, %v7207_v18  ;;  %v1427_v27 = vand.u32 2147483648, %v7223_v51  ;;  %v1430_v34 = vmul.f32 %v7336_v40, %v7241_v13  ;;  %2470 = vmax.xlane.f32.xlu1 %v7357_v1  ;;  %vm1426_vm14 = vcmp.eq.f32.partialorder %v7223_v51, 0.0  ;;  %v10804_v51 = vld [vmem:[#allocation23_spill] sm:$0xff] }
 0x287   :  { %v7605_v20 = vmul.u32.u64.low 2454267026, %v7585_v11  ;;  %v7606_v0 = vmul.u32.u64.high 2454267026, %v7585_v11, %v7605_v20  ;;  %v2492_v28 = vsub.s32 0, %v7588_v22  ;;  %v2052_v14 = vcvt.f32.s32 %v2051_v55  ;;  %v2066_v18 = vpop.xlane.xlu0 %2065 }
 0x288   :  { %v7612_v56 = vsel %vm1419_vm11, %v1420_v41, %v1418_v52  ;;  %v7614_v2 = vsel %vm1426_vm14, %v1427_v27, %v1425_v39  ;;  %vm1431_vm15 = vcmp.eq.f32.partialorder %v7241_v13, inf  ;;  %v1238_v40 = vsel %vm7591_vm13, %v1206_v42, %v1026_v24  ;;  %v10806_v52 = vld [vmem:[#allocation26_spill] sm:$0xff] }
 0x289   :  { %10802 = vst [vmem:[#allocation46_spill] sm:$0xff] %v7612_v56  ;;  %10803 = vst [vmem:[#allocation42_spill] sm:$0xff] %v7614_v2  ;;  %vm1047_vm8 = vc.u32 %v7605_v20, 2454267026  ;;  %v4609_v1 = vmin.u32 %v2492_v28, %v7588_v22  ;;  %v1434_v47 = vand.u32 2147483648, %v7241_v13  ;;  %v7623_v53 = vadd.s32 %v10804_v51, %v2052_v14  ;;  %v10808_v51 = vld [vmem:[#allocation30_spill] sm:$0xff] }
 0x28a   :  { %v1048_v37 = vsel %vm1047_vm8, 1, %v10562_v4  ;;  %v1432_v7 = vsel %vm1431_vm15, %v7241_v13, %v1430_v34  ;;  %v1444_v6 = vmul.f32 %v10805_v44, %v7109_v48  ;;  %2485 = vmax.xlane.f32.xlu1 %v7366_v61  ;;  %v2067_v25 = vcvt.f32.s32 %v2066_v18 }
 0x28b   :  { %v1049_v21 = vadd.s32 %v7606_v0, %v1048_v37  ;;  %v7630_v24 = vmul.u32.u64.low 2454267026, %v4609_v1  ;;  %v7631_v3 = vmul.u32.u64.high 2454267026, %v4609_v1, %v7630_v24  ;;  %v7633_v12 = vcvt.s32.f32 %v1238_v40  ;;  %v2081_v59 = vpop.xlane.xlu0 %2080 }
 0x28c   :  { %v2520_v62 = vsub.s32 0, %v7623_v53  ;;  %vm1433_vm5 = vcmp.eq.f32.partialorder %v7241_v13, 0.0  ;;  %4829 = vrsqrt.f32 %v7320_v29  ;;  %v7639_v42 = vadd.s32 %v10806_v52, %v2067_v25 }
 0x28d   :  { %v1050_v17 = vshrl.u32 %v1049_v21, 4  ;;  %vm2497_vm9 = vc.u32 %v7630_v24, 2454267026  ;;  %v7641_v54 = vsel %vm1433_vm5, %v1434_v47, %v1432_v7  ;;  %vm1445_vm0 = vcmp.eq.f32.partialorder %v7109_v48, inf }
 0x28e   :  { %10807 = vst [vmem:[#allocation34_spill] sm:$0xff] %v7641_v54  ;;  %v2498_v61 = vsel %vm2497_vm9, 1, %v10562_v4  ;;  %v4611_v39 = vmin.u32 %v2520_v62, %v7623_v53  ;;  %v2534_v41 = vsub.s32 0, %v7639_v42  ;;  %v1446_v27 = vsel %vm1445_vm0, %v7109_v48, %v1444_v6 }
 0x28f   :  { %v2499_v13 = vadd.s32 %v7631_v3, %v2498_v61  ;;  %v1451_v34 = vmul.f32 %v7538_v50, %v7454_v63  ;;  %v1051_v20 = vmul.u32 28, %v1050_v17  ;;  %v2082_v14 = vcvt.f32.s32 %v2081_v59  ;;  %v10810_v59 = vld [vmem:[#allocation21_spill] sm:$0xff] }
 0x290   :  { %v7652_v0 = vmul.u32.u64.low 2454267026, %v4611_v39  ;;  %v7653_v28 = vmul.u32.u64.high 2454267026, %v4611_v39, %v7652_v0  ;;  %v7656_v47 = vmin.u32 %v2534_v41, %v7639_v42  ;;  %vm1447_vm3 = vcmp.eq.f32.partialorder %v7109_v48, 0.0 }
 0x291   :  { %v2500_v40 = vshrl.u32 %v2499_v13, 4  ;;  %v1448_v37 = vand.u32 2147483648, %v7109_v48  ;;  %4831 = vrsqrt.f32 %v7633_v12  ;;  %v7662_v18 = vadd.s32 %v10808_v51, %v2082_v14 }
 0x292   :  { %vm2525_vm10 = vc.u32 %v7652_v0, 2454267026  ;;  %vm1452_vm1 = vcmp.eq.f32.partialorder %v7454_v63, inf  ;;  %vm1041_vm2 = vcmp.lt.s32.totalorder %v7566_v30, 0  ;;  %v1052_v21 = vsub.s32 %v7585_v11, %v1051_v20 }
 0x293   :  { %v2501_v50 = vmul.u32 28, %v2500_v40  ;;  %v2526_v7 = vsel %vm2525_vm10, 1, %v10562_v4  ;;  %v7667_v44 = vsel %vm1447_vm3, %v1448_v37, %v1446_v27  ;;  %v1453_v6 = vsel %vm1452_vm1, %v7454_v63, %v1451_v34 }
 0x294   :  { %10809 = vst [vmem:[#allocation68_spill] sm:$0xff] %v7667_v44  ;;  %v2527_v48 = vadd.s32 %v7653_v28, %v2526_v7  ;;  %v7673_v24 = vmul.u32.u64.low 2454267026, %v7656_v47  ;;  %v7674_v3 = vmul.u32.u64.high 2454267026, %v7656_v47, %v7673_v24  ;;  %v2548_v62 = vsub.s32 0, %v7662_v18  ;;  %v10812_v28 = vld [vmem:[#allocation8_spill] sm:$0xff] }
 0x295   :  { %v2502_v25 = vsub.s32 %v4609_v1, %v2501_v50  ;;  %vm1454_vm4 = vcmp.eq.f32.partialorder %v7454_v63, 0.0  ;;  %v1455_v17 = vand.u32 2147483648, %v7454_v63  ;;  %vm1438_vm6 = vcmp.eq.f32.partialorder %v7320_v29, inf }
 0x296   :  { %v4830_v52 = vpop.eup %4829  ;;  %v2528_v61 = vshrl.u32 %v2527_v48, 4  ;;  %v1458_v11 = vmul.f32 %v7553_v33, %v7471_v58  ;;  %vm1459_vm7 = vcmp.eq.f32.partialorder %v7471_v58, inf  ;;  %v1537_v13 = vadd.s32 4294967288, %v10810_v59 }
 0x297   :  { %v2503_v41 = vsub.s32 0, %v2502_v25  ;;  %vm2539_vm11 = vc.u32 %v7673_v24, 2454267026  ;;  %v7685_v1 = vmin.u32 %v2548_v62, %v7662_v18  ;;  %v7687_v27 = vsel %vm1454_vm4, %v1455_v17, %v1453_v6  ;;  %v2111_v40 = vpop.xlane.xlu0 %2110 }
 0x298   :  { %10811 = vst [vmem:[#allocation65_spill] sm:$0xff] %v7687_v27  ;;  %v1053_v34 = vsub.s32 0, %v1052_v21  ;;  %vm2491_vm12 = vcmp.lt.s32.totalorder %v7588_v22, 0  ;;  %v2529_v63 = vmul.u32 28, %v2528_v61  ;;  %v2540_v20 = vsel %vm2539_vm11, 1, %v10562_v4 }
 0x299   :  { %v2504_v0 = vsel %vm2491_vm12, %v2503_v41, %v2502_v25  ;;  %v2541_v33 = vadd.s32 %v7674_v3, %v2540_v20  ;;  %vm1461_vm13 = vcmp.eq.f32.partialorder %v7471_v58, 0.0  ;;  %v7695_v14 = vsub.s32 %v10810_v59, %v10812_v28 }
 0x29a   :  { %v1437_v37 = vmul.f32 %v4830_v52, %v7320_v29  ;;  %v1460_v51 = vsel %vm1459_vm7, %v7471_v58, %v1458_v11  ;;  %v1462_v22 = vand.u32 2147483648, %v7471_v58  ;;  %v7703_v50 = vsub.s32 %v1537_v13, %v10812_v28  ;;  %v10814_v13 = vld [vmem:[#allocation93_spill] sm:$0xff] }
 0x29b   :  { %v2530_v7 = vsub.s32 %v4611_v39, %v2529_v63  ;;  %v2542_v6 = vshrl.u32 %v2541_v33, 4  ;;  %v7706_v48 = vmul.u32.u64.low 2454267026, %v7685_v1  ;;  %v7707_v24 = vmul.u32.u64.high 2454267026, %v7685_v1, %v7706_v48  ;;  %v4832_v3 = vpop.eup %4831  ;;  %v2141_v30 = vpop.xlane.xlu0 %2140 }
 0x29c   :  { %vm1440_vm14 = vcmp.eq.f32.partialorder %v7320_v29, 0.0  ;;  %v1054_v25 = vsel %vm1041_vm2, %v1053_v34, %v1052_v21  ;;  %vm2939_vm15 = vcmp.ne.s32.totalorder %v2504_v0, 0  ;;  %vm2971_vm8 = vcmp.lt.s32.totalorder %v2504_v0, 0 }
 0x29d   :  { %v2112_v62 = vcvt.f32.s32 %v2111_v40  ;;  %v2543_v17 = vmul.u32 28, %v2542_v6  ;;  %vm2553_vm5 = vc.u32 %v7706_v48, 2454267026  ;;  %v7714_v52 = vsel %vm1461_vm13, %v1462_v22, %v1460_v51  ;;  %vm7724_vm10 = vmand %vm2971_vm8, %vm2939_vm15 }
 0x29e   :  { %10813 = vst [vmem:[#allocation20_spill] sm:$0xff] %v7714_v52  ;;  %v1536_v39 = vrot.slane %v7371_v26, %v7695_v14  ;;  %v3035_v61 = vadd.s32 28, %v2504_v0  ;;  %v2554_v11 = vsel %vm2553_vm5, 1, %v10562_v4  ;;  %vm1466_vm9 = vcmp.eq.f32.partialorder %v7633_v12, inf }
 0x29f   :  { %v7720_v41 = vadd.s32 %v10814_v13, %v2112_v62  ;;  %vm1112_vm0 = vcmp.ne.s32.totalorder %v1054_v25, 0  ;;  %vm1144_vm3 = vcmp.lt.s32.totalorder %v1054_v25, 0  ;;  %v2531_v58 = vsub.s32 0, %v2530_v7 }
 0x2a0   :  { %v1439_v34 = vsel %vm1438_vm6, %v7320_v29, %v1437_v37  ;;  %v1208_v63 = vadd.s32 28, %v1054_v25  ;;  %v1465_v20 = vmul.f32 %v4832_v3, %v7633_v12  ;;  %v1541_v33 = vrot.slane %v7381_v23, %v7703_v50  ;;  %vm7739_vm2 = vmand %vm1144_vm3, %vm1112_vm0  ;;  %v2261_v3 = vpop.xlane.xlu0 %2260 }
 0x2a1   :  { %v1544_v40 = vadd.s32 4294967280, %v10810_v59  ;;  %v2544_v51 = vsub.s32 %v7656_v47, %v2543_v17  ;;  %v2555_v22 = vadd.s32 %v7707_v24, %v2554_v11  ;;  %v2576_v6 = vsub.s32 0, %v7720_v41  ;;  %v10819_v11 = vld [vmem:[#allocation52_spill] sm:$0xff] }
 0x2a2   :  { %v2142_v48 = vcvt.f32.s32 %v2141_v30  ;;  %vm1468_vm1 = vcmp.eq.f32.partialorder %v7633_v12, 0.0  ;;  %v3067_v37 = vsel %vm7724_vm10, %v3035_v61, %v2504_v0  ;;  %vm2519_vm4 = vcmp.lt.s32.totalorder %v7623_v53, 0 }
 0x2a3   :  { %v1469_v13 = vand.u32 2147483648, %v7633_v12  ;;  %vm1542_vm6 = vcmask 130112   ;;  %v7747_v47 = vsel %vm2519_vm4, %v2531_v58, %v2530_v7  ;;  %v2556_v24 = vshrl.u32 %v2555_v22, 4 }
 0x2a4   :  { %v4615_v17 = vmin.u32 %v2576_v6, %v7720_v41  ;;  %v7751_v30 = vadd.s32 %v10819_v11, %v2142_v48  ;;  %vm2533_vm7 = vcmp.lt.s32.totalorder %v7639_v42, 0  ;;  %v2262_v55 = vcvt.f32.s32 %v2261_v3 }
 0x2a5   :  { %v10820_v21 = vand.u32 2147483648, %v7320_v29  ;;  %v7761_v0 = vsub.s32 %v1544_v40, %v10812_v28  ;;  %v1240_v7 = vsel %vm7739_vm2, %v1208_v63, %v1054_v25  ;;  %v2545_v61 = vsub.s32 0, %v2544_v51  ;;  %v10823_v63 = vld [vmem:[#allocation36_spill] sm:$0xff] }
 0x2a6   :  { %v1467_v58 = vsel %vm1466_vm9, %v7633_v12, %v1465_v20  ;;  %v1543_v22 = vsel %vm1542_vm6, %v1541_v33, %v1536_v39  ;;  %v7769_v6 = vcvt.s32.f32 %v3067_v37  ;;  %vm2941_vm11 = vcmp.ne.s32.totalorder %v7747_v47, 0 }
 0x2a7   :  { %v7758_v53 = vsel %vm1440_vm14, %v10820_v21, %v1439_v34  ;;  %vm2973_vm12 = vcmp.lt.s32.totalorder %v7747_v47, 0  ;;  %v2557_v29 = vmul.u32 28, %v2556_v24  ;;  %v2291_v34 = vpop.xlane.xlu0 %2290  ;;  %v2604_v25 = vsub.s32 0, %v7751_v30 }
 0x2a8   :  { %10821 = vst [vmem:[#allocation29_spill] sm:$0xff] %v7758_v53  ;;  %10822 = vst [vmem:[#allocation57_spill] sm:$0xff] %v7769_v6  ;;  %v7773_v40 = vmul.u32.u64.low 2454267026, %v4615_v17  ;;  %v7774_v48 = vmul.u32.u64.high 2454267026, %v4615_v17, %v7773_v40  ;;  %v7778_v62 = vadd.s32 %v10823_v63, %v2262_v55  ;;  %v7780_v3 = vcvt.s32.f32 %v1240_v7 }
 0x2a9   :  { %v2292_v20 = vcvt.f32.s32 %v2291_v34  ;;  %v1548_v39 = vrot.slane %v7404_v57, %v7761_v0  ;;  %vm10337_vm13 = vcmask 195712   ;;  %v3037_v33 = vadd.s32 28, %v7747_v47  ;;  %vm7793_vm15 = vmand %vm2973_vm12, %vm2941_vm11 }
 0x2aa   :  { %v2546_v37 = vsel %vm2533_vm7, %v2545_v61, %v2544_v51  ;;  %vm2581_vm14 = vc.u32 %v7773_v40, 2454267026  ;;  %v4617_v24 = vmin.u32 %v2604_v25, %v7751_v30  ;;  %4833 = vrsqrt.f32 %v7769_v6  ;;  %v10827_v25 = vld [vmem:[#allocation77_spill] sm:$0xff] }
 0x2ab   :  { %vm2547_vm8 = vcmp.lt.s32.totalorder %v7662_v18, 0  ;;  %v2582_v11 = vsel %vm2581_vm14, 1, %v10562_v4  ;;  %v2716_v42 = vsub.s32 0, %v7778_v62  ;;  %v7802_v51 = vsel %vm1468_vm1, %v1469_v13, %v1467_v58 }
 0x2ac   :  { %10826 = vst [vmem:[#allocation84_spill] sm:$0xff] %v7802_v51  ;;  %v2558_v21 = vsub.s32 %v7685_v1, %v2557_v29  ;;  %v2583_v7 = vadd.s32 %v7774_v48, %v2582_v11  ;;  %v7806_v61 = vmul.u32.u64.low 2454267026, %v4617_v24  ;;  %v7807_v34 = vmul.u32.u64.high 2454267026, %v4617_v24, %v7806_v61  ;;  %v2396_v11 = vpop.xlane.xlu0 %2395 }
 0x2ad   :  { %vm2942_vm5 = vcmp.ne.s32.totalorder %v2546_v37, 0  ;;  %vm2974_vm9 = vcmp.lt.s32.totalorder %v2546_v37, 0  ;;  %v4625_v40 = vmin.u32 %v2716_v42, %v7778_v62  ;;  %v7811_v63 = vadd.s32 %v10827_v25, %v2292_v20 }
 0x2ae   :  { %4835 = vrsqrt.f32 %v7780_v3  ;;  %v3069_v12 = vsel %vm7793_vm15, %v3037_v33, %v7747_v47  ;;  %v2584_v13 = vshrl.u32 %v2583_v7, 4  ;;  %v7818_v1 = vsel %vm10337_vm13, %v1548_v39, %v1543_v22  ;;  %vm7823_vm3 = vmand %vm2974_vm9, %vm2942_vm5 }
 0x2af   :  { %v3038_v58 = vadd.s32 28, %v2546_v37  ;;  %vm2609_vm0 = vc.u32 %v7806_v61, 2454267026  ;;  %v7820_v29 = vmul.u32.u64.low 2454267026, %v4625_v40  ;;  %v7821_v48 = vmul.u32.u64.high 2454267026, %v4625_v40, %v7820_v29 }
 0x2b0   :  { %v2559_v20 = vsub.s32 0, %v2558_v21  ;;  %v2585_v25 = vmul.u32 28, %v2584_v13  ;;  %v2610_v57 = vsel %vm2609_vm0, 1, %v10562_v4  ;;  %v2744_v47 = vsub.s32 0, %v7811_v63 }
 0x2b1   :  { %v2611_v22 = vadd.s32 %v7807_v34, %v2610_v57  ;;  %vm2721_vm10 = vc.u32 %v7820_v29, 2454267026  ;;  %v1551_v39 = vadd.s32 4294967272, %v10810_v59  ;;  %v2397_v23 = vcvt.f32.s32 %v2396_v11  ;;  %v10831_v29 = vld [vmem:[#allocation62_spill] sm:$0xff] }
 0x2b2   :  { %v2586_v55 = vsub.s32 %v4615_v17, %v2585_v25  ;;  %v2722_v7 = vsel %vm2721_vm10, 1, %v10562_v4  ;;  %v7834_v61 = vmin.u32 %v2744_v47, %v7811_v63  ;;  %v7836_v26 = vcvt.s32.f32 %v3069_v12 }
 0x2b3   :  { %v3070_v13 = vsel %vm7823_vm3, %v3038_v58, %v2546_v37  ;;  %v2612_v51 = vshrl.u32 %v2611_v22, 4  ;;  %v2723_v33 = vadd.s32 %v7821_v48, %v2722_v7  ;;  %v2560_v57 = vsel %vm2547_vm8, %v2559_v20, %v2558_v21 }
 0x2b4   :  { %10830 = vst [vmem:[#allocation17_spill] sm:$0xff] %v7836_v26  ;;  %v7844_v34 = vmul.u32.u64.low 2454267026, %v7834_v61  ;;  %v7845_v17 = vmul.u32.u64.high 2454267026, %v7834_v61, %v7844_v34  ;;  %v7848_v25 = vadd.s32 %v10831_v29, %v2397_v23  ;;  %v4834_v47 = vpop.eup %4833  ;;  %vm2575_vm1 = vcmp.lt.s32.totalorder %v7720_v41, 0 }
 0x2b5   :  { %v2587_v12 = vsub.s32 0, %v2586_v55  ;;  %v2613_v11 = vmul.u32 28, %v2612_v51  ;;  %v2724_v42 = vshrl.u32 %v2723_v33, 4  ;;  %v7854_v18 = vsub.s32 %v1551_v39, %v10812_v28 }
 0x2b6   :  { %vm2749_vm2 = vc.u32 %v7844_v34, 2454267026  ;;  %v2842_v37 = vsub.s32 0, %v7848_v25  ;;  %4837 = vrsqrt.f32 %v7836_v26  ;;  %v7857_v21 = vcvt.s32.f32 %v3070_v13 }
 0x2b7   :  { %vm2943_vm4 = vcmp.ne.s32.totalorder %v2560_v57, 0  ;;  %vm2975_vm7 = vcmp.lt.s32.totalorder %v2560_v57, 0  ;;  %v2614_v48 = vsub.s32 %v4617_v24, %v2613_v11  ;;  %v2725_v20 = vmul.u32 28, %v2724_v42 }
 0x2b8   :  { %10832 = vst [vmem:[#allocation51_spill] sm:$0xff] %v7857_v21  ;;  %v4836_v23 = vpop.eup %4835  ;;  %v2750_v51 = vsel %vm2749_vm2, 1, %v10562_v4  ;;  %v7861_v33 = vmin.u32 %v2842_v37, %v7848_v25  ;;  %vm3133_vm11 = vcmp.eq.f32.partialorder %v7769_v6, inf  ;;  %v7866_v22 = vsel %vm2575_vm1, %v2587_v12, %v2586_v55  ;;  %vm7875_vm8 = vmand %vm2975_vm7, %vm2943_vm4 }
 0x2b9   :  { %vm2603_vm12 = vcmp.lt.s32.totalorder %v7751_v30, 0  ;;  %vm2715_vm14 = vcmp.lt.s32.totalorder %v7778_v62, 0  ;;  %v2751_v39 = vadd.s32 %v7845_v17, %v2750_v51  ;;  %v3132_v24 = vmul.f32 %v4834_v47, %v7769_v6  ;;  %v2306_v11 = vpop.xlane.xlu0 %2305 }
 0x2ba   :  { %v3039_v7 = vadd.s32 28, %v2560_v57  ;;  %v2615_v13 = vsub.s32 0, %v2614_v48  ;;  %v2726_v34 = vsub.s32 %v4625_v40, %v2725_v20  ;;  %vm10336_vm15 = vcmask 261312  }
 0x2bb   :  { %4839 = vrsqrt.f32 %v7857_v21  ;;  %v2752_v55 = vshrl.u32 %v2751_v39, 4  ;;  %v7880_v30 = vmul.u32.u64.low 2454267026, %v7861_v33  ;;  %v7881_v29 = vmul.u32.u64.high 2454267026, %v7861_v33, %v7880_v30 }
 0x2bc   :  { %vm2945_vm5 = vcmp.ne.s32.totalorder %v7866_v22, 0  ;;  %vm2977_vm9 = vcmp.lt.s32.totalorder %v7866_v22, 0  ;;  %v2616_v17 = vsel %vm2603_vm12, %v2615_v13, %v2614_v48  ;;  %v2727_v40 = vsub.s32 0, %v2726_v34 }
 0x2bd   :  { %vm1480_vm0 = vcmp.eq.f32.partialorder %v7780_v3, inf  ;;  %vm2947_vm3 = vcmp.ne.s32.totalorder %v2616_v17, 0  ;;  %vm2979_vm10 = vcmp.lt.s32.totalorder %v2616_v17, 0  ;;  %v3043_v47 = vadd.s32 28, %v2616_v17  ;;  %vm7902_vm7 = vmand %vm2977_vm9, %vm2945_vm5 }
 0x2be   :  { %v2753_v12 = vmul.u32 28, %v2752_v55  ;;  %v3071_v42 = vsel %vm7875_vm8, %v3039_v7, %v2560_v57  ;;  %vm7888_vm1 = vmand %vm2979_vm10, %vm2947_vm3  ;;  %v2728_v20 = vsel %vm2715_vm14, %v2727_v40, %v2726_v34  ;;  %vm2847_vm2 = vc.u32 %v7880_v30, 2454267026  ;;  %v10839_v34 = vld [vmem:[#allocation89_spill] sm:$0xff] }
 0x2bf   :  { %v2307_v48 = vcvt.f32.s32 %v2306_v11  ;;  %v3041_v51 = vadd.s32 28, %v7866_v22  ;;  %vm2955_vm4 = vcmp.ne.s32.totalorder %v2728_v20, 0  ;;  %v1555_v39 = vrot.slane %v7406_v35, %v7854_v18 }
 0x2c0   :  { %v1558_v13 = vadd.s32 4294967264, %v10810_v59  ;;  %vm2987_vm12 = vcmp.lt.s32.totalorder %v2728_v20, 0  ;;  %v2754_v62 = vsub.s32 %v7834_v61, %v2753_v12  ;;  %v2848_v7 = vsel %vm2847_vm2, 1, %v10562_v4  ;;  %v4838_v55 = vpop.eup %4837 }
 0x2c1   :  { %v7909_v41 = vadd.s32 %v10839_v34, %v2307_v48  ;;  %v7911_v30 = vcvt.s32.f32 %v3071_v42  ;;  %v3075_v40 = vsel %vm7888_vm1, %v3043_v47, %v2616_v17  ;;  %v2849_v11 = vadd.s32 %v7881_v29, %v2848_v7  ;;  %vm7930_vm5 = vmand %vm2987_vm12, %vm2955_vm4 }
 0x2c2   :  { %v1479_v58 = vmul.f32 %v4836_v23, %v7780_v3  ;;  %v7920_v35 = vsel %vm3133_vm11, %v7769_v6, %v3132_v24  ;;  %v3051_v12 = vadd.s32 28, %v2728_v20  ;;  %vm2743_vm14 = vcmp.lt.s32.totalorder %v7811_v63, 0 }
 0x2c3   :  { %10840 = vst [vmem:[#allocation85_spill] sm:$0xff] %v7911_v30  ;;  %10841 = vst [vmem:[#allocation33_spill] sm:$0xff] %v7920_v35  ;;  %vm1482_vm8 = vcmp.eq.f32.partialorder %v7780_v3, 0.0  ;;  %v3073_v17 = vsel %vm7902_vm7, %v3041_v51, %v7866_v22  ;;  %v2755_v29 = vsub.s32 0, %v2754_v62  ;;  %v2850_v24 = vshrl.u32 %v2849_v11, 4 }
 0x2c4   :  { %v1565_v47 = vadd.s32 4294967256, %v10810_v59  ;;  %v7936_v42 = vmul.f32 %v4838_v55, %v7836_v26  ;;  %v7938_v63 = vcvt.s32.f32 %v3075_v40  ;;  %v2758_v37 = vsub.s32 0, %v7909_v41  ;;  %v10861_v26 = vld [vmem:[#allocation75_spill] sm:$0xff] }
 0x2c5   :  { %v7942_v48 = vsub.s32 %v1558_v13, %v10812_v28  ;;  %v4840_v22 = vpop.eup %4839  ;;  %4841 = vrsqrt.f32 %v7911_v30  ;;  %v2756_v51 = vsel %vm2743_vm14, %v2755_v29, %v2754_v62  ;;  %v1481_v57 = vsel %vm1480_vm0, %v7780_v3, %v1479_v58  ;;  %v2216_v62 = vpop.xlane.xlu0 %2215 }
 0x2c6   :  { %10844 = vst [vmem:[#allocation86_spill] sm:$0xff] %v7936_v42  ;;  %10845 = vst [vmem:[#allocation87_spill] sm:$0xff] %v7938_v63  ;;  %v1557_v7 = vsel %vm10336_vm15, %v1555_v39, %v7818_v1  ;;  %v7950_v34 = vcvt.s32.f32 %v3073_v17  ;;  %v3083_v55 = vsel %vm7930_vm5, %v3051_v12, %v2728_v20  ;;  %vm2841_vm11 = vcmp.lt.s32.totalorder %v7848_v25, 0 }
 0x2c7   :  { %v2851_v13 = vmul.u32 28, %v2850_v24  ;;  %vm2957_vm9 = vcmp.ne.s32.totalorder %v2756_v51, 0  ;;  %vm2989_vm3 = vcmp.lt.s32.totalorder %v2756_v51, 0  ;;  %v7956_v40 = vmin.u32 %v2758_v37, %v7909_v41 }
 0x2c8   :  { %10846 = vst [vmem:[#allocation90_spill] sm:$0xff] %v7950_v34  ;;  %v7959_v11 = vsub.s32 %v1565_v47, %v10812_v28  ;;  %4843 = vrsqrt.f32 %v7938_v63  ;;  %v2217_v58 = vcvt.f32.s32 %v2216_v62  ;;  %v1562_v20 = vrot.slane %v7432_v15, %v7942_v48  ;;  %vm7975_vm0 = vmand %vm2989_vm3, %vm2957_vm9 }
 0x2c9   :  { %v2852_v1 = vsub.s32 %v7861_v33, %v2851_v13  ;;  %v3053_v39 = vadd.s32 28, %v2756_v51  ;;  %v7966_v12 = vmul.u32.u64.low 2454267026, %v7956_v40  ;;  %v7967_v17 = vmul.u32.u64.high 2454267026, %v7956_v40, %v7966_v12  ;;  %v10851_v33 = vld [vmem:[#allocation92_spill] sm:$0xff]  ;;  %v2426_v62 = vpop.xlane.xlu0 %2425 }
 0x2ca   :  { %v1572_v23 = vadd.s32 4294967248, %v10810_v59  ;;  %v7971_v29 = vmul.f32 %v4840_v22, %v7857_v21  ;;  %v7973_v24 = vcvt.s32.f32 %v3083_v55  ;;  %v7980_v37 = vadd.s32 %v10851_v33, %v2217_v58 }
 0x2cb   :  { %vm10335_vm10 = vcmask 326912   ;;  %v2853_v13 = vsub.s32 0, %v2852_v1  ;;  %vm2763_vm1 = vc.u32 %v7966_v12, 2454267026  ;;  %v10852_v61 = vand.u32 2147483648, %v7780_v3 }
 0x2cc   :  { %10847 = vst [vmem:[#allocation79_spill] sm:$0xff] %v7971_v29  ;;  %10848 = vst [vmem:[#allocation91_spill] sm:$0xff] %v7973_v24  ;;  %v1569_v22 = vrot.slane %v7442_v8, %v7959_v11  ;;  %4845 = vrsqrt.f32 %v7950_v34  ;;  %v2764_v55 = vsel %vm2763_vm1, 1, %v10562_v4  ;;  %v2674_v58 = vsub.s32 0, %v7980_v37 }
 0x2cd   :  { %v7986_v30 = vsel %vm1482_vm8, %v10852_v61, %v1481_v57  ;;  %vm10334_vm2 = vcmask 392512   ;;  %v3085_v12 = vsel %vm7975_vm0, %v3053_v39, %v2756_v51  ;;  %v1564_v29 = vsel %vm10335_vm10, %v1562_v20, %v1557_v7  ;;  %v2336_v51 = vpop.xlane.xlu0 %2335 }
 0x2ce   :  { %10853 = vst [vmem:[#allocation88_spill] sm:$0xff] %v7986_v30  ;;  %v7998_v3 = vsub.s32 %v1572_v23, %v10812_v28  ;;  %4847 = vrsqrt.f32 %v7973_v24  ;;  %v2765_v61 = vadd.s32 %v7967_v17, %v2764_v55  ;;  %v4622_v57 = vmin.u32 %v2674_v58, %v7980_v37  ;;  %v10856_v23 = vld [vmem:[#allocation39_spill] sm:$0xff] }
 0x2cf   :  { %v2427_v34 = vcvt.f32.s32 %v2426_v62  ;;  %v8003_v21 = vpop.eup %4841  ;;  %v2854_v47 = vsel %vm2841_vm11, %v2853_v13, %v2852_v1  ;;  %v1571_v7 = vsel %vm10334_vm2, %v1569_v22, %v1564_v29  ;;  %v1579_v20 = vadd.s32 4294967240, %v10810_v59  ;;  %v10857_v22 = vld [vmem:[#allocation94_spill] sm:$0xff] }
 0x2d0   :  { %10854 = vst [vmem:[#allocation28_spill] sm:$0xff] %v8003_v21  ;;  %vm3189_vm4 = vcmp.eq.f32.partialorder %v7938_v63, inf  ;;  %v8011_v39 = vcvt.s32.f32 %v3085_v12  ;;  %v2766_v17 = vshrl.u32 %v2765_v61, 4  ;;  %vm10333_vm7 = vcmask 458112  }
 0x2d1   :  { %v8014_v55 = vadd.s32 %v10856_v23, %v2427_v34  ;;  %v8016_v62 = vmul.u32.u64.low 2454267026, %v4622_v57  ;;  %v8017_v58 = vmul.u32.u64.high 2454267026, %v4622_v57, %v8016_v62  ;;  %v2337_v42 = vcvt.f32.s32 %v2336_v51  ;;  %v2246_v34 = vpop.xlane.xlu0 %2245 }
 0x2d2   :  { %10855 = vst [vmem:[#allocation54_spill] sm:$0xff] %v8011_v39  ;;  %v1576_v25 = vrot.slane %v7444_v10, %v7998_v3  ;;  %v4844_v1 = vpop.eup %4843  ;;  %vm2964_vm12 = vcmp.ne.s32.totalorder %v2854_v47, 0  ;;  %vm2996_vm14 = vcmp.lt.s32.totalorder %v2854_v47, 0  ;;  %v2767_v29 = vmul.u32 28, %v2766_v17 }
 0x2d3   :  { %v2870_v13 = vsub.s32 0, %v8014_v55  ;;  %vm2679_vm8 = vc.u32 %v8016_v62, 2454267026  ;;  %v8023_v12 = vadd.s32 %v10857_v22, %v2337_v42  ;;  %v8026_v61 = vsub.s32 %v1579_v20, %v10812_v28  ;;  %vm8034_vm9 = vmand %vm2996_vm14, %vm2964_vm12 }
 0x2d4   :  { %vm10301_vm5 = vcmask 523712   ;;  %v3060_v23 = vadd.s32 28, %v2854_v47  ;;  %vm2757_vm11 = vcmp.lt.s32.totalorder %v7909_v41, 0  ;;  %v2680_v51 = vsel %vm2679_vm8, 1, %v10562_v4 }
 0x2d5   :  { %v4636_v33 = vmin.u32 %v2870_v13, %v8014_v55  ;;  %v2247_v59 = vcvt.f32.s32 %v2246_v34  ;;  %v3188_v17 = vmul.f32 %v4844_v1, %v7938_v63  ;;  %v2768_v20 = vsub.s32 %v7956_v40, %v2767_v29  ;;  %v2456_v40 = vpop.xlane.xlu0 %2455  ;;  %v585_v29 = vpop.xlane.xlu1 %584 }
 0x2d6   :  { %v2681_v62 = vadd.s32 %v8017_v58, %v2680_v51  ;;  %v2786_v22 = vsub.s32 0, %v8023_v12  ;;  %v8041_v28 = vpop.eup %4845  ;;  %4849 = vrsqrt.f32 %v8011_v39  ;;  %v1578_v1 = vsel %vm10333_vm7, %v1576_v25, %v1571_v7 }
 0x2d7   :  { %10860 = vst [vmem:[#allocation10_spill] sm:$0xff] %v8041_v28  ;;  %v8044_v13 = vmul.u32.u64.low 2454267026, %v4636_v33  ;;  %v8045_v34 = vmul.u32.u64.high 2454267026, %v4636_v33, %v8044_v13  ;;  %v8050_v6 = vadd.s32 %v10861_v26, %v2247_v59  ;;  %v1589_v58 = vrot.slane %v7480_v31, %v7695_v14 }
 0x2d8   :  { %v2682_v21 = vshrl.u32 %v2681_v62, 4  ;;  %v4630_v35 = vmin.u32 %v2786_v22, %v8023_v12  ;;  %v4848_v51 = vpop.eup %4847  ;;  %v3092_v28 = vsel %vm8034_vm9, %v3060_v23, %v2854_v47  ;;  %v2457_v10 = vcvt.f32.s32 %v2456_v40 }
 0x2d9   :  { %vm2875_vm3 = vc.u32 %v8044_v13, 2454267026  ;;  %v1583_v7 = vrot.slane %v7466_v60, %v8026_v61  ;;  %v8061_v25 = vsel %vm3189_vm4, %v7938_v63, %v3188_v17  ;;  %v2769_v26 = vsub.s32 0, %v2768_v20 }
 0x2da   :  { %10862 = vst [vmem:[#allocation37_spill] sm:$0xff] %v8061_v25  ;;  %vm2673_vm0 = vcmp.lt.s32.totalorder %v7980_v37, 0  ;;  %v2683_v59 = vmul.u32 28, %v2682_v21  ;;  %v1593_v62 = vrot.slane %v7484_v43, %v7703_v50  ;;  %v2876_v42 = vsel %vm2875_vm3, 1, %v10562_v4  ;;  %v10865_v21 = vld [vmem:[#allocation80_spill] sm:$0xff] }
 0x2db   :  { %v8067_v47 = vmul.u32.u64.low 2454267026, %v4630_v35  ;;  %v8068_v23 = vmul.u32.u64.high 2454267026, %v4630_v35, %v8067_v47  ;;  %v586_v22 = vcvt.f32.s32 %v585_v29  ;;  %v8070_v13 = vcvt.s32.f32 %v3092_v28 }
 0x2dc   :  { %v2684_v40 = vsub.s32 %v4622_v57, %v2683_v59  ;;  %v2877_v31 = vadd.s32 %v8045_v34, %v2876_v42  ;;  %v2702_v17 = vsub.s32 0, %v8050_v6  ;;  %v8075_v25 = vmul.f32 %v4848_v51, %v7973_v24 }
 0x2dd   :  { %10863 = vst [vmem:[#allocation58_spill] sm:$0xff] %v8070_v13  ;;  %vm2791_vm1 = vc.u32 %v8067_v47, 2454267026  ;;  %v8078_v63 = vadd.s32 %v10865_v21, %v2457_v10  ;;  %v1598_v43 = vrot.slane %v7510_v38, %v7761_v0  ;;  %v8084_v29 = vsel %vm2757_vm11, %v2769_v26, %v2768_v20  ;;  %v10866_v10 = vld [vmem:[#allocation63_spill] sm:$0xff]  ;;  %v8101_v26 = vpop.xlane.xlu1 %614 }
 0x2de   :  { %10864 = vst [vmem:[#allocation35_spill] sm:$0xff] %v8075_v25  ;;  %v2878_v28 = vshrl.u32 %v2877_v31, 4  ;;  %v2792_v57 = vsel %vm2791_vm1, 1, %v10562_v4  ;;  %v8088_v34 = vsel %vm10301_vm5, %v1583_v7, %v1578_v1  ;;  %v2685_v59 = vsub.s32 0, %v2684_v40  ;;  %v2366_v7 = vpop.xlane.xlu0 %2365 }
 0x2df   :  { %v2793_v51 = vadd.s32 %v8068_v23, %v2792_v57  ;;  %v8092_v42 = vmin.u32 %v2702_v17, %v8050_v6  ;;  %v8095_v47 = vadd.s32 %v10866_v10, %v586_v22  ;;  %4851 = vrsqrt.f32 %v8070_v13 }
 0x2e0   :  { %vm2869_vm4 = vcmp.lt.s32.totalorder %v8014_v55, 0  ;;  %v2879_v41 = vmul.u32 28, %v2878_v28  ;;  %v2898_v31 = vsub.s32 0, %v8078_v63  ;;  %v4850_v20 = vpop.eup %4849  ;;  %vm2958_vm12 = vcmp.ne.s32.totalorder %v8084_v29, 0 }
 0x2e1   :  { %v2794_v1 = vshrl.u32 %v2793_v51, 4  ;;  %v1594_v23 = vsel %vm1542_vm6, %v1593_v62, %v1589_v58  ;;  %v1603_v22 = vrot.slane %v7512_v9, %v7854_v18  ;;  %vm2990_vm14 = vcmp.lt.s32.totalorder %v8084_v29, 0 }
 0x2e2   :  { %v2880_v17 = vsub.s32 %v4636_v33, %v2879_v41  ;;  %v8107_v21 = vmul.u32.u64.low 2454267026, %v8092_v42  ;;  %v8108_v57 = vmul.u32.u64.high 2454267026, %v8092_v42, %v8107_v21  ;;  %v8111_v28 = vmin.u32 %v2898_v31, %v8078_v63  ;;  %vm8128_vm9 = vmand %vm2990_vm14, %vm2958_vm12 }
 0x2e3   :  { %v8116_v51 = vsel %vm2673_vm0, %v2685_v59, %v2684_v40  ;;  %vm2785_vm8 = vcmp.lt.s32.totalorder %v8023_v12, 0  ;;  %v2795_v58 = vmul.u32 28, %v2794_v1  ;;  %v1028_v62 = vsub.s32 0, %v8095_v47 }
 0x2e4   :  { %v3054_v33 = vadd.s32 28, %v8084_v29  ;;  %v2881_v10 = vsub.s32 0, %v2880_v17  ;;  %vm2707_vm11 = vc.u32 %v8107_v21, 2454267026  ;;  %v2367_v41 = vcvt.f32.s32 %v2366_v7  ;;  %v630_v7 = vpop.xlane.xlu0 %629  ;;  %v8142_v21 = vpop.xlane.xlu1 %2035 }
 0x2e5   :  { %v2796_v25 = vsub.s32 %v4630_v35, %v2795_v58  ;;  %v2708_v31 = vsel %vm2707_vm11, 1, %v10562_v4  ;;  %v8123_v24 = vmul.u32.u64.low 2454267026, %v8111_v28  ;;  %v8124_v9 = vmul.u32.u64.high 2454267026, %v8111_v28, %v8123_v24 }
 0x2e6   :  { %vm2952_vm3 = vcmp.ne.s32.totalorder %v8116_v51, 0  ;;  %v8135_v40 = vsel %vm2869_vm4, %v2881_v10, %v2880_v17  ;;  %v2709_v35 = vadd.s32 %v8108_v57, %v2708_v31  ;;  %v4605_v59 = vmin.u32 %v1028_v62, %v8095_v47  ;;  %v10869_v10 = vld [vmem:[#allocation96_spill] sm:$0xff] }
 0x2e7   :  { %vm2984_vm0 = vcmp.lt.s32.totalorder %v8116_v51, 0  ;;  %vm2966_vm1 = vcmp.ne.s32.totalorder %v8135_v40, 0  ;;  %vm2998_vm11 = vcmp.lt.s32.totalorder %v8135_v40, 0  ;;  %v2797_v1 = vsub.s32 0, %v2796_v25 }
 0x2e8   :  { %v2710_v58 = vshrl.u32 %v2709_v35, 4  ;;  %vm2903_vm12 = vc.u32 %v8123_v24, 2454267026  ;;  %v8144_v38 = vmul.u32.u64.low 2454267026, %v4605_v59  ;;  %v8145_v55 = vmul.u32.u64.high 2454267026, %v4605_v59, %v8144_v38  ;;  %vm8162_vm4 = vmand %vm2984_vm0, %vm2952_vm3 }
 0x2e9   :  { %v3086_v17 = vsel %vm8128_vm9, %v3054_v33, %v8084_v29  ;;  %v3048_v57 = vadd.s32 28, %v8116_v51  ;;  %v2904_v62 = vsel %vm2903_vm12, 1, %v10562_v4  ;;  %v8153_v31 = vadd.s32 %v10869_v10, %v2367_v41  ;;  %v4852_v60 = vpop.eup %4851  ;;  %vm8172_vm14 = vmand %vm2998_vm11, %vm2966_vm1 }
 0x2ea   :  { %v8156_v8 = vmul.f32 %v4850_v20, %v8011_v39  ;;  %v3062_v29 = vadd.s32 28, %v8135_v40  ;;  %v631_v33 = vcvt.f32.s32 %v630_v7  ;;  %v1599_v37 = vsel %vm10337_vm13, %v1598_v43, %v1594_v23  ;;  %v10877_v20 = vld [vmem:[#allocation55_spill] sm:$0xff] }
 0x2eb   :  { %v2711_v41 = vmul.u32 28, %v2710_v58  ;;  %v2905_v35 = vadd.s32 %v8124_v9, %v2904_v62  ;;  %vm1033_vm9 = vc.u32 %v8144_v38, 2454267026  ;;  %v8178_v10 = vsel %vm10336_vm15, %v1603_v22, %v1599_v37  ;;  %v8191_v22 = vpop.xlane.xlu1 %2095 }
 0x2ec   :  { %10870 = vst [vmem:[#allocation27_spill] sm:$0xff] %v8156_v8  ;;  %v8180_v8 = vcvt.s32.f32 %v3086_v17  ;;  %v2798_v43 = vsel %vm2785_vm8, %v2797_v1, %v2796_v25  ;;  %v1034_v23 = vsel %vm1033_vm9, 1, %v10562_v4  ;;  %v2814_v7 = vsub.s32 0, %v8153_v31  ;;  %v10876_v1 = vld [vmem:[#allocation97_spill] sm:$0xff] }
 0x2ed   :  { %v3080_v39 = vsel %vm8162_vm4, %v3048_v57, %v8116_v51  ;;  %v2712_v58 = vsub.s32 %v8092_v42, %v2711_v41  ;;  %v2906_v9 = vshrl.u32 %v2905_v35, 4  ;;  %v1035_v38 = vadd.s32 %v8145_v55, %v1034_v23 }
 0x2ee   :  { %10875 = vst [vmem:[#allocation66_spill] sm:$0xff] %v8180_v8  ;;  %v3094_v12 = vsel %vm8172_vm14, %v3062_v29, %v8135_v40  ;;  %v4632_v25 = vmin.u32 %v2814_v7, %v8153_v31  ;;  %v8198_v17 = vadd.s32 %v10876_v1, %v631_v33  ;;  %v616_v62 = vcvt.f32.s32 %v8101_v26 }
 0x2ef   :  { %vm2960_vm8 = vcmp.ne.s32.totalorder %v2798_v43, 0  ;;  %vm2992_vm3 = vcmp.lt.s32.totalorder %v2798_v43, 0  ;;  %v2907_v51 = vmul.u32 28, %v2906_v9  ;;  %v1036_v42 = vshrl.u32 %v1035_v38, 4  ;;  %v2126_v1 = vpop.xlane.xlu1 %2125 }
 0x2f0   :  { %v3056_v57 = vadd.s32 28, %v2798_v43  ;;  %v8201_v24 = vmul.u32.u64.low 2454267026, %v4632_v25  ;;  %v8202_v55 = vmul.u32.u64.high 2454267026, %v4632_v25, %v8201_v24  ;;  %v1070_v37 = vsub.s32 0, %v8198_v17  ;;  %vm8211_vm0 = vmand %vm2992_vm3, %vm2960_vm8 }
 0x2f1   :  { %v2713_v41 = vsub.s32 0, %v2712_v58  ;;  %v2908_v40 = vsub.s32 %v8111_v28, %v2907_v51  ;;  %v1037_v29 = vmul.u32 28, %v1036_v42  ;;  %v8207_v35 = vadd.s32 %v10877_v20, %v616_v62  ;;  %v10883_v42 = vld [vmem:[#allocation13_spill] sm:$0xff] }
 0x2f2   :  { %v8209_v33 = vcvt.s32.f32 %v3080_v39  ;;  %vm2701_vm1 = vcmp.lt.s32.totalorder %v8050_v6, 0  ;;  %vm2819_vm11 = vc.u32 %v8201_v24, 2454267026  ;;  %v2037_v23 = vcvt.f32.s32 %v8142_v21 }
 0x2f3   :  { %v2909_v7 = vsub.s32 0, %v2908_v40  ;;  %v1038_v9 = vsub.s32 %v4605_v59, %v1037_v29  ;;  %v2820_v38 = vsel %vm2819_vm11, 1, %v10562_v4  ;;  %v8219_v28 = vmin.u32 %v1070_v37, %v8198_v17 }
 0x2f4   :  { %10878 = vst [vmem:[#allocation98_spill] sm:$0xff] %v8209_v33  ;;  %v8222_v39 = vmul.f32 %v4852_v60, %v8070_v13  ;;  %4853 = vrsqrt.f32 %v8180_v8  ;;  %v8225_v62 = vcvt.s32.f32 %v3094_v12  ;;  %v2821_v6 = vadd.s32 %v8202_v55, %v2820_v38 }
 0x2f5   :  { %v3088_v21 = vsel %vm8211_vm0, %v3056_v57, %v2798_v43  ;;  %v8230_v51 = vsel %vm2701_vm1, %v2713_v41, %v2712_v58  ;;  %vm2897_vm12 = vcmp.lt.s32.totalorder %v8078_v63, 0  ;;  %v1056_v59 = vsub.s32 0, %v8207_v35  ;;  %v8252_v41 = vpop.xlane.xlu1 %2155 }
 0x2f6   :  { %10881 = vst [vmem:[#allocation70_spill] sm:$0xff] %v8222_v39  ;;  %10882 = vst [vmem:[#allocation99_spill] sm:$0xff] %v8225_v62  ;;  %4855 = vrsqrt.f32 %v8209_v33  ;;  %vm1027_vm4 = vcmp.lt.s32.totalorder %v8095_v47, 0  ;;  %v2822_v60 = vshrl.u32 %v2821_v6, 4  ;;  %v8237_v24 = vadd.s32 %v10883_v42, %v2037_v23  ;;  %v10892_v39 = vld [vmem:[#allocation32_spill] sm:$0xff] }
 0x2f7   :  { %v8239_v12 = vsel %vm2897_vm12, %v2909_v7, %v2908_v40  ;;  %v1039_v55 = vsub.s32 0, %v1038_v9  ;;  %v8242_v37 = vmul.u32.u64.low 2454267026, %v8219_v28  ;;  %v8243_v43 = vmul.u32.u64.high 2454267026, %v8219_v28, %v8242_v37 }
 0x2f8   :  { %4857 = vrsqrt.f32 %v8225_v62  ;;  %v8246_v63 = vcvt.s32.f32 %v3088_v21  ;;  %vm2954_vm14 = vcmp.ne.s32.totalorder %v8230_v51, 0  ;;  %vm2813_vm9 = vcmp.lt.s32.totalorder %v8153_v31, 0 }
 0x2f9   :  { %vm2986_vm8 = vcmp.lt.s32.totalorder %v8230_v51, 0  ;;  %v2823_v58 = vmul.u32 28, %v2822_v60  ;;  %vm1075_vm3 = vc.u32 %v8242_v37, 2454267026  ;;  %v4607_v57 = vmin.u32 %v1056_v59, %v8207_v35 }
 0x2fa   :  { %10884 = vst [vmem:[#allocation38_spill] sm:$0xff] %v8246_v63  ;;  %v3050_v40 = vadd.s32 28, %v8230_v51  ;;  %vm2968_vm0 = vcmp.ne.s32.totalorder %v8239_v12, 0  ;;  %v1076_v29 = vsel %vm1075_vm3, 1, %v10562_v4  ;;  %v2506_v20 = vsub.s32 0, %v8237_v24  ;;  %vm8273_vm11 = vmand %vm2986_vm8, %vm2954_vm14 }
 0x2fb   :  { %vm3000_vm1 = vcmp.lt.s32.totalorder %v8239_v12, 0  ;;  %v8261_v26 = vsel %vm1027_vm4, %v1039_v55, %v1038_v9  ;;  %v2824_v23 = vsub.s32 %v4632_v25, %v2823_v58  ;;  %v1077_v7 = vadd.s32 %v8243_v43, %v1076_v29 }
 0x2fc   :  { %v8264_v38 = vmul.u32.u64.low 2454267026, %v4607_v57  ;;  %v8265_v6 = vmul.u32.u64.high 2454267026, %v4607_v57, %v8264_v38  ;;  %v4610_v21 = vmin.u32 %v2506_v20, %v8237_v24  ;;  %v2097_v59 = vcvt.f32.s32 %v8191_v22  ;;  %v10888_v22 = vld [vmem:[#allocation72_spill] sm:$0xff]  ;;  %vm8290_vm4 = vmand %vm3000_vm1, %vm2968_vm0 }
 0x2fd   :  { %v3064_v47 = vadd.s32 28, %v8239_v12  ;;  %v2825_v25 = vsub.s32 0, %v2824_v23  ;;  %v1078_v9 = vshrl.u32 %v1077_v7, 4  ;;  %v2127_v42 = vcvt.f32.s32 %v2126_v1  ;;  %v2171_v7 = vpop.xlane.xlu1 %2170 }
 0x2fe   :  { %v8278_v55 = vpop.eup %4853  ;;  %vm1061_vm12 = vc.u32 %v8264_v38, 2454267026  ;;  %v8280_v37 = vmul.u32.u64.low 2454267026, %v4610_v21  ;;  %v8281_v43 = vmul.u32.u64.high 2454267026, %v4610_v21, %v8280_v37  ;;  %v8284_v58 = vadd.s32 %v10888_v22, %v2097_v59 }
 0x2ff   :  { %10887 = vst [vmem:[#allocation95_spill] sm:$0xff] %v8278_v55  ;;  %vm1111_vm14 = vcmp.ne.s32.totalorder %v8261_v26, 0  ;;  %vm1143_vm8 = vcmp.lt.s32.totalorder %v8261_v26, 0  ;;  %v1079_v1 = vmul.u32 28, %v1078_v9  ;;  %v1062_v20 = vsel %vm1061_vm12, 1, %v10562_v4 }
 0x300   :  { %v8297_v38 = vpop.eup %4855  ;;  %v3082_v59 = vsel %vm8273_vm11, %v3050_v40, %v8230_v51  ;;  %v2826_v22 = vsel %vm2813_vm9, %v2825_v25, %v2824_v23  ;;  %v1063_v62 = vadd.s32 %v8265_v6, %v1062_v20  ;;  %v8306_v13 = vadd.s32 %v10892_v39, %v2127_v42  ;;  %vm8320_vm9 = vmand %vm1143_vm8, %vm1111_vm14 }
 0x301   :  { %10891 = vst [vmem:[#allocation50_spill] sm:$0xff] %v8297_v38  ;;  %4859 = vrsqrt.f32 %v8246_v63  ;;  %v1207_v9 = vadd.s32 28, %v8261_v26  ;;  %vm2511_vm3 = vc.u32 %v8280_v37, 2454267026  ;;  %v2562_v55 = vsub.s32 0, %v8284_v58  ;;  %v2276_v29 = vpop.xlane.xlu1 %2275 }
 0x302   :  { %v8311_v8 = vpop.eup %4857  ;;  %v3096_v51 = vsel %vm8290_vm4, %v3064_v47, %v8239_v12  ;;  %vm1069_vm0 = vcmp.lt.s32.totalorder %v8198_v17, 0  ;;  %v1080_v39 = vsub.s32 %v8219_v28, %v1079_v1  ;;  %v1064_v40 = vshrl.u32 %v1063_v62, 4 }
 0x303   :  { %10893 = vst [vmem:[#allocation40_spill] sm:$0xff] %v8311_v8  ;;  %v2512_v23 = vsel %vm2511_vm3, 1, %v10562_v4  ;;  %v8327_v6 = vcvt.s32.f32 %v3082_v59  ;;  %vm2962_vm1 = vcmp.ne.s32.totalorder %v2826_v22, 0  ;;  %v8331_v60 = vmin.u32 %v2562_v55, %v8284_v58  ;;  %v10903_v59 = vld [vmem:[#allocation53_spill] sm:$0xff] }
 0x304   :  { %v2513_v12 = vadd.s32 %v8281_v43, %v2512_v23  ;;  %vm2994_vm11 = vcmp.lt.s32.totalorder %v2826_v22, 0  ;;  %v1065_v47 = vmul.u32 28, %v1064_v40  ;;  %v2590_v25 = vsub.s32 0, %v8306_v13 }
 0x305   :  { %10896 = vst [vmem:[#allocation23_spill] sm:$0xff] %v8327_v6  ;;  %v2157_v42 = vcvt.f32.s32 %v8252_v41  ;;  %v8335_v37 = vcvt.s32.f32 %v3096_v51  ;;  %v1239_v28 = vsel %vm8320_vm9, %v1207_v9, %v8261_v26  ;;  %vm1055_vm12 = vcmp.lt.s32.totalorder %v8207_v35, 0  ;;  %vm8342_vm4 = vmand %vm2994_vm11, %vm2962_vm1  ;;  %v10900_v9 = vld [vmem:[#allocation74_spill] sm:$0xff] }
 0x306   :  { %v2514_v62 = vshrl.u32 %v2513_v12, 4  ;;  %v3058_v43 = vadd.s32 28, %v2826_v22  ;;  %v1081_v1 = vsub.s32 0, %v1080_v39  ;;  %v1066_v55 = vsub.s32 %v4607_v57, %v1065_v47 }
 0x307   :  { %10897 = vst [vmem:[#allocation69_spill] sm:$0xff] %v8335_v37  ;;  %v2172_v20 = vcvt.f32.s32 %v2171_v7  ;;  %v8347_v51 = vmul.u32.u64.low 2454267026, %v8331_v60  ;;  %v8348_v40 = vmul.u32.u64.high 2454267026, %v8331_v60, %v8347_v51  ;;  %v8351_v26 = vmin.u32 %v2590_v25, %v8306_v13 }
 0x308   :  { %v2515_v41 = vmul.u32 28, %v2514_v62  ;;  %4861 = vrsqrt.f32 %v8327_v6  ;;  %vm2505_vm14 = vcmp.lt.s32.totalorder %v8237_v24, 0  ;;  %v8356_v57 = vadd.s32 %v10900_v9, %v2157_v42 }
 0x309   :  { %v2277_v7 = vcvt.f32.s32 %v2276_v29  ;;  %v8358_v31 = vcvt.s32.f32 %v1239_v28  ;;  %v1067_v23 = vsub.s32 0, %v1066_v55  ;;  %vm2567_vm8 = vc.u32 %v8347_v51, 2454267026 }
 0x30a   :  { %v2516_v12 = vsub.s32 %v4610_v21, %v2515_v41  ;;  %v3090_v47 = vsel %vm8342_vm4, %v3058_v43, %v2826_v22  ;;  %v2568_v62 = vsel %vm2567_vm8, 1, %v10562_v4  ;;  %4863 = vrsqrt.f32 %v8335_v37  ;;  %v10902_v21 = vld [vmem:[#allocation22_spill] sm:$0xff] }
 0x30b   :  { %v8364_v25 = vmul.u32.u64.low 2454267026, %v8351_v26  ;;  %v8365_v8 = vmul.u32.u64.high 2454267026, %v8351_v26, %v8364_v25  ;;  %v8367_v63 = vpop.eup %4859  ;;  %v8372_v42 = vsel %vm1069_vm0, %v1081_v1, %v1080_v39  ;;  %v8375_v29 = vadd.s32 %v10902_v21, %v2172_v20  ;;  %v2186_v1 = vpop.xlane.xlu1 %2185 }
 0x30c   :  { %10901 = vst [vmem:[#allocation26_spill] sm:$0xff] %v8367_v63  ;;  %v2517_v28 = vsub.s32 0, %v2516_v12  ;;  %v2569_v22 = vadd.s32 %v8348_v40, %v2568_v62  ;;  %v2618_v43 = vsub.s32 0, %v8356_v57  ;;  %v8380_v41 = vadd.s32 %v10903_v59, %v2277_v7 }
 0x30d   :  { %vm2595_vm3 = vc.u32 %v8364_v25, 2454267026  ;;  %4865 = vrsqrt.f32 %v8358_v31  ;;  %v8383_v51 = vcvt.s32.f32 %v3090_v47  ;;  %v8387_v17 = vsel %vm1055_vm12, %v1067_v23, %v1066_v55 }
 0x30e   :  { %v2596_v39 = vsel %vm2595_vm3, 1, %v10562_v4  ;;  %vm1114_vm9 = vcmp.ne.s32.totalorder %v8372_v42, 0  ;;  %vm1146_vm0 = vcmp.lt.s32.totalorder %v8372_v42, 0  ;;  %v1210_v20 = vadd.s32 28, %v8372_v42 }
 0x30f   :  { %10904 = vst [vmem:[#allocation30_spill] sm:$0xff] %v8383_v51  ;;  %v2518_v40 = vsel %vm2505_vm14, %v2517_v28, %v2516_v12  ;;  %vm2561_vm1 = vcmp.lt.s32.totalorder %v8284_v58, 0  ;;  %v2570_v9 = vshrl.u32 %v2569_v22, 4  ;;  %v2597_v7 = vadd.s32 %v8365_v8, %v2596_v39  ;;  %vm8420_vm8 = vmand %vm1146_vm0, %vm1114_vm9 }
 0x310   :  { %v8398_v35 = vmin.u32 %v2618_v43, %v8356_v57  ;;  %v2632_v55 = vsub.s32 0, %v8375_v29  ;;  %vm1113_vm11 = vcmp.ne.s32.totalorder %v8387_v17, 0  ;;  %vm1145_vm12 = vcmp.lt.s32.totalorder %v8387_v17, 0 }
 0x311   :  { %v2730_v23 = vsub.s32 0, %v8380_v41  ;;  %v2187_v47 = vcvt.f32.s32 %v2186_v1  ;;  %vm2940_vm4 = vcmp.ne.s32.totalorder %v2518_v40, 0  ;;  %v2571_v24 = vmul.u32 28, %v2570_v9  ;;  %v10908_v1 = vld [vmem:[#allocation56_spill] sm:$0xff]  ;;  %vm8433_vm3 = vmand %vm1145_vm12, %vm1113_vm11 }
 0x312   :  { %v2598_v12 = vshrl.u32 %v2597_v7, 4  ;;  %v8405_v62 = vmin.u32 %v2632_v55, %v8375_v29  ;;  %v8407_v25 = vpop.eup %4861  ;;  %vm2972_vm14 = vcmp.lt.s32.totalorder %v2518_v40, 0  ;;  %v1209_v43 = vadd.s32 28, %v8387_v17  ;;  %v2381_v7 = vpop.xlane.xlu1 %2380 }
 0x313   :  { %10905 = vst [vmem:[#allocation93_spill] sm:$0xff] %v8407_v25  ;;  %v8410_v8 = vmul.u32.u64.low 2454267026, %v8398_v35  ;;  %v8411_v28 = vmul.u32.u64.high 2454267026, %v8398_v35, %v8410_v8  ;;  %v8414_v21 = vmin.u32 %v2730_v23, %v8380_v41  ;;  %v3036_v59 = vadd.s32 28, %v2518_v40  ;;  %vm8445_vm0 = vmand %vm2972_vm14, %vm2940_vm4 }
 0x314   :  { %v2572_v39 = vsub.s32 %v8331_v60, %v2571_v24  ;;  %v8427_v9 = vadd.s32 %v10908_v1, %v2187_v47  ;;  %v2599_v23 = vmul.u32 28, %v2598_v12  ;;  %v8441_v25 = vpop.eup %4863  ;;  %vm2589_vm11 = vcmp.lt.s32.totalorder %v8306_v13, 0 }
 0x315   :  { %vm2623_vm9 = vc.u32 %v8410_v8, 2454267026  ;;  %v8438_v37 = vmul.u32.u64.low 2454267026, %v8405_v62  ;;  %v8439_v63 = vmul.u32.u64.high 2454267026, %v8405_v62, %v8438_v37  ;;  %10911 = vst [vmem:[#allocation52_spill] sm:$0xff] %v8441_v25  ;;  %4867 = vrsqrt.f32 %v8383_v51 }
 0x316   :  { %v2573_v47 = vsub.s32 0, %v2572_v39  ;;  %v2624_v24 = vsel %vm2623_vm9, 1, %v10562_v4  ;;  %v8452_v12 = vmul.u32.u64.low 2454267026, %v8414_v21  ;;  %v8453_v8 = vmul.u32.u64.high 2454267026, %v8414_v21, %v8452_v12 }
 0x317   :  { %v2600_v1 = vsub.s32 %v8351_v26, %v2599_v23  ;;  %v2625_v25 = vadd.s32 %v8411_v28, %v2624_v24  ;;  %vm2637_vm12 = vc.u32 %v8438_v37, 2454267026  ;;  %v8458_v6 = vpop.eup %4865  ;;  %v2646_v15 = vsub.s32 0, %v8427_v9 }
 0x318   :  { %v8462_v38 = vsel %vm2561_vm1, %v2573_v47, %v2572_v39  ;;  %v2638_v33 = vsel %vm2637_vm12, 1, %v10562_v4  ;;  %vm2735_vm4 = vc.u32 %v8452_v12, 2454267026  ;;  %v1242_v51 = vsel %vm8420_vm8, %v1210_v20, %v8372_v42  ;;  %v8480_v47 = vpop.xlane.xlu1 %2200 }
 0x319   :  { %v1241_v26 = vsel %vm8433_vm3, %v1209_v43, %v8387_v17  ;;  %v3068_v37 = vsel %vm8445_vm0, %v3036_v59, %v2518_v40  ;;  %vm2944_vm14 = vcmp.ne.s32.totalorder %v8462_v38, 0  ;;  %v2626_v58 = vshrl.u32 %v2625_v25, 4  ;;  %v10914_v43 = vld [vmem:[#allocation78_spill] sm:$0xff] }
 0x31a   :  { %v2639_v28 = vadd.s32 %v8439_v63, %v2638_v33  ;;  %v2736_v39 = vsel %vm2735_vm4, 1, %v10562_v4  ;;  %v8478_v23 = vmin.u32 %v2646_v15, %v8427_v9  ;;  %vm2976_vm1 = vcmp.lt.s32.totalorder %v8462_v38, 0 }
 0x31b   :  { %v2601_v42 = vsub.s32 0, %v2600_v1  ;;  %v2737_v17 = vadd.s32 %v8453_v8, %v2736_v39  ;;  %v2382_v20 = vcvt.f32.s32 %v2381_v7  ;;  %v8484_v22 = vcvt.s32.f32 %v1242_v51  ;;  %vm8499_vm3 = vmand %vm2976_vm1, %vm2944_vm14 }
 0x31c   :  { %v8486_v40 = vcvt.s32.f32 %v3068_v37  ;;  %v8489_v25 = vadd.s32 28, %v8462_v38  ;;  %vm2617_vm8 = vcmp.lt.s32.totalorder %v8356_v57, 0  ;;  %v2627_v33 = vmul.u32 28, %v2626_v58  ;;  %v2411_v58 = vpop.xlane.xlu1 %2410 }
 0x31d   :  { %v2640_v15 = vshrl.u32 %v2639_v28, 4  ;;  %v2738_v63 = vshrl.u32 %v2737_v17, 4  ;;  %v8493_v59 = vadd.s32 %v10914_v43, %v2382_v20  ;;  %v8495_v55 = vcvt.s32.f32 %v1241_v26 }
 0x31e   :  { %vm2631_vm9 = vcmp.lt.s32.totalorder %v8375_v29, 0  ;;  %v8505_v7 = vmul.u32.u64.low 2454267026, %v8478_v23  ;;  %v8506_v60 = vmul.u32.u64.high 2454267026, %v8478_v23, %v8505_v7  ;;  %v8510_v24 = vsel %vm2589_vm11, %v2601_v42, %v2600_v1 }
 0x31f   :  { %v2628_v12 = vsub.s32 %v8398_v35, %v2627_v33  ;;  %v2641_v8 = vmul.u32 28, %v2640_v15  ;;  %vm2729_vm0 = vcmp.lt.s32.totalorder %v8380_v41, 0  ;;  %4869 = vrsqrt.f32 %v8486_v40  ;;  %v8516_v28 = vpop.eup %4867 }
 0x320   :  { %v2739_v26 = vmul.u32 28, %v2738_v63  ;;  %vm2651_vm12 = vc.u32 %v8505_v7, 2454267026  ;;  %v2828_v37 = vsub.s32 0, %v8493_v59  ;;  %10917 = vst [vmem:[#allocation36_spill] sm:$0xff] %v8516_v28  ;;  %v3072_v13 = vsel %vm8499_vm3, %v8489_v25, %v8462_v38 }
 0x321   :  { %v2629_v1 = vsub.s32 0, %v2628_v12  ;;  %v2642_v35 = vsub.s32 %v8405_v62, %v2641_v8  ;;  %v2652_v39 = vsel %vm2651_vm12, 1, %v10562_v4  ;;  %vm2946_vm11 = vcmp.ne.s32.totalorder %v8510_v24, 0 }
 0x322   :  { %v2740_v42 = vsub.s32 %v8414_v21, %v2739_v26  ;;  %v2653_v17 = vadd.s32 %v8506_v60, %v2652_v39  ;;  %v8528_v20 = vmin.u32 %v2828_v37, %v8493_v59  ;;  %vm2978_vm4 = vcmp.lt.s32.totalorder %v8510_v24, 0  ;;  %v2321_v60 = vpop.xlane.xlu1 %2320 }
 0x323   :  { %v2630_v33 = vsel %vm2617_vm8, %v2629_v1, %v2628_v12  ;;  %v2643_v38 = vsub.s32 0, %v2642_v35  ;;  %v2202_v25 = vcvt.f32.s32 %v8480_v47  ;;  %v2412_v29 = vcvt.f32.s32 %v2411_v58 }
 0x324   :  { %vm2948_vm14 = vcmp.ne.s32.totalorder %v2630_v33, 0  ;;  %vm2980_vm1 = vcmp.lt.s32.totalorder %v2630_v33, 0  ;;  %v3044_v62 = vadd.s32 28, %v2630_v33  ;;  %v2741_v15 = vsub.s32 0, %v2740_v42 }
 0x325   :  { %vm8534_vm3 = vmand %vm2980_vm1, %vm2948_vm14  ;;  %v2644_v21 = vsel %vm2631_vm9, %v2643_v38, %v2642_v35  ;;  %v2654_v43 = vshrl.u32 %v2653_v17, 4  ;;  %v8541_v51 = vmul.u32.u64.low 2454267026, %v8528_v20  ;;  %v8542_v7 = vmul.u32.u64.high 2454267026, %v8528_v20, %v8541_v51 }
 0x326   :  { %v3076_v57 = vsel %vm8534_vm3, %v3044_v62, %v2630_v33  ;;  %vm2949_vm8 = vcmp.ne.s32.totalorder %v2644_v21, 0  ;;  %vm2981_vm12 = vcmp.lt.s32.totalorder %v2644_v21, 0  ;;  %v3045_v47 = vadd.s32 28, %v2644_v21  ;;  %v10923_v62 = vld [vmem:[#allocation67_spill] sm:$0xff] }
 0x327   :  { %vm3013_vm5 = vmand %vm2981_vm12, %vm2949_vm8  ;;  %v2742_v12 = vsel %vm2729_vm0, %v2741_v15, %v2740_v42  ;;  %v2655_v8 = vmul.u32 28, %v2654_v43  ;;  %vm2833_vm14 = vc.u32 %v8541_v51, 2454267026  ;;  %v3042_v1 = vadd.s32 28, %v8510_v24  ;;  %v10924_v43 = vld [vmem:[#allocation48_spill] sm:$0xff] }
 0x328   :  { %v3077_v26 = vsel %vm3013_vm5, %v3045_v47, %v2644_v21  ;;  %vm2956_vm9 = vcmp.ne.s32.totalorder %v2742_v12, 0  ;;  %vm2988_vm1 = vcmp.lt.s32.totalorder %v2742_v12, 0  ;;  %v3052_v37 = vadd.s32 28, %v2742_v12  ;;  %vm8557_vm0 = vmand %vm2978_vm4, %vm2946_vm11 }
 0x329   :  { %v8549_v35 = vcvt.s32.f32 %v3076_v57  ;;  %v8551_v39 = vcvt.s32.f32 %v3077_v26  ;;  %vm3020_vm3 = vmand %vm2988_vm1, %vm2956_vm9  ;;  %v2322_v17 = vcvt.f32.s32 %v2321_v60  ;;  %v4870_v33 = vpop.eup %4869  ;;  %v2656_v42 = vsub.s32 %v8478_v23, %v2655_v8  ;;  %v2231_v26 = vpop.xlane.xlu1 %2230 }
 0x32a   :  { %v3084_v58 = vsel %vm3020_vm3, %v3052_v37, %v2742_v12  ;;  %v2834_v38 = vsel %vm2833_vm14, 1, %v10562_v4  ;;  %v8564_v15 = vadd.s32 %v10923_v62, %v2202_v25  ;;  %vm2645_vm5 = vcmp.lt.s32.totalorder %v8427_v9, 0  ;;  %v10926_v9 = vld [vmem:[#allocation59_spill] sm:$0xff] }
 0x32b   :  { %10920 = vst [vmem:[#allocation77_spill] sm:$0xff] %v8551_v39  ;;  %v2835_v21 = vadd.s32 %v8542_v7, %v2834_v38  ;;  %v8570_v51 = vadd.s32 %v10924_v43, %v2412_v29  ;;  %v8572_v57 = vcvt.s32.f32 %v3072_v13  ;;  %v8574_v47 = vcvt.s32.f32 %v3084_v58 }
 0x32c   :  { %v2657_v60 = vsub.s32 0, %v2656_v42  ;;  %v2660_v23 = vsub.s32 0, %v8564_v15  ;;  %v3074_v25 = vsel %vm8557_vm0, %v3042_v1, %v8510_v24  ;;  %4871 = vrsqrt.f32 %v8549_v35 }
 0x32d   :  { %10925 = vst [vmem:[#allocation62_spill] sm:$0xff] %v8572_v57  ;;  %v2836_v12 = vshrl.u32 %v2835_v21, 4  ;;  %v8582_v8 = vadd.s32 %v10926_v9, %v2322_v17  ;;  %4873 = vrsqrt.f32 %v8551_v39  ;;  %v2856_v29 = vsub.s32 0, %v8570_v51 }
 0x32e   :  { %v2658_v7 = vsel %vm2645_vm5, %v2657_v60, %v2656_v42  ;;  %v4621_v13 = vmin.u32 %v2660_v23, %v8564_v15  ;;  %4875 = vrsqrt.f32 %v8574_v47  ;;  %v2232_v62 = vcvt.f32.s32 %v2231_v26 }
 0x32f   :  { %vm2950_vm11 = vcmp.ne.s32.totalorder %v2658_v7, 0  ;;  %vm2982_vm4 = vcmp.lt.s32.totalorder %v2658_v7, 0  ;;  %v3046_v37 = vadd.s32 28, %v2658_v7  ;;  %v2837_v58 = vmul.u32 28, %v2836_v12 }
 0x330   :  { %vm3014_vm8 = vmand %vm2982_vm4, %vm2950_vm11  ;;  %v8588_v24 = vmul.u32.u64.low 2454267026, %v4621_v13  ;;  %v8589_v1 = vmul.u32.u64.high 2454267026, %v4621_v13, %v8588_v24  ;;  %v4635_v17 = vmin.u32 %v2856_v29, %v8570_v51  ;;  %v2772_v38 = vsub.s32 0, %v8582_v8 }
 0x331   :  { %v3078_v41 = vsel %vm3014_vm8, %v3046_v37, %v2658_v7  ;;  %v2838_v42 = vsub.s32 %v8528_v20, %v2837_v58  ;;  %v8594_v21 = vcvt.s32.f32 %v3074_v25  ;;  %vm2827_vm14 = vcmp.lt.s32.totalorder %v8493_v59, 0  ;;  %v10929_v7 = vld [vmem:[#allocation73_spill] sm:$0xff] }
 0x332   :  { %vm2665_vm12 = vc.u32 %v8588_v24, 2454267026  ;;  %v8596_v43 = vmul.u32.u64.low 2454267026, %v4635_v17  ;;  %v8597_v60 = vmul.u32.u64.high 2454267026, %v4635_v17, %v8596_v43  ;;  %v4629_v9 = vmin.u32 %v2772_v38, %v8582_v8 }
 0x333   :  { %10927 = vst [vmem:[#allocation89_spill] sm:$0xff] %v8594_v21  ;;  %v2839_v23 = vsub.s32 0, %v2838_v42  ;;  %v2666_v12 = vsel %vm2665_vm12, 1, %v10562_v4  ;;  %v8602_v29 = vcvt.s32.f32 %v3078_v41  ;;  %v8606_v26 = vadd.s32 %v10929_v7, %v2232_v62 }
 0x334   :  { %v2667_v20 = vadd.s32 %v8589_v1, %v2666_v12  ;;  %vm2861_vm9 = vc.u32 %v8596_v43, 2454267026  ;;  %v8609_v58 = vmul.u32.u64.low 2454267026, %v4629_v9  ;;  %v8610_v24 = vmul.u32.u64.high 2454267026, %v4629_v9, %v8609_v58 }
 0x335   :  { %10928 = vst [vmem:[#allocation92_spill] sm:$0xff] %v8602_v29  ;;  %v2840_v25 = vsel %vm2827_vm14, %v2839_v23, %v2838_v42  ;;  %v2862_v37 = vsel %vm2861_vm9, 1, %v10562_v4  ;;  %v8613_v59 = vmul.f32 %v4870_v33, %v8486_v40  ;;  %4877 = vrsqrt.f32 %v8572_v57 }
 0x336   :  { %vm2963_vm1 = vcmp.ne.s32.totalorder %v2840_v25, 0  ;;  %vm2995_vm3 = vcmp.lt.s32.totalorder %v2840_v25, 0  ;;  %v4872_v41 = vpop.eup %4871  ;;  %v3059_v38 = vadd.s32 28, %v2840_v25  ;;  %v2668_v1 = vshrl.u32 %v2667_v20, 4 }
 0x337   :  { %10930 = vst [vmem:[#allocation39_spill] sm:$0xff] %v8613_v59  ;;  %v2863_v43 = vadd.s32 %v8597_v60, %v2862_v37  ;;  %vm2777_vm0 = vc.u32 %v8609_v58, 2454267026  ;;  %v4874_v62 = vpop.eup %4873  ;;  %4879 = vrsqrt.f32 %v8594_v21  ;;  %vm8619_vm5 = vmand %vm2995_vm3, %vm2963_vm1  ;;  %v2688_v12 = vsub.s32 0, %v8606_v26 }
 0x338   :  { %v2778_v33 = vsel %vm2777_vm0, 1, %v10562_v4  ;;  %4881 = vrsqrt.f32 %v8602_v29  ;;  %v2669_v7 = vmul.u32 28, %v2668_v1  ;;  %v4876_v37 = vpop.eup %4875  ;;  %vm2659_vm11 = vcmp.lt.s32.totalorder %v8564_v15, 0 }
 0x339   :  { %v2864_v20 = vshrl.u32 %v2863_v43, 4  ;;  %v2779_v60 = vadd.s32 %v8610_v24, %v2778_v33  ;;  %vm2855_vm4 = vcmp.lt.s32.totalorder %v8570_v51, 0  ;;  %v4623_v42 = vmin.u32 %v2688_v12, %v8606_v26 }
 0x33a   :  { %v3091_v63 = vsel %vm8619_vm5, %v3059_v38, %v2840_v25  ;;  %v2670_v28 = vsub.s32 %v4621_v13, %v2669_v7  ;;  %v8634_v1 = vmul.f32 %v4872_v41, %v8549_v35  ;;  %vm2771_vm8 = vcmp.lt.s32.totalorder %v8582_v8, 0 }
 0x33b   :  { %v2865_v21 = vmul.u32 28, %v2864_v20  ;;  %v2780_v57 = vshrl.u32 %v2779_v60, 4  ;;  %v8637_v24 = vmul.u32.u64.low 2454267026, %v4623_v42  ;;  %v8638_v43 = vmul.u32.u64.high 2454267026, %v4623_v42, %v8637_v24 }
 0x33c   :  { %10933 = vst [vmem:[#allocation94_spill] sm:$0xff] %v8634_v1  ;;  %v2671_v33 = vsub.s32 0, %v2670_v28  ;;  %4883 = vrsqrt.f32 %v8495_v55  ;;  %v8642_v12 = vmul.f32 %v4874_v62, %v8551_v39  ;;  %v8645_v13 = vmul.f32 %v4876_v37, %v8574_v47 }
 0x33d   :  { %v2866_v58 = vsub.s32 %v4635_v17, %v2865_v21  ;;  %v2781_v59 = vmul.u32 28, %v2780_v57  ;;  %v8647_v25 = vcvt.s32.f32 %v3091_v63  ;;  %vm2693_vm12 = vc.u32 %v8637_v24, 2454267026 }
 0x33e   :  { %10934 = vst [vmem:[#allocation75_spill] sm:$0xff] %v8642_v12  ;;  %10935 = vst [vmem:[#allocation80_spill] sm:$0xff] %v8645_v13  ;;  %v2672_v41 = vsel %vm2659_vm11, %v2671_v33, %v2670_v28  ;;  %v1472_v17 = vmul.f32 %v8458_v6, %v8358_v31  ;;  %v2694_v62 = vsel %vm2693_vm12, 1, %v10562_v4  ;;  %vm1473_vm3 = vcmp.eq.f32.partialorder %v8358_v31, inf }
 0x33f   :  { %v2867_v38 = vsub.s32 0, %v2866_v58  ;;  %v2782_v23 = vsub.s32 %v4629_v9, %v2781_v59  ;;  %v8653_v57 = vpop.eup %4877  ;;  %vm2951_vm14 = vcmp.ne.s32.totalorder %v2672_v41, 0  ;;  %vm2983_vm9 = vcmp.lt.s32.totalorder %v2672_v41, 0 }
 0x340   :  { %v3047_v21 = vadd.s32 28, %v2672_v41  ;;  %vm8656_vm1 = vmand %vm2983_vm9, %vm2951_vm14  ;;  %v2695_v63 = vadd.s32 %v8638_v43, %v2694_v62  ;;  %vm2687_vm11 = vcmp.lt.s32.totalorder %v8606_v26, 0  ;;  %vm1475_vm12 = vcmp.eq.f32.partialorder %v8358_v31, 0.0 }
 0x341   :  { %v2868_v15 = vsel %vm2855_vm4, %v2867_v38, %v2866_v58  ;;  %v2783_v28 = vsub.s32 0, %v2782_v23  ;;  %v8664_v6 = vpop.eup %4879  ;;  %v1474_v37 = vsel %vm1473_vm3, %v8358_v31, %v1472_v17  ;;  %4885 = vrsqrt.f32 %v8484_v22 }
 0x342   :  { %vm2965_vm0 = vcmp.ne.s32.totalorder %v2868_v15, 0  ;;  %vm2997_vm5 = vcmp.lt.s32.totalorder %v2868_v15, 0  ;;  %v3061_v9 = vadd.s32 28, %v2868_v15  ;;  %v4882_v59 = vpop.eup %4881  ;;  %v2696_v60 = vshrl.u32 %v2695_v63, 4 }
 0x343   :  { %vm8668_vm14 = vmand %vm2997_vm5, %vm2965_vm0  ;;  %v8674_v51 = vsel %vm2771_vm8, %v2783_v28, %v2782_v23  ;;  %v3079_v58 = vsel %vm8656_vm1, %v3047_v21, %v2672_v41  ;;  %v1476_v24 = vand.u32 2147483648, %v8358_v31  ;;  %4887 = vrsqrt.f32 %v8647_v25 }
 0x344   :  { %vm2959_vm4 = vcmp.ne.s32.totalorder %v8674_v51, 0  ;;  %vm2991_vm9 = vcmp.lt.s32.totalorder %v8674_v51, 0  ;;  %v3093_v8 = vsel %vm8668_vm14, %v3061_v9, %v2868_v15  ;;  %v8687_v43 = vadd.s32 28, %v8674_v51 }
 0x345   :  { %v2697_v33 = vmul.u32 28, %v2696_v60  ;;  %v8690_v38 = vmul.f32 %v4882_v59, %v8602_v29  ;;  %vm8692_vm8 = vmand %vm2991_vm9, %vm2959_vm4  ;;  %v8698_v23 = vsel %vm1475_vm12, %v1476_v24, %v1474_v37  ;;  %vm1487_vm1 = vcmp.eq.f32.partialorder %v8495_v55, inf }
 0x346   :  { %10943 = vst [vmem:[#allocation96_spill] sm:$0xff] %v8698_v23  ;;  %vm1489_vm3 = vcmp.eq.f32.partialorder %v8495_v55, 0.0  ;;  %v4884_v17 = vpop.eup %4883  ;;  %v8702_v21 = vcvt.s32.f32 %v3079_v58  ;;  %v1490_v7 = vand.u32 2147483648, %v8495_v55  ;;  %v1608_v15 = vrot.slane %v7515_v36, %v7942_v48 }
 0x347   :  { %10940 = vst [vmem:[#allocation63_spill] sm:$0xff] %v8690_v38  ;;  %v2698_v62 = vsub.s32 %v4623_v42, %v2697_v33  ;;  %v8707_v28 = vcvt.s32.f32 %v3093_v8  ;;  %v1486_v63 = vmul.f32 %v4884_v17, %v8495_v55  ;;  %vm1494_vm0 = vcmp.eq.f32.partialorder %v8484_v22, inf }
 0x348   :  { %v1613_v31 = vrot.slane %v7534_v16, %v7959_v11  ;;  %v3087_v9 = vsel %vm8692_vm8, %v8687_v43, %v8674_v51  ;;  %vm1496_vm5 = vcmp.eq.f32.partialorder %v8484_v22, 0.0  ;;  %v1618_v59 = vrot.slane %v7540_v19, %v7998_v3 }
 0x349   :  { %v2699_v42 = vsub.s32 0, %v2698_v62  ;;  %v1488_v20 = vsel %vm1487_vm1, %v8495_v55, %v1486_v63  ;;  %v1497_v60 = vand.u32 2147483648, %v8484_v22  ;;  %v1623_v37 = vrot.slane %v7542_v32, %v8026_v61 }
 0x34a   :  { %v1632_v58 = vrot.slane %v7568_v46, %v7703_v50  ;;  %v1609_v51 = vsel %vm10335_vm10, %v1608_v15, %v8178_v10  ;;  %v1628_v8 = vrot.slane %v7546_v5, %v7695_v14  ;;  %v1637_v43 = vrot.slane %v7573_v45, %v7761_v0 }
 0x34b   :  { %v2700_v24 = vsel %vm2687_vm11, %v2699_v42, %v2698_v62  ;;  %v1614_v33 = vsel %vm10334_vm2, %v1613_v31, %v1609_v51  ;;  %v1642_v41 = vrot.slane %v7597_v49, %v7854_v18  ;;  %v4886_v17 = vpop.eup %4885  ;;  %v8739_v26 = vsel %vm1489_vm3, %v1490_v7, %v1488_v20 }
 0x34c   :  { %vm2953_vm12 = vcmp.ne.s32.totalorder %v2700_v24, 0  ;;  %vm2985_vm14 = vcmp.lt.s32.totalorder %v2700_v24, 0  ;;  %v3049_v63 = vadd.s32 28, %v2700_v24  ;;  %10944 = vst [vmem:[#allocation97_spill] sm:$0xff] %v8739_v26  ;;  %v1619_v10 = vsel %vm10333_vm7, %v1618_v59, %v1614_v33 }
 0x34d   :  { %v1647_v62 = vrot.slane %v7612_v56, %v7942_v48  ;;  %vm8744_vm11 = vmand %vm2985_vm14, %vm2953_vm12  ;;  %v1493_v31 = vmul.f32 %v4886_v17, %v8484_v22  ;;  %v1633_v42 = vsel %vm1542_vm6, %v1632_v58, %v1628_v8  ;;  %v1652_v51 = vrot.slane %v7614_v2, %v7959_v11  ;;  %v8754_v7 = vpop.eup %4887 }
 0x34e   :  { %v1657_v55 = vrot.slane %v7641_v54, %v7998_v3  ;;  %v1638_v59 = vsel %vm10337_vm13, %v1637_v43, %v1633_v42  ;;  %v1662_v20 = vrot.slane %v7758_v53, %v8026_v61  ;;  %v1667_v33 = vrot.slane %v7667_v44, %v7695_v14  ;;  %v10947_v43 = vld [vmem:[#allocation84_spill] sm:$0xff] }
 0x34f   :  { %v1671_v17 = vrot.slane %v7687_v27, %v7703_v50  ;;  %v1495_v58 = vsel %vm1494_vm0, %v8484_v22, %v1493_v31  ;;  %v1643_v8 = vsel %vm10336_vm15, %v1642_v41, %v1638_v59  ;;  %v1676_v13 = vrot.slane %v7714_v52, %v7761_v0 }
 0x350   :  { %v1681_v42 = vrot.slane %v10947_v43, %v7854_v18  ;;  %v3081_v38 = vsel %vm8744_vm11, %v3049_v63, %v2700_v24  ;;  %vm10948_vm4 = vcmask 523712   ;;  %v1648_v12 = vsel %vm10335_vm10, %v1647_v62, %v1643_v8 }
 0x351   :  { %v1624_v29 = vsel %vm10948_vm4, %v1623_v37, %v1619_v10  ;;  %v1672_v39 = vsel %vm1542_vm6, %v1671_v17, %v1667_v33  ;;  %v8778_v31 = vsel %vm1496_vm5, %v1497_v60, %v1495_v58  ;;  %v1653_v41 = vsel %vm10334_vm2, %v1652_v51, %v1648_v12  ;;  %vm10950_vm9 = vmmov %vm10948_vm4  ;;  %v10953_v33 = vld [vmem:[#allocation16_spill] sm:$0xff] }
 0x352   :  { %10949 = vst [vmem:[#allocation55_spill] sm:$0xff] %v8778_v31  ;;  %v1677_v59 = vsel %vm10337_vm13, %v1676_v13, %v1672_v39  ;;  %v1686_v1 = vrot.slane %v8698_v23, %v7942_v48  ;;  %v1658_v15 = vsel %vm10333_vm7, %v1657_v55, %v1653_v41  ;;  %v1691_v37 = vrot.slane %v7986_v30, %v7959_v11  ;;  %vm10951_vm5 = vmmov %vm10948_vm4 }
 0x353   :  { %v1682_v24 = vsel %vm10336_vm15, %v1681_v42, %v1677_v59  ;;  %v1696_v63 = vrot.slane %v8739_v26, %v7998_v3  ;;  %v1663_v22 = vsel %vm10950_vm9, %v1662_v20, %v1658_v15  ;;  %vm10332_vm8 = vcmask 1041409   ;;  %v10955_v42 = vld [vmem:[#allocation18_spill] sm:$0xff]  ;;  %v10957_v15 = vld [vmem:[#allocation44_spill] sm:$0xff]  ;;  %vm10964_vm12 = vmmov %vm10948_vm4 }
 0x354   :  { %v1687_v60 = vsel %vm10335_vm10, %v1686_v1, %v1682_v24  ;;  %vm10331_vm1 = vcmask 1042434   ;;  %v8792_v39 = vcvt.s32.f32 %v3087_v9  ;;  %v1701_v13 = vrot.slane %v8778_v31, %v8026_v61  ;;  %v10952_v9 = vld [vmem:[#allocation64_spill] sm:$0xff]  ;;  %vm10966_vm11 = vmmov %vm10948_vm4 }
 0x355   :  { %v1692_v12 = vsel %vm10334_vm2, %v1691_v37, %v1687_v60  ;;  %vm10330_vm3 = vcmask 1043459   ;;  %v8797_v10 = vcvt.s32.f32 %v3081_v38  ;;  %v1704_v51 = vsel %vm10332_vm8, %v1624_v29, %v8088_v34  ;;  %v10954_v38 = vld [vmem:[#allocation12_spill] sm:$0xff]  ;;  %v10958_v37 = vld [vmem:[#allocation31_spill] sm:$0xff]  ;;  %vm10967_vm9 = vmmov %vm10951_vm5 }
 0x356   :  { %v1697_v62 = vsel %vm10333_vm7, %v1696_v63, %v1692_v12  ;;  %vm10329_vm0 = vcmask 519168   ;;  %v1706_v55 = vsel %vm10331_vm1, %v1663_v22, %v1704_v51  ;;  %v1715_v20 = vmul.f32 %v10952_v9, %v10952_v9  ;;  %v10956_v34 = vld [vmem:[#allocation24_spill] sm:$0xff]  ;;  %v10959_v22 = vld [vmem:[#allocation11_spill] sm:$0xff]  ;;  %v8826_v12 = vpop.xlane.xlu1 %2440  ;;  %v10961_v51 = vld [vmem:[#allocation81_spill] sm:$0xff] }
 0x357   :  { %v1702_v1 = vsel %vm10951_vm5, %v1701_v13, %v1697_v62  ;;  %v1716_v17 = vmul.f32 %v10953_v33, %v10953_v33  ;;  %v1717_v8 = vmul.f32 %v10954_v38, %v10954_v38  ;;  %v1718_v41 = vmul.f32 %v10955_v42, %v10955_v42  ;;  %v10960_v13 = vld [vmem:[#allocation14_spill] sm:$0xff] }
 0x358   :  { %v1708_v58 = vsel %vm10330_vm3, %v1702_v1, %v1706_v55  ;;  %v1719_v29 = vmul.f32 %v10956_v34, %v10956_v34  ;;  %v1720_v24 = vmul.f32 %v10957_v15, %v10957_v15  ;;  %v8820_v63 = vmul.f32 %v10958_v37, %v10958_v37  ;;  %v10962_v55 = vld [vmem:[#allocation41_spill] sm:$0xff]  ;;  %v10963_v15 = vld [vmem:[#allocation19_spill] sm:$0xff] }
 0x359   :  { %v1711_v59 = vsel %vm10329_vm0, %v1708_v58, 0.0  ;;  %v8824_v60 = vmul.f32 %v10959_v22, %v10959_v22  ;;  %v1723_v62 = vmul.f32 %v10960_v13, %v10960_v13  ;;  %v1724_v1 = vmul.f32 %v10961_v51, %v10961_v51 }
 0x35a   :  { %1712 = vadd.xlane.f32.xlu0 %v1711_v59  ;;  %v1725_v58 = vmul.f32 %v10962_v55, %v10962_v55  ;;  %v1726_v37 = vmul.f32 %v10963_v15, %v10963_v15  ;;  %v1727_v34 = vmul.f32 %v7515_v36, %v7515_v36  ;;  %v1728_v42 = vmul.f32 %v7534_v16, %v7534_v16 }
 0x35b   :  { %v1729_v59 = vmul.f32 %v7540_v19, %v7540_v19  ;;  %v8844_v13 = vmul.f32 %v7542_v32, %v7542_v32  ;;  %v1731_v38 = vmul.f32 %v7546_v5, %v7546_v5  ;;  %v1732_v55 = vmul.f32 %v7568_v46, %v7568_v46 }
 0x35c   :  { %v1733_v15 = vmul.f32 %v7573_v45, %v7573_v45  ;;  %v1734_v36 = vmul.f32 %v7597_v49, %v7597_v49  ;;  %v1735_v16 = vmul.f32 %v7612_v56, %v7612_v56  ;;  %v1736_v19 = vmul.f32 %v7614_v2, %v7614_v2 }
 0x35d   :  { %v8860_v32 = vmul.f32 %v7641_v54, %v7641_v54  ;;  %v8864_v5 = vmul.f32 %v7758_v53, %v7758_v53  ;;  %v1739_v45 = vmul.f32 %v7667_v44, %v7667_v44  ;;  %v1740_v49 = vmul.f32 %v7687_v27, %v7687_v27  ;;  %v8886_v27 = vpop.xlane.xlu1 %2350 }
 0x35e   :  { %v1741_v56 = vmul.f32 %v7714_v52, %v7714_v52  ;;  %v8874_v2 = vmul.f32 %v10947_v43, %v10947_v43  ;;  %v8878_v54 = vmul.f32 %v8698_v23, %v8698_v23  ;;  %v8882_v53 = vmul.f32 %v7986_v30, %v7986_v30 }
 0x35f   :  { %v1786_v44 = vrot.slane %v1716_v17, %v7703_v50  ;;  %v1791_v46 = vrot.slane %v1717_v8, %v7761_v0  ;;  %v8890_v52 = vmul.f32 %v8739_v26, %v8739_v26  ;;  %v1782_v43 = vrot.slane %v1715_v20, %v7695_v14 }
 0x360   :  { %v1796_v33 = vrot.slane %v1718_v41, %v7854_v18  ;;  %v1801_v23 = vrot.slane %v1719_v29, %v7942_v48  ;;  %v1806_v51 = vrot.slane %v1720_v24, %v7959_v11  ;;  %v1821_v30 = vrot.slane %v1723_v62, %v7695_v14 }
 0x361   :  { %v1825_v17 = vrot.slane %v1724_v1, %v7703_v50  ;;  %v1830_v8 = vrot.slane %v1725_v58, %v7761_v0  ;;  %v1787_v9 = vsel %vm1542_vm6, %v1786_v44, %v1782_v43  ;;  %v1811_v26 = vrot.slane %v8820_v63, %v7998_v3 }
 0x362   :  { %v1835_v22 = vrot.slane %v1726_v37, %v7854_v18  ;;  %v1840_v20 = vrot.slane %v1727_v34, %v7942_v48  ;;  %v1792_v41 = vsel %vm10337_vm13, %v1791_v46, %v1787_v9  ;;  %v1816_v29 = vrot.slane %v8824_v60, %v8026_v61  ;;  %v2471_v60 = vpop.xlane.xlu1 %2470 }
 0x363   :  { %v1826_v24 = vsel %vm1542_vm6, %v1825_v17, %v1821_v30  ;;  %v1845_v62 = vrot.slane %v1728_v42, %v7959_v11  ;;  %v1797_v1 = vsel %vm10336_vm15, %v1796_v33, %v1792_v41  ;;  %v1850_v43 = vrot.slane %v1729_v59, %v7998_v3 }
 0x364   :  { %v1831_v44 = vsel %vm10337_vm13, %v1830_v8, %v1826_v24  ;;  %v1864_v63 = vrot.slane %v1732_v55, %v7703_v50  ;;  %v1860_v34 = vrot.slane %v1731_v38, %v7695_v14  ;;  %v1869_v46 = vrot.slane %v1733_v15, %v7761_v0 }
 0x365   :  { %v1836_v37 = vsel %vm10336_vm15, %v1835_v22, %v1831_v44  ;;  %v1874_v9 = vrot.slane %v1734_v36, %v7854_v18  ;;  %v1802_v30 = vsel %vm10335_vm10, %v1801_v23, %v1797_v1  ;;  %v1855_v33 = vrot.slane %v8844_v13, %v8026_v61 }
 0x366   :  { %v1841_v42 = vsel %vm10335_vm10, %v1840_v20, %v1836_v37  ;;  %v1879_v58 = vrot.slane %v1735_v16, %v7942_v48  ;;  %v1807_v55 = vsel %vm10334_vm2, %v1806_v51, %v1802_v30  ;;  %v1865_v38 = vsel %vm1542_vm6, %v1864_v63, %v1860_v34 }
 0x367   :  { %v1846_v22 = vsel %vm10334_vm2, %v1845_v62, %v1841_v42  ;;  %v1884_v15 = vrot.slane %v1736_v19, %v7959_v11  ;;  %v1812_v36 = vsel %vm10333_vm7, %v1811_v26, %v1807_v55  ;;  %v1870_v23 = vsel %vm10337_vm13, %v1869_v46, %v1865_v38  ;;  %v10965_v62 = vld [vmem:[#allocation57_spill] sm:$0xff]  ;;  %v10970_v55 = vld [vmem:[#allocation43_spill] sm:$0xff] }
 0x368   :  { %v1851_v59 = vsel %vm10333_vm7, %v1850_v43, %v1846_v22  ;;  %v1889_v17 = vrot.slane %v8860_v32, %v7998_v3  ;;  %v1875_v13 = vsel %vm10336_vm15, %v1874_v9, %v1870_v23  ;;  %v1894_v16 = vrot.slane %v8864_v5, %v8026_v61  ;;  %v10968_v42 = vld [vmem:[#allocation49_spill] sm:$0xff]  ;;  %v10971_v38 = vld [vmem:[#allocation15_spill] sm:$0xff] }
 0x369   :  { %v1899_v51 = vrot.slane %v1739_v45, %v7695_v14  ;;  %v1903_v8 = vrot.slane %v1740_v49, %v7703_v50  ;;  %v1880_v19 = vsel %vm10335_vm10, %v1879_v58, %v1875_v13  ;;  %v1908_v26 = vrot.slane %v1741_v56, %v7761_v0  ;;  %v2486_v49 = vpop.xlane.xlu1 %2485  ;;  %v10972_v23 = vld [vmem:[#allocation17_spill] sm:$0xff] }
 0x36a   :  { %v1913_v20 = vrot.slane %v8874_v2, %v7854_v18  ;;  %v1918_v41 = vrot.slane %v8878_v54, %v7942_v48  ;;  %v1746_v32 = vmul.f32 %v8778_v31, %v8778_v31  ;;  %v1817_v24 = vsel %vm10964_vm12, %v1816_v29, %v1812_v36 }
 0x36b   :  { %v1885_v5 = vsel %vm10334_vm2, %v1884_v15, %v1880_v19  ;;  %v1904_v45 = vsel %vm1542_vm6, %v1903_v8, %v1899_v51  ;;  %vm3135_vm14 = vcmp.eq.f32.partialorder %v10965_v62, 0.0  ;;  %v1856_v56 = vsel %vm10966_vm11, %v1855_v33, %v1851_v59 }
 0x36c   :  { %v1890_v1 = vsel %vm10333_vm7, %v1889_v17, %v1885_v5  ;;  %v1909_v2 = vsel %vm10337_vm13, %v1908_v26, %v1904_v45  ;;  %v1928_v54 = vrot.slane %v8890_v52, %v7998_v3  ;;  %v1923_v29 = vrot.slane %v8882_v53, %v7959_v11  ;;  %v10969_v53 = vld [vmem:[#allocation76_spill] sm:$0xff]  ;;  %v10973_v45 = vld [vmem:[#allocation33_spill] sm:$0xff] }
 0x36d   :  { %v1914_v44 = vsel %vm10336_vm15, %v1913_v20, %v1909_v2  ;;  %v2442_v43 = vcvt.f32.s32 %v8826_v12  ;;  %v2352_v63 = vcvt.f32.s32 %v8886_v27  ;;  %vm3140_vm4 = vcmp.eq.f32.partialorder %v8486_v40, inf }
 0x36e   :  { %v1895_v37 = vsel %vm10967_vm9, %v1894_v16, %v1890_v1  ;;  %v1919_v34 = vsel %vm10335_vm10, %v1918_v41, %v1914_v44  ;;  %v2472_v46 = vcvt.f32.s32 %v2471_v60  ;;  %v2487_v9 = vcvt.f32.s32 %v2486_v49 }
 0x36f   :  { %v1924_v30 = vsel %vm10334_vm2, %v1923_v29, %v1919_v34  ;;  %v1933_v52 = vrot.slane %v1746_v32, %v8026_v61  ;;  %v8964_v33 = vadd.s32 %v10968_v42, %v2442_v43  ;;  %v8967_v58 = vadd.s32 %v10969_v53, %v2352_v63  ;;  %v10975_v43 = vld [vmem:[#allocation39_spill] sm:$0xff] }
 0x370   :  { %v1929_v27 = vsel %vm10333_vm7, %v1928_v54, %v1924_v30  ;;  %v1935_v12 = vsel %vm10332_vm8, %v1856_v56, %v1817_v24  ;;  %v8972_v22 = vadd.s32 %v10970_v55, %v2472_v46  ;;  %v8975_v60 = vadd.s32 %v10971_v38, %v2487_v9  ;;  %v10978_v38 = vld [vmem:[#allocation86_spill] sm:$0xff] }
 0x371   :  { %4889 = vrsqrt.f32 %v8702_v21  ;;  %v1934_v15 = vsel %vm10951_vm5, %v1933_v52, %v1929_v27  ;;  %v1936_v36 = vsel %vm10331_vm1, %v1895_v37, %v1935_v12  ;;  %v2884_v59 = vsub.s32 0, %v8964_v33 }
 0x372   :  { %vm3147_vm12 = vcmp.eq.f32.partialorder %v10972_v23, inf  ;;  %4891 = vrsqrt.f32 %v8707_v28  ;;  %v1937_v17 = vsel %vm10330_vm3, %v1934_v15, %v1936_v36  ;;  %v2800_v13 = vsub.s32 0, %v8967_v58 }
 0x373   :  { %v2912_v16 = vsub.s32 0, %v8972_v22  ;;  %4893 = vrsqrt.f32 %v8792_v39  ;;  %v1939_v51 = vsel %vm10329_vm0, %v1937_v17, 0.0  ;;  %v4637_v8 = vmin.u32 %v2884_v59, %v8964_v33  ;;  %v10979_v17 = vld [vmem:[#allocation51_spill] sm:$0xff] }
 0x374   :  { %v2926_v19 = vsub.s32 0, %v8975_v60  ;;  %v8992_v26 = vmul.f32 %v8754_v7, %v8647_v25  ;;  %4895 = vrsqrt.f32 %v8797_v10  ;;  %1940 = vadd.xlane.f32.xlu1 %v1939_v51  ;;  %v4631_v20 = vmin.u32 %v2800_v13, %v8967_v58  ;;  %v10980_v13 = vld [vmem:[#allocation85_spill] sm:$0xff] }
 0x375   :  { %v4639_v41 = vmin.u32 %v2912_v16, %v8972_v22  ;;  %v8997_v32 = vmul.u32.u64.low 2454267026, %v4637_v8  ;;  %v8998_v24 = vmul.u32.u64.high 2454267026, %v4637_v8, %v8997_v32  ;;  %v10974_v49 = vand.u32 2147483648, %v10965_v62  ;;  %v10981_v16 = vld [vmem:[#allocation28_spill] sm:$0xff] }
 0x376   :  { %v4640_v5 = vmin.u32 %v2926_v19, %v8975_v60  ;;  %v9008_v7 = vmul.u32.u64.low 2454267026, %v4631_v20  ;;  %v9009_v1 = vmul.u32.u64.high 2454267026, %v4631_v20, %v9008_v7  ;;  %v3141_v63 = vsel %vm3140_vm4, %v8486_v40, %v10975_v43 }
 0x377   :  { %v9006_v56 = vsel %vm3135_vm14, %v10974_v49, %v10973_v45  ;;  %v9011_v2 = vmul.u32.u64.low 2454267026, %v4639_v41  ;;  %v9012_v54 = vmul.u32.u64.high 2454267026, %v4639_v41, %v9011_v2  ;;  %vm2889_vm11 = vc.u32 %v8997_v32, 2454267026 }
 0x378   :  { %v9014_v44 = vmul.u32.u64.low 2454267026, %v4640_v5  ;;  %v9015_v29 = vmul.u32.u64.high 2454267026, %v4640_v5, %v9014_v44  ;;  %v2890_v37 = vsel %vm2889_vm11, 1, %v10562_v4  ;;  %vm2805_vm9 = vc.u32 %v9008_v7, 2454267026 }
 0x379   :  { %vm2917_vm14 = vc.u32 %v9011_v2, 2454267026  ;;  %vm3142_vm5 = vcmp.eq.f32.partialorder %v8486_v40, 0.0  ;;  %v2891_v62 = vadd.s32 %v8998_v24, %v2890_v37  ;;  %v2806_v34 = vsel %vm2805_vm9, 1, %v10562_v4  ;;  %v10982_v24 = vld [vmem:[#allocation79_spill] sm:$0xff] }
 0x37a   :  { %v2918_v46 = vsel %vm2917_vm14, 1, %v10562_v4  ;;  %vm2931_vm0 = vc.u32 %v9014_v44, 2454267026  ;;  %vm2883_vm3 = vcmp.lt.s32.totalorder %v8964_v33, 0  ;;  %v2807_v9 = vadd.s32 %v9009_v1, %v2806_v34 }
 0x37b   :  { %v2919_v30 = vadd.s32 %v9012_v54, %v2918_v46  ;;  %v2932_v52 = vsel %vm2931_vm0, 1, %v10562_v4  ;;  %v9030_v42 = vpop.eup %4889  ;;  %v2892_v53 = vshrl.u32 %v2891_v62, 4  ;;  %vm2799_vm4 = vcmp.lt.s32.totalorder %v8967_v58, 0 }
 0x37c   :  { %v2933_v27 = vadd.s32 %v9015_v29, %v2932_v52  ;;  %v10976_v12 = vand.u32 2147483648, %v8486_v40  ;;  %v3148_v15 = vsel %vm3147_vm12, %v10972_v23, %v10978_v38  ;;  %v9042_v36 = vpop.eup %4891  ;;  %v2808_v59 = vshrl.u32 %v2807_v9, 4  ;;  %v10987_v38 = vld [vmem:[#allocation10_spill] sm:$0xff] }
 0x37d   :  { %vm2911_vm0 = vcmp.lt.s32.totalorder %v8972_v22, 0  ;;  %v2920_v4 = vshrl.u32 %v2919_v30, 4  ;;  %vm3154_vm11 = vcmp.eq.f32.partialorder %v10979_v17, inf  ;;  %v3160_v51 = vmul.f32 %v10981_v16, %v10980_v13  ;;  %v9048_v19 = vpop.eup %4893 }
 0x37e   :  { %v9036_v55 = vsel %vm3142_vm5, %v10976_v12, %v3141_v63  ;;  %v2893_v40 = vmul.u32 28, %v2892_v53  ;;  %v2934_v32 = vshrl.u32 %v2933_v27, 4  ;;  %vm3149_vm9 = vcmp.eq.f32.partialorder %v10972_v23, 0.0  ;;  %v9053_v49 = vpop.eup %4895  ;;  %v10986_v12 = vld [vmem:[#allocation90_spill] sm:$0xff] }
 0x37f   :  { %10977 = vst [vmem:[#allocation13_spill] sm:$0xff] %v9036_v55  ;;  %v3155_v45 = vsel %vm3154_vm11, %v10979_v17, %v10982_v24  ;;  %v2809_v7 = vmul.u32 28, %v2808_v59  ;;  %v2921_v1 = vmul.u32 28, %v2920_v4  ;;  %vm2925_vm12 = vcmp.lt.s32.totalorder %v8975_v60, 0 }
 0x380   :  { %v10983_v2 = vand.u32 2147483648, %v10972_v23  ;;  %v3157_v44 = vand.u32 2147483648, %v10979_v17  ;;  %v2894_v29 = vsub.s32 %v4637_v8, %v2893_v40  ;;  %v2935_v43 = vmul.u32 28, %v2934_v32  ;;  %v10985_v8 = vld [vmem:[#allocation62_spill] sm:$0xff] }
 0x381   :  { %vm3156_vm14 = vcmp.eq.f32.partialorder %v10979_v17, 0.0  ;;  %vm3161_vm5 = vcmp.eq.f32.partialorder %v10980_v13, inf  ;;  %v2810_v63 = vsub.s32 %v4631_v20, %v2809_v7  ;;  %v2922_v37 = vsub.s32 %v4639_v41, %v2921_v1 }
 0x382   :  { %v9058_v54 = vsel %vm3149_vm9, %v10983_v2, %v3148_v15  ;;  %v9063_v62 = vsel %vm3156_vm14, %v3157_v44, %v3155_v45  ;;  %v3162_v34 = vsel %vm3161_vm5, %v10980_v13, %v3160_v51  ;;  %v2895_v46 = vsub.s32 0, %v2894_v29  ;;  %v10991_v2 = vld [vmem:[#allocation89_spill] sm:$0xff] }
 0x383   :  { %10984 = vst [vmem:[#allocation72_spill] sm:$0xff] %v9063_v62  ;;  %v2936_v9 = vsub.s32 %v4640_v5, %v2935_v43  ;;  %vm3163_vm11 = vcmp.eq.f32.partialorder %v10980_v13, 0.0  ;;  %v3164_v23 = vand.u32 2147483648, %v10980_v13  ;;  %v2811_v30 = vsub.s32 0, %v2810_v63 }
 0x384   :  { %v2923_v52 = vsub.s32 0, %v2922_v37  ;;  %v3167_v53 = vmul.f32 %v8653_v57, %v10985_v8  ;;  %vm3168_vm9 = vcmp.eq.f32.partialorder %v10985_v8, inf  ;;  %v2896_v20 = vsel %vm2883_vm3, %v2895_v46, %v2894_v29  ;;  %v10988_v57 = vld [vmem:[#allocation87_spill] sm:$0xff]  ;;  %v10994_v46 = vld [vmem:[#allocation94_spill] sm:$0xff] }
 0x385   :  { %v2937_v41 = vsub.s32 0, %v2936_v9  ;;  %v9073_v27 = vsel %vm3163_vm11, %v3164_v23, %v3162_v34  ;;  %v3174_v5 = vmul.f32 %v10987_v38, %v10986_v12  ;;  %vm3196_vm14 = vcmp.eq.f32.partialorder %v8549_v35, inf  ;;  %v10995_v23 = vld [vmem:[#allocation77_spill] sm:$0xff] }
 0x386   :  { %vm2967_vm5 = vcmp.ne.s32.totalorder %v2896_v20, 0  ;;  %vm2999_vm1 = vcmp.lt.s32.totalorder %v2896_v20, 0  ;;  %v3063_v15 = vadd.s32 28, %v2896_v20  ;;  %v2812_v59 = vsel %vm2799_vm4, %v2811_v30, %v2810_v63 }
 0x387   :  { %vm3191_vm8 = vcmp.eq.f32.partialorder %v10988_v57, 0.0  ;;  %vm3031_vm7 = vmand %vm2999_vm1, %vm2967_vm5  ;;  %vm2961_vm2 = vcmp.ne.s32.totalorder %v2812_v59, 0  ;;  %vm2993_vm10 = vcmp.lt.s32.totalorder %v2812_v59, 0  ;;  %v3057_v33 = vadd.s32 28, %v2812_v59 }
 0x388   :  { %v2924_v4 = vsel %vm2911_vm0, %v2923_v52, %v2922_v37  ;;  %v3095_v17 = vsel %vm3031_vm7, %v3063_v15, %v2896_v20  ;;  %vm3025_vm3 = vmand %vm2993_vm10, %vm2961_vm2  ;;  %v2938_v58 = vsel %vm2925_vm12, %v2937_v41, %v2936_v9  ;;  %v3169_v40 = vsel %vm3168_vm9, %v10985_v8, %v3167_v53  ;;  %v10993_v37 = vld [vmem:[#allocation91_spill] sm:$0xff] }
 0x389   :  { %vm2969_vm11 = vcmp.ne.s32.totalorder %v2924_v4, 0  ;;  %vm3001_vm15 = vcmp.lt.s32.totalorder %v2924_v4, 0  ;;  %v3065_v13 = vadd.s32 28, %v2924_v4  ;;  %v9083_v16 = vcvt.s32.f32 %v3095_v17  ;;  %v10998_v41 = vld [vmem:[#allocation75_spill] sm:$0xff] }
 0x38a   :  { %v3089_v51 = vsel %vm3025_vm3, %v3057_v33, %v2812_v59  ;;  %vm3033_vm13 = vmand %vm3001_vm15, %vm2969_vm11  ;;  %vm2970_vm1 = vcmp.ne.s32.totalorder %v2938_v58, 0  ;;  %vm3002_vm7 = vcmp.lt.s32.totalorder %v2938_v58, 0  ;;  %v3066_v7 = vadd.s32 28, %v2938_v58 }
 0x38b   :  { %v9090_v32 = vcvt.s32.f32 %v3089_v51  ;;  %v3097_v22 = vsel %vm3033_vm13, %v3065_v13, %v2924_v4  ;;  %vm9094_vm10 = vmand %vm3002_vm7, %vm2970_vm1  ;;  %v3171_v1 = vand.u32 2147483648, %v10985_v8  ;;  %vm3175_vm15 = vcmp.eq.f32.partialorder %v10986_v12, inf }
 0x38c   :  { %v9092_v24 = vcvt.s32.f32 %v3097_v22  ;;  %4897 = vrsqrt.f32 %v9083_v16  ;;  %vm3170_vm2 = vcmp.eq.f32.partialorder %v10985_v8, 0.0  ;;  %v3176_v60 = vsel %vm3175_vm15, %v10986_v12, %v3174_v5  ;;  %v10996_v8 = vld [vmem:[#allocation37_spill] sm:$0xff]  ;;  %v10999_v5 = vld [vmem:[#allocation92_spill] sm:$0xff] }
 0x38d   :  { %v3181_v44 = vmul.f32 %v8664_v6, %v10991_v2  ;;  %4899 = vrsqrt.f32 %v9090_v32  ;;  %v3098_v29 = vsel %vm9094_vm10, %v3066_v7, %v2938_v58  ;;  %v9108_v43 = vsel %vm3170_vm2, %v3171_v1, %v3169_v40  ;;  %v11002_v58 = vld [vmem:[#allocation98_spill] sm:$0xff] }
 0x38e   :  { %10992 = vst [vmem:[#allocation32_spill] sm:$0xff] %v9108_v43  ;;  %v3178_v63 = vand.u32 2147483648, %v10986_v12  ;;  %4901 = vrsqrt.f32 %v9092_v24  ;;  %vm3177_vm13 = vcmp.eq.f32.partialorder %v10986_v12, 0.0  ;;  %vm3182_vm4 = vcmp.eq.f32.partialorder %v10991_v2, inf  ;;  %v11003_v40 = vld [vmem:[#allocation50_spill] sm:$0xff] }
 0x38f   :  { %vm3184_vm0 = vcmp.eq.f32.partialorder %v10991_v2, 0.0  ;;  %vm3245_vm12 = vcmp.eq.f32.partialorder %v10993_v37, inf  ;;  %vm3252_vm9 = vcmp.eq.f32.partialorder %v8574_v47, inf  ;;  %v3183_v34 = vsel %vm3182_vm4, %v10991_v2, %v3181_v44  ;;  %v11004_v44 = vld [vmem:[#allocation23_spill] sm:$0xff] }
 0x390   :  { %v9117_v6 = vsel %vm3177_vm13, %v3178_v63, %v3176_v60  ;;  %v3197_v9 = vsel %vm3196_vm14, %v8549_v35, %v10994_v46  ;;  %vm3203_vm5 = vcmp.eq.f32.partialorder %v10995_v23, inf  ;;  %v9125_v30 = vcvt.s32.f32 %v3098_v29  ;;  %v11005_v29 = vld [vmem:[#allocation93_spill] sm:$0xff] }
 0x391   :  { %v3185_v52 = vand.u32 2147483648, %v10991_v2  ;;  %v10997_v53 = vand.u32 2147483648, %v10988_v57  ;;  %v3204_v12 = vsel %vm3203_vm5, %v10995_v23, %v10998_v41  ;;  %vm3198_vm3 = vcmp.eq.f32.partialorder %v8549_v35, 0.0  ;;  %v11001_v57 = vld [vmem:[#allocation63_spill] sm:$0xff]  ;;  %v11007_v41 = vld [vmem:[#allocation80_spill] sm:$0xff] }
 0x392   :  { %v3206_v38 = vand.u32 2147483648, %v10995_v23  ;;  %vm3210_vm14 = vcmp.eq.f32.partialorder %v10999_v5, inf  ;;  %v3216_v15 = vmul.f32 %v9030_v42, %v8702_v21  ;;  %v11000_v33 = vand.u32 2147483648, %v8549_v35 }
 0x393   :  { %v9133_v20 = vsel %vm3191_vm8, %v10997_v53, %v10996_v8  ;;  %v9142_v59 = vsel %vm3184_vm0, %v3185_v52, %v3183_v34  ;;  %vm3205_vm8 = vcmp.eq.f32.partialorder %v10995_v23, 0.0  ;;  %v3211_v17 = vsel %vm3210_vm14, %v10999_v5, %v11001_v57  ;;  %v11006_v8 = vld [vmem:[#allocation35_spill] sm:$0xff] }
 0x394   :  { %v9146_v4 = vsel %vm3198_vm3, %v11000_v33, %v3197_v9  ;;  %v9151_v13 = vsel %vm3205_vm8, %v3206_v38, %v3204_v12  ;;  %vm3212_vm11 = vcmp.eq.f32.partialorder %v10999_v5, 0.0  ;;  %v3213_v51 = vand.u32 2147483648, %v10999_v5  ;;  %v11010_v33 = vld [vmem:[#allocation66_spill] sm:$0xff]  ;;  %v11011_v57 = vld [vmem:[#allocation95_spill] sm:$0xff] }
 0x395   :  { %v3223_v42 = vmul.f32 %v11003_v40, %v11002_v58  ;;  %vm3217_vm1 = vcmp.eq.f32.partialorder %v8702_v21, inf  ;;  %vm3219_vm7 = vcmp.eq.f32.partialorder %v8702_v21, 0.0  ;;  %v3220_v35 = vand.u32 2147483648, %v8702_v21 }
 0x396   :  { %v3230_v22 = vmul.f32 %v9053_v49, %v8797_v10  ;;  %v9162_v45 = vsel %vm3212_vm11, %v3213_v51, %v3211_v17  ;;  %v3218_v7 = vsel %vm3217_vm1, %v8702_v21, %v3216_v15  ;;  %vm3224_vm10 = vcmp.eq.f32.partialorder %v11002_v58, inf  ;;  %v9167_v1 = vpop.eup %4897 }
 0x397   :  { %vm3231_vm15 = vcmp.eq.f32.partialorder %v8797_v10, inf  ;;  %v3225_v60 = vsel %vm3224_vm10, %v11002_v58, %v3223_v42  ;;  %vm3226_vm2 = vcmp.eq.f32.partialorder %v11002_v58, 0.0  ;;  %v3237_v63 = vmul.f32 %v11005_v29, %v11004_v44  ;;  %v4900_v49 = vpop.eup %4899  ;;  %v11016_v42 = vld [vmem:[#allocation54_spill] sm:$0xff] }
 0x398   :  { %v3232_v2 = vsel %vm3231_vm15, %v8797_v10, %v3230_v22  ;;  %v3227_v34 = vand.u32 2147483648, %v11002_v58  ;;  %vm3233_vm13 = vcmp.eq.f32.partialorder %v8797_v10, 0.0  ;;  %v3234_v46 = vand.u32 2147483648, %v8797_v10  ;;  %v9178_v9 = vpop.eup %4901  ;;  %v11017_v22 = vld [vmem:[#allocation27_spill] sm:$0xff] }
 0x399   :  { %vm3238_vm4 = vcmp.eq.f32.partialorder %v11004_v44, inf  ;;  %v3241_v52 = vand.u32 2147483648, %v11004_v44  ;;  %v3246_v53 = vsel %vm3245_vm12, %v10993_v37, %v11006_v8  ;;  %v3253_v12 = vsel %vm3252_vm9, %v8574_v47, %v11007_v41  ;;  %v11022_v41 = vld [vmem:[#allocation36_spill] sm:$0xff] }
 0x39a   :  { %v3239_v23 = vsel %vm3238_vm4, %v11004_v44, %v3237_v63  ;;  %v9192_v10 = vsel %vm3219_vm7, %v3220_v35, %v3218_v7  ;;  %v9194_v38 = vsel %vm3226_vm2, %v3227_v34, %v3225_v60  ;;  %v9196_v5 = vsel %vm3233_vm13, %v3234_v46, %v3232_v2  ;;  %v11019_v2 = vld [vmem:[#allocation26_spill] sm:$0xff] }
 0x39b   :  { %11008 = vst [vmem:[#allocation74_spill] sm:$0xff] %v9194_v38  ;;  %vm3240_vm0 = vcmp.eq.f32.partialorder %v11004_v44, 0.0  ;;  %vm3247_vm5 = vcmp.eq.f32.partialorder %v10993_v37, 0.0  ;;  %vm3254_vm12 = vcmp.eq.f32.partialorder %v8574_v47, 0.0  ;;  %v3265_v17 = vmul.f32 %v11011_v57, %v11010_v33 }
 0x39c   :  { %v9199_v15 = vsel %vm3240_vm0, %v3241_v52, %v3239_v23  ;;  %v11012_v51 = vand.u32 2147483648, %v10993_v37  ;;  %v11014_v58 = vand.u32 2147483648, %v8574_v47  ;;  %vm3259_vm9 = vcmp.eq.f32.partialorder %v11016_v42, inf  ;;  %v11018_v37 = vld [vmem:[#allocation38_spill] sm:$0xff] }
 0x39d   :  { %11009 = vst [vmem:[#allocation22_spill] sm:$0xff] %v9199_v15  ;;  %v3272_v35 = vmul.f32 %v9048_v19, %v8792_v39  ;;  %v3260_v7 = vsel %vm3259_vm9, %v11016_v42, %v11017_v22  ;;  %vm3261_vm3 = vcmp.eq.f32.partialorder %v11016_v42, 0.0  ;;  %v3262_v60 = vand.u32 2147483648, %v11016_v42 }
 0x39e   :  { %v9207_v21 = vsel %vm3247_vm5, %v11012_v51, %v3246_v53  ;;  %v9211_v40 = vsel %vm3254_vm12, %v11014_v58, %v3253_v12  ;;  %vm3266_vm14 = vcmp.eq.f32.partialorder %v11010_v33, inf  ;;  %vm3268_vm8 = vcmp.eq.f32.partialorder %v11010_v33, 0.0  ;;  %v11021_v53 = vld [vmem:[#allocation30_spill] sm:$0xff] }
 0x39f   :  { %11013 = vst [vmem:[#allocation53_spill] sm:$0xff] %v9207_v21  ;;  %11015 = vst [vmem:[#allocation56_spill] sm:$0xff] %v9211_v40  ;;  %v3269_v47 = vand.u32 2147483648, %v11010_v33  ;;  %vm3273_vm11 = vcmp.eq.f32.partialorder %v8792_v39, inf  ;;  %v3279_v44 = vmul.f32 %v11019_v2, %v11018_v37  ;;  %v3267_v19 = vsel %vm3266_vm14, %v11010_v33, %v3265_v17 }
 0x3a0   :  { %v3274_v29 = vsel %vm3273_vm11, %v8792_v39, %v3272_v35  ;;  %vm3280_vm1 = vcmp.eq.f32.partialorder %v11018_v37, inf  ;;  %v3286_v63 = vmul.f32 %v4900_v49, %v9090_v32  ;;  %v9230_v34 = vsel %vm3261_vm3, %v3262_v60, %v3260_v7  ;;  %v11025_v35 = vld [vmem:[#allocation58_spill] sm:$0xff] }
 0x3a1   :  { %11020 = vst [vmem:[#allocation78_spill] sm:$0xff] %v9230_v34  ;;  %v3276_v46 = vand.u32 2147483648, %v8792_v39  ;;  %v3281_v23 = vsel %vm3280_vm1, %v11018_v37, %v3279_v44  ;;  %vm3287_vm7 = vcmp.eq.f32.partialorder %v9090_v32, inf  ;;  %vm3275_vm10 = vcmp.eq.f32.partialorder %v8792_v39, 0.0  ;;  %v11026_v7 = vld [vmem:[#allocation70_spill] sm:$0xff] }
 0x3a2   :  { %v3283_v52 = vand.u32 2147483648, %v11018_v37  ;;  %v3288_v8 = vsel %vm3287_vm7, %v9090_v32, %v3286_v63  ;;  %v3293_v12 = vmul.f32 %v11022_v41, %v11021_v53  ;;  %v9242_v49 = vsel %vm3268_vm8, %v3269_v47, %v3267_v19  ;;  %v11027_v47 = vld [vmem:[#allocation99_spill] sm:$0xff] }
 0x3a3   :  { %11023 = vst [vmem:[#allocation67_spill] sm:$0xff] %v9242_v49  ;;  %v9244_v57 = vsel %vm3275_vm10, %v3276_v46, %v3274_v29  ;;  %vm3282_vm15 = vcmp.eq.f32.partialorder %v11018_v37, 0.0  ;;  %v3290_v17 = vand.u32 2147483648, %v9090_v32  ;;  %vm3289_vm2 = vcmp.eq.f32.partialorder %v9090_v32, 0.0  ;;  %v11028_v37 = vld [vmem:[#allocation40_spill] sm:$0xff]  ;;  %v11032_v46 = vld [vmem:[#allocation69_spill] sm:$0xff] }
 0x3a4   :  { %v9248_v51 = vsel %vm3282_vm15, %v3283_v52, %v3281_v23  ;;  %vm3294_vm13 = vcmp.eq.f32.partialorder %v11021_v53, inf  ;;  %vm3296_vm4 = vcmp.eq.f32.partialorder %v11021_v53, 0.0  ;;  %v3297_v58 = vand.u32 2147483648, %v11021_v53  ;;  %v11033_v23 = vld [vmem:[#allocation52_spill] sm:$0xff] }
 0x3a5   :  { %11024 = vst [vmem:[#allocation48_spill] sm:$0xff] %v9248_v51  ;;  %v9253_v39 = vsel %vm3289_vm2, %v3290_v17, %v3288_v8  ;;  %v3295_v33 = vsel %vm3294_vm13, %v11021_v53, %v3293_v12  ;;  %vm3301_vm0 = vcmp.eq.f32.partialorder %v8647_v25, inf  ;;  %vm3303_vm5 = vcmp.eq.f32.partialorder %v8647_v25, 0.0 }
 0x3a6   :  { %v3302_v42 = vsel %vm3301_vm0, %v8647_v25, %v8992_v26  ;;  %vm3308_vm12 = vcmp.eq.f32.partialorder %v11025_v35, inf  ;;  %v3314_v32 = vmul.f32 %v9042_v36, %v8707_v28  ;;  %v3304_v22 = vand.u32 2147483648, %v8647_v25 }
 0x3a7   :  { %v3309_v60 = vsel %vm3308_vm12, %v11025_v35, %v11026_v7  ;;  %vm3315_vm9 = vcmp.eq.f32.partialorder %v8707_v28, inf  ;;  %v3321_v2 = vmul.f32 %v11028_v37, %v11027_v47  ;;  %v9270_v44 = vsel %vm3296_vm4, %v3297_v58, %v3295_v33 }
 0x3a8   :  { %11029 = vst [vmem:[#allocation59_spill] sm:$0xff] %v9270_v44  ;;  %vm3310_vm3 = vcmp.eq.f32.partialorder %v11025_v35, 0.0  ;;  %v3311_v26 = vand.u32 2147483648, %v11025_v35  ;;  %v3316_v19 = vsel %vm3315_vm9, %v8707_v28, %v3314_v32  ;;  %v9275_v29 = vsel %vm3303_vm5, %v3304_v22, %v3302_v42 }
 0x3a9   :  { %11030 = vst [vmem:[#allocation73_spill] sm:$0xff] %v9275_v29  ;;  %vm3317_vm14 = vcmp.eq.f32.partialorder %v8707_v28, 0.0  ;;  %v3318_v25 = vand.u32 2147483648, %v8707_v28  ;;  %v3328_v36 = vmul.f32 %v9167_v1, %v9083_v16  ;;  %vm3322_vm8 = vcmp.eq.f32.partialorder %v11027_v47, inf }
 0x3aa   :  { %v9281_v63 = vsel %vm3310_vm3, %v3311_v26, %v3309_v60  ;;  %vm3324_vm11 = vcmp.eq.f32.partialorder %v11027_v47, 0.0  ;;  %v3335_v52 = vmul.f32 %v11033_v23, %v11032_v46  ;;  %v3323_v53 = vsel %vm3322_vm8, %v11027_v47, %v3321_v2 }
 0x3ab   :  { %11031 = vst [vmem:[#allocation57_spill] sm:$0xff] %v9281_v63  ;;  %v9287_v8 = vsel %vm3317_vm14, %v3318_v25, %v3316_v19  ;;  %v3325_v41 = vand.u32 2147483648, %v11027_v47  ;;  %vm3329_vm1 = vcmp.eq.f32.partialorder %v9083_v16, inf  ;;  %vm3331_vm7 = vcmp.eq.f32.partialorder %v9083_v16, 0.0 }
 0x3ac   :  { %11034 = vst [vmem:[#allocation49_spill] sm:$0xff] %v9287_v8  ;;  %v3332_v28 = vand.u32 2147483648, %v9083_v16  ;;  %vm3336_vm10 = vcmp.eq.f32.partialorder %v11032_v46, inf  ;;  %v3342_v1 = vmul.f32 %v9178_v9, %v9092_v24  ;;  %v3330_v12 = vsel %vm3329_vm1, %v9083_v16, %v3328_v36 }
 0x3ad   :  { %v3337_v17 = vsel %vm3336_vm10, %v11032_v46, %v3335_v52  ;;  %vm3343_vm15 = vcmp.eq.f32.partialorder %v9092_v24, inf  ;;  %4903 = vrsqrt.f32 %v9125_v30  ;;  %v9301_v33 = vsel %vm3324_vm11, %v3325_v41, %v3323_v53 }
 0x3ae   :  { %11035 = vst [vmem:[#allocation76_spill] sm:$0xff] %v9301_v33  ;;  %v3339_v58 = vand.u32 2147483648, %v11032_v46  ;;  %v3344_v42 = vsel %vm3343_vm15, %v9092_v24, %v3342_v1  ;;  %v3346_v35 = vand.u32 2147483648, %v9092_v24  ;;  %vm3338_vm2 = vcmp.eq.f32.partialorder %v11032_v46, 0.0 }
 0x3af   :  { %vm3345_vm13 = vcmp.eq.f32.partialorder %v9092_v24, 0.0  ;;  %v3390_v9 = vrot.slane %v9006_v56, %v7695_v14  ;;  %v3394_v32 = vrot.slane %v9036_v55, %v7703_v50  ;;  %v9314_v22 = vsel %vm3331_vm7, %v3332_v28, %v3330_v12 }
 0x3b0   :  { %v9316_v7 = vsel %vm3338_vm2, %v3339_v58, %v3337_v17  ;;  %v9318_v60 = vsel %vm3345_vm13, %v3346_v35, %v3344_v42  ;;  %v3399_v47 = vrot.slane %v9058_v54, %v7761_v0  ;;  %vm3350_vm4 = vcmp.eq.f32.partialorder %v9125_v30, inf }
 0x3b1   :  { %11036 = vst [vmem:[#allocation43_spill] sm:$0xff] %v9316_v7  ;;  %v3353_v24 = vand.u32 2147483648, %v9125_v30  ;;  %v3395_v37 = vsel %vm1542_vm6, %v3394_v32, %v3390_v9  ;;  %v3404_v2 = vrot.slane %v9063_v62, %v7854_v18  ;;  %v3429_v16 = vrot.slane %v9133_v20, %v7695_v14 }
 0x3b2   :  { %vm3352_vm0 = vcmp.eq.f32.partialorder %v9125_v30, 0.0  ;;  %vm11037_vm5 = vcmask 195712   ;;  %v3433_v19 = vrot.slane %v9146_v4, %v7703_v50  ;;  %v3438_v25 = vrot.slane %v9151_v13, %v7761_v0 }
 0x3b3   :  { %v3400_v26 = vsel %vm11037_vm5, %v3399_v47, %v3395_v37  ;;  %v3443_v36 = vrot.slane %v9162_v45, %v7854_v18  ;;  %vm11038_vm12 = vcmask 261312   ;;  %v3409_v23 = vrot.slane %v9073_v27, %v7942_v48  ;;  %vm11040_vm3 = vmmov %vm11037_vm5 }
 0x3b4   :  { %v3405_v46 = vsel %vm11038_vm12, %v3404_v2, %v3400_v26  ;;  %v3414_v52 = vrot.slane %v9108_v43, %v7959_v11  ;;  %v3448_v53 = vrot.slane %v9192_v10, %v7942_v48  ;;  %v3419_v41 = vrot.slane %v9117_v6, %v7998_v3  ;;  %vm11041_vm14 = vmmov %vm11038_vm12 }
 0x3b5   :  { %v3424_v28 = vrot.slane %v9142_v59, %v8026_v61  ;;  %v3434_v1 = vsel %vm1542_vm6, %v3433_v19, %v3429_v16  ;;  %v3453_v12 = vrot.slane %v9194_v38, %v7959_v11  ;;  %vm11039_vm9 = vcmask 326912   ;;  %vm11044_vm1 = vmmov %vm11040_vm3 }
 0x3b6   :  { %v3410_v17 = vsel %vm11039_vm9, %v3409_v23, %v3405_v46  ;;  %v3439_v58 = vsel %vm11040_vm3, %v3438_v25, %v3434_v1  ;;  %v3468_v42 = vrot.slane %v9207_v21, %v7695_v14  ;;  %v3472_v35 = vrot.slane %v9211_v40, %v7703_v50  ;;  %vm11042_vm8 = vmmov %vm11039_vm9 }
 0x3b7   :  { %v3444_v9 = vsel %vm11041_vm14, %v3443_v36, %v3439_v58  ;;  %v3458_v32 = vrot.slane %v9196_v5, %v7998_v3  ;;  %v3477_v47 = vrot.slane %v9230_v34, %v7761_v0  ;;  %v3487_v37 = vrot.slane %v9244_v57, %v7942_v48  ;;  %v4904_v2 = vpop.eup %4903  ;;  %vm11046_vm10 = vmmov %vm11038_vm12 }
 0x3b8   :  { %v3449_v16 = vsel %vm11042_vm8, %v3448_v53, %v3444_v9  ;;  %v3463_v26 = vrot.slane %v9199_v15, %v8026_v61  ;;  %v3473_v19 = vsel %vm1542_vm6, %v3472_v35, %v3468_v42  ;;  %v3482_v25 = vrot.slane %v9242_v49, %v7854_v18  ;;  %vm11048_vm2 = vmmov %vm11042_vm8 }
 0x3b9   :  { %v3349_v36 = vmul.f32 %v4904_v2, %v9125_v30  ;;  %vm11043_vm11 = vcmask 392512   ;;  %v3478_v23 = vsel %vm11044_vm1, %v3477_v47, %v3473_v19  ;;  %v3497_v1 = vrot.slane %v9253_v39, %v7998_v3  ;;  %vm11053_vm12 = vmmov %vm11044_vm1 }
 0x3ba   :  { %v3415_v46 = vsel %vm11043_vm11, %v3414_v52, %v3410_v17  ;;  %vm11045_vm7 = vmmov %vm11043_vm11  ;;  %v3483_v53 = vsel %vm11046_vm10, %v3482_v25, %v3478_v23  ;;  %v3492_v9 = vrot.slane %v9248_v51, %v7959_v11  ;;  %v3507_v42 = vrot.slane %v9275_v29, %v7695_v14 }
 0x3bb   :  { %v3454_v58 = vsel %vm11045_vm7, %v3453_v12, %v3449_v16  ;;  %v3351_v35 = vsel %vm3350_vm4, %v9125_v30, %v3349_v36  ;;  %vm11047_vm15 = vcmask 458112   ;;  %v3488_v17 = vsel %vm11048_vm2, %v3487_v37, %v3483_v53  ;;  %vm11049_vm13 = vmmov %vm11045_vm7 }
 0x3bc   :  { %v3459_v52 = vsel %vm11047_vm15, %v3458_v32, %v3454_v58  ;;  %v3511_v47 = vrot.slane %v9281_v63, %v7703_v50  ;;  %v9390_v12 = vsel %vm3352_vm0, %v3353_v24, %v3351_v35  ;;  %v3493_v2 = vsel %vm11049_vm13, %v3492_v9, %v3488_v17  ;;  %vm11050_vm4 = vmmov %vm11047_vm15 }
 0x3bd   :  { %v3502_v16 = vrot.slane %v9270_v44, %v8026_v61  ;;  %v3516_v19 = vrot.slane %v9287_v8, %v7761_v0  ;;  %v3498_v25 = vsel %vm11050_vm4, %v3497_v1, %v3493_v2  ;;  %v3521_v37 = vrot.slane %v9301_v33, %v7854_v18  ;;  %vm11051_vm0 = vmmov %vm11050_vm4 }
 0x3be   :  { %v3512_v32 = vsel %vm1542_vm6, %v3511_v47, %v3507_v42  ;;  %v3526_v30 = vrot.slane %v9314_v22, %v7942_v48  ;;  %v3420_v24 = vsel %vm11051_vm0, %v3419_v41, %v3415_v46  ;;  %vm11052_vm5 = vcmask 523712   ;;  %vm11055_vm3 = vmmov %vm11046_vm10 }
 0x3bf   :  { %v3464_v36 = vsel %vm11052_vm5, %v3463_v26, %v3459_v52  ;;  %v3517_v23 = vsel %vm11053_vm12, %v3516_v19, %v3512_v32  ;;  %v3536_v58 = vrot.slane %v9318_v60, %v7998_v3  ;;  %vm11054_vm9 = vmmov %vm11052_vm5  ;;  %v3531_v9 = vrot.slane %v9316_v7, %v7959_v11 }
 0x3c0   :  { %v3503_v53 = vsel %vm11054_vm9, %v3502_v16, %v3498_v25  ;;  %v3522_v1 = vsel %vm11055_vm3, %v3521_v37, %v3517_v23  ;;  %v3541_v42 = vrot.slane %v9390_v12, %v8026_v61  ;;  %vm11056_vm14 = vmmov %vm11052_vm5  ;;  %vm11059_vm1 = vcmask 1041409  }
 0x3c1   :  { %v3425_v35 = vsel %vm11056_vm14, %v3424_v28, %v3420_v24  ;;  %vm11057_vm8 = vmmov %vm11048_vm2  ;;  %v3551_v52 = vmul.f32 %v9006_v56, %v9006_v56  ;;  %v3552_v17 = vmul.f32 %v9036_v55, %v9036_v55  ;;  %vm11061_vm10 = vcmask 1042434  }
 0x3c2   :  { %v3527_v41 = vsel %vm11057_vm8, %v3526_v30, %v3522_v1  ;;  %vm11058_vm11 = vmmov %vm11045_vm7  ;;  %v3543_v46 = vsel %vm11059_vm1, %v3464_v36, %v3425_v35  ;;  %v3553_v16 = vmul.f32 %v9058_v54, %v9058_v54  ;;  %v3554_v28 = vmul.f32 %v9063_v62, %v9063_v62 }
 0x3c3   :  { %v3532_v26 = vsel %vm11058_vm11, %v3531_v9, %v3527_v41  ;;  %vm11060_vm7 = vmmov %vm11051_vm0  ;;  %v3544_v2 = vsel %vm11061_vm10, %v3503_v53, %v3543_v46  ;;  %v3555_v25 = vmul.f32 %v9073_v27, %v9073_v27  ;;  %v9433_v32 = vmul.f32 %v9108_v43, %v9108_v43 }
 0x3c4   :  { %v3537_v47 = vsel %vm11060_vm7, %v3536_v58, %v3532_v26  ;;  %vm11062_vm15 = vmmov %vm11052_vm5  ;;  %v9437_v37 = vmul.f32 %v9117_v6, %v9117_v6  ;;  %vm11063_vm2 = vcmask 1043459   ;;  %v9442_v24 = vmul.f32 %v9142_v59, %v9142_v59 }
 0x3c5   :  { %v3542_v19 = vsel %vm11062_vm15, %v3541_v42, %v3537_v47  ;;  %v3559_v36 = vmul.f32 %v9133_v20, %v9133_v20  ;;  %v3560_v23 = vmul.f32 %v9146_v4, %v9146_v4  ;;  %vm11064_vm13 = vcmask 519168   ;;  %vm11065_vm4 = vmmov %vm11053_vm12 }
 0x3c6   :  { %v3545_v30 = vsel %vm11063_vm2, %v3542_v19, %v3544_v2  ;;  %v3561_v53 = vmul.f32 %v9151_v13, %v9151_v13  ;;  %v3562_v1 = vmul.f32 %v9162_v45, %v9162_v45  ;;  %v3563_v9 = vmul.f32 %v9192_v10, %v9192_v10  ;;  %vm11066_vm0 = vmmov %vm11055_vm3 }
 0x3c7   :  { %v3547_v58 = vsel %vm11064_vm13, %v3545_v30, 0.0  ;;  %v3564_v42 = vmul.f32 %v9194_v38, %v9194_v38  ;;  %v3565_v35 = vmul.f32 %v9196_v5, %v9196_v5  ;;  %v9461_v41 = vmul.f32 %v9199_v15, %v9199_v15  ;;  %vm11067_vm5 = vmmov %vm11065_vm4 }
 0x3c8   :  { %3548 = vadd.xlane.f32.xlu0 %v3547_v58  ;;  %v3567_v26 = vmul.f32 %v9207_v21, %v9207_v21  ;;  %v3568_v46 = vmul.f32 %v9211_v40, %v9211_v40  ;;  %v3569_v47 = vmul.f32 %v9230_v34, %v9230_v34  ;;  %v3570_v2 = vmul.f32 %v9242_v49, %v9242_v49  ;;  %vm11068_vm12 = vmmov %vm11066_vm0 }
 0x3c9   :  { %v3571_v19 = vmul.f32 %v9244_v57, %v9244_v57  ;;  %v3572_v30 = vmul.f32 %v9248_v51, %v9248_v51  ;;  %v3573_v58 = vmul.f32 %v9253_v39, %v9253_v39  ;;  %v9479_v21 = vmul.f32 %v9270_v44, %v9270_v44  ;;  %vm11069_vm9 = vmmov %vm11057_vm8 }
 0x3ca   :  { %v3575_v43 = vmul.f32 %v9275_v29, %v9275_v29  ;;  %v3576_v34 = vmul.f32 %v9281_v63, %v9281_v63  ;;  %v3577_v62 = vmul.f32 %v9287_v8, %v9287_v8  ;;  %v3618_v55 = vrot.slane %v3551_v52, %v7695_v14  ;;  %vm11070_vm3 = vmmov %vm11057_vm8 }
 0x3cb   :  { %v3622_v31 = vrot.slane %v3552_v17, %v7703_v50  ;;  %v3578_v15 = vmul.f32 %v9301_v33, %v9301_v33  ;;  %v3579_v51 = vmul.f32 %v9314_v22, %v9314_v22  ;;  %v3580_v38 = vmul.f32 %v9316_v7, %v9316_v7  ;;  %vm11071_vm14 = vmmov %vm11058_vm11 }
 0x3cc   :  { %v3627_v49 = vrot.slane %v3553_v16, %v7761_v0  ;;  %v3632_v29 = vrot.slane %v3554_v28, %v7854_v18  ;;  %v3657_v8 = vrot.slane %v3559_v36, %v7695_v14  ;;  %v3661_v52 = vrot.slane %v3560_v23, %v7703_v50  ;;  %vm11072_vm8 = vmmov %vm11065_vm4 }
 0x3cd   :  { %v3623_v63 = vsel %vm1542_vm6, %v3622_v31, %v3618_v55  ;;  %v3666_v33 = vrot.slane %v3561_v53, %v7761_v0  ;;  %v3671_v44 = vrot.slane %v3562_v1, %v7854_v18  ;;  %v3676_v40 = vrot.slane %v3563_v9, %v7942_v48  ;;  %vm11073_vm11 = vmmov %vm11066_vm0 }
 0x3ce   :  { %v3628_v17 = vsel %vm11065_vm4, %v3627_v49, %v3623_v63  ;;  %v3581_v7 = vmul.f32 %v9318_v60, %v9318_v60  ;;  %v3582_v31 = vmul.f32 %v9390_v12, %v9390_v12  ;;  %v3637_v55 = vrot.slane %v3555_v25, %v7942_v48  ;;  %vm11074_vm1 = vmmov %vm11060_vm7 }
 0x3cf   :  { %v3662_v16 = vsel %vm1542_vm6, %v3661_v52, %v3657_v8  ;;  %v3633_v28 = vsel %vm11066_vm0, %v3632_v29, %v3628_v17  ;;  %v3642_v49 = vrot.slane %v9433_v32, %v7959_v11  ;;  %v3647_v63 = vrot.slane %v9437_v37, %v7998_v3  ;;  %vm11075_vm7 = vmmov %vm11070_vm3 }
 0x3d0   :  { %v3667_v36 = vsel %vm11067_vm5, %v3666_v33, %v3662_v16  ;;  %v3681_v53 = vrot.slane %v3564_v42, %v7959_v11  ;;  %v3696_v1 = vrot.slane %v3567_v26, %v7695_v14  ;;  %v3700_v25 = vrot.slane %v3568_v46, %v7703_v50  ;;  %vm11076_vm10 = vmmov %vm11071_vm14 }
 0x3d1   :  { %v3672_v23 = vsel %vm11068_vm12, %v3671_v44, %v3667_v36  ;;  %v3686_v29 = vrot.slane %v3565_v35, %v7998_v3  ;;  %v3705_v9 = vrot.slane %v3569_v47, %v7761_v0  ;;  %v3715_v32 = vrot.slane %v3571_v19, %v7942_v48  ;;  %vm11077_vm15 = vmmov %vm11076_vm10 }
 0x3d2   :  { %v3677_v8 = vsel %vm11069_vm9, %v3676_v40, %v3672_v23  ;;  %v3638_v37 = vsel %vm11070_vm3, %v3637_v55, %v3633_v28  ;;  %v3652_v33 = vrot.slane %v9442_v24, %v8026_v61  ;;  %v3701_v44 = vsel %vm1542_vm6, %v3700_v25, %v3696_v1  ;;  %vm11078_vm2 = vmmov %vm11074_vm1 }
 0x3d3   :  { %v3710_v42 = vrot.slane %v3570_v2, %v7854_v18  ;;  %v3682_v26 = vsel %vm11071_vm14, %v3681_v53, %v3677_v8  ;;  %v3691_v40 = vrot.slane %v9461_v41, %v8026_v61  ;;  %v3706_v35 = vsel %vm11072_vm8, %v3705_v9, %v3701_v44  ;;  %vm11079_vm13 = vmmov %vm11065_vm4 }
 0x3d4   :  { %v3725_v46 = vrot.slane %v3573_v58, %v7998_v3  ;;  %v3720_v19 = vrot.slane %v3572_v30, %v7959_v11  ;;  %v3735_v52 = vrot.slane %v3575_v43, %v7695_v14  ;;  %v3739_v24 = vrot.slane %v3576_v34, %v7703_v50  ;;  %vm11081_vm5 = vmmov %vm11074_vm1 }
 0x3d5   :  { %v3711_v47 = vsel %vm11073_vm11, %v3710_v42, %v3706_v35  ;;  %v3687_v17 = vsel %vm11074_vm1, %v3686_v29, %v3682_v26  ;;  %v3744_v55 = vrot.slane %v3577_v62, %v7761_v0  ;;  %v3754_v41 = vrot.slane %v3579_v51, %v7942_v48  ;;  %vm11083_vm9 = vmmov %vm11070_vm3 }
 0x3d6   :  { %v3716_v2 = vsel %vm11075_vm7, %v3715_v32, %v3711_v47  ;;  %v3643_v16 = vsel %vm11076_vm10, %v3642_v49, %v3638_v37  ;;  %v3740_v28 = vsel %vm1542_vm6, %v3739_v24, %v3735_v52  ;;  %v3749_v30 = vrot.slane %v3578_v15, %v7854_v18  ;;  %vm11085_vm14 = vmmov %vm11076_vm10  ;;  %v3785_v24 = vld [vmem:[%s10108_s2] sm:$0xf]  ;;  %s4960_s2 = smov [#allocation5]  }
 0x3d7   :  { %v3721_v58 = vsel %vm11077_vm15, %v3720_v19, %v3716_v2  ;;  %v3730_v34 = vrot.slane %v9479_v21, %v8026_v61  ;;  %v3745_v36 = vsel %vm11079_vm13, %v3744_v55, %v3740_v28  ;;  %v3764_v23 = vrot.slane %v3581_v7, %v7998_v3  ;;  %vm11086_vm8 = vmmov %vm11074_vm1  ;;  %v3789_v55 = vld [vmem:[%s10109_s3] sm:$0xf]  ;;  %v11092_v28 = vld [vmem:[#allocation8_spill] sm:$0xff]  ;;  %s4568_s3 = sshll.u32 %s4960_s2, 4  ;;  %s4569_s3 = int_to_ptr.vmem [resolvable:$true] %s4568_s3 }
 0x3d8   :  { %v3726_v43 = vsel %vm11078_vm2, %v3725_v46, %v3721_v58  ;;  %vm11080_vm4 = vcmask 523712   ;;  %v3750_v51 = vsel %vm11066_vm0, %v3749_v30, %v3745_v36  ;;  %v3759_v49 = vrot.slane %v3580_v38, %v7959_v11  ;;  %vm11142_vm2 = vmmov %vm11079_vm13  ;;  %s4929_s8 = scalar_lea.vmem %s4569_s3, 64  ;;  %p4934_p9 = scmp.lt.s32.totalorder %s4569_s3, %s4569_s3 }
 0x3d9   :  { %v3692_v62 = vsel %vm11080_vm4, %v3691_v40, %v3687_v17  ;;  %v3769_v53 = vrot.slane %v3582_v31, %v8026_v61  ;;  %v3648_v1 = vsel %vm11081_vm5, %v3647_v63, %v3643_v16  ;;  %vm11082_vm12 = vmmov %vm11080_vm4  ;;  %v3755_v25 = vsel %vm11083_vm9, %v3754_v41, %v3750_v51  ;;  %v11094_v51 = vld [vmem:[#allocation11_spill] sm:$0xff]  ;;  %p4930_p8 = scmp.ne.s32.totalorder %s4569_s3, %s4929_s8  ;;  %p4935_p10 = scmp.lt.s32.totalorder %s4929_s8, %s4929_s8 }
 0x3da   :  { %v3731_v15 = vsel %vm11082_vm12, %v3730_v34, %v3726_v43  ;;  %vm11084_vm3 = vmmov %vm11080_vm4  ;;  %v3760_v8 = vsel %vm11085_vm14, %v3759_v49, %v3755_v25  ;;  %vm11087_vm11 = vcmask 1041409   ;;  %vm11089_vm7 = vcmask 1042434   ;;  %v11093_v43 = vld [vmem:[#allocation9_spill] sm:$0xff] }
 0x3db   :  { %v3653_v21 = vsel %vm11084_vm3, %v3652_v33, %v3648_v1  ;;  %v3765_v7 = vsel %vm11086_vm8, %v3764_v23, %v3760_v8  ;;  %vm11088_vm1 = vmmov %vm11084_vm3  ;;  %vm11090_vm10 = vcmask 1043459   ;;  %vm11091_vm15 = vcmask 519168   ;;  %v11096_v8 = vld [vmem:[#allocation81_spill] sm:$0xff]  ;;  %p4936_p11 = por %p4935_p10, %p4934_p9 }
 0x3dc   :  { %v3771_v29 = vsel %vm11087_vm11, %v3692_v62, %v3653_v21  ;;  %v3770_v9 = vsel %vm11088_vm1, %v3769_v53, %v3765_v7  ;;  %v3802_v30 = vsub.s32 1, %v11092_v28  ;;  %v11095_v53 = vld [vmem:[#allocation64_spill] sm:$0xff]  ;;  %vm11143_vm13 = vmmov %vm11142_vm2  ;;  %vm11151_vm8 = vcmask 392512  }
 0x3dd   :  { %v3772_v38 = vsel %vm11089_vm7, %v3731_v15, %v3771_v29  ;;  %v11097_v29 = vld [vmem:[#allocation16_spill] sm:$0xff]  ;;  %vm11144_vm4 = vmmov %vm11066_vm0  ;;  %p4937_p12 = pnand %p4936_p11, %p4930_p8 }
 0x3de   :  { %v3773_v31 = vsel %vm11090_vm10, %v3770_v9, %v3772_v38  ;;  %vm11145_vm0 = vmmov %vm11083_vm9 }
 0x3df   :  { %v3775_v63 = vsel %vm11091_vm15, %v3773_v31, 0.0  ;;  %vm11146_vm5 = vmmov %vm11144_vm4 }
 0x3e0   :  { %3776 = vadd.xlane.f32.xlu1 %v3775_v63  ;;  %v3806_v63 = vsub.s32 2, %v11092_v28  ;;  %vm11147_vm12 = vmmov %vm11145_vm0 }
 0x3e1   :  { %vm11148_vm9 = vmmov %vm11142_vm2 }
 0x3e2   :  { %vm11149_vm3 = vmmov %vm11142_vm2 }
 0x3e3   :  { %vm11150_vm14 = vmmov %vm11144_vm4 }
 0x3e4   :  { %vm11152_vm11 = vmmov %vm11145_vm0 }
 0x3e5   :  { %vm11154_vm1 = vmmov %vm11151_vm8 }
 0x3e6   :  { %vm11155_vm7 = vmmov %vm11154_vm1 }
 0x3e7   :  { %v1713_v32 = vpop.xlane.xlu0 %1712  ;;  %vm11157_vm15 = vmmov %vm11144_vm4 }
 0x401   :  { %v1941_v42 = vpop.xlane.xlu1 %1940 }
 0x455   :  { %v3549_v37 = vpop.xlane.xlu0 %3548 }
 0x456   :  { %v3550_v44 = vadd.f32 %v3549_v37, %v1713_v32  ;;  %v11098_v32 = vld [vmem:[#allocation19_spill] sm:$0xff] }
 0x458   :  { %v3780_v33 = vmul.f32 0.0078125, %v3550_v44  ;;  %v11099_v44 = vld [vmem:[#allocation12_spill] sm:$0xff] }
 0x45a   :  { %v3782_v40 = vmul.f32 %v3780_v33, %v3780_v33 }
 0x46d   :  { %v3777_v26 = vpop.xlane.xlu1 %3776 }
 0x46e   :  { %v3778_v35 = vadd.f32 %v3777_v26, %v1941_v42 }
 0x470   :  { %v3781_v46 = vmul.f32 0.0078125, %v3778_v35 }
 0x472   :  { %v3783_v47 = vsub.f32 %v3781_v46, %v3782_v40  ;;  %v11100_v46 = vld [vmem:[#allocation71_spill] sm:$0xff] }
 0x474   :  { %v3784_v19 = vmax.f32 %v3783_v47, 0.0 }
 0x476   :  { %v3786_v52 = vadd.f32 1e-05, %v3784_v19  ;;  %v11101_v19 = vld [vmem:[#allocation18_spill] sm:$0xff] }
 0x478   :  { %4905 = vrsqrt.f32 %v3786_v52 }
 0x482   :  { %v4906_v17 = vpop.eup %4905 }
 0x483   :  { %v3788_v2 = vmul.f32 %v4906_v17, %v3785_v24 }
 0x485   :  { %3794 = vperm.xlu0 %4775, %v3788_v2   ;;  %v3790_v41 = vmul.f32 %v3788_v2, %v3780_v33  ;;  %v3810_v33 = vsub.s32 3, %v11092_v28 }
 0x487   :  { %v3791_v16 = vsub.f32 %v3789_v55, %v3790_v41  ;;  %v11102_v41 = vld [vmem:[#allocation25_spill] sm:$0xff] }
 0x489   :  { %3850 = vperm.xlu1 %4776, %v3791_v16  }
 0x504   :  { %v3795_v58 = vpop.permute.xlu0 %3794 }
 0x505   :  { %v9574_v34 = vrot.slane %v3795_v58, %v11093_v43  ;;  %v9576_v23 = vrot.slane %v3795_v58, %v3802_v30  ;;  %v9603_v35 = vrot.slane %v3795_v58, %v3806_v63  ;;  %v9609_v24 = vrot.slane %v3795_v58, %v3810_v33 }
 0x507   :  { %v3823_v49 = vmul.f32 %v9574_v34, %v11094_v51  ;;  %v3816_v1 = vmul.f32 %v9574_v34, %v11095_v53  ;;  %v3825_v7 = vmul.f32 %v9576_v23, %v11096_v8  ;;  %v3817_v9 = vmul.f32 %v9574_v34, %v11097_v29  ;;  %v11104_v53 = vld [vmem:[#allocation83_spill] sm:$0xff] }
 0x508   :  { %v3851_v36 = vpop.permute.xlu1 %3850  ;;  %v3827_v37 = vmul.f32 %v9576_v23, %v11098_v32  ;;  %v3818_v42 = vmul.f32 %v9574_v34, %v11099_v44  ;;  %v3829_v47 = vmul.f32 %v9576_v23, %v11100_v46  ;;  %v3819_v52 = vmul.f32 %v9574_v34, %v11101_v19 }
 0x509   :  { %v9579_v62 = vrot.slane %v3851_v36, %v11093_v43  ;;  %v9585_v15 = vrot.slane %v3851_v36, %v3802_v30  ;;  %v9611_v17 = vrot.slane %v3851_v36, %v3806_v63  ;;  %v3831_v16 = vmul.f32 %v9576_v23, %v11102_v41  ;;  %v11103_v30 = vld [vmem:[#allocation24_spill] sm:$0xff]  ;;  %v11107_v63 = vld [vmem:[#allocation31_spill] sm:$0xff] }
 0x50a   :  { %v3820_v43 = vmul.f32 %v9574_v34, %v11103_v30  ;;  %v4200_v51 = vmul.f32 %v9574_v34, %v9142_v59  ;;  %v9623_v58 = vrot.slane %v3851_v36, %v3810_v33  ;;  %v3822_v32 = vmul.f32 %v9574_v34, %v11107_v63 }
 0x50b   :  { %v3879_v25 = vadd.f32 %v9579_v62, %v3823_v49  ;;  %v3872_v21 = vadd.f32 %v9579_v62, %v3816_v1  ;;  %v3881_v38 = vadd.f32 %v9585_v15, %v3825_v7  ;;  %v3873_v31 = vadd.f32 %v9579_v62, %v3817_v9  ;;  %v11106_v9 = vld [vmem:[#allocation45_spill] sm:$0xff] }
 0x50c   :  { %v3883_v26 = vadd.f32 %v9585_v15, %v3827_v37  ;;  %v3874_v40 = vadd.f32 %v9579_v62, %v3818_v42  ;;  %v3885_v2 = vadd.f32 %v9585_v15, %v3829_v47  ;;  %v3875_v55 = vadd.f32 %v9579_v62, %v3819_v52  ;;  %v11108_v37 = vld [vmem:[#allocation42_spill] sm:$0xff] }
 0x50d   :  { %3958 = vperm.xlu0 %4775, %v3879_v25   ;;  %3937 = vperm.xlu1 %4776, %v3872_v21   ;;  %v4202_v49 = vmul.f32 %v9576_v23, %v9146_v4  ;;  %v3833_v1 = vmul.f32 %v9603_v35, %v11104_v53  ;;  %v11105_v25 = vld [vmem:[#allocation44_spill] sm:$0xff]  ;;  %v3887_v8 = vadd.f32 %v9585_v15, %v3831_v16 }
 0x50e   :  { %v3821_v21 = vmul.f32 %v9574_v34, %v11105_v25  ;;  %v3876_v7 = vadd.f32 %v9579_v62, %v3820_v43  ;;  %v9632_v29 = vadd.f32 %v4200_v51, %v9579_v62  ;;  %v3837_v44 = vmul.f32 %v9603_v35, %v11108_v37 }
 0x50f   :  { %v9635_v59 = vadd.f32 %v4202_v49, %v9585_v15  ;;  %v3889_v4 = vadd.f32 %v9611_v17, %v3833_v1  ;;  %v4193_v42 = vmul.f32 %v9574_v34, %v9006_v56  ;;  %v4195_v33 = vmul.f32 %v9574_v34, %v9058_v54  ;;  %v11110_v1 = vld [vmem:[#allocation56_spill] sm:$0xff] }
 0x510   :  { %v3877_v36 = vadd.f32 %v9579_v62, %v3821_v21  ;;  %v3878_v19 = vadd.f32 %v9579_v62, %v3822_v32  ;;  %v3893_v52 = vadd.f32 %v9611_v17, %v3837_v44  ;;  %v4201_v41 = vmul.f32 %v9576_v23, %v9133_v20  ;;  %v11111_v21 = vld [vmem:[#allocation59_spill] sm:$0xff] }
 0x511   :  { %3964 = vperm.xlu0 %4775, %v3881_v38   ;;  %3940 = vperm.xlu1 %4776, %v3873_v31   ;;  %v3835_v38 = vmul.f32 %v9603_v35, %v11106_v9  ;;  %v4204_v31 = vmul.f32 %v9576_v23, %v9162_v45  ;;  %v4197_v45 = vmul.f32 %v9574_v34, %v9073_v27  ;;  %v11113_v9 = vld [vmem:[#allocation67_spill] sm:$0xff] }
 0x512   :  { %v9661_v56 = vadd.f32 %v4193_v42, %v9579_v62  ;;  %v9664_v54 = vadd.f32 %v4195_v33, %v9579_v62  ;;  %v4213_v27 = vmul.f32 %v9603_v35, %v9244_v57  ;;  %v4207_v16 = vmul.f32 %v9576_v23, %v9196_v5 }
 0x513   :  { %v9654_v46 = vadd.f32 %v4204_v31, %v9585_v15  ;;  %v3891_v47 = vadd.f32 %v9611_v17, %v3835_v38  ;;  %v4203_v30 = vmul.f32 %v9576_v23, %v9151_v13  ;;  %v4221_v43 = vmul.f32 %v9609_v24, %v9314_v22  ;;  %v11114_v31 = vld [vmem:[#allocation74_spill] sm:$0xff] }
 0x514   :  { %v9687_v57 = vadd.f32 %v4213_v27, %v9611_v17  ;;  %v9690_v20 = vadd.f32 %v4201_v41, %v9585_v15  ;;  %v9693_v5 = vadd.f32 %v4207_v16, %v9585_v15  ;;  %v4205_v49 = vmul.f32 %v9576_v23, %v9192_v10  ;;  %v11118_v27 = vld [vmem:[#allocation29_spill] sm:$0xff] }
 0x515   :  { %3970 = vperm.xlu0 %4775, %v3883_v26   ;;  %3943 = vperm.xlu1 %4776, %v3874_v40   ;;  %v11109_v26 = vld [vmem:[#allocation14_spill] sm:$0xff]  ;;  %v9696_v13 = vadd.f32 %v4203_v30, %v9585_v15  ;;  %v9699_v22 = vadd.f32 %v4221_v43, %v9623_v58  ;;  %v4215_v53 = vmul.f32 %v9603_v35, %v9253_v39  ;;  %v11119_v16 = vld [vmem:[#allocation41_spill] sm:$0xff]  ;;  %v11120_v43 = vld [vmem:[#allocation43_spill] sm:$0xff] }
 0x516   :  { %v3824_v40 = vmul.f32 %v9576_v23, %v11109_v26  ;;  %v4210_v25 = vmul.f32 %v9603_v35, %v11110_v1  ;;  %v4212_v38 = vmul.f32 %v9603_v35, %v11113_v9  ;;  %v4206_v10 = vmul.f32 %v9576_v23, %v11114_v31  ;;  %v11115_v26 = vld [vmem:[#allocation76_spill] sm:$0xff] }
 0x517   :  { %v9718_v39 = vadd.f32 %v4205_v49, %v9585_v15  ;;  %v9721_v63 = vadd.f32 %v4215_v53, %v9611_v17  ;;  %v3839_v41 = vmul.f32 %v9603_v35, %v11118_v27  ;;  %v3826_v30 = vmul.f32 %v9576_v23, %v11119_v16 }
 0x518   :  { %v3880_v51 = vadd.f32 %v9585_v15, %v3824_v40  ;;  %v9724_v32 = vadd.f32 %v4210_v25, %v9611_v17  ;;  %v9736_v42 = vadd.f32 %v4212_v38, %v9611_v17  ;;  %v9739_v33 = vadd.f32 %v4206_v10, %v9585_v15  ;;  %v11123_v10 = vld [vmem:[#allocation84_spill] sm:$0xff] }
 0x519   :  { %3976 = vperm.xlu0 %4775, %v3885_v2   ;;  %3946 = vperm.xlu1 %4776, %v3875_v55   ;;  %v9668_v2 = vadd.f32 %v4197_v45, %v9579_v62  ;;  %v4199_v55 = vmul.f32 %v9574_v34, %v9117_v6  ;;  %v4220_v40 = vmul.f32 %v9609_v24, %v11115_v26  ;;  %v11116_v45 = vld [vmem:[#allocation48_spill] sm:$0xff] }
 0x51a   :  { %v4222_v49 = vmul.f32 %v9609_v24, %v11120_v43  ;;  %v4223_v53 = vmul.f32 %v9609_v24, %v9318_v60  ;;  %v3882_v60 = vadd.f32 %v9585_v15, %v3826_v30  ;;  %v3843_v26 = vmul.f32 %v9609_v24, %v11123_v10  ;;  %v11131_v10 = vld [vmem:[#allocation72_spill] sm:$0xff] }
 0x51b   :  { %v9684_v6 = vadd.f32 %v4199_v55, %v9579_v62  ;;  %v9756_v1 = vadd.f32 %v4220_v40, %v9623_v58  ;;  %v11124_v40 = vld [vmem:[#allocation82_spill] sm:$0xff] }
 0x51d   :  { %3982 = vperm.xlu0 %4775, %v3887_v8   ;;  %3949 = vperm.xlu1 %4776, %v3876_v7   ;;  %v4216_v8 = vmul.f32 %v9603_v35, %v11111_v21  ;;  %v11112_v7 = vld [vmem:[#allocation73_spill] sm:$0xff] }
 0x51f   :  { %v9727_v37 = vadd.f32 %v4216_v8, %v9611_v17  ;;  %v9765_v8 = vadd.f32 %v4222_v49, %v9623_v58  ;;  %v11127_v49 = vld [vmem:[#allocation55_spill] sm:$0xff] }
 0x521   :  { %3988 = vperm.xlu0 %4775, %v3889_v4   ;;  %3952 = vperm.xlu1 %4776, %v3877_v36   ;;  %v4217_v4 = vmul.f32 %v9609_v24, %v11112_v7  ;;  %v4224_v36 = vmul.f32 %v9609_v24, %v9390_v12  ;;  %v9768_v7 = vadd.f32 %v4223_v53, %v9623_v58  ;;  %v11128_v53 = vld [vmem:[#allocation60_spill] sm:$0xff] }
 0x523   :  { %v9730_v12 = vadd.f32 %v4217_v4, %v9623_v58  ;;  %v9733_v44 = vadd.f32 %v4224_v36, %v9623_v58  ;;  %v3895_v4 = vadd.f32 %v9611_v17, %v3839_v41  ;;  %v11122_v36 = vld [vmem:[#allocation47_spill] sm:$0xff]  ;;  %v11126_v41 = vld [vmem:[#allocation61_spill] sm:$0xff] }
 0x524   :  { %v3828_v9 = vmul.f32 %v9576_v23, %v11122_v36  ;;  %v3832_v16 = vmul.f32 %v9603_v35, %v11126_v41  ;;  %v11130_v36 = vld [vmem:[#allocation46_spill] sm:$0xff]  ;;  %v11134_v41 = vld [vmem:[#allocation68_spill] sm:$0xff] }
 0x525   :  { %3994 = vperm.xlu0 %4775, %v3891_v47   ;;  %3955 = vperm.xlu1 %4776, %v3878_v19   ;;  %v4214_v47 = vmul.f32 %v9603_v35, %v11116_v45  ;;  %v11117_v19 = vld [vmem:[#allocation22_spill] sm:$0xff]  ;;  %v3830_v45 = vmul.f32 %v9576_v23, %v11124_v40 }
 0x526   :  { %v4208_v55 = vmul.f32 %v9576_v23, %v11117_v19  ;;  %v3884_v31 = vadd.f32 %v9585_v15, %v3828_v9  ;;  %v3888_v43 = vadd.f32 %v9611_v17, %v3832_v16  ;;  %v3847_v23 = vmul.f32 %v9609_v24, %v11127_v49  ;;  %v11132_v40 = vld [vmem:[#allocation34_spill] sm:$0xff]  ;;  %v11135_v49 = vld [vmem:[#allocation20_spill] sm:$0xff] }
 0x527   :  { %v9759_v25 = vadd.f32 %v4214_v47, %v9611_v17  ;;  %v3899_v47 = vadd.f32 %v9623_v58, %v3843_v26  ;;  %v3886_v19 = vadd.f32 %v9585_v15, %v3830_v45  ;;  %v3836_v9 = vmul.f32 %v9603_v35, %v11130_v36 }
 0x528   :  { %v9762_v21 = vadd.f32 %v4208_v55, %v9585_v15  ;;  %v11125_v55 = vld [vmem:[#allocation88_spill] sm:$0xff]  ;;  %v3834_v15 = vmul.f32 %v9603_v35, %v11128_v53  ;;  %v4196_v26 = vmul.f32 %v9574_v34, %v11131_v10  ;;  %v3838_v45 = vmul.f32 %v9603_v35, %v11132_v40 }
 0x529   :  { %4000 = vperm.xlu0 %4775, %v3893_v52   ;;  %3961 = vperm.xlu1 %4776, %v3880_v51   ;;  %v11121_v52 = vld [vmem:[#allocation65_spill] sm:$0xff]  ;;  %v3845_v27 = vmul.f32 %v9609_v24, %v11125_v55  ;;  %v11133_v55 = vld [vmem:[#allocation32_spill] sm:$0xff]  ;;  %v3840_v16 = vmul.f32 %v9609_v24, %v11134_v41 }
 0x52a   :  { %v3841_v51 = vmul.f32 %v9609_v24, %v11121_v52  ;;  %v11129_v52 = vld [vmem:[#allocation13_spill] sm:$0xff] }
 0x52b   :  { %v3901_v30 = vadd.f32 %v9623_v58, %v3845_v27  ;;  %v4198_v27 = vmul.f32 %v9574_v34, %v11133_v55 }
 0x52c   :  { %v3897_v38 = vadd.f32 %v9623_v58, %v3841_v51  ;;  %v4194_v51 = vmul.f32 %v9574_v34, %v11129_v52 }
 0x52d   :  { %4006 = vperm.xlu0 %4775, %v3895_v4   ;;  %3967 = vperm.xlu1 %4776, %v3882_v60   ;;  %v3903_v4 = vadd.f32 %v9623_v58, %v3847_v23  ;;  %v3890_v60 = vadd.f32 %v9611_v17, %v3834_v15  ;;  %v3842_v23 = vmul.f32 %v9609_v24, %v11135_v49  ;;  %v11136_v15 = vld [vmem:[#allocation96_spill] sm:$0xff] }
 0x52e   :  { %v3844_v34 = vmul.f32 %v9609_v24, %v11136_v15 }
 0x52f   :  { %v3898_v53 = vadd.f32 %v9623_v58, %v3842_v23 }
 0x531   :  { %4012 = vperm.xlu0 %4775, %v3897_v38   ;;  %3973 = vperm.xlu1 %4776, %v3884_v31   ;;  %v4226_v38 = vadd.f32 %v4194_v51, %v9579_v62  ;;  %v3892_v31 = vadd.f32 %v9611_v17, %v3836_v9  ;;  %v11138_v51 = vld [vmem:[#allocation53_spill] sm:$0xff]  ;;  %v11139_v9 = vld [vmem:[#allocation78_spill] sm:$0xff] }
 0x535   :  { %4018 = vperm.xlu0 %4775, %v3899_v47   ;;  %3979 = vperm.xlu1 %4776, %v3886_v19   ;;  %v4228_v47 = vadd.f32 %v4196_v26, %v9579_v62  ;;  %v3894_v19 = vadd.f32 %v9611_v17, %v3838_v45  ;;  %v11141_v26 = vld [vmem:[#allocation49_spill] sm:$0xff] }
 0x536   :  { %v4219_v40 = vmul.f32 %v9609_v24, %v11141_v26 }
 0x539   :  { %4024 = vperm.xlu0 %4775, %v3901_v30   ;;  %3985 = vperm.xlu1 %4776, %v3888_v43   ;;  %v4230_v30 = vadd.f32 %v4198_v27, %v9579_v62  ;;  %v3896_v43 = vadd.f32 %v9623_v58, %v3840_v16  ;;  %v11137_v62 = vld [vmem:[#allocation97_spill] sm:$0xff] }
 0x53d   :  { %4030 = vperm.xlu0 %4775, %v3903_v4   ;;  %3991 = vperm.xlu1 %4776, %v3890_v60   ;;  %v3900_v4 = vadd.f32 %v9623_v58, %v3844_v34  ;;  %v3846_v60 = vmul.f32 %v9609_v24, %v11137_v62 }
 0x53f   :  { %v3902_v52 = vadd.f32 %v9623_v58, %v3846_v60 }
 0x541   :  { %4293 = vperm.xlu0 %4775, %v4226_v38   ;;  %3997 = vperm.xlu1 %4776, %v3892_v31   ;;  %v11140_v31 = vld [vmem:[#allocation57_spill] sm:$0xff] }
 0x545   :  { %4299 = vperm.xlu0 %4775, %v4228_v47   ;;  %4003 = vperm.xlu1 %4776, %v3894_v19  }
 0x549   :  { %4305 = vperm.xlu0 %4775, %v4230_v30   ;;  %4009 = vperm.xlu1 %4776, %v3896_v43  }
 0x54d   :  { %4311 = vperm.xlu0 %4775, %v9632_v29   ;;  %4015 = vperm.xlu1 %4776, %v3898_v53   ;;  %v4209_v29 = vmul.f32 %v9603_v35, %v11138_v51 }
 0x54f   :  { %v4241_v36 = vadd.f32 %v4209_v29, %v9611_v17 }
 0x551   :  { %4317 = vperm.xlu0 %4775, %v9635_v59   ;;  %4021 = vperm.xlu1 %4776, %v3900_v4   ;;  %v4211_v59 = vmul.f32 %v9603_v35, %v11139_v9 }
 0x553   :  { %v4243_v38 = vadd.f32 %v4211_v59, %v9611_v17 }
 0x555   :  { %4323 = vperm.xlu0 %4775, %v9654_v46   ;;  %4027 = vperm.xlu1 %4776, %v3902_v52   ;;  %v4218_v46 = vmul.f32 %v9609_v24, %v11140_v31 }
 0x557   :  { %v4250_v10 = vadd.f32 %v4218_v46, %v9623_v58 }
 0x559   :  { %4338 = vperm.xlu0 %4775, %v4241_v36   ;;  %4290 = vperm.xlu1 %4776, %v9661_v56   ;;  %v4251_v56 = vadd.f32 %v4219_v40, %v9623_v58 }
 0x55d   :  { %4344 = vperm.xlu0 %4775, %v4243_v38   ;;  %4296 = vperm.xlu1 %4776, %v9664_v54  }
 0x561   :  { %4365 = vperm.xlu0 %4775, %v4250_v10   ;;  %4302 = vperm.xlu1 %4776, %v9668_v2  }
 0x565   :  { %4368 = vperm.xlu0 %4775, %v4251_v56   ;;  %4308 = vperm.xlu1 %4776, %v9684_v6  }
 0x569   :  { %4350 = vperm.xlu0 %4775, %v9687_v57   ;;  %4314 = vperm.xlu1 %4776, %v9690_v20  }
 0x56d   :  { %4332 = vperm.xlu0 %4775, %v9693_v5   ;;  %4320 = vperm.xlu1 %4776, %v9696_v13  }
 0x571   :  { %4374 = vperm.xlu0 %4775, %v9699_v22   ;;  %4326 = vperm.xlu1 %4776, %v9718_v39  }
 0x575   :  { %4356 = vperm.xlu0 %4775, %v9721_v63   ;;  %4341 = vperm.xlu1 %4776, %v9724_v32  }
 0x579   :  { %4359 = vperm.xlu0 %4775, %v9727_v37   ;;  %4362 = vperm.xlu1 %4776, %v9730_v12  }
 0x57d   :  { %4383 = vperm.xlu0 %4775, %v9733_v44   ;;  %4347 = vperm.xlu1 %4776, %v9736_v42  }
 0x581   :  { %4329 = vperm.xlu1 %4776, %v9739_v33  }
 0x585   :  { %4371 = vperm.xlu1 %4776, %v9756_v1  }
 0x589   :  { %4353 = vperm.xlu1 %4776, %v9759_v25  }
 0x58c   :  { %v9857_v35 = vpop.permute.xlu0 %3958  ;;  %v3938_v24 = vpop.permute.xlu1 %3937 }
 0x58d   :  { %4335 = vperm.xlu1 %4776, %v9762_v21   ;;  %v4035_v62 = vrot.slane %v3938_v24, %v7695_v14 }
 0x590   :  { %v3965_v17 = vpop.permute.xlu0 %3964  ;;  %v3941_v58 = vpop.permute.xlu1 %3940 }
 0x591   :  { %4377 = vperm.xlu1 %4776, %v9765_v8   ;;  %v4078_v43 = vrot.slane %v3965_v17, %v7703_v50  ;;  %v4039_v23 = vrot.slane %v3941_v58, %v7703_v50 }
 0x593   :  { %v4040_v38 = vsel %vm1542_vm6, %v4039_v23, %v4035_v62 }
 0x594   :  { %v3971_v54 = vpop.permute.xlu0 %3970  ;;  %v9861_v2 = vpop.permute.xlu1 %3943 }
 0x595   :  { %4380 = vperm.xlu1 %4776, %v9768_v7   ;;  %v4088_v29 = vrot.slane %v3971_v54, %v7854_v18  ;;  %v4044_v31 = vrot.slane %v9861_v2, %v7761_v0 }
 0x598   :  { %v9864_v6 = vpop.permute.xlu0 %3976  ;;  %v9866_v57 = vpop.permute.xlu1 %3946 }
 0x599   :  { %v4098_v46 = vrot.slane %v9864_v6, %v7959_v11  ;;  %v4049_v26 = vrot.slane %v9866_v57, %v7854_v18 }
 0x59c   :  { %v9868_v20 = vpop.permute.xlu0 %3982  ;;  %v9870_v5 = vpop.permute.xlu1 %3949 }
 0x59d   :  { %v4054_v40 = vrot.slane %v9870_v5, %v7942_v48 }
 0x5a0   :  { %v3989_v13 = vpop.permute.xlu0 %3988  ;;  %v9872_v22 = vpop.permute.xlu1 %3952 }
 0x5a1   :  { %v4117_v53 = vrot.slane %v3989_v13, %v7703_v50  ;;  %v4059_v57 = vrot.slane %v9872_v22, %v7959_v11 }
 0x5a4   :  { %v3995_v39 = vpop.permute.xlu0 %3994  ;;  %v9874_v63 = vpop.permute.xlu1 %3955 }
 0x5a5   :  { %v4127_v10 = vrot.slane %v3995_v39, %v7854_v18  ;;  %v4045_v39 = vsel %vm11148_vm9, %v4044_v31, %v4040_v38  ;;  %vm11164_vm9 = vcmask 1041409  }
 0x5a8   :  { %v9876_v32 = vpop.permute.xlu0 %4000  ;;  %v3962_v37 = vpop.permute.xlu1 %3961 }
 0x5a9   :  { %v4074_v55 = vrot.slane %v3962_v37, %v7695_v14  ;;  %v4064_v37 = vrot.slane %v9874_v63, %v7998_v3 }
 0x5ab   :  { %v4079_v15 = vsel %vm1542_vm6, %v4078_v43, %v4074_v55  ;;  %v4108_v55 = vrot.slane %v9868_v20, %v8026_v61 }
 0x5ac   :  { %v9878_v12 = vpop.permute.xlu0 %4006  ;;  %v3968_v44 = vpop.permute.xlu1 %3967 }
 0x5ad   :  { %v4083_v16 = vrot.slane %v3968_v44, %v7761_v0  ;;  %v4137_v44 = vrot.slane %v9876_v32, %v7959_v11 }
 0x5af   :  { %v4084_v60 = vsel %vm11142_vm2, %v4083_v16, %v4079_v15 }
 0x5b0   :  { %v4013_v42 = vpop.permute.xlu0 %4012  ;;  %v3974_v33 = vpop.permute.xlu1 %3973 }
 0x5b1   :  { %v4093_v52 = vrot.slane %v3974_v33, %v7942_v48  ;;  %v4156_v56 = vrot.slane %v4013_v42, %v7703_v50 }
 0x5b4   :  { %v9880_v1 = vpop.permute.xlu0 %4018  ;;  %v3980_v25 = vpop.permute.xlu1 %3979 }
 0x5b5   :  { %v4103_v54 = vrot.slane %v3980_v25, %v7998_v3  ;;  %v4166_v22 = vrot.slane %v9880_v1, %v7854_v18 }
 0x5b8   :  { %v9882_v21 = vpop.permute.xlu0 %4024  ;;  %v3986_v8 = vpop.permute.xlu1 %3985 }
 0x5b9   :  { %v4113_v30 = vrot.slane %v3986_v8, %v7695_v14  ;;  %v4176_v20 = vrot.slane %v9882_v21, %v7959_v11 }
 0x5bb   :  { %v4118_v51 = vsel %vm1542_vm6, %v4117_v53, %v4113_v30  ;;  %v4147_v30 = vrot.slane %v9878_v12, %v8026_v61 }
 0x5bc   :  { %v9884_v7 = vpop.permute.xlu0 %4030  ;;  %v3992_v45 = vpop.permute.xlu1 %3991 }
 0x5bd   :  { %v4122_v49 = vrot.slane %v3992_v45, %v7761_v0  ;;  %v4186_v12 = vrot.slane %v9884_v7, %v8026_v61 }
 0x5bf   :  { %v4123_v36 = vsel %vm11143_vm13, %v4122_v49, %v4118_v51  ;;  %vm11159_vm13 = vmmov %vm11145_vm0  ;;  %v4069_v49 = vrot.slane %v9857_v35, %v8026_v61 }
 0x5c0   :  { %v9886_v47 = vpop.permute.xlu0 %4293  ;;  %v3998_v19 = vpop.permute.xlu1 %3997  ;;  %v4128_v2 = vsel %vm11146_vm5, %v4127_v10, %v4123_v36 }
 0x5c1   :  { %v4132_v9 = vrot.slane %v3998_v19, %v7942_v48 }
 0x5c3   :  { %v4133_v5 = vsel %vm11147_vm12, %v4132_v9, %v4128_v2  ;;  %vm11163_vm12 = vmmov %vm11154_vm1 }
 0x5c4   :  { %v9889_v27 = vpop.permute.xlu0 %4299  ;;  %v4004_v41 = vpop.permute.xlu1 %4003  ;;  %v4138_v19 = vsel %vm11154_vm1, %v4137_v44, %v4133_v5  ;;  %vm4395_vm1 = vcmask 654912  }
 0x5c5   :  { %v4142_v50 = vrot.slane %v4004_v41, %v7998_v3 }
 0x5c8   :  { %v9898_v34 = vpop.permute.xlu0 %4305  ;;  %v4010_v4 = vpop.permute.xlu1 %4009 }
 0x5c9   :  { %v4152_v59 = vrot.slane %v4010_v4, %v7695_v14  ;;  %v4089_v14 = vsel %vm11144_vm4, %v4088_v29, %v4084_v60  ;;  %vm11160_vm4 = vcmask 523712  }
 0x5ca   :  { %v4094_v58 = vsel %vm11145_vm0, %v4093_v52, %v4089_v14  ;;  %vm11161_vm0 = vmmov %vm11160_vm4  ;;  %v11170_v14 = vld [vmem:[#allocation21_spill] sm:$0xff] }
 0x5cb   :  { %v4157_v13 = vsel %vm1542_vm6, %v4156_v56, %v4152_v59  ;;  %v4099_v33 = vsel %vm11151_vm8, %v4098_v46, %v4094_v58  ;;  %vm11153_vm6 = vcmask 458112   ;;  %vm11162_vm5 = vmmov %vm11161_vm0  ;;  %v4418_v5 = vadd.s32 4294967192, %v11170_v14 }
 0x5cc   :  { %v9920_v24 = vpop.permute.xlu0 %4311  ;;  %v4016_v17 = vpop.permute.xlu1 %4015  ;;  %v4104_v45 = vsel %vm11153_vm6, %v4103_v54, %v4099_v33  ;;  %vm11156_vm10 = vmmov %vm11153_vm6  ;;  %v4397_v54 = vadd.s32 4294967216, %v11170_v14 }
 0x5cd   :  { %v4161_v6 = vrot.slane %v4016_v17, %v7761_v0  ;;  %v4050_v0 = vsel %vm11150_vm14, %v4049_v26, %v4045_v39  ;;  %v4143_v18 = vsel %vm11156_vm10, %v4142_v50, %v4138_v19  ;;  %vm11158_vm2 = vmmov %vm11153_vm6  ;;  %vm11166_vm14 = vcmask 1042434  }
 0x5ce   :  { %v4055_v8 = vsel %vm11152_vm11, %v4054_v40, %v4050_v0  ;;  %v4148_v53 = vsel %vm11161_vm0, %v4147_v30, %v4143_v18  ;;  %vm11167_vm8 = vmmov %vm11161_vm0  ;;  %vm11168_vm11 = vcmask 1043459   ;;  %vm11169_vm6 = vcmask 519168  }
 0x5cf   :  { %v4162_v42 = vsel %vm11149_vm3, %v4161_v6, %v4157_v13  ;;  %v4060_v41 = vsel %vm11155_vm7, %v4059_v57, %v4055_v8  ;;  %vm11165_vm3 = vmmov %vm11158_vm2  ;;  %v4385_v17 = vadd.s32 4294967232, %v11170_v14  ;;  %v4390_v6 = vadd.s32 4294967224, %v11170_v14 }
 0x5d0   :  { %v4022_v25 = vpop.permute.xlu1 %4021  ;;  %v9944_v63 = vpop.permute.xlu0 %4317  ;;  %v4167_v1 = vsel %vm11157_vm15, %v4166_v22, %v4162_v42  ;;  %v4065_v16 = vsel %vm11158_vm2, %v4064_v37, %v4060_v41  ;;  %v4404_v57 = vadd.s32 4294967208, %v11170_v14  ;;  %v10000_v13 = vsub.s32 %v4397_v54, %v11092_v28  ;;  %vm11171_vm0 = vmmov %vm11164_vm9 }
 0x5d1   :  { %v4171_v32 = vrot.slane %v4022_v25, %v7942_v48  ;;  %v4109_v48 = vsel %vm11160_vm4, %v4108_v55, %v4104_v45  ;;  %v4070_v4 = vsel %vm11162_vm5, %v4069_v49, %v4065_v16  ;;  %v4388_v50 = vsub.s32 %v4385_v17, %v11092_v28 }
 0x5d2   :  { %v4188_v60 = vsel %vm11164_vm9, %v4109_v48, %v4070_v4  ;;  %v4411_v39 = vadd.s32 4294967200, %v11170_v14  ;;  %v4393_v44 = vsub.s32 %v4390_v6, %v11092_v28  ;;  %v4432_v0 = vadd.s32 4294967176, %v11170_v14  ;;  %vm11173_vm9 = vmmov %vm11168_vm11 }
 0x5d3   :  { %v4172_v43 = vsel %vm11159_vm13, %v4171_v32, %v4167_v1  ;;  %v4189_v11 = vsel %vm11166_vm14, %v4148_v53, %v4188_v60  ;;  %v10008_v22 = vsub.s32 %v4404_v57, %v11092_v28  ;;  %v10011_v33 = vsub.s32 %v4418_v5, %v11092_v28 }
 0x5d4   :  { %v4028_v23 = vpop.permute.xlu1 %4027  ;;  %v4177_v62 = vsel %vm11163_vm12, %v4176_v20, %v4172_v43  ;;  %v9968_v35 = vpop.permute.xlu0 %4323  ;;  %v4425_v8 = vadd.s32 4294967184, %v11170_v14  ;;  %v10016_v19 = vsub.s32 %v4411_v39, %v11092_v28  ;;  %v4394_v41 = vrot.slane %v9886_v47, %v4393_v44  ;;  %vm11172_vm12 = vmmov %vm11166_vm14 }
 0x5d5   :  { %v4181_v15 = vrot.slane %v4028_v23, %v7998_v3  ;;  %vm4402_vm7 = vcmask 720512   ;;  %v10021_v16 = vsub.s32 %v4432_v0, %v11092_v28  ;;  %v4446_v30 = vrot.slane %v9944_v63, %v4393_v44 }
 0x5d6   :  { %vm4409_vm10 = vcmask 786112   ;;  %vm4416_vm15 = vcmask 851712   ;;  %vm4423_vm2 = vcmask 917312   ;;  %v10026_v48 = vsub.s32 %v4425_v8, %v11092_v28 }
 0x5d7   :  { %v4182_v52 = vsel %vm11165_vm3, %v4181_v15, %v4177_v62  ;;  %v4408_v47 = vrot.slane %v9889_v27, %v10008_v22  ;;  %v4456_v27 = vrot.slane %v9968_v35, %v10008_v22  ;;  %vm4430_vm13 = vcmask 982912  }
 0x5d8   :  { %v4187_v21 = vsel %vm11167_vm8, %v4186_v12, %v4182_v52  ;;  %v4291_v51 = vpop.permute.xlu1 %4290  ;;  %v4339_v36 = vpop.permute.xlu0 %4338  ;;  %v4436_v54 = vrot.slane %v9920_v24, %v10021_v16  ;;  %vm4437_vm4 = vcmask 1048512   ;;  %vm4560_vm5 = vcmask 1043968  }
 0x5d9   :  { %v4190_v3 = vsel %vm11168_vm11, %v4187_v21, %v4189_v11  ;;  %v4389_v25 = vrot.slane %v4291_v51, %v4388_v50  ;;  %v4481_v43 = vrot.slane %v4339_v36, %v4388_v50  ;;  %v4422_v21 = vrot.slane %v9898_v34, %v10011_v33 }
 0x5da   :  { %4192 = vst.msk [vmem:[#allocation5] sm:$0xf] %vm11169_vm6, %v4190_v3 }
 0x5db   :  { %v4396_v49 = vsel %vm4395_vm1, %v4394_v41, %v4389_v25 }
 0x5dc   :  { %v4297_v29 = vpop.permute.xlu1 %4296  ;;  %v9977_v7 = vpop.permute.xlu0 %4344 }
 0x5dd   :  { %v4401_v45 = vrot.slane %v4297_v29, %v10000_v13  ;;  %v4490_v60 = vrot.slane %v9977_v7, %v10000_v13 }
 0x5df   :  { %v4403_v23 = vsel %vm4402_vm7, %v4401_v45, %v4396_v49 }
 0x5e0   :  { %v9975_v61 = vpop.permute.xlu1 %4302  ;;  %v9981_v38 = vpop.permute.xlu0 %4365  ;;  %v4410_v3 = vsel %vm4409_vm10, %v4408_v47, %v4403_v23 }
 0x5e1   :  { %v4415_v53 = vrot.slane %v9975_v61, %v10016_v19  ;;  %v4524_v51 = vrot.slane %v9981_v38, %v4393_v44 }
 0x5e3   :  { %v4417_v29 = vsel %vm4416_vm15, %v4415_v53, %v4410_v3 }
 0x5e4   :  { %v9979_v9 = vpop.permute.xlu1 %4308  ;;  %v9983_v46 = vpop.permute.xlu0 %4368 }
 0x5e5   :  { %v4429_v35 = vrot.slane %v9979_v9, %v10026_v48  ;;  %v4529_v17 = vrot.slane %v9983_v46, %v10000_v13 }
 0x5e8   :  { %v4315_v59 = vpop.permute.xlu1 %4314  ;;  %v9987_v40 = vpop.permute.xlu0 %4350 }
 0x5e9   :  { %v4442_v32 = vrot.slane %v4315_v59, %v4388_v50  ;;  %v4500_v59 = vrot.slane %v9987_v40, %v10016_v19 }
 0x5eb   :  { %v4447_v63 = vsel %vm4395_vm1, %v4446_v30, %v4442_v32 }
 0x5ec   :  { %v4321_v31 = vpop.permute.xlu1 %4320  ;;  %v9992_v58 = vpop.permute.xlu0 %4332 }
 0x5ed   :  { %v4451_v18 = vrot.slane %v4321_v31, %v10000_v13  ;;  %v4471_v40 = vrot.slane %v9992_v58, %v10026_v48 }
 0x5ef   :  { %v4452_v4 = vsel %vm4402_vm7, %v4451_v18, %v4447_v63 }
 0x5f0   :  { %v9985_v10 = vpop.permute.xlu1 %4326  ;;  %v10004_v42 = vpop.permute.xlu0 %4374  ;;  %v4457_v36 = vsel %vm4409_vm10, %v4456_v27, %v4452_v4 }
 0x5f1   :  { %v4461_v12 = vrot.slane %v9985_v10, %v10016_v19 }
 0x5f3   :  { %v4462_v34 = vsel %vm4416_vm15, %v4461_v12, %v4457_v36 }
 0x5f4   :  { %v4342_v26 = vpop.permute.xlu1 %4341  ;;  %v4357_v20 = vpop.permute.xlu0 %4356 }
 0x5f5   :  { %v4485_v1 = vrot.slane %v4342_v26, %v4393_v44  ;;  %v4510_v13 = vrot.slane %v4357_v20, %v10026_v48  ;;  %v4539_v44 = vrot.slane %v10004_v42, %v10016_v19 }
 0x5f7   :  { %v4486_v28 = vsel %vm4395_vm1, %v4485_v1, %v4481_v43 }
 0x5f8   :  { %v9989_v56 = vpop.permute.xlu1 %4362  ;;  %v4491_v61 = vsel %vm4402_vm7, %v4490_v60, %v4486_v28  ;;  %v4360_v31 = vpop.permute.xlu0 %4359 }
 0x5f9   :  { %v4520_v52 = vrot.slane %v9989_v56, %v4388_v50  ;;  %v4515_v45 = vrot.slane %v4360_v31, %v10021_v16 }
 0x5fb   :  { %v4525_v26 = vsel %vm4395_vm1, %v4524_v51, %v4520_v52 }
 0x5fc   :  { %v4348_v2 = vpop.permute.xlu1 %4347  ;;  %v4530_v50 = vsel %vm4402_vm7, %v4529_v17, %v4525_v26  ;;  %v4384_v0 = vpop.permute.xlu0 %4383 }
 0x5fd   :  { %v4495_v62 = vrot.slane %v4348_v2, %v10008_v22  ;;  %v4424_v2 = vsel %vm4423_vm2, %v4422_v21, %v4417_v29 }
 0x5fe   :  { %v4431_v5 = vsel %vm4430_vm13, %v4429_v35, %v4424_v2 }
 0x5ff   :  { %v4496_v38 = vsel %vm4409_vm10, %v4495_v62, %v4491_v61 }
 0x600   :  { %v4330_v37 = vpop.permute.xlu1 %4329  ;;  %v4501_v6 = vsel %vm4416_vm15, %v4500_v59, %v4496_v38 }
 0x601   :  { %v4466_v11 = vrot.slane %v4330_v37, %v10011_v33 }
 0x603   :  { %v4467_v56 = vsel %vm4423_vm2, %v4466_v11, %v4462_v34 }
 0x604   :  { %v4372_v55 = vpop.permute.xlu1 %4371  ;;  %v4472_v46 = vsel %vm4430_vm13, %v4471_v40, %v4467_v56 }
 0x605   :  { %v4534_v9 = vrot.slane %v4372_v55, %v10008_v22  ;;  %v4438_v22 = vsel %vm4437_vm4, %v4436_v54, %v4431_v5 }
 0x607   :  { %v4535_v58 = vsel %vm4409_vm10, %v4534_v9, %v4530_v50 }
 0x608   :  { %v4354_v15 = vpop.permute.xlu1 %4353  ;;  %v4540_v55 = vsel %vm4416_vm15, %v4539_v44, %v4535_v58 }
 0x609   :  { %v4505_v10 = vrot.slane %v4354_v15, %v10011_v33 }
 0x60b   :  { %v4506_v39 = vsel %vm4423_vm2, %v4505_v10, %v4501_v6 }
 0x60c   :  { %v4336_v7 = vpop.permute.xlu1 %4335  ;;  %v4511_v25 = vsel %vm4430_vm13, %v4510_v13, %v4506_v39 }
 0x60d   :  { %v4476_v14 = vrot.slane %v4336_v7, %v10021_v16  ;;  %v4516_v19 = vsel %vm4437_vm4, %v4515_v45, %v4511_v25 }
 0x60f   :  { %v4477_v24 = vsel %vm4437_vm4, %v4476_v14, %v4472_v46 }
 0x610   :  { %v4378_v57 = vpop.permute.xlu1 %4377  ;;  %v4556_v32 = vsel %vm11171_vm0, %v4477_v24, %v4438_v22 }
 0x611   :  { %v4544_v37 = vrot.slane %v4378_v57, %v10011_v33  ;;  %v4554_v33 = vrot.slane %v4384_v0, %v10021_v16  ;;  %v4557_v30 = vsel %vm11172_vm12, %v4516_v19, %v4556_v32 }
 0x613   :  { %v4545_v42 = vsel %vm4423_vm2, %v4544_v37, %v4540_v55 }
 0x614   :  { %v4381_v8 = vpop.permute.xlu1 %4380 }
 0x615   :  { %v4549_v41 = vrot.slane %v4381_v8, %v10026_v48 }
 0x617   :  { %v4550_v18 = vsel %vm4430_vm13, %v4549_v41, %v4545_v42 }
 0x618   :  { %v4555_v1 = vsel %vm4437_vm4, %v4554_v33, %v4550_v18 }
 0x619   :  { %v4558_v43 = vsel %vm11173_vm9, %v4555_v1, %v4557_v30 }
 0x61a   :  { %4561 = vst.msk [vmem:[#allocation5] sm:$0xf] %vm4560_vm5, %v4558_v43 }
 0x61b   :  { %4940 = shalt.err (!%p4937_p12)
}
 0x61c   :  { %s4941_s11 = scalar_lea.hbm %s10110_s4, 64 }
 0x61d   :  { %p4942_p13 = scmp.ne.s32.totalorder %s10110_s4, %s4941_s11  ;;  %p4945_p0 = scmp.lt.u32.totalorder %s4941_s11, %s10110_s4 }
 0x61f   :  { %p4947_p1 = pnand %p4945_p0, %p4942_p13 }
 0x621   :  { %4950 = shalt.err (!%p4947_p1)
}
 0x622   :  { %4571 = dma.vmem_to_hbm [thread:$0]  %s4569_s3, 64, %s10110_s4, [#allocation4]  }
 0x623   :  { %4953 = dma.done.wait [#allocation4], 64  }
 0x624   :  { %4954 = vsyncadd [#allocation4], 4294967232 }
 0x625   :  { %4575 = vsyncpa [#allocation3], 1 }
 0x626   :  { %4576 = vsyncpa [#allocation4], 1 }

</bundles_post_ra>
